<compile_context>
chip_gen: v7x
topology: tpu7x:2x2x1
jax: 0.10.0
libtpu: 0.0.40
codegen_flags: <defaults>
</compile_context>

<pallas_src>
import functools

import jax
import jax.numpy as jnp
from jax.experimental import pallas as pl
from jax.experimental.pallas import tpu as pltpu

EPS = 1e-5         # InstanceNorm2d eps   (nnUNet norm_op_kwargs)
NEG_SLOPE = 1e-2   # LeakyReLU slope      (nnUNet nonlin_kwargs)
LANE = 128         # output channels padded to this for lane-dense stores


def _round_up(x, m):
    return (x + m - 1) // m * m


# --------------------------------------------------------------------------
# In-kernel building blocks
# --------------------------------------------------------------------------
def _lrelu(y):
    return jnp.where(y >= 0, y, NEG_SLOPE * y)


def _conv3x3_instnorm(src_ref, w_ref, g_ref, b_ref, mask, *, Wp, lo, L, inv_count):
    """3x3 conv (stride 1, zero pad) + InstanceNorm on a padded flattened slab.

    src_ref : ((H+2)*(W+2), Cin_p) bf16  zero-padded input slab (halo included)
    w_ref   : (9*Cin_p, Cout_p)    bf16  per-tap weight blocks, tap order (dh, dw)
    g_ref   : (1, Cout_p)          f32   instance-norm gamma (zero on pad chans)
    b_ref   : (1, Cout_p)          f32   instance-norm beta  (zero on pad chans)
    mask    : (L, 1)               f32   1.0 on valid output pixels, 0.0 on the
                                         width-halo columns inside the slice
    Returns (L, Cout_p) f32: masked, normalized conv output (no nonlinearity).
    """
    cin = src_ref.shape[-1]
    cout = w_ref.shape[-1]
    acc = jnp.zeros((L, cout), jnp.float32)

    # In-kernel im2col: 9 shifted matmuls, all offsets static.
    t = 0
    for dh in range(3):
        for dw in range(3):
            s = lo + (dh - 1) * Wp + (dw - 1)
            xs = src_ref[pl.ds(s, L), :]                 # (L, Cin_p)  bf16
            wt = w_ref[pl.ds(t * cin, cin), :]           # (Cin_p, Cout_p) bf16
            acc = acc + jnp.dot(xs, wt, preferred_element_type=jnp.float32)
            t += 1
    # NOTE: conv bias intentionally omitted — a per-channel bias added before
    # InstanceNorm is exactly cancelled by the mean subtraction.

    # Masked instance-norm statistics, single pass (f32).
    am = acc * mask                                      # zero the halo columns
    s1 = jnp.sum(am, axis=0, keepdims=True)              # per-channel sum
    s2 = jnp.sum(am * acc, axis=0, keepdims=True)        # per-channel sum x^2
    mean = s1 * inv_count
    var = jnp.maximum(s2 * inv_count - mean * mean, 0.0)  # biased variance
    y = (acc - mean) * jax.lax.rsqrt(var + EPS) * g_ref[...] + b_ref[...]
    return y * mask                                      # keep halo columns at 0


def _store_slab(o_ref, y, *, lo, L):
    """Write y into the interior of the padded output slab; zero the halo."""
    S = o_ref.shape[0]
    C = o_ref.shape[1]
    o_ref[pl.ds(0, lo), :] = jnp.zeros((lo, C), o_ref.dtype)
    o_ref[pl.ds(lo, L), :] = y.astype(o_ref.dtype)
    o_ref[pl.ds(lo + L, S - lo - L), :] = jnp.zeros((S - lo - L, C), o_ref.dtype)


# --------------------------------------------------------------------------
# Kernels (one batch sample per grid step)
# --------------------------------------------------------------------------
def _conv_block_kernel(x_ref, mask_ref, w_ref, g_ref, b_ref, o_ref, *, H, W):
    # ConvDropoutNormNonlin: lrelu(IN(conv(x)))   (dropout p=0 -> disabled)
    Wp = W + 2
    lo = Wp + 1
    L = H * Wp - 2
    inv_count = 1.0 / float(H * W)
    mask = mask_ref[...]
    y = _conv3x3_instnorm(x_ref, w_ref, g_ref, b_ref, mask,
                          Wp=Wp, lo=lo, L=L, inv_count=inv_count)
    _store_slab(o_ref, _lrelu(y), lo=lo, L=L)


def _res_block_kernel(x_ref, mask_ref, w1_ref, g1_ref, b1_ref,
                      w2_ref, g2_ref, b2_ref, o_ref, h_ref, *, H, W):
    # BasicResidualBlock, fully fused (intermediate activation stays in VMEM):
    #   h = lrelu(IN(conv1(x)));  y = IN(conv2(h)) + x;  out = lrelu(y)
    Wp = W + 2
    lo = Wp + 1
    L = H * Wp - 2
    inv_count = 1.0 / float(H * W)
    mask = mask_ref[...]

    h = _lrelu(_conv3x3_instnorm(x_ref, w1_ref, g1_ref, b1_ref, mask,
                                 Wp=Wp, lo=lo, L=L, inv_count=inv_count))
    _store_slab(h_ref, h, lo=lo, L=L)          # padded slab in VMEM scratch

    y = _conv3x3_instnorm(h_ref, w2_ref, g2_ref, b2_ref, mask,
                          Wp=Wp, lo=lo, L=L, inv_count=inv_count)
    y = y + x_ref[pl.ds(lo, L), :].astype(jnp.float32)     # residual add
    _store_slab(o_ref, _lrelu(y), lo=lo, L=L)


# --------------------------------------------------------------------------
# Wrappers: packing + pallas_call plumbing
# --------------------------------------------------------------------------
def _compiler_params():
    return pltpu.CompilerParams(
        dimension_semantics=("parallel",),
        vmem_limit_bytes=64 * 1024 * 1024,
    )


def _valid_mask(H, W):
    Wp = W + 2
    lo = Wp + 1
    L = H * Wp - 2
    pos = lo + jnp.arange(L, dtype=jnp.int32)
    col = pos % Wp
    return ((col >= 1) & (col <= W)).astype(jnp.float32).reshape(L, 1)


def _pack_conv_weight(w_hwio, cin_p, cout_p):
    # (3, 3, Cin, Cout) HWIO  ->  (9*Cin_p, Cout_p) bf16, zero-padded channels
    cin, cout = w_hwio.shape[2], w_hwio.shape[3]
    w = jnp.zeros((3, 3, cin_p, cout_p), jnp.float32)
    w = w.at[:, :, :cin, :cout].set(w_hwio)
    return w.reshape(9 * cin_p, cout_p).astype(jnp.bfloat16)


def _pack_affine(v, cout_p):
    out = jnp.zeros((cout_p,), jnp.float32).at[:v.shape[0]].set(v)
    return out.reshape(1, cout_p)


def _call_conv_block(slab, mask, w, gamma, beta, *, N, H, W, cin_p, cout_p):
    S = (H + 2) * (W + 2)
    kernel = functools.partial(_conv_block_kernel, H=H, W=W)
    return pl.pallas_call(
        kernel,
        out_shape=jax.ShapeDtypeStruct((N, S, cout_p), jnp.bfloat16),
        grid=(N,),
        in_specs=[
            pl.BlockSpec((None, S, cin_p), lambda n: (n, 0, 0)),
            pl.BlockSpec(mask.shape, lambda n: (0, 0)),
            pl.BlockSpec((9 * cin_p, cout_p), lambda n: (0, 0)),
            pl.BlockSpec((1, cout_p), lambda n: (0, 0)),
            pl.BlockSpec((1, cout_p), lambda n: (0, 0)),
        ],
        out_specs=pl.BlockSpec((None, S, cout_p), lambda n: (n, 0, 0)),
        compiler_params=_compiler_params(),
    )(slab, mask, w, gamma, beta)


def _call_res_block(slab, mask, w1, g1, b1, w2, g2, b2, *, N, H, W, c_p):
    S = (H + 2) * (W + 2)
    kernel = functools.partial(_res_block_kernel, H=H, W=W)
    return pl.pallas_call(
        kernel,
        out_shape=jax.ShapeDtypeStruct((N, S, c_p), jnp.bfloat16),
        grid=(N,),
        in_specs=[
            pl.BlockSpec((None, S, c_p), lambda n: (n, 0, 0)),
            pl.BlockSpec(mask.shape, lambda n: (0, 0)),
            pl.BlockSpec((9 * c_p, c_p), lambda n: (0, 0)),
            pl.BlockSpec((1, c_p), lambda n: (0, 0)),
            pl.BlockSpec((1, c_p), lambda n: (0, 0)),
            pl.BlockSpec((9 * c_p, c_p), lambda n: (0, 0)),
            pl.BlockSpec((1, c_p), lambda n: (0, 0)),
            pl.BlockSpec((1, c_p), lambda n: (0, 0)),
        ],
        out_specs=pl.BlockSpec((None, S, c_p), lambda n: (n, 0, 0)),
        scratch_shapes=[pltpu.VMEM((S, c_p), jnp.bfloat16)],
        compiler_params=_compiler_params(),
    )(slab, mask, w1, g1, b1, w2, g2, b2)


# --------------------------------------------------------------------------
# StackedConvLayers3 forward
# --------------------------------------------------------------------------
@jax.jit
def stacked_conv_layers3_forward(x_nchw, params):
    N, Cin, H, W = x_nchw.shape
    Hp, Wp = H + 2, W + 2
    mask = _valid_mask(H, W)

    # NCHW -> zero-padded, spatially-flattened NHWC slab (N, Hp*Wp, Cin), bf16.
    x = jnp.transpose(x_nchw, (0, 2, 3, 1))
    x = jnp.pad(x, ((0, 0), (1, 1), (1, 1), (0, 0)))
    slab = x.reshape(N, Hp * Wp, Cin).astype(jnp.bfloat16)

    # ConvDropoutNormNonlin  (dropout disabled since p=0; conv bias cancelled by IN)
    p0 = params["block0"]
    c0 = p0["w"].shape[-1]
    c_p = _round_up(c0, LANE)
    slab = _call_conv_block(
        slab, mask,
        _pack_conv_weight(p0["w"], Cin, c_p),
        _pack_affine(p0["gamma"], c_p),
        _pack_affine(p0["beta"], c_p),
        N=N, H=H, W=W, cin_p=Cin, cout_p=c_p)

    # BasicResidualBlocks (one fused pallas_call per block)
    c_last = c0
    for bp in params["res_blocks"]:
        c_last = bp["w2"].shape[-1]
        c_p = _round_up(c_last, LANE)
        slab = _call_res_block(
            slab, mask,
            _pack_conv_weight(bp["w1"], c_p, c_p),
            _pack_affine(bp["g1"], c_p), _pack_affine(bp["bt1"], c_p),
            _pack_conv_weight(bp["w2"], c_p, c_p),
            _pack_affine(bp["g2"], c_p), _pack_affine(bp["bt2"], c_p),
            N=N, H=H, W=W, c_p=c_p)

    # Crop halo + channel padding, back to NCHW f32.
    y = slab.reshape(N, Hp, Wp, -1)[:, 1:H + 1, 1:W + 1, :c_last]
    return jnp.transpose(y.astype(jnp.float32), (0, 3, 1, 2))


# --------------------------------------------------------------------------
# Deterministic parameter init (shapes from the module __init__)
# --------------------------------------------------------------------------
def _conv_block_params(key, cin, cout):
    kw, kb, kg, kbt = jax.random.split(key, 4)
    return {
        "w": 0.1 * jax.random.normal(kw, (3, 3, cin, cout), jnp.float32),   # HWIO
        "b": 0.1 * jax.random.normal(kb, (cout,), jnp.float32),  # unused by the
        # kernel: bias before InstanceNorm is a mathematical no-op (kept for the
        # f32 reference to demonstrate the cancellation).
        "gamma": 1.0 + 0.1 * jax.random.normal(kg, (cout,), jnp.float32),
        "beta": 0.1 * jax.random.normal(kbt, (cout,), jnp.float32),
    }


def init_params(key, in_ch, out_chs):
    keys = jax.random.split(key, 1 + 2 * len(out_chs))
    p = {"block0": _conv_block_params(keys[0], in_ch, out_chs[0]),
         "res_blocks": []}
    for i, c in enumerate(out_chs):
        c1 = _conv_block_params(keys[1 + 2 * i], c, c)
        c2 = _conv_block_params(keys[2 + 2 * i], c, c)
        p["res_blocks"].append({
            "w1": c1["w"], "b1": c1["b"], "g1": c1["gamma"], "bt1": c1["beta"],
            "w2": c2["w"], "b2": c2["b"], "g2": c2["gamma"], "bt2": c2["beta"],
        })
    return p


# --------------------------------------------------------------------------
# Pure-JAX f32 reference (for correctness check only; includes the conv bias)
# --------------------------------------------------------------------------
def _ref_conv_in(x, w, b, gamma, beta):
    y = jax.lax.conv_general_dilated(
        x, w, window_strides=(1, 1), padding=((1, 1), (1, 1)),
        dimension_numbers=("NHWC", "HWIO", "NHWC"),
        precision=jax.lax.Precision.HIGHEST) + b
    mean = jnp.mean(y, axis=(1, 2), keepdims=True)
    var = jnp.mean((y - mean) ** 2, axis=(1, 2), keepdims=True)
    return (y - mean) * jax.lax.rsqrt(var + EPS) * gamma + beta


def _ref_lrelu(y):
    return jnp.where(y >= 0, y, NEG_SLOPE * y)


def stacked_ref(x_nchw, params):
    x = jnp.transpose(x_nchw, (0, 2, 3, 1))
    p0 = params["block0"]
    x = _ref_lrelu(_ref_conv_in(x, p0["w"], p0["b"], p0["gamma"], p0["beta"]))
    for bp in params["res_blocks"]:
        r = x
        x = _ref_lrelu(_ref_conv_in(x, bp["w1"], bp["b1"], bp["g1"], bp["bt1"]))
        x = _ref_conv_in(x, bp["w2"], bp["b2"], bp["g2"], bp["bt2"]) + r
        x = _ref_lrelu(x)
    return jnp.transpose(x, (0, 3, 1, 2))


if __name__ == "__main__":
    key = jax.random.PRNGKey(0)
    kx, kp = jax.random.split(key)

    N, Cin, H, W = 2, 4, 16, 16
    out_chs = (8, 8)   # StackedConvLayers3(4, [8, 8], ...): 1 conv block + 2 residual blocks

    x = jax.random.normal(kx, (N, Cin, H, W), jnp.float32)
    params = init_params(kp, Cin, out_chs)

    y = stacked_conv_layers3_forward(x, params)
    y = jax.block_until_ready(y)

    assert y.shape == (N, out_chs[-1], H, W), y.shape
    y_ref = stacked_ref(x, params)
    # Tolerance sized for bf16 activation storage / bf16 MXU operands
    # (f32 accumulation and f32 instance-norm statistics inside the kernel).
    assert jnp.allclose(y, y_ref, atol=3e-2, rtol=3e-2), \
        float(jnp.max(jnp.abs(y - y_ref)))

    print("KERNEL_OK")
</pallas_src>

<mosaic_0001>
module attributes {stable_mosaic.version = 11 : i64} {
  func.func @_conv_block_kernel(%arg0: i32, %arg1: memref<1x324x4xbf16, #tpu.memory_space<vmem>>, %arg2: memref<286x1xf32, #tpu.memory_space<vmem>>, %arg3: memref<36x128xbf16, #tpu.memory_space<vmem>>, %arg4: memref<1x128xf32, #tpu.memory_space<vmem>>, %arg5: memref<1x128xf32, #tpu.memory_space<vmem>>, %arg6: memref<1x324x128xbf16, #tpu.memory_space<vmem>>) attributes {dimension_semantics = [#tpu.dimension_semantics<parallel>], iteration_bounds = array<i64: 2>, scalar_prefetch = 0 : i64, scratch_operands = 0 : i64, tpu.core_type = #tpu.core_type<tc>, window_params = [{transform_indices = @transform_0, window_bounds = array<i64: 1, 324, 4>}, {pipeline_mode = #tpu.pipeline_mode<synchronous>, transform_indices = @transform_1, window_bounds = array<i64: 286, 1>}, {pipeline_mode = #tpu.pipeline_mode<synchronous>, transform_indices = @transform_2, window_bounds = array<i64: 36, 128>}, {pipeline_mode = #tpu.pipeline_mode<synchronous>, transform_indices = @transform_3, window_bounds = array<i64: 1, 128>}, {pipeline_mode = #tpu.pipeline_mode<synchronous>, transform_indices = @transform_4, window_bounds = array<i64: 1, 128>}, {transform_indices = @transform_5, window_bounds = array<i64: 1, 324, 128>}]} {
    %c0 = arith.constant 0 : index
    %c0_0 = arith.constant 0 : index
    %0 = vector.load %arg2[%c0, %c0_0] : memref<286x1xf32, #tpu.memory_space<vmem>>, vector<286x1xf32>
    %cst = arith.constant 0.000000e+00 : f32
    %1 = vector.broadcast %cst : f32 to vector<286x128xf32>
    %c0_1 = arith.constant 0 : index
    %c0_2 = arith.constant 0 : index
    %c0_3 = arith.constant 0 : index
    %2 = vector.load %arg1[%c0_1, %c0_2, %c0_3] : memref<1x324x4xbf16, #tpu.memory_space<vmem>>, vector<1x286x4xbf16>
    %3 = vector.shape_cast %2 : vector<1x286x4xbf16> to vector<286x4xbf16>
    %c0_4 = arith.constant 0 : index
    %c0_5 = arith.constant 0 : index
    %4 = vector.load %arg3[%c0_4, %c0_5] : memref<36x128xbf16, #tpu.memory_space<vmem>>, vector<4x128xbf16>
    %cst_6 = arith.constant dense<0.000000e+00> : vector<286x128xf32>
    %5 = tpu.matmul %3, %4, %cst_6 {dimension_numbers = #tpu.dot_dimension_numbers<[1], [0], [0], [1], [0, 0, 1, 1], [], []>} : vector<286x4xbf16>, vector<4x128xbf16>, vector<286x128xf32> -> vector<286x128xf32>
    %6 = arith.addf %1, %5 : vector<286x128xf32>
    %c0_7 = arith.constant 0 : index
    %c1 = arith.constant 1 : index
    %c0_8 = arith.constant 0 : index
    %7 = vector.load %arg1[%c0_7, %c1, %c0_8] : memref<1x324x4xbf16, #tpu.memory_space<vmem>>, vector<1x286x4xbf16>
    %8 = vector.shape_cast %7 : vector<1x286x4xbf16> to vector<286x4xbf16>
    %c4 = arith.constant 4 : index
    %c0_9 = arith.constant 0 : index
    %9 = vector.load %arg3[%c4, %c0_9] : memref<36x128xbf16, #tpu.memory_space<vmem>>, vector<4x128xbf16>
    %cst_10 = arith.constant dense<0.000000e+00> : vector<286x128xf32>
    %10 = tpu.matmul %8, %9, %cst_10 {dimension_numbers = #tpu.dot_dimension_numbers<[1], [0], [0], [1], [0, 0, 1, 1], [], []>} : vector<286x4xbf16>, vector<4x128xbf16>, vector<286x128xf32> -> vector<286x128xf32>
    %11 = arith.addf %6, %10 : vector<286x128xf32>
    %c0_11 = arith.constant 0 : index
    %c2 = arith.constant 2 : index
    %c0_12 = arith.constant 0 : index
    %12 = vector.load %arg1[%c0_11, %c2, %c0_12] : memref<1x324x4xbf16, #tpu.memory_space<vmem>>, vector<1x286x4xbf16>
    %13 = vector.shape_cast %12 : vector<1x286x4xbf16> to vector<286x4xbf16>
    %c8 = arith.constant 8 : index
    %c0_13 = arith.constant 0 : index
    %14 = vector.load %arg3[%c8, %c0_13] : memref<36x128xbf16, #tpu.memory_space<vmem>>, vector<4x128xbf16>
    %cst_14 = arith.constant dense<0.000000e+00> : vector<286x128xf32>
    %15 = tpu.matmul %13, %14, %cst_14 {dimension_numbers = #tpu.dot_dimension_numbers<[1], [0], [0], [1], [0, 0, 1, 1], [], []>} : vector<286x4xbf16>, vector<4x128xbf16>, vector<286x128xf32> -> vector<286x128xf32>
    %16 = arith.addf %11, %15 : vector<286x128xf32>
    %c0_15 = arith.constant 0 : index
    %c18 = arith.constant 18 : index
    %c0_16 = arith.constant 0 : index
    %17 = vector.load %arg1[%c0_15, %c18, %c0_16] : memref<1x324x4xbf16, #tpu.memory_space<vmem>>, vector<1x286x4xbf16>
    %18 = vector.shape_cast %17 : vector<1x286x4xbf16> to vector<286x4xbf16>
    %c12 = arith.constant 12 : index
    %c0_17 = arith.constant 0 : index
    %19 = vector.load %arg3[%c12, %c0_17] : memref<36x128xbf16, #tpu.memory_space<vmem>>, vector<4x128xbf16>
    %cst_18 = arith.constant dense<0.000000e+00> : vector<286x128xf32>
    %20 = tpu.matmul %18, %19, %cst_18 {dimension_numbers = #tpu.dot_dimension_numbers<[1], [0], [0], [1], [0, 0, 1, 1], [], []>} : vector<286x4xbf16>, vector<4x128xbf16>, vector<286x128xf32> -> vector<286x128xf32>
    %21 = arith.addf %16, %20 : vector<286x128xf32>
    %c0_19 = arith.constant 0 : index
    %c19 = arith.constant 19 : index
    %c0_20 = arith.constant 0 : index
    %22 = vector.load %arg1[%c0_19, %c19, %c0_20] : memref<1x324x4xbf16, #tpu.memory_space<vmem>>, vector<1x286x4xbf16>
    %23 = vector.shape_cast %22 : vector<1x286x4xbf16> to vector<286x4xbf16>
    %c16 = arith.constant 16 : index
    %c0_21 = arith.constant 0 : index
    %24 = vector.load %arg3[%c16, %c0_21] : memref<36x128xbf16, #tpu.memory_space<vmem>>, vector<4x128xbf16>
    %cst_22 = arith.constant dense<0.000000e+00> : vector<286x128xf32>
    %25 = tpu.matmul %23, %24, %cst_22 {dimension_numbers = #tpu.dot_dimension_numbers<[1], [0], [0], [1], [0, 0, 1, 1], [], []>} : vector<286x4xbf16>, vector<4x128xbf16>, vector<286x128xf32> -> vector<286x128xf32>
    %26 = arith.addf %21, %25 : vector<286x128xf32>
    %c0_23 = arith.constant 0 : index
    %c20 = arith.constant 20 : index
    %c0_24 = arith.constant 0 : index
    %27 = vector.load %arg1[%c0_23, %c20, %c0_24] : memref<1x324x4xbf16, #tpu.memory_space<vmem>>, vector<1x286x4xbf16>
    %28 = vector.shape_cast %27 : vector<1x286x4xbf16> to vector<286x4xbf16>
    %c20_25 = arith.constant 20 : index
    %c0_26 = arith.constant 0 : index
    %29 = vector.load %arg3[%c20_25, %c0_26] : memref<36x128xbf16, #tpu.memory_space<vmem>>, vector<4x128xbf16>
    %cst_27 = arith.constant dense<0.000000e+00> : vector<286x128xf32>
    %30 = tpu.matmul %28, %29, %cst_27 {dimension_numbers = #tpu.dot_dimension_numbers<[1], [0], [0], [1], [0, 0, 1, 1], [], []>} : vector<286x4xbf16>, vector<4x128xbf16>, vector<286x128xf32> -> vector<286x128xf32>
    %31 = arith.addf %26, %30 : vector<286x128xf32>
    %c0_28 = arith.constant 0 : index
    %c36 = arith.constant 36 : index
    %c0_29 = arith.constant 0 : index
    %32 = vector.load %arg1[%c0_28, %c36, %c0_29] : memref<1x324x4xbf16, #tpu.memory_space<vmem>>, vector<1x286x4xbf16>
    %33 = vector.shape_cast %32 : vector<1x286x4xbf16> to vector<286x4xbf16>
    %c24 = arith.constant 24 : index
    %c0_30 = arith.constant 0 : index
    %34 = vector.load %arg3[%c24, %c0_30] : memref<36x128xbf16, #tpu.memory_space<vmem>>, vector<4x128xbf16>
    %cst_31 = arith.constant dense<0.000000e+00> : vector<286x128xf32>
    %35 = tpu.matmul %33, %34, %cst_31 {dimension_numbers = #tpu.dot_dimension_numbers<[1], [0], [0], [1], [0, 0, 1, 1], [], []>} : vector<286x4xbf16>, vector<4x128xbf16>, vector<286x128xf32> -> vector<286x128xf32>
    %36 = arith.addf %31, %35 : vector<286x128xf32>
    %c0_32 = arith.constant 0 : index
    %c37 = arith.constant 37 : index
    %c0_33 = arith.constant 0 : index
    %37 = vector.load %arg1[%c0_32, %c37, %c0_33] : memref<1x324x4xbf16, #tpu.memory_space<vmem>>, vector<1x286x4xbf16>
    %38 = vector.shape_cast %37 : vector<1x286x4xbf16> to vector<286x4xbf16>
    %c28 = arith.constant 28 : index
    %c0_34 = arith.constant 0 : index
    %39 = vector.load %arg3[%c28, %c0_34] : memref<36x128xbf16, #tpu.memory_space<vmem>>, vector<4x128xbf16>
    %cst_35 = arith.constant dense<0.000000e+00> : vector<286x128xf32>
    %40 = tpu.matmul %38, %39, %cst_35 {dimension_numbers = #tpu.dot_dimension_numbers<[1], [0], [0], [1], [0, 0, 1, 1], [], []>} : vector<286x4xbf16>, vector<4x128xbf16>, vector<286x128xf32> -> vector<286x128xf32>
    %41 = arith.addf %36, %40 : vector<286x128xf32>
    %c0_36 = arith.constant 0 : index
    %c38 = arith.constant 38 : index
    %c0_37 = arith.constant 0 : index
    %42 = vector.load %arg1[%c0_36, %c38, %c0_37] : memref<1x324x4xbf16, #tpu.memory_space<vmem>>, vector<1x286x4xbf16>
    %43 = vector.shape_cast %42 : vector<1x286x4xbf16> to vector<286x4xbf16>
    %c32 = arith.constant 32 : index
    %c0_38 = arith.constant 0 : index
    %44 = vector.load %arg3[%c32, %c0_38] : memref<36x128xbf16, #tpu.memory_space<vmem>>, vector<4x128xbf16>
    %cst_39 = arith.constant dense<0.000000e+00> : vector<286x128xf32>
    %45 = tpu.matmul %43, %44, %cst_39 {dimension_numbers = #tpu.dot_dimension_numbers<[1], [0], [0], [1], [0, 0, 1, 1], [], []>} : vector<286x4xbf16>, vector<4x128xbf16>, vector<286x128xf32> -> vector<286x128xf32>
    %46 = arith.addf %41, %45 : vector<286x128xf32>
    %47 = vector.broadcast %0 : vector<286x1xf32> to vector<286x128xf32>
    %48 = arith.mulf %46, %47 : vector<286x128xf32>
    %cst_40 = arith.constant dense<0.000000e+00> : vector<128xf32>
    %49 = vector.multi_reduction <add>, %48, %cst_40 [0] : vector<286x128xf32> to vector<128xf32>
    %50 = vector.shape_cast %49 : vector<128xf32> to vector<1x128xf32>
    %51 = arith.mulf %48, %46 : vector<286x128xf32>
    %cst_41 = arith.constant dense<0.000000e+00> : vector<128xf32>
    %52 = vector.multi_reduction <add>, %51, %cst_41 [0] : vector<286x128xf32> to vector<128xf32>
    %53 = vector.shape_cast %52 : vector<128xf32> to vector<1x128xf32>
    %cst_42 = arith.constant 3.906250e-03 : f32
    %54 = vector.broadcast %cst_42 : f32 to vector<1x128xf32>
    %55 = arith.mulf %50, %54 : vector<1x128xf32>
    %cst_43 = arith.constant 3.906250e-03 : f32
    %56 = vector.broadcast %cst_43 : f32 to vector<1x128xf32>
    %57 = arith.mulf %53, %56 : vector<1x128xf32>
    %58 = arith.mulf %55, %55 : vector<1x128xf32>
    %59 = arith.subf %57, %58 : vector<1x128xf32>
    %cst_44 = arith.constant 0.000000e+00 : f32
    %60 = vector.broadcast %cst_44 : f32 to vector<1x128xf32>
    %61 = arith.maximumf %59, %60 : vector<1x128xf32>
    %62 = vector.broadcast %55 : vector<1x128xf32> to vector<286x128xf32>
    %63 = arith.subf %46, %62 : vector<286x128xf32>
    %cst_45 = arith.constant 9.99999974E-6 : f32
    %64 = vector.broadcast %cst_45 : f32 to vector<1x128xf32>
    %65 = arith.addf %61, %64 : vector<1x128xf32>
    %66 = math.rsqrt %65 : vector<1x128xf32>
    %67 = vector.broadcast %66 : vector<1x128xf32> to vector<286x128xf32>
    %68 = arith.mulf %63, %67 : vector<286x128xf32>
    %c0_46 = arith.constant 0 : index
    %c0_47 = arith.constant 0 : index
    %69 = vector.load %arg4[%c0_46, %c0_47] : memref<1x128xf32, #tpu.memory_space<vmem>>, vector<1x128xf32>
    %70 = vector.broadcast %69 : vector<1x128xf32> to vector<286x128xf32>
    %71 = arith.mulf %68, %70 : vector<286x128xf32>
    %c0_48 = arith.constant 0 : index
    %c0_49 = arith.constant 0 : index
    %72 = vector.load %arg5[%c0_48, %c0_49] : memref<1x128xf32, #tpu.memory_space<vmem>>, vector<1x128xf32>
    %73 = vector.broadcast %72 : vector<1x128xf32> to vector<286x128xf32>
    %74 = arith.addf %71, %73 : vector<286x128xf32>
    %75 = vector.broadcast %0 : vector<286x1xf32> to vector<286x128xf32>
    %76 = arith.mulf %74, %75 : vector<286x128xf32>
    %cst_50 = arith.constant 0.000000e+00 : f32
    %77 = vector.broadcast %cst_50 : f32 to vector<286x128xf32>
    %78 = arith.cmpf oge, %76, %77 : vector<286x128xf32>
    %cst_51 = arith.constant 0.00999999977 : f32
    %79 = vector.broadcast %cst_51 : f32 to vector<286x128xf32>
    %80 = arith.mulf %79, %76 : vector<286x128xf32>
    %81 = arith.select %78, %76, %80 : vector<286x128xi1>, vector<286x128xf32>
    %cst_52 = arith.constant 0.000000e+00 : bf16
    %82 = vector.broadcast %cst_52 : bf16 to vector<19x128xbf16>
    %c0_53 = arith.constant 0 : index
    %c0_54 = arith.constant 0 : index
    %c0_55 = arith.constant 0 : index
    %83 = vector.load %arg6[%c0_53, %c0_54, %c0_55] : memref<1x324x128xbf16, #tpu.memory_space<vmem>>, vector<1x19x128xbf16>
    %84 = vector.shape_cast %83 : vector<1x19x128xbf16> to vector<19x128xbf16>
    %85 = vector.shape_cast %82 : vector<19x128xbf16> to vector<1x19x128xbf16>
    tpu.vector_store %arg6[%c0_53, %c0_54, %c0_55], %85 {strides = array<i32>} : memref<1x324x128xbf16, #tpu.memory_space<vmem>>, vector<1x19x128xbf16>,
    %86 = arith.truncf %81 : vector<286x128xf32> to vector<286x128xbf16>
    %c0_56 = arith.constant 0 : index
    %c19_57 = arith.constant 19 : index
    %c0_58 = arith.constant 0 : index
    %87 = vector.load %arg6[%c0_56, %c19_57, %c0_58] : memref<1x324x128xbf16, #tpu.memory_space<vmem>>, vector<1x286x128xbf16>
    %88 = vector.shape_cast %87 : vector<1x286x128xbf16> to vector<286x128xbf16>
    %89 = vector.shape_cast %86 : vector<286x128xbf16> to vector<1x286x128xbf16>
    tpu.vector_store %arg6[%c0_56, %c19_57, %c0_58], %89 {strides = array<i32>} : memref<1x324x128xbf16, #tpu.memory_space<vmem>>, vector<1x286x128xbf16>,
    %cst_59 = arith.constant 0.000000e+00 : bf16
    %90 = vector.broadcast %cst_59 : bf16 to vector<19x128xbf16>
    %c0_60 = arith.constant 0 : index
    %c305 = arith.constant 305 : index
    %c0_61 = arith.constant 0 : index
    %91 = vector.load %arg6[%c0_60, %c305, %c0_61] : memref<1x324x128xbf16, #tpu.memory_space<vmem>>, vector<1x19x128xbf16>
    %92 = vector.shape_cast %91 : vector<1x19x128xbf16> to vector<19x128xbf16>
    %93 = vector.shape_cast %90 : vector<19x128xbf16> to vector<1x19x128xbf16>
    tpu.vector_store %arg6[%c0_60, %c305, %c0_61], %93 {strides = array<i32>} : memref<1x324x128xbf16, #tpu.memory_space<vmem>>, vector<1x19x128xbf16>,
    return
  }
  func.func @transform_0(%arg0: i32) -> (i32, i32, i32) {
    %c0_i32 = arith.constant 0 : i32
    %c0_i32_0 = arith.constant 0 : i32
    %c0_i32_1 = arith.constant 0 : i32
    return %arg0, %c0_i32, %c0_i32_0 : i32, i32, i32
  }
  func.func @transform_1(%arg0: i32) -> (i32, i32) {
    %c0_i32 = arith.constant 0 : i32
    %c0_i32_0 = arith.constant 0 : i32
    %c0_i32_1 = arith.constant 0 : i32
    return %c0_i32, %c0_i32_0 : i32, i32
  }
  func.func @transform_2(%arg0: i32) -> (i32, i32) {
    %c0_i32 = arith.constant 0 : i32
    %c0_i32_0 = arith.constant 0 : i32
    %c0_i32_1 = arith.constant 0 : i32
    return %c0_i32, %c0_i32_0 : i32, i32
  }
  func.func @transform_3(%arg0: i32) -> (i32, i32) {
    %c0_i32 = arith.constant 0 : i32
    %c0_i32_0 = arith.constant 0 : i32
    %c0_i32_1 = arith.constant 0 : i32
    return %c0_i32, %c0_i32_0 : i32, i32
  }
  func.func @transform_4(%arg0: i32) -> (i32, i32) {
    %c0_i32 = arith.constant 0 : i32
    %c0_i32_0 = arith.constant 0 : i32
    %c0_i32_1 = arith.constant 0 : i32
    return %c0_i32, %c0_i32_0 : i32, i32
  }
  func.func @transform_5(%arg0: i32) -> (i32, i32, i32) {
    %c0_i32 = arith.constant 0 : i32
    %c0_i32_0 = arith.constant 0 : i32
    %c0_i32_1 = arith.constant 0 : i32
    return %arg0, %c0_i32, %c0_i32_0 : i32, i32, i32
  }
}

module attributes {stable_mosaic.version = 11 : i64} {
  func.func @_res_block_kernel(%arg0: i32, %arg1: memref<1x324x128xbf16, #tpu.memory_space<vmem>>, %arg2: memref<286x1xf32, #tpu.memory_space<vmem>>, %arg3: memref<1152x128xbf16, #tpu.memory_space<vmem>>, %arg4: memref<1x128xf32, #tpu.memory_space<vmem>>, %arg5: memref<1x128xf32, #tpu.memory_space<vmem>>, %arg6: memref<1152x128xbf16, #tpu.memory_space<vmem>>, %arg7: memref<1x128xf32, #tpu.memory_space<vmem>>, %arg8: memref<1x128xf32, #tpu.memory_space<vmem>>, %arg9: memref<1x324x128xbf16, #tpu.memory_space<vmem>>, %arg10: memref<324x128xbf16, #tpu.memory_space<vmem>>) attributes {dimension_semantics = [#tpu.dimension_semantics<parallel>], iteration_bounds = array<i64: 2>, scalar_prefetch = 0 : i64, scratch_operands = 1 : i64, tpu.core_type = #tpu.core_type<tc>, window_params = [{transform_indices = @transform_0, window_bounds = array<i64: 1, 324, 128>}, {pipeline_mode = #tpu.pipeline_mode<synchronous>, transform_indices = @transform_1, window_bounds = array<i64: 286, 1>}, {pipeline_mode = #tpu.pipeline_mode<synchronous>, transform_indices = @transform_2, window_bounds = array<i64: 1152, 128>}, {pipeline_mode = #tpu.pipeline_mode<synchronous>, transform_indices = @transform_3, window_bounds = array<i64: 1, 128>}, {pipeline_mode = #tpu.pipeline_mode<synchronous>, transform_indices = @transform_4, window_bounds = array<i64: 1, 128>}, {pipeline_mode = #tpu.pipeline_mode<synchronous>, transform_indices = @transform_5, window_bounds = array<i64: 1152, 128>}, {pipeline_mode = #tpu.pipeline_mode<synchronous>, transform_indices = @transform_6, window_bounds = array<i64: 1, 128>}, {pipeline_mode = #tpu.pipeline_mode<synchronous>, transform_indices = @transform_7, window_bounds = array<i64: 1, 128>}, {transform_indices = @transform_8, window_bounds = array<i64: 1, 324, 128>}]} {
    %c0 = arith.constant 0 : index
    %c0_0 = arith.constant 0 : index
    %0 = vector.load %arg2[%c0, %c0_0] : memref<286x1xf32, #tpu.memory_space<vmem>>, vector<286x1xf32>
    %cst = arith.constant 0.000000e+00 : f32
    %1 = vector.broadcast %cst : f32 to vector<286x128xf32>
    %c0_1 = arith.constant 0 : index
    %c0_2 = arith.constant 0 : index
    %c0_3 = arith.constant 0 : index
    %2 = vector.load %arg1[%c0_1, %c0_2, %c0_3] : memref<1x324x128xbf16, #tpu.memory_space<vmem>>, vector<1x286x128xbf16>
    %3 = vector.shape_cast %2 : vector<1x286x128xbf16> to vector<286x128xbf16>
    %c0_4 = arith.constant 0 : index
    %c0_5 = arith.constant 0 : index
    %4 = vector.load %arg3[%c0_4, %c0_5] : memref<1152x128xbf16, #tpu.memory_space<vmem>>, vector<128x128xbf16>
    %cst_6 = arith.constant dense<0.000000e+00> : vector<286x128xf32>
    %5 = tpu.matmul %3, %4, %cst_6 {dimension_numbers = #tpu.dot_dimension_numbers<[1], [0], [0], [1], [0, 0, 1, 1], [], []>} : vector<286x128xbf16>, vector<128x128xbf16>, vector<286x128xf32> -> vector<286x128xf32>
    %6 = arith.addf %1, %5 : vector<286x128xf32>
    %c0_7 = arith.constant 0 : index
    %c1 = arith.constant 1 : index
    %c0_8 = arith.constant 0 : index
    %7 = vector.load %arg1[%c0_7, %c1, %c0_8] : memref<1x324x128xbf16, #tpu.memory_space<vmem>>, vector<1x286x128xbf16>
    %8 = vector.shape_cast %7 : vector<1x286x128xbf16> to vector<286x128xbf16>
    %c128 = arith.constant 128 : index
    %c0_9 = arith.constant 0 : index
    %9 = vector.load %arg3[%c128, %c0_9] : memref<1152x128xbf16, #tpu.memory_space<vmem>>, vector<128x128xbf16>
    %cst_10 = arith.constant dense<0.000000e+00> : vector<286x128xf32>
    %10 = tpu.matmul %8, %9, %cst_10 {dimension_numbers = #tpu.dot_dimension_numbers<[1], [0], [0], [1], [0, 0, 1, 1], [], []>} : vector<286x128xbf16>, vector<128x128xbf16>, vector<286x128xf32> -> vector<286x128xf32>
    %11 = arith.addf %6, %10 : vector<286x128xf32>
    %c0_11 = arith.constant 0 : index
    %c2 = arith.constant 2 : index
    %c0_12 = arith.constant 0 : index
    %12 = vector.load %arg1[%c0_11, %c2, %c0_12] : memref<1x324x128xbf16, #tpu.memory_space<vmem>>, vector<1x286x128xbf16>
    %13 = vector.shape_cast %12 : vector<1x286x128xbf16> to vector<286x128xbf16>
    %c256 = arith.constant 256 : index
    %c0_13 = arith.constant 0 : index
    %14 = vector.load %arg3[%c256, %c0_13] : memref<1152x128xbf16, #tpu.memory_space<vmem>>, vector<128x128xbf16>
    %cst_14 = arith.constant dense<0.000000e+00> : vector<286x128xf32>
    %15 = tpu.matmul %13, %14, %cst_14 {dimension_numbers = #tpu.dot_dimension_numbers<[1], [0], [0], [1], [0, 0, 1, 1], [], []>} : vector<286x128xbf16>, vector<128x128xbf16>, vector<286x128xf32> -> vector<286x128xf32>
    %16 = arith.addf %11, %15 : vector<286x128xf32>
    %c0_15 = arith.constant 0 : index
    %c18 = arith.constant 18 : index
    %c0_16 = arith.constant 0 : index
    %17 = vector.load %arg1[%c0_15, %c18, %c0_16] : memref<1x324x128xbf16, #tpu.memory_space<vmem>>, vector<1x286x128xbf16>
    %18 = vector.shape_cast %17 : vector<1x286x128xbf16> to vector<286x128xbf16>
    %c384 = arith.constant 384 : index
    %c0_17 = arith.constant 0 : index
    %19 = vector.load %arg3[%c384, %c0_17] : memref<1152x128xbf16, #tpu.memory_space<vmem>>, vector<128x128xbf16>
    %cst_18 = arith.constant dense<0.000000e+00> : vector<286x128xf32>
    %20 = tpu.matmul %18, %19, %cst_18 {dimension_numbers = #tpu.dot_dimension_numbers<[1], [0], [0], [1], [0, 0, 1, 1], [], []>} : vector<286x128xbf16>, vector<128x128xbf16>, vector<286x128xf32> -> vector<286x128xf32>
    %21 = arith.addf %16, %20 : vector<286x128xf32>
    %c0_19 = arith.constant 0 : index
    %c19 = arith.constant 19 : index
    %c0_20 = arith.constant 0 : index
    %22 = vector.load %arg1[%c0_19, %c19, %c0_20] : memref<1x324x128xbf16, #tpu.memory_space<vmem>>, vector<1x286x128xbf16>
    %23 = vector.shape_cast %22 : vector<1x286x128xbf16> to vector<286x128xbf16>
    %c512 = arith.constant 512 : index
    %c0_21 = arith.constant 0 : index
    %24 = vector.load %arg3[%c512, %c0_21] : memref<1152x128xbf16, #tpu.memory_space<vmem>>, vector<128x128xbf16>
    %cst_22 = arith.constant dense<0.000000e+00> : vector<286x128xf32>
    %25 = tpu.matmul %23, %24, %cst_22 {dimension_numbers = #tpu.dot_dimension_numbers<[1], [0], [0], [1], [0, 0, 1, 1], [], []>} : vector<286x128xbf16>, vector<128x128xbf16>, vector<286x128xf32> -> vector<286x128xf32>
    %26 = arith.addf %21, %25 : vector<286x128xf32>
    %c0_23 = arith.constant 0 : index
    %c20 = arith.constant 20 : index
    %c0_24 = arith.constant 0 : index
    %27 = vector.load %arg1[%c0_23, %c20, %c0_24] : memref<1x324x128xbf16, #tpu.memory_space<vmem>>, vector<1x286x128xbf16>
    %28 = vector.shape_cast %27 : vector<1x286x128xbf16> to vector<286x128xbf16>
    %c640 = arith.constant 640 : index
    %c0_25 = arith.constant 0 : index
    %29 = vector.load %arg3[%c640, %c0_25] : memref<1152x128xbf16, #tpu.memory_space<vmem>>, vector<128x128xbf16>
    %cst_26 = arith.constant dense<0.000000e+00> : vector<286x128xf32>
    %30 = tpu.matmul %28, %29, %cst_26 {dimension_numbers = #tpu.dot_dimension_numbers<[1], [0], [0], [1], [0, 0, 1, 1], [], []>} : vector<286x128xbf16>, vector<128x128xbf16>, vector<286x128xf32> -> vector<286x128xf32>
    %31 = arith.addf %26, %30 : vector<286x128xf32>
    %c0_27 = arith.constant 0 : index
    %c36 = arith.constant 36 : index
    %c0_28 = arith.constant 0 : index
    %32 = vector.load %arg1[%c0_27, %c36, %c0_28] : memref<1x324x128xbf16, #tpu.memory_space<vmem>>, vector<1x286x128xbf16>
    %33 = vector.shape_cast %32 : vector<1x286x128xbf16> to vector<286x128xbf16>
    %c768 = arith.constant 768 : index
    %c0_29 = arith.constant 0 : index
    %34 = vector.load %arg3[%c768, %c0_29] : memref<1152x128xbf16, #tpu.memory_space<vmem>>, vector<128x128xbf16>
    %cst_30 = arith.constant dense<0.000000e+00> : vector<286x128xf32>
    %35 = tpu.matmul %33, %34, %cst_30 {dimension_numbers = #tpu.dot_dimension_numbers<[1], [0], [0], [1], [0, 0, 1, 1], [], []>} : vector<286x128xbf16>, vector<128x128xbf16>, vector<286x128xf32> -> vector<286x128xf32>
    %36 = arith.addf %31, %35 : vector<286x128xf32>
    %c0_31 = arith.constant 0 : index
    %c37 = arith.constant 37 : index
    %c0_32 = arith.constant 0 : index
    %37 = vector.load %arg1[%c0_31, %c37, %c0_32] : memref<1x324x128xbf16, #tpu.memory_space<vmem>>, vector<1x286x128xbf16>
    %38 = vector.shape_cast %37 : vector<1x286x128xbf16> to vector<286x128xbf16>
    %c896 = arith.constant 896 : index
    %c0_33 = arith.constant 0 : index
    %39 = vector.load %arg3[%c896, %c0_33] : memref<1152x128xbf16, #tpu.memory_space<vmem>>, vector<128x128xbf16>
    %cst_34 = arith.constant dense<0.000000e+00> : vector<286x128xf32>
    %40 = tpu.matmul %38, %39, %cst_34 {dimension_numbers = #tpu.dot_dimension_numbers<[1], [0], [0], [1], [0, 0, 1, 1], [], []>} : vector<286x128xbf16>, vector<128x128xbf16>, vector<286x128xf32> -> vector<286x128xf32>
    %41 = arith.addf %36, %40 : vector<286x128xf32>
    %c0_35 = arith.constant 0 : index
    %c38 = arith.constant 38 : index
    %c0_36 = arith.constant 0 : index
    %42 = vector.load %arg1[%c0_35, %c38, %c0_36] : memref<1x324x128xbf16, #tpu.memory_space<vmem>>, vector<1x286x128xbf16>
    %43 = vector.shape_cast %42 : vector<1x286x128xbf16> to vector<286x128xbf16>
    %c1024 = arith.constant 1024 : index
    %c0_37 = arith.constant 0 : index
    %44 = vector.load %arg3[%c1024, %c0_37] : memref<1152x128xbf16, #tpu.memory_space<vmem>>, vector<128x128xbf16>
    %cst_38 = arith.constant dense<0.000000e+00> : vector<286x128xf32>
    %45 = tpu.matmul %43, %44, %cst_38 {dimension_numbers = #tpu.dot_dimension_numbers<[1], [0], [0], [1], [0, 0, 1, 1], [], []>} : vector<286x128xbf16>, vector<128x128xbf16>, vector<286x128xf32> -> vector<286x128xf32>
    %46 = arith.addf %41, %45 : vector<286x128xf32>
    %47 = vector.broadcast %0 : vector<286x1xf32> to vector<286x128xf32>
    %48 = arith.mulf %46, %47 : vector<286x128xf32>
    %cst_39 = arith.constant dense<0.000000e+00> : vector<128xf32>
    %49 = vector.multi_reduction <add>, %48, %cst_39 [0] : vector<286x128xf32> to vector<128xf32>
    %50 = vector.shape_cast %49 : vector<128xf32> to vector<1x128xf32>
    %51 = arith.mulf %48, %46 : vector<286x128xf32>
    %cst_40 = arith.constant dense<0.000000e+00> : vector<128xf32>
    %52 = vector.multi_reduction <add>, %51, %cst_40 [0] : vector<286x128xf32> to vector<128xf32>
    %53 = vector.shape_cast %52 : vector<128xf32> to vector<1x128xf32>
    %cst_41 = arith.constant 3.906250e-03 : f32
    %54 = vector.broadcast %cst_41 : f32 to vector<1x128xf32>
    %55 = arith.mulf %50, %54 : vector<1x128xf32>
    %cst_42 = arith.constant 3.906250e-03 : f32
    %56 = vector.broadcast %cst_42 : f32 to vector<1x128xf32>
    %57 = arith.mulf %53, %56 : vector<1x128xf32>
    %58 = arith.mulf %55, %55 : vector<1x128xf32>
    %59 = arith.subf %57, %58 : vector<1x128xf32>
    %cst_43 = arith.constant 0.000000e+00 : f32
    %60 = vector.broadcast %cst_43 : f32 to vector<1x128xf32>
    %61 = arith.maximumf %59, %60 : vector<1x128xf32>
    %62 = vector.broadcast %55 : vector<1x128xf32> to vector<286x128xf32>
    %63 = arith.subf %46, %62 : vector<286x128xf32>
    %cst_44 = arith.constant 9.99999974E-6 : f32
    %64 = vector.broadcast %cst_44 : f32 to vector<1x128xf32>
    %65 = arith.addf %61, %64 : vector<1x128xf32>
    %66 = math.rsqrt %65 : vector<1x128xf32>
    %67 = vector.broadcast %66 : vector<1x128xf32> to vector<286x128xf32>
    %68 = arith.mulf %63, %67 : vector<286x128xf32>
    %c0_45 = arith.constant 0 : index
    %c0_46 = arith.constant 0 : index
    %69 = vector.load %arg4[%c0_45, %c0_46] : memref<1x128xf32, #tpu.memory_space<vmem>>, vector<1x128xf32>
    %70 = vector.broadcast %69 : vector<1x128xf32> to vector<286x128xf32>
    %71 = arith.mulf %68, %70 : vector<286x128xf32>
    %c0_47 = arith.constant 0 : index
    %c0_48 = arith.constant 0 : index
    %72 = vector.load %arg5[%c0_47, %c0_48] : memref<1x128xf32, #tpu.memory_space<vmem>>, vector<1x128xf32>
    %73 = vector.broadcast %72 : vector<1x128xf32> to vector<286x128xf32>
    %74 = arith.addf %71, %73 : vector<286x128xf32>
    %75 = vector.broadcast %0 : vector<286x1xf32> to vector<286x128xf32>
    %76 = arith.mulf %74, %75 : vector<286x128xf32>
    %cst_49 = arith.constant 0.000000e+00 : f32
    %77 = vector.broadcast %cst_49 : f32 to vector<286x128xf32>
    %78 = arith.cmpf oge, %76, %77 : vector<286x128xf32>
    %cst_50 = arith.constant 0.00999999977 : f32
    %79 = vector.broadcast %cst_50 : f32 to vector<286x128xf32>
    %80 = arith.mulf %79, %76 : vector<286x128xf32>
    %81 = arith.select %78, %76, %80 : vector<286x128xi1>, vector<286x128xf32>
    %cst_51 = arith.constant 0.000000e+00 : bf16
    %82 = vector.broadcast %cst_51 : bf16 to vector<19x128xbf16>
    %c0_52 = arith.constant 0 : index
    %c0_53 = arith.constant 0 : index
    %83 = vector.load %arg10[%c0_52, %c0_53] : memref<324x128xbf16, #tpu.memory_space<vmem>>, vector<19x128xbf16>
    tpu.vector_store %arg10[%c0_52, %c0_53], %82 {strides = array<i32>} : memref<324x128xbf16, #tpu.memory_space<vmem>>, vector<19x128xbf16>,
    %84 = arith.truncf %81 : vector<286x128xf32> to vector<286x128xbf16>
    %c19_54 = arith.constant 19 : index
    %c0_55 = arith.constant 0 : index
    %85 = vector.load %arg10[%c19_54, %c0_55] : memref<324x128xbf16, #tpu.memory_space<vmem>>, vector<286x128xbf16>
    tpu.vector_store %arg10[%c19_54, %c0_55], %84 {strides = array<i32>} : memref<324x128xbf16, #tpu.memory_space<vmem>>, vector<286x128xbf16>,
    %cst_56 = arith.constant 0.000000e+00 : bf16
    %86 = vector.broadcast %cst_56 : bf16 to vector<19x128xbf16>
    %c305 = arith.constant 305 : index
    %c0_57 = arith.constant 0 : index
    %87 = vector.load %arg10[%c305, %c0_57] : memref<324x128xbf16, #tpu.memory_space<vmem>>, vector<19x128xbf16>
    tpu.vector_store %arg10[%c305, %c0_57], %86 {strides = array<i32>} : memref<324x128xbf16, #tpu.memory_space<vmem>>, vector<19x128xbf16>,
    %cst_58 = arith.constant 0.000000e+00 : f32
    %88 = vector.broadcast %cst_58 : f32 to vector<286x128xf32>
    %c0_59 = arith.constant 0 : index
    %c0_60 = arith.constant 0 : index
    %89 = vector.load %arg10[%c0_59, %c0_60] : memref<324x128xbf16, #tpu.memory_space<vmem>>, vector<286x128xbf16>
    %c0_61 = arith.constant 0 : index
    %c0_62 = arith.constant 0 : index
    %90 = vector.load %arg6[%c0_61, %c0_62] : memref<1152x128xbf16, #tpu.memory_space<vmem>>, vector<128x128xbf16>
    %cst_63 = arith.constant dense<0.000000e+00> : vector<286x128xf32>
    %91 = tpu.matmul %89, %90, %cst_63 {dimension_numbers = #tpu.dot_dimension_numbers<[1], [0], [0], [1], [0, 0, 1, 1], [], []>} : vector<286x128xbf16>, vector<128x128xbf16>, vector<286x128xf32> -> vector<286x128xf32>
    %92 = arith.addf %88, %91 : vector<286x128xf32>
    %c1_64 = arith.constant 1 : index
    %c0_65 = arith.constant 0 : index
    %93 = vector.load %arg10[%c1_64, %c0_65] : memref<324x128xbf16, #tpu.memory_space<vmem>>, vector<286x128xbf16>
    %c128_66 = arith.constant 128 : index
    %c0_67 = arith.constant 0 : index
    %94 = vector.load %arg6[%c128_66, %c0_67] : memref<1152x128xbf16, #tpu.memory_space<vmem>>, vector<128x128xbf16>
    %cst_68 = arith.constant dense<0.000000e+00> : vector<286x128xf32>
    %95 = tpu.matmul %93, %94, %cst_68 {dimension_numbers = #tpu.dot_dimension_numbers<[1], [0], [0], [1], [0, 0, 1, 1], [], []>} : vector<286x128xbf16>, vector<128x128xbf16>, vector<286x128xf32> -> vector<286x128xf32>
    %96 = arith.addf %92, %95 : vector<286x128xf32>
    %c2_69 = arith.constant 2 : index
    %c0_70 = arith.constant 0 : index
    %97 = vector.load %arg10[%c2_69, %c0_70] : memref<324x128xbf16, #tpu.memory_space<vmem>>, vector<286x128xbf16>
    %c256_71 = arith.constant 256 : index
    %c0_72 = arith.constant 0 : index
    %98 = vector.load %arg6[%c256_71, %c0_72] : memref<1152x128xbf16, #tpu.memory_space<vmem>>, vector<128x128xbf16>
    %cst_73 = arith.constant dense<0.000000e+00> : vector<286x128xf32>
    %99 = tpu.matmul %97, %98, %cst_73 {dimension_numbers = #tpu.dot_dimension_numbers<[1], [0], [0], [1], [0, 0, 1, 1], [], []>} : vector<286x128xbf16>, vector<128x128xbf16>, vector<286x128xf32> -> vector<286x128xf32>
    %100 = arith.addf %96, %99 : vector<286x128xf32>
    %c18_74 = arith.constant 18 : index
    %c0_75 = arith.constant 0 : index
    %101 = vector.load %arg10[%c18_74, %c0_75] : memref<324x128xbf16, #tpu.memory_space<vmem>>, vector<286x128xbf16>
    %c384_76 = arith.constant 384 : index
    %c0_77 = arith.constant 0 : index
    %102 = vector.load %arg6[%c384_76, %c0_77] : memref<1152x128xbf16, #tpu.memory_space<vmem>>, vector<128x128xbf16>
    %cst_78 = arith.constant dense<0.000000e+00> : vector<286x128xf32>
    %103 = tpu.matmul %101, %102, %cst_78 {dimension_numbers = #tpu.dot_dimension_numbers<[1], [0], [0], [1], [0, 0, 1, 1], [], []>} : vector<286x128xbf16>, vector<128x128xbf16>, vector<286x128xf32> -> vector<286x128xf32>
    %104 = arith.addf %100, %103 : vector<286x128xf32>
    %c19_79 = arith.constant 19 : index
    %c0_80 = arith.constant 0 : index
    %105 = vector.load %arg10[%c19_79, %c0_80] : memref<324x128xbf16, #tpu.memory_space<vmem>>, vector<286x128xbf16>
    %c512_81 = arith.constant 512 : index
    %c0_82 = arith.constant 0 : index
    %106 = vector.load %arg6[%c512_81, %c0_82] : memref<1152x128xbf16, #tpu.memory_space<vmem>>, vector<128x128xbf16>
    %cst_83 = arith.constant dense<0.000000e+00> : vector<286x128xf32>
    %107 = tpu.matmul %105, %106, %cst_83 {dimension_numbers = #tpu.dot_dimension_numbers<[1], [0], [0], [1], [0, 0, 1, 1], [], []>} : vector<286x128xbf16>, vector<128x128xbf16>, vector<286x128xf32> -> vector<286x128xf32>
    %108 = arith.addf %104, %107 : vector<286x128xf32>
    %c20_84 = arith.constant 20 : index
    %c0_85 = arith.constant 0 : index
    %109 = vector.load %arg10[%c20_84, %c0_85] : memref<324x128xbf16, #tpu.memory_space<vmem>>, vector<286x128xbf16>
    %c640_86 = arith.constant 640 : index
    %c0_87 = arith.constant 0 : index
    %110 = vector.load %arg6[%c640_86, %c0_87] : memref<1152x128xbf16, #tpu.memory_space<vmem>>, vector<128x128xbf16>
    %cst_88 = arith.constant dense<0.000000e+00> : vector<286x128xf32>
    %111 = tpu.matmul %109, %110, %cst_88 {dimension_numbers = #tpu.dot_dimension_numbers<[1], [0], [0], [1], [0, 0, 1, 1], [], []>} : vector<286x128xbf16>, vector<128x128xbf16>, vector<286x128xf32> -> vector<286x128xf32>
    %112 = arith.addf %108, %111 : vector<286x128xf32>
    %c36_89 = arith.constant 36 : index
    %c0_90 = arith.constant 0 : index
    %113 = vector.load %arg10[%c36_89, %c0_90] : memref<324x128xbf16, #tpu.memory_space<vmem>>, vector<286x128xbf16>
    %c768_91 = arith.constant 768 : index
    %c0_92 = arith.constant 0 : index
    %114 = vector.load %arg6[%c768_91, %c0_92] : memref<1152x128xbf16, #tpu.memory_space<vmem>>, vector<128x128xbf16>
    %cst_93 = arith.constant dense<0.000000e+00> : vector<286x128xf32>
    %115 = tpu.matmul %113, %114, %cst_93 {dimension_numbers = #tpu.dot_dimension_numbers<[1], [0], [0], [1], [0, 0, 1, 1], [], []>} : vector<286x128xbf16>, vector<128x128xbf16>, vector<286x128xf32> -> vector<286x128xf32>
    %116 = arith.addf %112, %115 : vector<286x128xf32>
    %c37_94 = arith.constant 37 : index
    %c0_95 = arith.constant 0 : index
    %117 = vector.load %arg10[%c37_94, %c0_95] : memref<324x128xbf16, #tpu.memory_space<vmem>>, vector<286x128xbf16>
    %c896_96 = arith.constant 896 : index
    %c0_97 = arith.constant 0 : index
    %118 = vector.load %arg6[%c896_96, %c0_97] : memref<1152x128xbf16, #tpu.memory_space<vmem>>, vector<128x128xbf16>
    %cst_98 = arith.constant dense<0.000000e+00> : vector<286x128xf32>
    %119 = tpu.matmul %117, %118, %cst_98 {dimension_numbers = #tpu.dot_dimension_numbers<[1], [0], [0], [1], [0, 0, 1, 1], [], []>} : vector<286x128xbf16>, vector<128x128xbf16>, vector<286x128xf32> -> vector<286x128xf32>
    %120 = arith.addf %116, %119 : vector<286x128xf32>
    %c38_99 = arith.constant 38 : index
    %c0_100 = arith.constant 0 : index
    %121 = vector.load %arg10[%c38_99, %c0_100] : memref<324x128xbf16, #tpu.memory_space<vmem>>, vector<286x128xbf16>
    %c1024_101 = arith.constant 1024 : index
    %c0_102 = arith.constant 0 : index
    %122 = vector.load %arg6[%c1024_101, %c0_102] : memref<1152x128xbf16, #tpu.memory_space<vmem>>, vector<128x128xbf16>
    %cst_103 = arith.constant dense<0.000000e+00> : vector<286x128xf32>
    %123 = tpu.matmul %121, %122, %cst_103 {dimension_numbers = #tpu.dot_dimension_numbers<[1], [0], [0], [1], [0, 0, 1, 1], [], []>} : vector<286x128xbf16>, vector<128x128xbf16>, vector<286x128xf32> -> vector<286x128xf32>
    %124 = arith.addf %120, %123 : vector<286x128xf32>
    %125 = vector.broadcast %0 : vector<286x1xf32> to vector<286x128xf32>
    %126 = arith.mulf %124, %125 : vector<286x128xf32>
    %cst_104 = arith.constant dense<0.000000e+00> : vector<128xf32>
    %127 = vector.multi_reduction <add>, %126, %cst_104 [0] : vector<286x128xf32> to vector<128xf32>
    %128 = vector.shape_cast %127 : vector<128xf32> to vector<1x128xf32>
    %129 = arith.mulf %126, %124 : vector<286x128xf32>
    %cst_105 = arith.constant dense<0.000000e+00> : vector<128xf32>
    %130 = vector.multi_reduction <add>, %129, %cst_105 [0] : vector<286x128xf32> to vector<128xf32>
    %131 = vector.shape_cast %130 : vector<128xf32> to vector<1x128xf32>
    %cst_106 = arith.constant 3.906250e-03 : f32
    %132 = vector.broadcast %cst_106 : f32 to vector<1x128xf32>
    %133 = arith.mulf %128, %132 : vector<1x128xf32>
    %cst_107 = arith.constant 3.906250e-03 : f32
    %134 = vector.broadcast %cst_107 : f32 to vector<1x128xf32>
    %135 = arith.mulf %131, %134 : vector<1x128xf32>
    %136 = arith.mulf %133, %133 : vector<1x128xf32>
    %137 = arith.subf %135, %136 : vector<1x128xf32>
    %cst_108 = arith.constant 0.000000e+00 : f32
    %138 = vector.broadcast %cst_108 : f32 to vector<1x128xf32>
    %139 = arith.maximumf %137, %138 : vector<1x128xf32>
    %140 = vector.broadcast %133 : vector<1x128xf32> to vector<286x128xf32>
    %141 = arith.subf %124, %140 : vector<286x128xf32>
    %cst_109 = arith.constant 9.99999974E-6 : f32
    %142 = vector.broadcast %cst_109 : f32 to vector<1x128xf32>
    %143 = arith.addf %139, %142 : vector<1x128xf32>
    %144 = math.rsqrt %143 : vector<1x128xf32>
    %145 = vector.broadcast %144 : vector<1x128xf32> to vector<286x128xf32>
    %146 = arith.mulf %141, %145 : vector<286x128xf32>
    %c0_110 = arith.constant 0 : index
    %c0_111 = arith.constant 0 : index
    %147 = vector.load %arg7[%c0_110, %c0_111] : memref<1x128xf32, #tpu.memory_space<vmem>>, vector<1x128xf32>
    %148 = vector.broadcast %147 : vector<1x128xf32> to vector<286x128xf32>
    %149 = arith.mulf %146, %148 : vector<286x128xf32>
    %c0_112 = arith.constant 0 : index
    %c0_113 = arith.constant 0 : index
    %150 = vector.load %arg8[%c0_112, %c0_113] : memref<1x128xf32, #tpu.memory_space<vmem>>, vector<1x128xf32>
    %151 = vector.broadcast %150 : vector<1x128xf32> to vector<286x128xf32>
    %152 = arith.addf %149, %151 : vector<286x128xf32>
    %153 = vector.broadcast %0 : vector<286x1xf32> to vector<286x128xf32>
    %154 = arith.mulf %152, %153 : vector<286x128xf32>
    %c0_114 = arith.constant 0 : index
    %c19_115 = arith.constant 19 : index
    %c0_116 = arith.constant 0 : index
    %155 = vector.load %arg1[%c0_114, %c19_115, %c0_116] : memref<1x324x128xbf16, #tpu.memory_space<vmem>>, vector<1x286x128xbf16>
    %156 = vector.shape_cast %155 : vector<1x286x128xbf16> to vector<286x128xbf16>
    %157 = arith.extf %156 : vector<286x128xbf16> to vector<286x128xf32>
    %158 = arith.addf %154, %157 : vector<286x128xf32>
    %cst_117 = arith.constant 0.000000e+00 : f32
    %159 = vector.broadcast %cst_117 : f32 to vector<286x128xf32>
    %160 = arith.cmpf oge, %158, %159 : vector<286x128xf32>
    %cst_118 = arith.constant 0.00999999977 : f32
    %161 = vector.broadcast %cst_118 : f32 to vector<286x128xf32>
    %162 = arith.mulf %161, %158 : vector<286x128xf32>
    %163 = arith.select %160, %158, %162 : vector<286x128xi1>, vector<286x128xf32>
    %cst_119 = arith.constant 0.000000e+00 : bf16
    %164 = vector.broadcast %cst_119 : bf16 to vector<19x128xbf16>
    %c0_120 = arith.constant 0 : index
    %c0_121 = arith.constant 0 : index
    %c0_122 = arith.constant 0 : index
    %165 = vector.load %arg9[%c0_120, %c0_121, %c0_122] : memref<1x324x128xbf16, #tpu.memory_space<vmem>>, vector<1x19x128xbf16>
    %166 = vector.shape_cast %165 : vector<1x19x128xbf16> to vector<19x128xbf16>
    %167 = vector.shape_cast %164 : vector<19x128xbf16> to vector<1x19x128xbf16>
    tpu.vector_store %arg9[%c0_120, %c0_121, %c0_122], %167 {strides = array<i32>} : memref<1x324x128xbf16, #tpu.memory_space<vmem>>, vector<1x19x128xbf16>,
    %168 = arith.truncf %163 : vector<286x128xf32> to vector<286x128xbf16>
    %c0_123 = arith.constant 0 : index
    %c19_124 = arith.constant 19 : index
    %c0_125 = arith.constant 0 : index
    %169 = vector.load %arg9[%c0_123, %c19_124, %c0_125] : memref<1x324x128xbf16, #tpu.memory_space<vmem>>, vector<1x286x128xbf16>
    %170 = vector.shape_cast %169 : vector<1x286x128xbf16> to vector<286x128xbf16>
    %171 = vector.shape_cast %168 : vector<286x128xbf16> to vector<1x286x128xbf16>
    tpu.vector_store %arg9[%c0_123, %c19_124, %c0_125], %171 {strides = array<i32>} : memref<1x324x128xbf16, #tpu.memory_space<vmem>>, vector<1x286x128xbf16>,
    %cst_126 = arith.constant 0.000000e+00 : bf16
    %172 = vector.broadcast %cst_126 : bf16 to vector<19x128xbf16>
    %c0_127 = arith.constant 0 : index
    %c305_128 = arith.constant 305 : index
    %c0_129 = arith.constant 0 : index
    %173 = vector.load %arg9[%c0_127, %c305_128, %c0_129] : memref<1x324x128xbf16, #tpu.memory_space<vmem>>, vector<1x19x128xbf16>
    %174 = vector.shape_cast %173 : vector<1x19x128xbf16> to vector<19x128xbf16>
    %175 = vector.shape_cast %172 : vector<19x128xbf16> to vector<1x19x128xbf16>
    tpu.vector_store %arg9[%c0_127, %c305_128, %c0_129], %175 {strides = array<i32>} : memref<1x324x128xbf16, #tpu.memory_space<vmem>>, vector<1x19x128xbf16>,
    return
  }
  func.func @transform_0(%arg0: i32) -> (i32, i32, i32) {
    %c0_i32 = arith.constant 0 : i32
    %c0_i32_0 = arith.constant 0 : i32
    %c0_i32_1 = arith.constant 0 : i32
    return %arg0, %c0_i32, %c0_i32_0 : i32, i32, i32
  }
  func.func @transform_1(%arg0: i32) -> (i32, i32) {
    %c0_i32 = arith.constant 0 : i32
    %c0_i32_0 = arith.constant 0 : i32
    %c0_i32_1 = arith.constant 0 : i32
    return %c0_i32, %c0_i32_0 : i32, i32
  }
  func.func @transform_2(%arg0: i32) -> (i32, i32) {
    %c0_i32 = arith.constant 0 : i32
    %c0_i32_0 = arith.constant 0 : i32
    %c0_i32_1 = arith.constant 0 : i32
    return %c0_i32, %c0_i32_0 : i32, i32
  }
  func.func @transform_3(%arg0: i32) -> (i32, i32) {
    %c0_i32 = arith.constant 0 : i32
    %c0_i32_0 = arith.constant 0 : i32
    %c0_i32_1 = arith.constant 0 : i32
    return %c0_i32, %c0_i32_0 : i32, i32
  }
  func.func @transform_4(%arg0: i32) -> (i32, i32) {
    %c0_i32 = arith.constant 0 : i32
    %c0_i32_0 = arith.constant 0 : i32
    %c0_i32_1 = arith.constant 0 : i32
    return %c0_i32, %c0_i32_0 : i32, i32
  }
  func.func @transform_5(%arg0: i32) -> (i32, i32) {
    %c0_i32 = arith.constant 0 : i32
    %c0_i32_0 = arith.constant 0 : i32
    %c0_i32_1 = arith.constant 0 : i32
    return %c0_i32, %c0_i32_0 : i32, i32
  }
  func.func @transform_6(%arg0: i32) -> (i32, i32) {
    %c0_i32 = arith.constant 0 : i32
    %c0_i32_0 = arith.constant 0 : i32
    %c0_i32_1 = arith.constant 0 : i32
    return %c0_i32, %c0_i32_0 : i32, i32
  }
  func.func @transform_7(%arg0: i32) -> (i32, i32) {
    %c0_i32 = arith.constant 0 : i32
    %c0_i32_0 = arith.constant 0 : i32
    %c0_i32_1 = arith.constant 0 : i32
    return %c0_i32, %c0_i32_0 : i32, i32
  }
  func.func @transform_8(%arg0: i32) -> (i32, i32, i32) {
    %c0_i32 = arith.constant 0 : i32
    %c0_i32_0 = arith.constant 0 : i32
    %c0_i32_1 = arith.constant 0 : i32
    return %arg0, %c0_i32, %c0_i32_0 : i32, i32, i32
  }
}

</mosaic_0001>

<bundles_post_ra>
// kernel: stacked_conv_layers3_forward.3
= control target key start
LH: loop header
LB: loop body
LE: loop exit
PB: predicated region body
PF: predicated region fallthrough
CT: control target
= control target key end

     0   :  { %10 = vsyncpa [#allocation3], 0  ;;  %s8978_s0 = inlined_call_operand.hbm [shape: bf16[2,324,4], index: 0, kind: input, shape index: {}]   ;;  %s8979_s1 = inlined_call_operand.hbm [shape: f32[286,1], index: 1, kind: input, shape index: {}]   ;;  %s8980_s2 = inlined_call_operand.hbm [shape: bf16[36,128], index: 2, kind: input, shape index: {}]   ;;  %s8981_s3 = inlined_call_operand.hbm [shape: f32[1,128], index: 3, kind: input, shape index: {}]   ;;  %s8982_s4 = inlined_call_operand.hbm [shape: f32[1,128], index: 4, kind: input, shape index: {}]   ;;  %s8983_s5 = inlined_call_operand.hbm [shape: bf16[2,324,128], index: 5, kind: output, shape index: {}]  }
   0x1   :  { %12 = vsyncpa [#allocation3 + $0x1], 0 }
   0x2   :  { %13 = vsyncpa [#allocation6], 0 }
   0x3   :  { %14 = vsyncpa [#allocation9], 0 }
   0x4   :  { %15 = vsyncpa [#allocation4], 0 }
   0x5   :  { %17 = vsyncpa [#allocation4 + $0x1], 0  ;;  %s6843_s18 = smov 0   ;;  %s6845_s19 = smov 0  }
   0x6   :  { %s6847_s20 = smov 0   ;;  %s6849_s21 = smov 0  }
   0x7 LB: > { %s6864_s22 = sadd.s32 4294967295, %s6798_s21   ;;  %s5240_s23 = sadd.s32 4294967294, %s6798_s21   ;;  %s6798_s21 = sphi %s6849_s21, %s9136_s21   ;;  %s6794_s20 = sphi %s6847_s20, %s9135_s20   ;;  %s6790_s19 = sphi %s6845_s19, %s9134_s19   ;;  %s6786_s18 = sphi %s6843_s18, %s9133_s18  }
   0x8   : > { %p43_p0 = scmp.ne.s32.totalorder %s6790_s19, %s6786_s18  ;;  %p8984_p1 = scmp.eq.s32.totalorder %s6864_s22, 0 }
   0x9   : > { %p157_p3 = scmp.eq.s32.totalorder %s5240_s23, 1  ;;  %p5241_p5 = scmp.ge.s32.totalorder %s6798_s21, 1 }
   0xa   : > { %p6873_p4 = por %p8984_p1, %p43_p0  ;;  %p164_p7 = scmp.lt.s32.totalorder %s6798_s21, 3 }
   0xb   : > { %p6878_p6 = por %p157_p3, %p43_p0  ;;  %s6800_s27 = smov [#allocation5]  }
   0xc   : > { %s9023_s24 = scalar_select %p6873_p4, 1, 0 }
   0xd   : > { %s9024_s25 = scalar_select %p6878_p6, 1, 0 }
   0xe   : > { %p6883_p8 = pnand %p5241_p5, %p164_p7  ;;  %s176_s28 = sshll.u32 %s6800_s27, 4  ;;  %s6887_s28 = int_to_ptr.vmem [resolvable:$true] %s176_s28 }
   0xf   : > { %s6801_s30 = smov [#allocation8]   ;;  %s6802_s7 = smov [#allocation7]  }
  0x10   : > { %s9025_s26 = scalar_select %p6883_p8, 1, 0 }
  0x11   : > { %p6412_p9 = pneg %p6883_p8  ;;  %s203_s6 = sshll.u32 %s6801_s30, 4  ;;  %s6898_s6 = int_to_ptr.vmem [resolvable:$true] %s203_s6 }
  0x12   : > { %s6900_s8 = sshll.u32 %s6802_s7, 4  ;;  %s6582_s11 = scalar_lea.hbm %s8979_s1, 4608  ;;  %s190_s8 = int_to_ptr.vmem [resolvable:$true] %s6900_s8 }
  0x13   : > { %p6894_p11 = pnand %p6412_p9, %p8984_p1  ;;  %p6583_p12 = scmp.ne.s32.totalorder %s8979_s1, %s6582_s11 }
  0x14   : > { %p6589_p5 = scmp.lt.u32.totalorder %s6582_s11, %s8979_s1 }
  0x15   : > { %p6910_p13 = pneg %p6894_p11 }
  0x17   : > { %p6585_p0 = pnand %p6910_p13, %p6583_p12 }
  0x19   : > { %p6586_p3 = pneg %p6585_p0 }
  0x1b   : > { %p6591_p7 = pnand %p6589_p5, %p6586_p3 }
  0x1d   : > { %6594 = shalt.err (!%p6591_p7)
}
  0x1e   : > { %s6595_s17 = scalar_lea.vmem %s6887_s28, 4608  ;;  %p6603_p2 = scmp.lt.s32.totalorder %s6887_s28, %s6887_s28 }
  0x1f   : > { %p6596_p9 = scmp.ne.s32.totalorder %s6887_s28, %s6595_s17  ;;  %p6604_p6 = scmp.lt.s32.totalorder %s6595_s17, %s6595_s17 }
  0x21   : > { %p6598_p10 = pnand %p6596_p9, %p6910_p13  ;;  %p6605_p12 = por %p6604_p6, %p6603_p2 }
  0x23   : > { %p6599_p1 = pneg %p6598_p10 }
  0x25   : > { %p6606_p0 = pnand %p6605_p12, %p6599_p1 }
  0x27   : > { %6609 = shalt.err (!%p6606_p0)
}
  0x28   : > { %s6803_s23 = smov 128   ;;  %s6804_s27 = smov 8  }
  0x29   : > { %6415 = dma.hbm_to_vmem [thread:$0]  (!%p6894_p11), %s8979_s1, 4608, %s6887_s28, [#allocation6], %s6803_s23, %s6803_s23, %s6804_s27  }
  0x2a   : > { %s6610_s11 = scalar_lea.hbm %s8981_s3, 16 }
  0x2b   : > { %p6611_p2 = scmp.ne.s32.totalorder %s8981_s3, %s6610_s11  ;;  %p6617_p10 = scmp.lt.u32.totalorder %s6610_s11, %s8981_s3 }
  0x2d   : > { %p6613_p1 = pnand %p6611_p2, %p6910_p13 }
  0x2f   : > { %p6614_p6 = pneg %p6613_p1 }
  0x31   : > { %p6619_p3 = pnand %p6617_p10, %p6614_p6 }
  0x33   : > { %6622 = shalt.err (!%p6619_p3)
}
  0x34   : > { %s6623_s28 = scalar_lea.vmem %s6898_s6, 16  ;;  %s6630_s17 = scalar_lea.vmem %s6898_s6, 32 }
  0x35   : > { %p6624_p5 = scmp.ne.s32.totalorder %s6898_s6, %s6623_s28  ;;  %p6631_p12 = scmp.lt.s32.totalorder %s6898_s6, %s6898_s6 }
  0x36   : > { %p6632_p0 = scmp.lt.s32.totalorder %s6630_s17, %s6623_s28 }
  0x37   : > { %p6626_p7 = pnand %p6624_p5, %p6910_p13 }
  0x38   : > { %p6633_p2 = por %p6632_p0, %p6631_p12 }
  0x39   : > { %p6627_p9 = pneg %p6626_p7 }
  0x3b   : > { %p6634_p1 = pnand %p6633_p2, %p6627_p9 }
  0x3d   : > { %6637 = shalt.err (!%p6634_p1)
}
  0x3e   : > { %6421 = dma.hbm_to_vmem [thread:$0]  (!%p6894_p11), %s8981_s3, 16, %s6898_s6, [#allocation9]  }
  0x3f   : > { %s6638_s9 = scalar_lea.hbm %s8980_s2, 320 }
  0x40   : > { %p6639_p6 = scmp.ne.s32.totalorder %s8980_s2, %s6638_s9  ;;  %p6645_p5 = scmp.lt.u32.totalorder %s6638_s9, %s8980_s2 }
  0x42   : > { %p6641_p10 = pnand %p6639_p6, %p6910_p13 }
  0x44   : > { %p6642_p3 = pneg %p6641_p10 }
  0x46   : > { %p6647_p7 = pnand %p6645_p5, %p6642_p3 }
  0x48   : > { %6650 = shalt.err (!%p6647_p7)
}
  0x49   : > { %s6651_s15 = scalar_lea.vmem %s190_s8, 320  ;;  %p6659_p2 = scmp.lt.s32.totalorder %s190_s8, %s190_s8 }
  0x4a   : > { %p6652_p9 = scmp.ne.s32.totalorder %s190_s8, %s6651_s15  ;;  %p6660_p1 = scmp.lt.s32.totalorder %s6651_s15, %s6651_s15 }
  0x4c   : > { %p6654_p12 = pnand %p6652_p9, %p6910_p13  ;;  %p6661_p4 = por %p6660_p1, %p6659_p2 }
  0x4e   : > { %p6655_p0 = pneg %p6654_p12 }
  0x50   : > { %p6662_p8 = pnand %p6661_p4, %p6655_p0 }
  0x52   : > { %6665 = shalt.err (!%p6662_p8)
}
  0x53   : > { %s8987_s6 = smov 64   ;;  %s6806_s16 = smov 4  }
  0x54   : > { %6418 = dma.hbm_to_vmem [thread:$0]  (!%p6894_p11), %s8980_s2, 320, %s190_s8, [#allocation6], %s8987_s6, %s8987_s6, %s6806_s16  }
  0x55   : > { %s6807_s23 = smov [#allocation10]   ;;  %s6666_s9 = scalar_lea.hbm %s8982_s4, 16 }
  0x56   : > { %s214_s27 = sshll.u32 %s6807_s23, 4  ;;  %p6667_p4 = scmp.ne.s32.totalorder %s8982_s4, %s6666_s9  ;;  %s215_s27 = int_to_ptr.vmem [resolvable:$true] %s214_s27 }
  0x57   : > { %p6673_p10 = scmp.lt.u32.totalorder %s6666_s9, %s8982_s4 }
  0x58   : > { %p6669_p8 = pnand %p6667_p4, %p6910_p13 }
  0x5a   : > { %p6670_p6 = pneg %p6669_p8 }
  0x5c   : > { %p6675_p3 = pnand %p6673_p10, %p6670_p6 }
  0x5e   : > { %6678 = shalt.err (!%p6675_p3)
}
  0x5f   : > { %s6679_s8 = scalar_lea.vmem %s215_s27, 16  ;;  %s6686_s15 = scalar_lea.vmem %s215_s27, 32 }
  0x60   : > { %p6680_p5 = scmp.ne.s32.totalorder %s215_s27, %s6679_s8  ;;  %p6687_p12 = scmp.lt.s32.totalorder %s215_s27, %s215_s27 }
  0x61   : > { %p6688_p0 = scmp.lt.s32.totalorder %s6686_s15, %s6679_s8 }
  0x62   : > { %p6682_p7 = pnand %p6680_p5, %p6910_p13 }
  0x63   : > { %p6689_p2 = por %p6688_p0, %p6687_p12 }
  0x64   : > { %p6683_p9 = pneg %p6682_p7 }
  0x66   : > { %p6690_p1 = pnand %p6689_p2, %p6683_p9 }
  0x68   : > { %6693 = shalt.err (!%p6690_p1)
}
  0x69   : > { %6424 = dma.hbm_to_vmem [thread:$0]  (!%p6894_p11), %s8982_s4, 16, %s215_s27, [#allocation9]  }
  0x6a   : > { %s6996_s14 = sadd.s32 1, %s6798_s21   ;;  %s30_s23 = sadd.s32 1, %s6794_s20 }
  0x6b   : > { %s27_s29 = ssub.s32 %s6798_s21, %s6996_s14  ;;  %p37_p13 = scmp.ne.s32.totalorder %s6794_s20, %s6790_s19 }
  0x6c   : > { %p28_p4 = scmp.eq.s32.totalorder %s27_s29, 0  ;;  %p38_p8 = scmp.eq.s32.totalorder %s6798_s21, 0 }
  0x6d   : > { %p9028_p6 = scmp.eq.s32.totalorder %s6864_s22, 1  ;;  %p6437_p3 = scmp.lt.s32.totalorder %s6798_s21, 2 }
  0x6e   : > { %s7012_s7 = scalar_select %p28_p4, %s6794_s20, %s30_s23  }
  0x6f   : > { %p7006_p10 = por %p9028_p6, %p37_p13  ;;  %p39_p5 = por %p38_p8, %p37_p13 }
  0x70   : > { %s225_s9 = sand.u32 1, %s6794_s20   ;;  %s6389_s27 = smul.u32 2624, %s6798_s21 }
  0x71   : > { %s6388_s10 = smul.u32 164, %s225_s9  ;;  %p7016_p11 = pnand %p6437_p3, %p39_p5 }
  0x72   : > { %s7023_s8 = scalar_lea.hbm %s8978_s0, %s6389_s27  ;;  %s7027_s17 = scalar_lea.sflag [#allocation3], %s225_s9 }
  0x73   : > { %s229_s15 = scalar_lea.vmem [#allocation2], %s6388_s10  ;;  %s6694_s23 = scalar_lea.hbm %s7023_s8, 2624 }
  0x74   : > { %s236_s28 = sshll.u32 %s229_s15, 4  ;;  %p6695_p7 = scmp.ne.s32.totalorder %s7023_s8, %s6694_s23  ;;  %s7025_s28 = int_to_ptr.vmem [resolvable:$true] %s236_s28 }
  0x75   : > { %p6696_p9 = pneg %p7016_p11  ;;  %s6699_s12 = scalar_lea.hbm %s8978_s0, 5248 }
  0x76   : > { %p6700_p2 = scmp.lt.u32.totalorder %s7023_s8, %s8978_s0  ;;  %p6701_p1 = scmp.lt.u32.totalorder %s6699_s12, %s6694_s23 }
  0x77   : > { %p6697_p12 = pnand %p6696_p9, %p6695_p7  ;;  %p6703_p4 = scmp.lt.u32.totalorder %s6694_s23, %s7023_s8 }
  0x78   : > { %p6702_p13 = por %p6701_p1, %p6700_p2 }
  0x79   : > { %p6698_p0 = pneg %p6697_p12 }
  0x7a   : > { %p6704_p8 = por %p6703_p4, %p6702_p13 }
  0x7c   : > { %p6705_p6 = pnand %p6704_p8, %p6698_p0 }
  0x7e   : > { %6708 = shalt.err (!%p6705_p6)
}
  0x7f   : > { %s6709_s9 = scalar_lea.vmem %s7025_s28, 2624  ;;  %s6808_s10 = smov [#allocation2]  }
  0x80   : > { %p6710_p3 = scmp.ne.s32.totalorder %s7025_s28, %s6709_s9  ;;  %s6714_s15 = sshll.u32 %s6808_s10, 4  ;;  %s6715_s15 = int_to_ptr.vmem [resolvable:$false] %s6714_s15 }
  0x81   : > { %s6716_s6 = scalar_lea.vmem %s6715_s15, 5248  ;;  %p6717_p12 = scmp.lt.s32.totalorder %s7025_s28, %s6715_s15 }
  0x82   : > { %p6712_p5 = pnand %p6710_p3, %p6696_p9  ;;  %p6718_p2 = scmp.lt.s32.totalorder %s6716_s6, %s6709_s9 }
  0x84   : > { %p6713_p7 = pneg %p6712_p5  ;;  %p6719_p1 = por %p6718_p2, %p6717_p12 }
  0x86   : > { %p6720_p13 = pnand %p6719_p1, %p6713_p7 }
  0x88   : > { %6723 = shalt.err (!%p6720_p13)
}
  0x89   : > { %s9031_s23 = smov 64   ;;  %p9032_p9 = scmp.ne.s32.totalorder %s9025_s26, 0 }
  0x8a   : > { %6428 = dma.hbm_to_vmem [thread:$0]  (!%p7016_p11), %s7023_s8, 2624, %s7025_s28, %s7027_s17, %s9031_s23, %s9031_s23, %s6806_s16  }
  0x8b   : > { %248 = sbr.rel (%p9032_p9) target bundleno = 914 (0x392), region = 40 }
  0x92   : > { %s7061_s29 = sand.u32 1, %s6790_s19   ;;  %p9033_p0 = scmp.ne.s32.totalorder %s9023_s24, 0 }
  0x93   : > { %s6390_s27 = smul.u32 164, %s7061_s29  ;;  %s251_s12 = scalar_lea.sflag [#allocation3], %s7061_s29 }
  0x95   : > { %s7067_s11 = scalar_lea.vmem [#allocation2], %s6390_s27 }
  0x96   : > { %6769 = dma.done.wait (%p9033_p0), %s251_s12, 2624  }
  0x97   : > { %6771 = vsyncadd (%p9033_p0), %s251_s12, 4294964672  ;;  %p9034_p11 = scmp.eq.s32.totalorder %s6864_s22, 0 }
  0x99   : > { %6773 = dma.done.wait (%p9034_p11), [#allocation6], 4928   ;;  %p9035_p4 = pmov %p9034_p11 }
  0x9b   : > { %6775 = vsyncadd (%p9035_p4), [#allocation6], 4294962368  ;;  %p9036_p8 = pmov %p9035_p4 }
  0x9c   : > { %p9037_p6 = pmov %p9035_p4 }
  0x9d   : > { %6777 = dma.done.wait (%p9036_p8), [#allocation9], 32  }
  0x9e   : > { %6779 = vsyncadd (%p9037_p6), [#allocation9], 4294967264  ;;  %vm666_vm0 = vcmask 1041408   ;;  %vm463_vm1 = vsmask.f32 7424  ;;  %v7094_v6 = vld [vmem:[%s7067_s11 + $0x8] sm:$0xff]  }
  0x9f   : > { %v1851_v0 = vld [vmem:[#allocation7 + $0x8] sm:$0x3]  ;;  %v334_v1 = vld [vmem:[%s7067_s11] sm:$0xf]  ;;  %v7087_v4 = vld [vmem:[%s7067_s11 + $0x4] sm:$0xf] }
  0xa0   : > { %6382 = vmatprep.subr.msk.bf16.mxu0 %vm666_vm0, %v1851_v0  ;;  %v6488_v2 = vld [vmem:[#allocation7] ss:$0 sps:$4 sm:$0xcc]   ;;  %v7084_v3 = vsel %vm666_vm0, %v1851_v0, 0  ;;  %v7091_v5 = vcombine.low %v334_v1, %v7087_v4  ;;  %vm611_vm2 = vcmask 31744   ;;  %v7101_v10 = vld [vmem:[%s7067_s11 + $0x10] sm:$0xff]  }
  0xa1   : > { %5899 = vmatpush3.bf16.msra.mxu0 %v7084_v3  ;;  %vm1945_vm3 = vsmask.f32 6400  ;;  %v610_v7 = vrot.slane %v6488_v2, 2  ;;  %v1814_v8 = vld [vmem:[%s7067_s11 + $0x8] sm:$0xe]  ;;  %v472_v13 = vshll.u32 %v7094_v6, 16 }
  0xa2   : > { %v7098_v9 = vld [vmem:[%s7067_s11 + $0xc] sm:$0xf]  ;;  %v465_v11 = vshrl.u32 %v7091_v5, 16  ;;  %v467_v12 = vshll.u32 %v7091_v5, 16  ;;  %v476_v14 = vshrl.u32 %v7094_v6, 16  ;;  %v1955_v17 = vshrl.u32 %v7101_v10, 16 }
  0xa3   : > { %6378 = vmatprep.subr.msk.bf16.mxu1 %vm666_vm0, %v610_v7  ;;  %v668_v15 = vsel %vm666_vm0, %v610_v7, 0  ;;  %v5365_v16 = vcombine.low %v1814_v8, %v7098_v9  ;;  %v1958_v18 = vshll.u32 %v7101_v10, 16  ;;  %v7113_v19 = vld [vmem:[%s7067_s11 + $0x10] sm:$0xff]   ;;  %v474_v21 = vrot.slane %v472_v13, 1  ;;  %v7117_v33 = vld [vmem:[%s7067_s11 + $0x18] sm:$0xff]   ;;  %v7128_v43 = vld [vmem:[%s7067_s11 + $0x20] sm:$0xff]  }
  0xa4   : > { %5747 = vmatpush3.bf16.msra.mxu1 %v668_v15  ;;  %v469_v20 = vrot.slane %v467_v12, 1  ;;  %v1957_v24 = vrot.slane %v1955_v17, 1  ;;  %v6493_v28 = vld [vmem:[#allocation7 + $0x8] ss:$0 sps:$4 sm:$0xcc]   ;;  %v480_v29 = vshll.u32 %v7113_v19, 16 }
  0xa5   : > { %v1947_v22 = vshrl.u32 %v5365_v16, 16  ;;  %v1950_v23 = vshll.u32 %v5365_v16, 16  ;;  %v1960_v25 = vrot.slane %v1958_v18, 2  ;;  %v478_v27 = vor.u32 %v476_v14, %v474_v21  ;;  %v7120_v34 = vld [vmem:[%s7067_s11 + $0x18] sm:$0xff]   ;;  %v370_v42 = vld [vmem:[#allocation7] sm:$0x3] }
  0xa6   : > { %v470_v26 = vor.u32 %v469_v20, %v465_v11  ;;  %v2428_v36 = vrot.slane %v6493_v28, 2  ;;  %v482_v37 = vrot.slane %v480_v29, 1  ;;  %v1964_v39 = vshrl.u32 %v7117_v33, 16  ;;  %6379 = vmatprep.subr.msk.bf16.mxu1 %vm666_vm0, %v370_v42  ;;  %v7141_v54 = vld [vmem:[%s7067_s11 + $0x20] sm:$0xff]   ;;  %v7145_v56 = vld [vmem:[%s7067_s11 + $0x28] sm:$0xff]   ;;  %v7158_v8 = vld [vmem:[%s7067_s11 + $0x30] sm:$0xff]  }
  0xa7   : > { %v1949_v30 = vrot.slane %v1947_v22, 1  ;;  %v1952_v31 = vrot.slane %v1950_v23, 2  ;;  %v1961_v32 = vor.u32 %v1960_v25, %v1957_v24  ;;  %v1967_v40 = vshll.u32 %v7117_v33, 16  ;;  %v7149_v59 = vld [vmem:[%s7067_s11 + $0x28] sm:$0xff]   ;;  %v7167_v22 = vld [vmem:[%s7067_s11 + $0x30] sm:$0xff]   ;;  %v7173_v28 = vld [vmem:[%s7067_s11 + $0x38] sm:$0xff]  }
  0xa8   : > { %v475_v35 = vsel %vm463_vm1, %v470_v26, %v474_v21  ;;  %v484_v41 = vshrl.u32 %v7113_v19, 16  ;;  %6384 = vmatprep.subr.msk.bf16.mxu0 %vm666_vm0, %v2428_v36  ;;  %v483_v44 = vsel %vm463_vm1, %v478_v27, %v482_v37  ;;  %v2484_v45 = vsel %vm666_vm0, %v2428_v36, 0  ;;  %s7507_s24 = scalar_lea.vmem [#allocation11], %s6390_s27  ;;  %s6391_s26 = smul.u32 2624, %s6864_s22 }
  0xa9   : > { %5748 = vmatprep.mubr.msk.bf16.mxu1 %vm611_vm2, %v475_v35  ;;  %v1953_v38 = vor.u32 %v1952_v31, %v1949_v30  ;;  %v488_v46 = vshll.u32 %v7120_v34, 16  ;;  %v1966_v48 = vrot.slane %v1964_v39, 1  ;;  %v1969_v49 = vrot.slane %v1967_v40, 2  ;;  %s5129_s16 = sshll.u32 %s7507_s24, 4  ;;  %s5116_s13 = scalar_lea.sflag [#allocation4], %s7061_s29  ;;  %s8932_s16 = int_to_ptr.vmem [resolvable:$true] %s5129_s16 }
  0xaa   : > { %5749 = vmatmul.mubr.msk.bf16.vlgmr.msra.gmra.mrb[0].mxu1 %vm611_vm2, %v483_v44  ;;  %v486_v50 = vor.u32 %v484_v41, %v482_v37  ;;  %v1973_v52 = vshrl.u32 %v7128_v43, 16  ;;  %v1976_v53 = vshll.u32 %v7128_v43, 16  ;;  %v492_v55 = vshrl.u32 %v7120_v34, 16  ;;  %v7188_v44 = vld [vmem:[%s7067_s11 + $0x40] sm:$0xff]   ;;  %s8930_s17 = scalar_lea.hbm %s8983_s5, %s6391_s26  ;;  %s6724_s9 = scalar_lea.vmem %s8932_s16, 2624 }
  0xab   : > { %v1962_v47 = vsel %vm1945_vm3, %v1953_v38, %v1961_v32  ;;  %v490_v51 = vrot.slane %v488_v46, 1  ;;  %v1970_v57 = vor.u32 %v1969_v49, %v1966_v48  ;;  %v888_v58 = vsel %vm666_vm0, %v370_v42, 0  ;;  %v7195_v49 = vld [vmem:[%s7067_s11 + $0x48] sm:$0xff]   ;;  %p6725_p3 = scmp.ne.s32.totalorder %s8932_s16, %s6724_s9  ;;  %s6810_s22 = smov [#allocation11]  }
  0xac   : > { %5900 = vmatprep.mubr.msk.bf16.mxu0 %vm611_vm2, %v1962_v47  ;;  %v1975_v61 = vrot.slane %v1973_v52, 1  ;;  %v1978_v62 = vrot.slane %v1976_v53, 2  ;;  %5785 = vmatpush3.bf16.msra.mxu1 %v888_v58  ;;  %v496_v1 = vshll.u32 %v7141_v54, 16  ;;  %v1982_v2 = vshrl.u32 %v7145_v56, 16  ;;  %s6728_s10 = sshll.u32 %s6810_s22, 4  ;;  %s6729_s10 = int_to_ptr.vmem [resolvable:$false] %s6728_s10 }
  0xad   : > { %v491_v60 = vsel %vm463_vm1, %v486_v50, %v490_v51  ;;  %v494_v63 = vor.u32 %v492_v55, %v490_v51  ;;  %v1971_v0 = vsel %vm1945_vm3, %v1961_v32, %v1970_v57  ;;  %v1985_v7 = vshll.u32 %v7145_v56, 16  ;;  %v7178_v32 = vld [vmem:[%s7067_s11 + $0x38] sm:$0xff]   ;;  %v7201_v55 = vld [vmem:[%s7067_s11 + $0x48] sm:$0xff]   ;;  %p6726_p5 = pnand %p6725_p3, %p7006_p10  ;;  %s6730_s15 = scalar_lea.vmem %s6729_s10, 5248 }
  0xae   : > { %5752 = vmatprep.mubr.msk.bf16.mxu1 %vm611_vm2, %v491_v60  ;;  %5901 = vmatmul.mubr.msk.bf16.vlgmr.msra.gmra.mrb[0].mxu0 %vm611_vm2, %v1971_v0  ;;  %v1979_v11 = vor.u32 %v1978_v62, %v1975_v61  ;;  %v500_v12 = vshrl.u32 %v7141_v54, 16  ;;  %v504_v13 = vshll.u32 %v7149_v59, 16  ;;  %v498_v14 = vrot.slane %v496_v1, 1  ;;  %v7208_v62 = vld [vmem:[%s7067_s11 + $0x50] sm:$0xff]   ;;  %p6731_p12 = scmp.lt.s32.totalorder %s8932_s16, %s6729_s10  ;;  %p6732_p2 = scmp.lt.s32.totalorder %s6730_s15, %s6724_s9 }
  0xaf   : > { %5937 = vmatpush3.bf16.msra.mxu0 %v2484_v45  ;;  %v1984_v15 = vrot.slane %v1982_v2, 1  ;;  %v1987_v16 = vrot.slane %v1985_v7, 2  ;;  %v1991_v17 = vshrl.u32 %v7158_v8, 16  ;;  %v1994_v21 = vshll.u32 %v7158_v8, 16  ;;  %v7191_v45 = vld [vmem:[%s7067_s11 + $0x40] sm:$0xff]   ;;  %p6727_p7 = pneg %p6726_p5 }
  0xb0   : > { %v1980_v18 = vsel %vm1945_vm3, %v1970_v57, %v1979_v11  ;;  %v506_v20 = vrot.slane %v504_v13, 1  ;;  %v508_v23 = vshrl.u32 %v7149_v59, 16  ;;  %v499_v24 = vsel %vm463_vm1, %v494_v63, %v498_v14  ;;  %v7214_v13 = vld [vmem:[%s7067_s11 + $0x50] sm:$0xff]   ;;  %p6733_p1 = por %p6732_p2, %p6731_p12 }
  0xb1   : > { %5904 = vmatprep.mubr.msk.bf16.mxu0 %vm611_vm2, %v1980_v18  ;;  %v1988_v25 = vor.u32 %v1987_v16, %v1984_v15  ;;  %v502_v26 = vor.u32 %v500_v12, %v498_v14  ;;  %v1993_v27 = vrot.slane %v1991_v17, 1  ;;  %v1996_v29 = vrot.slane %v1994_v21, 2 }
  0xb2   : > { %5753 = vmatmul.mubr.msk.bf16.gmra.mrb[4].mxu1 %vm611_vm2, %v499_v24  ;;  %v510_v30 = vor.u32 %v508_v23, %v506_v20  ;;  %v512_v31 = vshll.u32 %v7167_v22, 16  ;;  %v516_v35 = vshrl.u32 %v7167_v22, 16  ;;  %v2000_v38 = vshrl.u32 %v7173_v28, 16  ;;  %p6734_p13 = pnand %p6733_p1, %p6727_p7 }
  0xb3   : > { %v1989_v36 = vsel %vm1945_vm3, %v1979_v11, %v1988_v25  ;;  %v507_v37 = vsel %vm463_vm1, %v502_v26, %v506_v20  ;;  %v2003_v39 = vshll.u32 %v7173_v28, 16  ;;  %v1997_v40 = vor.u32 %v1996_v29, %v1993_v27  ;;  %v7224_v26 = vld [vmem:[%s7067_s11 + $0x58] sm:$0xff]  }
  0xb4   : > { %5756 = vmatprep.mubr.msk.bf16.mxu1 %vm611_vm2, %v507_v37  ;;  %v514_v41 = vrot.slane %v512_v31, 1  ;;  %v520_v42 = vshll.u32 %v7178_v32, 16  ;;  %v2002_v46 = vrot.slane %v2000_v38, 1  ;;  %v524_v48 = vshrl.u32 %v7178_v32, 16  ;;  %v7227_v27 = vld [vmem:[%s7067_s11 + $0x58] sm:$0xff]  }
  0xb5   : > { %v2005_v47 = vrot.slane %v2003_v39, 2  ;;  %v1998_v50 = vsel %vm1945_vm3, %v1988_v25, %v1997_v40  ;;  %v2009_v58 = vshrl.u32 %v7188_v44, 16  ;;  %v2012_v60 = vshll.u32 %v7188_v44, 16 }
  0xb6   : > { %5905 = vmatmul.mubr.msk.bf16.gmra.mrb[4].mxu0 %vm611_vm2, %v1989_v36  ;;  %v515_v51 = vsel %vm463_vm1, %v510_v30, %v514_v41  ;;  %v518_v52 = vor.u32 %v516_v35, %v514_v41  ;;  %v522_v53 = vrot.slane %v520_v42, 1  ;;  %v528_v61 = vshll.u32 %v7191_v45, 16  ;;  %v2736_v41 = vld [vmem:[#allocation7 + $0xc] sm:$0x3] }
  0xb7   : > { %5908 = vmatprep.mubr.msk.bf16.mxu0 %vm611_vm2, %v1998_v50  ;;  %v2006_v57 = vor.u32 %v2005_v47, %v2002_v46  ;;  %v2018_v0 = vshrl.u32 %v7195_v49, 16  ;;  %v2021_v1 = vshll.u32 %v7195_v49, 16  ;;  %v2011_v2 = vrot.slane %v2009_v58, 1  ;;  %6385 = vmatprep.subr.msk.bf16.mxu0 %vm666_vm0, %v2736_v41  ;;  %v2382_v50 = vld [vmem:[%s7067_s11 + $0x8] sm:$0xc] }
  0xb8   : > { %v523_v63 = vsel %vm463_vm1, %v518_v52, %v522_v53  ;;  %v2014_v7 = vrot.slane %v2012_v60, 2  ;;  %v526_v11 = vor.u32 %v524_v48, %v522_v53  ;;  %v530_v12 = vrot.slane %v528_v61, 1  ;;  %v7244_v52 = vld [vmem:[%s7067_s11 + $0x60] sm:$0xff]  }
  0xb9   : > { %v2020_v14 = vrot.slane %v2018_v0, 1  ;;  %v2023_v15 = vrot.slane %v2021_v1, 2  ;;  %v532_v16 = vshrl.u32 %v7191_v45, 16  ;;  %v536_v17 = vshll.u32 %v7201_v55, 16 }
  0xba   : > { %5757 = vmatmul.mubr.msk.bf16.gmra.mrb[8].mxu1 %vm611_vm2, %v515_v51  ;;  %v2007_v18 = vsel %vm1945_vm3, %v1997_v40, %v2006_v57  ;;  %v2015_v20 = vor.u32 %v2014_v7, %v2011_v2  ;;  %v2027_v21 = vshrl.u32 %v7208_v62, 16  ;;  %v2030_v23 = vshll.u32 %v7208_v62, 16  ;;  %v7251_v2 = vld [vmem:[%s7067_s11 + $0x68] sm:$0xff]  }
  0xbb   : > { %5760 = vmatprep.mubr.msk.bf16.mxu1 %vm611_vm2, %v523_v63  ;;  %v534_v24 = vor.u32 %v532_v16, %v530_v12  ;;  %v538_v25 = vrot.slane %v536_v17, 1  ;;  %v531_v35 = vsel %vm463_vm1, %v526_v11, %v530_v12  ;;  %v544_v36 = vshll.u32 %v7214_v13, 16 }
  0xbc   : > { %v2016_v29 = vsel %vm1945_vm3, %v2006_v57, %v2015_v20  ;;  %v2029_v30 = vrot.slane %v2027_v21, 1  ;;  %v2032_v31 = vrot.slane %v2030_v23, 2  ;;  %v2024_v37 = vor.u32 %v2023_v15, %v2020_v14 }
  0xbd   : > { %v540_v38 = vshrl.u32 %v7201_v55, 16  ;;  %v2036_v39 = vshrl.u32 %v7224_v26, 16  ;;  %v2039_v40 = vshll.u32 %v7224_v26, 16  ;;  %v539_v42 = vsel %vm463_vm1, %v534_v24, %v538_v25 }
  0xbe   : > { %5909 = vmatmul.mubr.msk.bf16.gmra.mrb[8].mxu0 %vm611_vm2, %v2007_v18  ;;  %v2033_v46 = vor.u32 %v2032_v31, %v2029_v30  ;;  %v548_v47 = vshrl.u32 %v7214_v13, 16  ;;  %v552_v48 = vshll.u32 %v7227_v27, 16  ;;  %v546_v51 = vrot.slane %v544_v36, 1  ;;  %v7277_v31 = vld [vmem:[%s7067_s11 + $0x78] sm:$0xff]  }
  0xbf   : > { %5912 = vmatprep.mubr.msk.bf16.mxu0 %vm611_vm2, %v2016_v29  ;;  %v2025_v53 = vsel %vm1945_vm3, %v2015_v20, %v2024_v37  ;;  %v542_v57 = vor.u32 %v540_v38, %v538_v25  ;;  %v2038_v58 = vrot.slane %v2036_v39, 1  ;;  %v2041_v60 = vrot.slane %v2039_v40, 2  ;;  %v7264_v20 = vld [vmem:[#allocation7 + $0x4] sm:$0x3] }
  0xc0   : > { %v2034_v61 = vsel %vm1945_vm3, %v2024_v37, %v2033_v46  ;;  %v550_v63 = vor.u32 %v548_v47, %v546_v51  ;;  %v554_v0 = vrot.slane %v552_v48, 1  ;;  %v5402_v1 = vcombine.low %v2382_v50, %v7098_v9  ;;  %6380 = vmatprep.subr.msk.bf16.mxu1 %vm666_vm0, %v7264_v20  ;;  %v7290_v47 = vld [vmem:[%s7067_s11 + $0x88] sm:$0xf]  ;;  %v371_v48 = vld [vmem:[%s7067_s11 + $0x8c] sm:$0xf] }
  0xc1   : > { %v560_v7 = vshll.u32 %v7244_v52, 16  ;;  %v547_v11 = vsel %vm463_vm1, %v542_v57, %v546_v51  ;;  %v7257_v12 = vor.u32 %v2041_v60, %v2038_v58  ;;  %v2389_v14 = vrot.slane %v7101_v10, 2  ;;  %v7270_v10 = vld [vmem:[%s7067_s11 + $0x70] sm:$0xff]   ;;  %v7295_v51 = vld [vmem:[%s7067_s11 + $0x80] sm:$0xff]  }
  0xc2   : > { %5761 = vmatmul.mubr.msk.bf16.gmra.mrb[12].mxu1 %vm611_vm2, %v531_v35  ;;  %v556_v15 = vshrl.u32 %v7227_v27, 16  ;;  %v555_v16 = vsel %vm463_vm1, %v550_v63, %v554_v0  ;;  %v2388_v9 = vrot.slane %v5402_v1, 2  ;;  %v564_v17 = vshrl.u32 %v7244_v52, 16  ;;  %v7304_v63 = vld [vmem:[#allocation7 + $0xc] ss:$0 sps:$4 sm:$0xcc]  }
  0xc3   : > { %5764 = vmatprep.mubr.msk.bf16.mxu1 %vm611_vm2, %v539_v42  ;;  %v568_v18 = vshll.u32 %v7251_v2, 16  ;;  %vm2387_vm4 = vcmask 1045504   ;;  %v562_v21 = vrot.slane %v560_v7, 1  ;;  %v2043_v23 = vsel %vm1945_vm3, %v2033_v46, %v7257_v12 }
  0xc4   : > { %v558_v24 = vor.u32 %v556_v15, %v554_v0  ;;  %v2390_v25 = vsel %vm2387_vm4, %v2388_v9, %v2389_v14  ;;  %v576_v35 = vshll.u32 %v7270_v10, 16  ;;  %v2391_v37 = vrot.slane %v7117_v33, 2 }
  0xc5   : > { %v566_v29 = vor.u32 %v564_v17, %v562_v21  ;;  %v570_v30 = vrot.slane %v568_v18, 1  ;;  %v2393_v38 = vrot.slane %v7128_v43, 2  ;;  %v572_v39 = vshrl.u32 %v7251_v2, 16 }
  0xc6   : > { %5913 = vmatmul.mubr.msk.bf16.gmra.mrb[12].mxu0 %vm611_vm2, %v2025_v53  ;;  %v563_v36 = vsel %vm463_vm1, %v558_v24, %v562_v21  ;;  %v580_v42 = vshrl.u32 %v7270_v10, 16  ;;  %v584_v46 = vshll.u32 %v7277_v31, 16  ;;  %v578_v50 = vrot.slane %v576_v35, 1 }
  0xc7   : > { %5916 = vmatprep.mubr.msk.bf16.mxu0 %vm611_vm2, %v2034_v61  ;;  %v571_v40 = vsel %vm463_vm1, %v566_v29, %v570_v30  ;;  %v2392_v33 = vsel %vm2387_vm4, %v2389_v14, %v2391_v37  ;;  %v2922_v43 = vsel %vm666_vm0, %v2736_v41, 0  ;;  %v574_v53 = vor.u32 %v572_v39, %v570_v30 }
  0xc8   : > { %v2394_v57 = vsel %vm2387_vm4, %v2391_v37, %v2393_v38  ;;  %v582_v58 = vor.u32 %v580_v42, %v578_v50  ;;  %v586_v60 = vrot.slane %v584_v46, 1  ;;  %v7302_v61 = vcombine.low %v7290_v47, %v371_v48  ;;  %v6520_v42 = vld [vmem:[%s7067_s11 + $0x60] sm:$0xff]   ;;  %v7345_v46 = vld [vmem:[#allocation7 + $0x4] ss:$0 sps:$4 sm:$0xcc]  }
  0xc9   : > { %v2395_v0 = vrot.slane %v7145_v56, 2  ;;  %v592_v1 = vshll.u32 %v7295_v51, 16  ;;  %v3316_v41 = vrot.slane %v7304_v63, 2  ;;  %v579_v7 = vsel %vm463_vm1, %v574_v53, %v578_v50 }
  0xca   : > { %5765 = vmatmul.mubr.msk.bf16.gmra.mrb[16].mxu1 %vm611_vm2, %v547_v11  ;;  %v2397_v11 = vrot.slane %v7158_v8, 2  ;;  %v588_v14 = vshrl.u32 %v7277_v31, 16  ;;  %v587_v15 = vsel %vm463_vm1, %v582_v58, %v586_v60  ;;  %v600_v56 = vshll.u32 %v7302_v61, 16  ;;  %v6523_v58 = vld [vmem:[%s7067_s11 + $0x78] sm:$0xff]  }
  0xcb   : > { %5768 = vmatprep.mubr.msk.bf16.mxu1 %vm611_vm2, %v555_v16  ;;  %v596_v16 = vshrl.u32 %v7295_v51, 16  ;;  %v594_v9 = vrot.slane %v592_v1, 1  ;;  %v2396_v17 = vsel %vm2387_vm4, %v2393_v38, %v2395_v0  ;;  %v2401_v30 = vrot.slane %v7188_v44, 2 }
  0xcc   : > { %v590_v8 = vor.u32 %v588_v14, %v586_v60  ;;  %v2398_v18 = vsel %vm2387_vm4, %v2395_v0, %v2397_v11  ;;  %v604_v35 = vshrl.u32 %v7302_v61, 16  ;;  %v2405_v39 = vrot.slane %v7208_v62, 2  ;;  %v6524_v60 = vld [vmem:[%s7067_s11 + $0x80] sm:$0xff]  }
  0xcd   : > { %v598_v21 = vor.u32 %v596_v16, %v594_v9  ;;  %v2409_v62 = vrot.slane %v6520_v42, 2  ;;  %v1163_v48 = vsel %vm666_vm0, %v7264_v20, 0  ;;  %v1543_v50 = vrot.slane %v7345_v46, 2  ;;  %v6526_v16 = vld [vmem:[%s7067_s11 + $0x90] sm:$0xff]  }
  0xce   : > { %5917 = vmatmul.mubr.msk.bf16.gmra.mrb[16].mxu0 %vm611_vm2, %v2043_v23  ;;  %v602_v23 = vrot.slane %v600_v56, 1  ;;  %v595_v24 = vsel %vm463_vm1, %v590_v8, %v594_v9  ;;  %v2415_v1 = vrot.slane %v6523_v58, 2  ;;  %v2421_v9 = vrot.slane %v6526_v16, 2  ;;  %v7388_v8 = vld [vmem:[%s7067_s11 + $0x14] sm:$0xf]  ;;  %v7476_v16 = vld [vmem:[%s7067_s11 + $0x58] sm:$0xff]  }
  0xcf   : > { %5938 = vmatprep.mubr.msk.bf16.mxu0 %vm611_vm2, %v2390_v25  ;;  %v2399_v25 = vrot.slane %v7173_v28, 2  ;;  %v2403_v28 = vrot.slane %v7195_v49, 2  ;;  %v2407_v49 = vrot.slane %v7224_v26, 2  ;;  %v7429_v42 = vld [vmem:[%s7067_s11 + $0x30] sm:$0xff]   ;;  %vm1072_vm5 = vcmask 1046528  }
  0xd0   : > { %v603_v29 = vsel %vm463_vm1, %v598_v21, %v602_v23  ;;  %v606_v38 = vor.u32 %v604_v35, %v602_v23  ;;  %v6527_v21 = vld [vmem:[%s7067_s11 + $0x98] ss:$0 sps:$4 sm:$0x11]   ;;  %vm3142_vm6 = vsmask.f32 5376  ;;  %vm3592_vm7 = vcmask 1044480  }
  0xd1   : > { %v2402_v37 = vsel %vm2387_vm4, %v2399_v25, %v2401_v30  ;;  %v2404_v44 = vsel %vm2387_vm4, %v2401_v30, %v2403_v28  ;;  %v2410_v26 = vsel %vm2387_vm4, %v2407_v49, %v2409_v62  ;;  %vm4549_vm8 = vsmask.f32 1280 }
  0xd2   : > { %5769 = vmatmul.mubr.msk.bf16.gmra.mrb[20].mxu1 %vm611_vm2, %v563_v36  ;;  %v2400_v36 = vsel %vm2387_vm4, %v2397_v11, %v2399_v25  ;;  %v6525_v11 = vld [vmem:[%s7067_s11 + $0x88] sm:$0xff]   ;;  %v7401_v25 = vld [vmem:[%s7067_s11 + $0x18] sm:$0xff]   ;;  %vm4550_vm9 = vmand %vm666_vm0, %vm4549_vm8  ;;  %vm4662_vm10 = vsmask.f32 5392 }
  0xd3   : > { %5772 = vmatprep.mubr.msk.bf16.mxu1 %vm611_vm2, %v571_v40  ;;  %v2406_v40 = vsel %vm2387_vm4, %v2403_v28, %v2405_v39  ;;  %v2419_v56 = vrot.slane %v6525_v11, 2  ;;  %v2831_v35 = vrot.slane %v7401_v25, 2  ;;  %v7417_v28 = vld [vmem:[%s7067_s11 + $0x28] sm:$0xff]   ;;  %vm8336_vm14 = vmor %vm4549_vm8, %vm4662_vm10 }
  0xd5   : > { %v2422_v23 = vsel %vm2387_vm4, %v2419_v56, %v2421_v9 }
  0xd6   : > { %5939 = vmatmul.mubr.msk.bf16.vlgmr.msra.gmra.mrb[0].mxu0 %vm611_vm2, %v2392_v33  ;;  %v6521_v33 = vld [vmem:[%s7067_s11 + $0x68] sm:$0xff]  }
  0xd7   : > { %5975 = vmatpush3.bf16.msra.mxu0 %v2922_v43  ;;  %5942 = vmatprep.mubr.msk.bf16.mxu0 %vm611_vm2, %v2394_v57  ;;  %v6522_v43 = vld [vmem:[%s7067_s11 + $0x70] sm:$0xff]   ;;  %v2411_v20 = vrot.slane %v6521_v33, 2  ;;  %v2837_v33 = vrot.slane %v7429_v42, 2 }
  0xd8   : > { %6386 = vmatprep.subr.msk.bf16.mxu0 %vm666_vm0, %v3316_v41  ;;  %v2413_v53 = vrot.slane %v6522_v43, 2 }
  0xd9   : > { %v2412_v57 = vsel %vm2387_vm4, %v2409_v62, %v2411_v20 }
  0xda   : > { %5773 = vmatmul.mubr.msk.bf16.gmra.mrb[24].mxu1 %vm611_vm2, %v579_v7  ;;  %v2414_v0 = vsel %vm2387_vm4, %v2411_v20, %v2413_v53  ;;  %v2417_v7 = vrot.slane %v6524_v60, 2  ;;  %v2416_v14 = vsel %vm2387_vm4, %v2413_v53, %v2415_v1  ;;  %v7456_v20 = vld [vmem:[%s7067_s11 + $0x48] sm:$0xff]   ;;  %v1067_v53 = vld [vmem:[%s7067_s11] sm:$0xe] }
  0xdb   : > { %5776 = vmatprep.mubr.msk.bf16.mxu1 %vm611_vm2, %v587_v15  ;;  %v2843_v58 = vrot.slane %v7456_v20, 2  ;;  %v5309_v60 = vcombine.low %v1067_v53, %v7087_v4  ;;  %v299_v53 = vld [vmem:[#allocation5 + $0x8] sm:$0xff] }
  0xdc   : > { %v2418_v15 = vsel %vm2387_vm4, %v2415_v1, %v2417_v7  ;;  %v369_v1 = vld [vmem:[%s7067_s11 + $0x8c] sm:$0x7] }
  0xdd   : > { %v5290_v4 = vcombine.low %v7290_v47, %v369_v1  ;;  %v1086_v1 = vrot.slane %v7178_v32, 1 }
  0xde   : > { %5943 = vmatmul.mubr.msk.bf16.gmra.mrb[4].mxu0 %vm611_vm2, %v2396_v17  ;;  %v2699_v17 = vld [vmem:[%s7067_s11 + $0x10] sm:$0xc] }
  0xdf   : > { %5946 = vmatprep.mubr.msk.bf16.mxu0 %vm611_vm2, %v2398_v18  ;;  %v2420_v18 = vsel %vm2387_vm4, %v2417_v7, %v2419_v56  ;;  %v7471_v7 = vld [vmem:[%s7067_s11 + $0x50] sm:$0xff]  }
  0xe0   : > { %v2845_v56 = vrot.slane %v7471_v7, 2 }
  0xe2   : > { %5777 = vmatmul.mubr.msk.bf16.gmra.mrb[28].mxu1 %vm611_vm2, %v595_v24  ;;  %v7398_v24 = vcombine.low %v2699_v17, %v7388_v8  ;;  %v2847_v17 = vrot.slane %v7476_v16, 2 }
  0xe3   : > { %5780 = vmatprep.mubr.msk.bf16.mxu1 %vm611_vm2, %v603_v29  ;;  %v2423_v29 = vrot.slane %v6527_v21, 2  ;;  %v7489_v21 = vld [vmem:[%s7067_s11 + $0x60] sm:$0xff]  }
  0xe4   : > { %v2830_v30 = vrot.slane %v7398_v24, 2  ;;  %v2848_v47 = vsel %vm2387_vm4, %v2845_v56, %v2847_v17 }
  0xe6   : > { %5947 = vmatmul.mubr.msk.bf16.gmra.mrb[8].mxu0 %vm611_vm2, %v2400_v36  ;;  %v2424_v36 = vsel %vm2387_vm4, %v2421_v9, %v2423_v29  ;;  %v7494_v29 = vld [vmem:[%s7067_s11 + $0x68] sm:$0xff]  }
  0xe7   : > { %5950 = vmatprep.mubr.msk.bf16.mxu0 %vm611_vm2, %v2402_v37  ;;  %v7413_v37 = vld [vmem:[%s7067_s11 + $0x20] sm:$0xff]  }
  0xea   : > { %5781 = vmatmul.mubr.msk.bf16.gmra.mrb[32].mxu1 %vm611_vm2, %v606_v38  ;;  %v2832_v38 = vsel %vm2387_vm4, %v2830_v30, %v2831_v35 }
  0xeb   : > { %5786 = vmatprep.mubr.msk.bf16.mxu1 %vm611_vm2, %v7091_v5  ;;  %v2408_v5 = vsel %vm2387_vm4, %v2405_v39, %v2407_v49  ;;  %v2833_v39 = vrot.slane %v7413_v37, 2  ;;  %v3372_v49 = vsel %vm666_vm0, %v3316_v41, 0  ;;  %v7452_v41 = vld [vmem:[%s7067_s11 + $0x40] sm:$0xff]  }
  0xee   : > { %5951 = vmatmul.mubr.msk.bf16.gmra.mrb[12].mxu0 %vm611_vm2, %v2404_v44  ;;  %v2835_v44 = vrot.slane %v7417_v28, 2 }
  0xef   : > { %5954 = vmatprep.mubr.msk.bf16.mxu0 %vm611_vm2, %v2406_v40  ;;  %v2834_v40 = vsel %vm2387_vm4, %v2831_v35, %v2833_v39  ;;  %v2849_v35 = vrot.slane %v7489_v21, 2 }
  0xf0   : > { %v2836_v62 = vsel %vm2387_vm4, %v2833_v39, %v2835_v44  ;;  %v2838_v63 = vsel %vm2387_vm4, %v2835_v44, %v2837_v33  ;;  %v7518_v39 = vld [vmem:[%s7067_s11 + $0x70] sm:$0xff]  }
  0xf1   : > { %v2850_v46 = vsel %vm2387_vm4, %v2847_v17, %v2849_v35  ;;  %v304_v17 = vld [vmem:[#allocation5 + $0x30] sm:$0xff] }
  0xf2   : > { %5787 = vmatmul.mubr.msk.bf16.vlgmr.msra.gmra.mrb[0].mxu1 %vm611_vm2, %v7094_v6 }
  0xf3   : > { %5790 = vmatprep.mubr.msk.bf16.mxu1 %vm611_vm2, %v7113_v19  ;;  %5823 = vmatpush3.bf16.msra.mxu1 %v1163_v48  ;;  %v7436_v48 = vld [vmem:[%s7067_s11 + $0x38] sm:$0xff]  }
  0xf4   : > { %6381 = vmatprep.subr.msk.bf16.mxu1 %vm666_vm0, %v1543_v50 }
  0xf6   : > { %5955 = vmatmul.mubr.msk.bf16.gmra.mrb[16].mxu0 %vm611_vm2, %v2408_v5  ;;  %v7438_v5 = vld [vmem:[#allocation7 + $0x10] sm:$0x3] }
  0xf7   : > { %5958 = vmatprep.mubr.msk.bf16.mxu0 %vm611_vm2, %v2410_v26  ;;  %v2839_v26 = vrot.slane %v7436_v48, 2 }
  0xf9   : > { %v2840_v43 = vsel %vm2387_vm4, %v2837_v33, %v2839_v26  ;;  %v298_v33 = vld [vmem:[#allocation5] sm:$0xff] }
  0xfa   : > { %5791 = vmatmul.mubr.msk.bf16.gmra.mrb[4].mxu1 %vm611_vm2, %v7120_v34 }
  0xfb   : > { %5794 = vmatprep.mubr.msk.bf16.mxu1 %vm611_vm2, %v7141_v54 }
  0xfe   : > { %5959 = vmatmul.mubr.msk.bf16.gmra.mrb[20].mxu0 %vm611_vm2, %v2412_v57  ;;  %v2841_v57 = vrot.slane %v7452_v41, 2 }
  0xff   : > { %5962 = vmatprep.mubr.msk.bf16.mxu0 %vm611_vm2, %v2414_v0 }
 0x100   : > { %v2842_v0 = vsel %vm2387_vm4, %v2839_v26, %v2841_v57  ;;  %v2844_v11 = vsel %vm2387_vm4, %v2841_v57, %v2843_v58  ;;  %v300_v26 = vld [vmem:[#allocation5 + $0x10] sm:$0xff] }
 0x102   : > { %5795 = vmatmul.mubr.msk.bf16.gmra.mrb[8].mxu1 %vm611_vm2, %v7149_v59 }
 0x103   : > { %5798 = vmatprep.mubr.msk.bf16.mxu1 %vm611_vm2, %v7167_v22 }
 0x106   : > { %5963 = vmatmul.mubr.msk.bf16.gmra.mrb[24].mxu0 %vm611_vm2, %v2416_v14  ;;  %v1073_v14 = vrot.slane %v5309_v60, 1  ;;  %v7537_v60 = vld [vmem:[%s7067_s11 + $0x80] sm:$0xff]  }
 0x107   : > { %5966 = vmatprep.mubr.msk.bf16.mxu0 %vm611_vm2, %v2418_v15  ;;  %v1074_v15 = vrot.slane %v7094_v6, 1  ;;  %v2846_v6 = vsel %vm2387_vm4, %v2843_v58, %v2845_v56  ;;  %v1084_v58 = vrot.slane %v7167_v22, 1  ;;  %v303_v56 = vld [vmem:[#allocation5 + $0x28] sm:$0xff] }
 0x109   : > { %v1075_v9 = vsel %vm1072_vm5, %v1073_v14, %v1074_v15  ;;  %v301_v14 = vld [vmem:[#allocation5 + $0x18] sm:$0xff] }
 0x10a   : > { %5799 = vmatmul.mubr.msk.bf16.gmra.mrb[12].mxu1 %vm611_vm2, %v7178_v32 }
 0x10b   : > { %5802 = vmatprep.mubr.msk.bf16.mxu1 %vm611_vm2, %v7191_v45 }
 0x10e   : > { %5967 = vmatmul.mubr.msk.bf16.gmra.mrb[28].mxu0 %vm611_vm2, %v2420_v18  ;;  %v1076_v18 = vrot.slane %v7113_v19, 1  ;;  %v2851_v19 = vrot.slane %v7494_v29, 2 }
 0x10f   : > { %5970 = vmatprep.mubr.msk.bf16.mxu0 %vm611_vm2, %v2422_v23  ;;  %v1078_v23 = vrot.slane %v7120_v34, 1  ;;  %v6809_v34 = vmov 0  }
 0x110   : > { %v1077_v30 = vsel %vm1072_vm5, %v1074_v15, %v1076_v18  ;;  %6486 = vset.pattern.permute.xlu0 %v6809_v34  ;;  %4546 = vst [vmem:[%s7507_s24] sm:$0xf] %v6809_v34  ;;  %4547 = vst [vmem:[%s7507_s24 + $0x4] sm:$0xf] %v6809_v34  ;;  %6487 = vset.pattern.permute.xlu1 %v6809_v34  ;;  %v2852_v44 = vsel %vm2387_vm4, %v2849_v35, %v2851_v19  ;;  %v302_v15 = vld [vmem:[#allocation5 + $0x20] sm:$0xff] }
 0x111   : > { %5113 = vst [vmem:[%s7507_s24 + $0x9c] sm:$0xf] %v6809_v34  ;;  %5114 = vst [vmem:[%s7507_s24 + $0xa0] sm:$0x3] %v6809_v34  ;;  %3902 = vperm.xlu0 %6486, %v298_v33   ;;  %3912 = vperm.xlu1 %6487, %v300_v26   ;;  %v308_v33 = vld [vmem:[#allocation5 + $0x50] sm:$0xff]  ;;  %v1092_v26 = vrot.slane %v7214_v13, 1 }
 0x112   : > { %5803 = vmatmul.mubr.msk.bf16.gmra.mrb[16].mxu1 %vm611_vm2, %v7201_v55 }
 0x113   : > { %5806 = vmatprep.mubr.msk.bf16.mxu1 %vm611_vm2, %v7214_v13 }
 0x115   : > { %3907 = vperm.xlu0 %6486, %v299_v53   ;;  %3917 = vperm.xlu1 %6487, %v301_v14  }
 0x116   : > { %5971 = vmatmul.mubr.msk.bf16.gmra.mrb[32].mxu0 %vm611_vm2, %v2424_v36  ;;  %v1079_v36 = vsel %vm1072_vm5, %v1076_v18, %v1078_v23  ;;  %v1088_v18 = vrot.slane %v7191_v45, 1 }
 0x117   : > { %5976 = vmatprep.mubr.msk.bf16.mxu0 %vm611_vm2, %v2832_v38  ;;  %v1599_v38 = vsel %vm666_vm0, %v1543_v50, 0  ;;  %v1080_v50 = vrot.slane %v7141_v54, 1 }
 0x119   : > { %v1081_v54 = vsel %vm1072_vm5, %v1078_v23, %v1080_v50  ;;  %3922 = vperm.xlu0 %6486, %v302_v15   ;;  %3927 = vperm.xlu1 %6487, %v303_v56   ;;  %v1090_v23 = vrot.slane %v7201_v55, 1 }
 0x11a   : > { %5807 = vmatmul.mubr.msk.bf16.gmra.mrb[20].mxu1 %vm611_vm2, %v7227_v27 }
 0x11b   : > { %5810 = vmatprep.mubr.msk.bf16.mxu1 %vm611_vm2, %v7244_v52  ;;  %v1091_v34 = vsel %vm1072_vm5, %v1088_v18, %v1090_v23  ;;  %v1093_v13 = vsel %vm1072_vm5, %v1090_v23, %v1092_v26  ;;  %v1096_v23 = vrot.slane %v7244_v52, 1  ;;  %v3179_v52 = vshrl.u32 %v7429_v42, 16 }
 0x11d   : > { %3932 = vperm.xlu0 %6486, %v304_v17   ;;  %v3173_v17 = vshll.u32 %v7417_v28, 16 }
 0x11e   : > { %5977 = vmatmul.mubr.msk.bf16.vlgmr.msra.gmra.mrb[0].mxu0 %vm611_vm2, %v2834_v40  ;;  %v1082_v40 = vrot.slane %v7149_v59, 1 }
 0x11f   : > { %6013 = vmatpush3.bf16.msra.mxu0 %v3372_v49  ;;  %5980 = vmatprep.mubr.msk.bf16.mxu0 %vm611_vm2, %v2836_v62  ;;  %v7523_v49 = vld [vmem:[%s7067_s11 + $0x78] sm:$0xff]   ;;  %v6573_v62 = vld [vmem:[#allocation7 + $0x8] sm:$0x3] }
 0x120   : > { %6387 = vmatprep.subr.msk.bf16.mxu0 %vm666_vm0, %v7438_v5  ;;  %v1083_v59 = vsel %vm1072_vm5, %v1080_v50, %v1082_v40  ;;  %v1085_v22 = vsel %vm1072_vm5, %v1082_v40, %v1084_v58  ;;  %v3144_v50 = vshrl.u32 %v7398_v24, 16  ;;  %v3152_v40 = vshrl.u32 %v7401_v25, 16 }
 0x122   : > { %5811 = vmatmul.mubr.msk.bf16.gmra.mrb[24].mxu1 %vm611_vm2, %v7251_v2 }
 0x123   : > { %5814 = vmatprep.mubr.msk.bf16.mxu1 %vm611_vm2, %v7270_v10 }
 0x126   : > { %5981 = vmatmul.mubr.msk.bf16.gmra.mrb[4].mxu0 %vm611_vm2, %v2838_v63  ;;  %v2853_v63 = vrot.slane %v7518_v39, 2 }
 0x127   : > { %5984 = vmatprep.mubr.msk.bf16.mxu0 %vm611_vm2, %v2840_v43  ;;  %v2855_v43 = vrot.slane %v7523_v49, 2 }
 0x128   : > { %v2854_v57 = vsel %vm2387_vm4, %v2851_v19, %v2853_v63  ;;  %v306_v19 = vld [vmem:[#allocation5 + $0x40] sm:$0xff] }
 0x129   : > { %3942 = vperm.xlu0 %6486, %v306_v19  }
 0x12a   : > { %5815 = vmatmul.mubr.msk.bf16.gmra.mrb[28].mxu1 %vm611_vm2, %v7277_v31 }
 0x12b   : > { %5818 = vmatprep.mubr.msk.bf16.mxu1 %vm611_vm2, %v7295_v51 }
 0x12d   : > { %3952 = vperm.xlu0 %6486, %v308_v33  }
 0x12e   : > { %5985 = vmatmul.mubr.msk.bf16.gmra.mrb[8].mxu0 %vm611_vm2, %v2842_v0  ;;  %v2856_v0 = vsel %vm2387_vm4, %v2853_v63, %v2855_v43 }
 0x12f   : > { %5988 = vmatprep.mubr.msk.bf16.mxu0 %vm611_vm2, %v2844_v11  ;;  %v7542_v11 = vld [vmem:[%s7067_s11 + $0x88] sm:$0xff]  }
 0x130   : > { %v2859_v32 = vrot.slane %v7542_v11, 2 }
 0x132   : > { %5819 = vmatmul.mubr.msk.bf16.gmra.mrb[32].mxu1 %vm611_vm2, %v5290_v4  ;;  %v2857_v4 = vrot.slane %v7537_v60, 2 }
 0x133   : > { %5824 = vmatprep.mubr.msk.bf16.mxu1 %vm611_vm2, %v1075_v9  ;;  %v1087_v9 = vsel %vm1072_vm5, %v1084_v58, %v1086_v1 }
 0x134   : > { %v2860_v35 = vsel %vm2387_vm4, %v2857_v4, %v2859_v32 }
 0x136   : > { %5989 = vmatmul.mubr.msk.bf16.gmra.mrb[12].mxu0 %vm611_vm2, %v2846_v6  ;;  %v2858_v6 = vsel %vm2387_vm4, %v2855_v43, %v2857_v4  ;;  %v1094_v43 = vrot.slane %v7227_v27, 1  ;;  %v3164_v27 = vshll.u32 %v7413_v37, 16  ;;  %v311_v4 = vld [vmem:[#allocation5 + $0x68] sm:$0xff] }
 0x137   : > { %5992 = vmatprep.mubr.msk.bf16.mxu0 %vm611_vm2, %v2848_v47  ;;  %v7555_v47 = vld [vmem:[%s7067_s11 + $0x90] sm:$0xff]  }
 0x138   : > { %v2861_v45 = vrot.slane %v7555_v47, 2  ;;  %v1095_v15 = vsel %vm1072_vm5, %v1092_v26, %v1094_v43  ;;  %v3188_v26 = vshrl.u32 %v7436_v48, 16 }
 0x13a   : > { %5825 = vmatmul.mubr.msk.bf16.vlgmr.msra.gmra.mrb[0].mxu1 %vm611_vm2, %v1077_v30  ;;  %v7559_v30 = vld [vmem:[%s7067_s11 + $0x98] sm:$0xff]  }
 0x13b   : > { %5828 = vmatprep.mubr.msk.bf16.mxu1 %vm611_vm2, %v1079_v36  ;;  %5861 = vmatpush3.bf16.msra.mxu1 %v1599_v38  ;;  %v305_v36 = vld [vmem:[#allocation5 + $0x38] sm:$0xff]  ;;  %v1089_v38 = vsel %vm1072_vm5, %v1086_v1, %v1088_v18  ;;  %v2863_v55 = vrot.slane %v7559_v30, 2  ;;  %v310_v1 = vld [vmem:[#allocation5 + $0x60] sm:$0xff] }
 0x13c   : > { %6383 = vmatprep.subr.msk.bf16.mxu1 %vm666_vm0, %v6573_v62  ;;  %3937 = vperm.xlu1 %6487, %v305_v36   ;;  %v3155_v62 = vshll.u32 %v7401_v25, 16  ;;  %v3166_v36 = vrot.slane %v3164_v27, 3  ;;  %v3200_v27 = vshll.u32 %v7452_v41, 16 }
 0x13d   : > { %v2864_v63 = vsel %vm2387_vm4, %v2861_v45, %v2863_v55  ;;  %3962 = vperm.xlu0 %6486, %v310_v1  }
 0x13e   : > { %5993 = vmatmul.mubr.msk.bf16.gmra.mrb[16].mxu0 %vm611_vm2, %v2850_v46  ;;  %v307_v46 = vld [vmem:[#allocation5 + $0x48] sm:$0xff]  ;;  %v3157_v58 = vrot.slane %v3155_v62, 3 }
 0x13f   : > { %5996 = vmatprep.mubr.msk.bf16.mxu0 %vm611_vm2, %v2852_v44  ;;  %v3147_v44 = vshll.u32 %v7398_v24, 16  ;;  %v3146_v24 = vrot.slane %v3144_v50, 2  ;;  %v314_v50 = vld [vmem:[#allocation5 + $0x80] sm:$0xff]  ;;  %v315_v62 = vld [vmem:[#allocation5 + $0x88] sm:$0xff] }
 0x140   : > { %3947 = vperm.xlu1 %6487, %v307_v46   ;;  %v313_v46 = vld [vmem:[#allocation5 + $0x78] sm:$0xff] }
 0x141   : > { %v3149_v53 = vrot.slane %v3147_v44, 3 }
 0x142   : > { %5829 = vmatmul.mubr.msk.bf16.gmra.mrb[4].mxu1 %vm611_vm2, %v1081_v54  ;;  %v2862_v54 = vsel %vm2387_vm4, %v2859_v32, %v2861_v45  ;;  %v3170_v32 = vshrl.u32 %v7417_v28, 16 }
 0x143   : > { %5832 = vmatprep.mubr.msk.bf16.mxu1 %vm611_vm2, %v1083_v59  ;;  %v6550_v59 = vld [vmem:[%s7067_s11 + $0xa0] ss:$0 sps:$4 sm:$0x11]   ;;  %v3150_v56 = vor.u32 %v3149_v53, %v3146_v24  ;;  %v3685_v24 = vsel %vm666_vm0, %v7438_v5, 0  ;;  %v3181_v53 = vrot.slane %v3179_v52, 2  ;;  %v318_v5 = vld [vmem:[#allocation5 + $0xa0] sm:$0xff] }
 0x144   : > { %v2865_v14 = vrot.slane %v6550_v59, 2  ;;  %v3172_v45 = vrot.slane %v3170_v32, 2  ;;  %v1100_v59 = vrot.slane %v7270_v10, 1  ;;  %v3218_v52 = vshll.u32 %v7471_v7, 16 }
 0x146   : > { %5997 = vmatmul.mubr.msk.bf16.gmra.mrb[20].mxu0 %vm611_vm2, %v2854_v57  ;;  %v3154_v57 = vrot.slane %v3152_v40, 2  ;;  %v2866_v18 = vsel %vm2387_vm4, %v2863_v55, %v2865_v14  ;;  %v1097_v55 = vsel %vm1072_vm5, %v1094_v43, %v1096_v23  ;;  %v3182_v40 = vshll.u32 %v7429_v42, 16  ;;  %v317_v14 = vld [vmem:[#allocation5 + $0x98] sm:$0xff] }
 0x147   : > { %6000 = vmatprep.mubr.msk.bf16.mxu0 %vm611_vm2, %v2856_v0  ;;  %v309_v0 = vld [vmem:[#allocation5 + $0x58] sm:$0xff] }
 0x148   : > { %3957 = vperm.xlu1 %6487, %v309_v0   ;;  %v1102_v0 = vrot.slane %v7277_v31, 1  ;;  %v3209_v31 = vshll.u32 %v7456_v20, 16 }
 0x14a   : > { %5833 = vmatmul.mubr.msk.bf16.gmra.mrb[8].mxu1 %vm611_vm2, %v1085_v22  ;;  %v3161_v22 = vshrl.u32 %v7413_v37, 16 }
 0x14b   : > { %5836 = vmatprep.mubr.msk.bf16.mxu1 %vm611_vm2, %v1087_v9  ;;  %v3158_v9 = vor.u32 %v3157_v58, %v3154_v57  ;;  %v3184_v57 = vrot.slane %v3182_v40, 3  ;;  %v323_v40 = vld [vmem:[#allocation5 + $0xc8] sm:$0xff] }
 0x14c   : > { %3967 = vperm.xlu1 %6487, %v311_v4   ;;  %v3206_v4 = vshrl.u32 %v7456_v20, 16 }
 0x14d   : > { %v3159_v19 = vsel %vm3142_vm6, %v3150_v56, %v3158_v9  ;;  %v319_v56 = vld [vmem:[#allocation5 + $0xa8] sm:$0xff] }
 0x14e   : > { %6001 = vmatmul.mubr.msk.bf16.gmra.mrb[24].mxu0 %vm611_vm2, %v2858_v6  ;;  %v312_v6 = vld [vmem:[#allocation5 + $0x70] sm:$0xff] }
 0x14f   : > { %6004 = vmatprep.mubr.msk.bf16.mxu0 %vm611_vm2, %v2860_v35  ;;  %v3163_v35 = vrot.slane %v3161_v22, 2  ;;  %3972 = vperm.xlu0 %6486, %v312_v6   ;;  %v3185_v22 = vor.u32 %v3184_v57, %v3181_v53  ;;  %v1104_v6 = vrot.slane %v7295_v51, 1  ;;  %v325_v53 = vld [vmem:[#allocation5 + $0xd8] sm:$0xff] }
 0x150   : > { %3977 = vperm.xlu1 %6487, %v313_v46   ;;  %v322_v46 = vld [vmem:[#allocation5 + $0xc0] sm:$0xff] }
 0x151   : > { %v3167_v44 = vor.u32 %v3166_v36, %v3163_v35  ;;  %v3202_v35 = vrot.slane %v3200_v27, 3  ;;  %v3208_v36 = vrot.slane %v3206_v4, 2  ;;  %v1105_v51 = vsel %vm1072_vm5, %v1102_v0, %v1104_v6 }
 0x152   : > { %5837 = vmatmul.mubr.msk.bf16.gmra.mrb[12].mxu1 %vm611_vm2, %v1089_v38  ;;  %v1098_v38 = vrot.slane %v7251_v2, 1 }
 0x153   : > { %5840 = vmatprep.mubr.msk.bf16.mxu1 %vm611_vm2, %v1091_v34  ;;  %v3175_v34 = vrot.slane %v3173_v17, 3  ;;  %3982 = vperm.xlu0 %6486, %v314_v50   ;;  %v3168_v43 = vsel %vm3142_vm6, %v3158_v9, %v3167_v44  ;;  %v1103_v9 = vsel %vm1072_vm5, %v1100_v59, %v1102_v0  ;;  %v320_v17 = vld [vmem:[#allocation5 + $0xb0] sm:$0xff] }
 0x154   : > { %v1099_v2 = vsel %vm1072_vm5, %v1096_v23, %v1098_v38  ;;  %3987 = vperm.xlu1 %6487, %v315_v62   ;;  %v1101_v10 = vsel %vm1072_vm5, %v1098_v38, %v1100_v59 }
 0x155   : > { %v3176_v33 = vor.u32 %v3175_v34, %v3172_v45  ;;  %v1106_v45 = vrot.slane %v7302_v61, 1  ;;  %v321_v34 = vld [vmem:[#allocation5 + $0xb8] sm:$0xff]  ;;  %v6551_v61 = vld [vmem:[%s7067_s11 + $0x8] sm:$0xfe]  }
 0x156   : > { %6005 = vmatmul.mubr.msk.bf16.gmra.mrb[28].mxu0 %vm611_vm2, %v2862_v54  ;;  %v3191_v54 = vshll.u32 %v7436_v48, 16  ;;  %v1505_v57 = vrot.slane %v6551_v61, 1  ;;  %v6556_v61 = vld [vmem:[%s7067_s11 + $0x30] sm:$0xff]  }
 0x157   : > { %6008 = vmatprep.mubr.msk.bf16.mxu0 %vm611_vm2, %v2864_v63  ;;  %v316_v63 = vld [vmem:[#allocation5 + $0x90] sm:$0xff]  ;;  %v3177_v58 = vsel %vm3142_vm6, %v3167_v44, %v3176_v33  ;;  %v3186_v23 = vsel %vm3142_vm6, %v3176_v33, %v3185_v22  ;;  %v3215_v44 = vshrl.u32 %v7471_v7, 16  ;;  %v1107_v62 = vsel %vm1072_vm5, %v1104_v6, %v1106_v45 }
 0x158   : > { %3992 = vperm.xlu0 %6486, %v316_v63   ;;  %v3193_v1 = vrot.slane %v3191_v54, 3  ;;  %3997 = vperm.xlu1 %6487, %v317_v14   ;;  %v3224_v33 = vshrl.u32 %v7476_v16, 16  ;;  %v324_v54 = vld [vmem:[#allocation5 + $0xd0] sm:$0xff] }
 0x15a   : > { %5841 = vmatmul.mubr.msk.bf16.gmra.mrb[16].mxu1 %vm611_vm2, %v1093_v13  ;;  %v3190_v13 = vrot.slane %v3188_v26, 2  ;;  %v3227_v26 = vshll.u32 %v7476_v16, 16  ;;  %v3226_v0 = vrot.slane %v3224_v33, 2  ;;  %v3263_v33 = vshll.u32 %v7523_v49, 16 }
 0x15b   : > { %5844 = vmatprep.mubr.msk.bf16.mxu1 %vm611_vm2, %v1095_v15  ;;  %v3197_v15 = vshrl.u32 %v7452_v41, 16 }
 0x15c   : > { %v3194_v32 = vor.u32 %v3193_v1, %v3190_v13  ;;  %4002 = vperm.xlu0 %6486, %v318_v5   ;;  %4007 = vperm.xlu1 %6487, %v319_v56   ;;  %v3229_v13 = vrot.slane %v3227_v26, 3  ;;  %v326_v1 = vld [vmem:[#allocation5 + $0xe0] sm:$0xff]  ;;  %v3236_v5 = vshll.u32 %v7489_v21, 16  ;;  %v3242_v56 = vshrl.u32 %v7494_v29, 16  ;;  %v332_v26 = vld [vmem:[#allocation5 + $0x110] sm:$0xff] }
 0x15e   : > { %6009 = vmatmul.mubr.msk.bf16.gmra.mrb[32].mxu0 %vm611_vm2, %v2866_v18  ;;  %v3199_v18 = vrot.slane %v3197_v15, 2  ;;  %v3195_v38 = vsel %vm3142_vm6, %v3185_v22, %v3194_v32  ;;  %v3233_v15 = vshrl.u32 %v7489_v21, 16  ;;  %v327_v22 = vld [vmem:[#allocation5 + $0xe8] sm:$0xff]  ;;  %v3230_v4 = vor.u32 %v3229_v13, %v3226_v0 }
 0x15f   : > { %6014 = vmatprep.mubr.msk.bf16.mxu0 %vm611_vm2, %v3159_v19  ;;  %v3211_v19 = vrot.slane %v3209_v31, 3  ;;  %v6554_v31 = vld [vmem:[%s7067_s11 + $0x20] sm:$0xff]   ;;  %v3265_v0 = vrot.slane %v3263_v33, 3 }
 0x160   : > { %4012 = vperm.xlu0 %6486, %v320_v17   ;;  %4017 = vperm.xlu1 %6487, %v321_v34   ;;  %v3203_v50 = vor.u32 %v3202_v35, %v3199_v18  ;;  %v3235_v18 = vrot.slane %v3233_v15, 2  ;;  %v329_v35 = vld [vmem:[#allocation5 + $0xf8] sm:$0xff] }
 0x162   : > { %5845 = vmatmul.mubr.msk.bf16.gmra.mrb[20].mxu1 %vm611_vm2, %v1097_v55  ;;  %v3212_v55 = vor.u32 %v3211_v19, %v3208_v36  ;;  %v3204_v63 = vsel %vm3142_vm6, %v3194_v32, %v3203_v50  ;;  %v328_v32 = vld [vmem:[#allocation5 + $0xf0] sm:$0xff]  ;;  %v1510_v19 = vrot.slane %v6554_v31, 1 }
 0x163   : > { %5848 = vmatprep.mubr.msk.bf16.mxu1 %vm611_vm2, %v1099_v2  ;;  %v6552_v2 = vld [vmem:[%s7067_s11 + $0x10] sm:$0xff]  }
 0x164   : > { %4022 = vperm.xlu0 %6486, %v322_v46   ;;  %4027 = vperm.xlu1 %6487, %v323_v40   ;;  %v3213_v59 = vsel %vm3142_vm6, %v3203_v50, %v3212_v55  ;;  %v6555_v50 = vld [vmem:[%s7067_s11 + $0x28] sm:$0xff]  }
 0x166   : > { %6015 = vmatmul.mubr.msk.bf16.vlgmr.msra.gmra.mrb[0].mxu0 %vm611_vm2, %v3168_v43  ;;  %v3217_v43 = vrot.slane %v3215_v44, 2  ;;  %v3254_v44 = vshll.u32 %v7518_v39, 16 }
 0x167   : > { %6051 = vmatpush3.bf16.msra.mxu0 %v3685_v24  ;;  %6018 = vmatprep.mubr.msk.bf16.mxu0 %vm611_vm2, %v3177_v58  ;;  %v3220_v24 = vrot.slane %v3218_v52, 3  ;;  %v1506_v58 = vrot.slane %v6552_v2, 1  ;;  %v331_v52 = vld [vmem:[#allocation5 + $0x108] sm:$0xff]  ;;  %v3260_v2 = vshrl.u32 %v7523_v49, 16 }
 0x168   : > { %4032 = vperm.xlu0 %6486, %v324_v54   ;;  %4037 = vperm.xlu1 %6487, %v325_v53  }
 0x169   : > { %v3221_v14 = vor.u32 %v3220_v24, %v3217_v43  ;;  %v1507_v27 = vsel %vm1072_vm5, %v1505_v57, %v1506_v58  ;;  %v3256_v43 = vrot.slane %v3254_v44, 3  ;;  %v333_v24 = vld [vmem:[#allocation5 + $0x118] sm:$0x3f]  ;;  %v1514_v57 = vrot.slane %v6556_v61, 1 }
 0x16a   : > { %5849 = vmatmul.mubr.msk.bf16.gmra.mrb[24].mxu1 %vm611_vm2, %v1101_v10  ;;  %v6553_v10 = vld [vmem:[%s7067_s11 + $0x18] sm:$0xff]   ;;  %v7693_v61 = vld [vmem:[%s7067_s11 + $0xa0] ss:$0 sps:$4 sm:$0x33]  }
 0x16b   : > { %5852 = vmatprep.mubr.msk.bf16.mxu1 %vm611_vm2, %v1103_v9  ;;  %v3245_v9 = vshll.u32 %v7494_v29, 16  ;;  %v3222_v17 = vsel %vm3142_vm6, %v3212_v55, %v3221_v14  ;;  %v1508_v6 = vrot.slane %v6553_v10, 1  ;;  %v3231_v36 = vsel %vm3142_vm6, %v3221_v14, %v3230_v4  ;;  %v6557_v14 = vld [vmem:[%s7067_s11 + $0x38] sm:$0xff]  }
 0x16c   : > { %4042 = vperm.xlu0 %6486, %v326_v1   ;;  %4047 = vperm.xlu1 %6487, %v327_v22   ;;  %v3251_v55 = vshrl.u32 %v7518_v39, 16  ;;  %v3272_v10 = vshll.u32 %v7537_v60, 16  ;;  %v6558_v22 = vld [vmem:[%s7067_s11 + $0x40] sm:$0xff]  }
 0x16d   : > { %v3247_v34 = vrot.slane %v3245_v9, 3  ;;  %v1511_v40 = vsel %vm1072_vm5, %v1508_v6, %v1510_v19 }
 0x16e   : > { %6019 = vmatmul.mubr.msk.bf16.gmra.mrb[4].mxu0 %vm611_vm2, %v3186_v23  ;;  %v3238_v23 = vrot.slane %v3236_v5, 3 }
 0x16f   : > { %6022 = vmatprep.mubr.msk.bf16.mxu0 %vm611_vm2, %v3195_v38  ;;  %v3244_v38 = vrot.slane %v3242_v56, 2  ;;  %v1516_v56 = vrot.slane %v6557_v14, 1 }
 0x170   : > { %4052 = vperm.xlu0 %6486, %v328_v32   ;;  %4057 = vperm.xlu1 %6487, %v329_v35   ;;  %v3239_v46 = vor.u32 %v3238_v23, %v3235_v18  ;;  %v3274_v32 = vrot.slane %v3272_v10, 3 }
 0x171   : > { %v1517_v35 = vsel %vm1072_vm5, %v1514_v57, %v1516_v56 }
 0x172   : > { %5853 = vmatmul.mubr.msk.bf16.gmra.mrb[28].mxu1 %vm611_vm2, %v1105_v51  ;;  %v330_v51 = vld [vmem:[#allocation5 + $0x100] sm:$0xff]  ;;  %v3240_v54 = vsel %vm3142_vm6, %v3230_v4, %v3239_v46  ;;  %v3281_v4 = vshll.u32 %v7542_v11, 16 }
 0x173   : > { %5856 = vmatprep.mubr.msk.bf16.mxu1 %vm611_vm2, %v1107_v62  ;;  %v3248_v62 = vor.u32 %v3247_v34, %v3244_v38  ;;  %v3287_v38 = vshrl.u32 %v7555_v47, 16  ;;  %v3290_v34 = vshll.u32 %v7555_v47, 16 }
 0x174   : > { %4062 = vperm.xlu0 %6486, %v330_v51   ;;  %4067 = vperm.xlu1 %6487, %v331_v52   ;;  %v3283_v23 = vrot.slane %v3281_v4, 3 }
 0x175   : > { %v3249_v53 = vsel %vm3142_vm6, %v3239_v46, %v3248_v62  ;;  %v6560_v46 = vld [vmem:[%s7067_s11 + $0x50] sm:$0xff]  }
 0x176   : > { %6023 = vmatmul.mubr.msk.bf16.gmra.mrb[8].mxu0 %vm611_vm2, %v3204_v63  ;;  %v1512_v63 = vrot.slane %v6555_v50, 1  ;;  %v3296_v50 = vshrl.u32 %v7559_v30, 16  ;;  %v1522_v33 = vrot.slane %v6560_v46, 1 }
 0x177   : > { %6026 = vmatprep.mubr.msk.bf16.mxu0 %vm611_vm2, %v3213_v59  ;;  %v3253_v59 = vrot.slane %v3251_v55, 2  ;;  %v3299_v55 = vshll.u32 %v7559_v30, 16 }
 0x178   : > { %4072 = vperm.xlu0 %6486, %v332_v26   ;;  %4077 = vperm.xlu1 %6487, %v333_v24   ;;  %v1513_v13 = vsel %vm1072_vm5, %v1510_v19, %v1512_v63  ;;  %v1515_v15 = vsel %vm1072_vm5, %v1512_v63, %v1514_v57  ;;  %v6559_v19 = vld [vmem:[%s7067_s11 + $0x48] sm:$0xff]   ;;  %v3298_v26 = vrot.slane %v3296_v50, 2  ;;  %v3305_v24 = vshrl.u32 %v7693_v61, 16 }
 0x179   : > { %v3257_v1 = vor.u32 %v3256_v43, %v3253_v59  ;;  %v1520_v52 = vrot.slane %v6559_v19, 1  ;;  %v6561_v43 = vld [vmem:[%s7067_s11 + $0x58] sm:$0xff]  }
 0x17a   : > { %5857 = vmatmul.mubr.msk.bf16.gmra.mrb[32].mxu1 %vm611_vm2, %v1106_v45  ;;  %v1509_v45 = vsel %vm1072_vm5, %v1506_v58, %v1508_v6  ;;  %v3262_v58 = vrot.slane %v3260_v2, 2  ;;  %v1518_v6 = vrot.slane %v6558_v22, 1  ;;  %v1524_v14 = vrot.slane %v6561_v43, 1 }
 0x17b   : > { %5862 = vmatprep.mubr.msk.bf16.mxu1 %vm611_vm2, %v1507_v27  ;;  %v3278_v27 = vshrl.u32 %v7542_v11, 16  ;;  %v3258_v31 = vsel %vm3142_vm6, %v3248_v62, %v3257_v1  ;;  %v3292_v62 = vrot.slane %v3290_v34, 3  ;;  %v1523_v57 = vsel %vm1072_vm5, %v1520_v52, %v1522_v33  ;;  %v6568_v34 = vld [vmem:[%s7067_s11 + $0x80] sm:$0xff]  }
 0x17c   : > { %v3266_v5 = vor.u32 %v3265_v0, %v3262_v58  ;;  %v1519_v51 = vsel %vm1072_vm5, %v1516_v56, %v1518_v6  ;;  %v1521_v63 = vsel %vm1072_vm5, %v1518_v6, %v1520_v52  ;;  %v6563_v0 = vld [vmem:[%s7067_s11 + $0x60] sm:$0xff]   ;;  %v1534_v50 = vrot.slane %v6568_v34, 1 }
 0x17d   : > { %v3280_v18 = vrot.slane %v3278_v27, 2  ;;  %v1525_v27 = vsel %vm1072_vm5, %v1522_v33, %v1524_v14  ;;  %v3602_v52 = vrot.slane %v7436_v48, 3  ;;  %v3614_v34 = vrot.slane %v7494_v29, 3 }
 0x17e   : > { %6027 = vmatmul.mubr.msk.bf16.gmra.mrb[12].mxu0 %vm611_vm2, %v3222_v17  ;;  %v3267_v17 = vsel %vm3142_vm6, %v3257_v1, %v3266_v5 }
 0x17f   : > { %6030 = vmatprep.mubr.msk.bf16.mxu0 %vm611_vm2, %v3231_v36 }
 0x182   : > { %5863 = vmatmul.mubr.msk.bf16.vlgmr.msra.gmra.mrb[0].mxu1 %vm611_vm2, %v1509_v45  ;;  %v3284_v45 = vor.u32 %v3283_v23, %v3280_v18 }
 0x183   : > { %5866 = vmatprep.mubr.msk.bf16.mxu1 %vm611_vm2, %v1511_v40  ;;  %6089 = vmatpush3.bf16.msra.mxu1 %v7084_v3  ;;  %v3269_v3 = vshrl.u32 %v7537_v60, 16  ;;  %v3289_v40 = vrot.slane %v3287_v38, 2  ;;  %v3598_v38 = vrot.slane %v7417_v28, 3  ;;  %v3600_v28 = vrot.slane %v7429_v42, 3 }
 0x185   : > { %v3271_v9 = vrot.slane %v3269_v3, 2  ;;  %v3293_v59 = vor.u32 %v3292_v62, %v3289_v40  ;;  %v3307_v3 = vrot.slane %v3305_v24, 2  ;;  %v6570_v40 = vld [vmem:[%s7067_s11 + $0x90] sm:$0xff]   ;;  %v3601_v62 = vsel %vm3592_vm7, %v3598_v38, %v3600_v28 }
 0x186   : > { %6031 = vmatmul.mubr.msk.bf16.gmra.mrb[16].mxu0 %vm611_vm2, %v3240_v54  ;;  %v3301_v54 = vrot.slane %v3299_v55, 3  ;;  %v6569_v55 = vld [vmem:[%s7067_s11 + $0x88] sm:$0xff]   ;;  %v3603_v33 = vsel %vm3592_vm7, %v3600_v28, %v3602_v52  ;;  %v3606_v24 = vrot.slane %v7456_v20, 3  ;;  %v3608_v20 = vrot.slane %v7471_v7, 3 }
 0x187   : > { %6034 = vmatprep.mubr.msk.bf16.mxu0 %vm611_vm2, %v3249_v53  ;;  %v3275_v36 = vor.u32 %v3274_v32, %v3271_v9  ;;  %v3308_v53 = vshll.u32 %v7693_v61, 16  ;;  %v3294_v1 = vsel %vm3142_vm6, %v3284_v45, %v3293_v59  ;;  %v3594_v32 = vrot.slane %v7401_v25, 3 }
 0x188   : > { %v3302_v58 = vor.u32 %v3301_v54, %v3298_v26  ;;  %v3596_v25 = vrot.slane %v7413_v37, 3  ;;  %v1538_v26 = vrot.slane %v6570_v40, 1  ;;  %v6574_v54 = vld [vmem:[%s7067_s11 + $0x60] sm:$0xff]  }
 0x189   : > { %v3276_v44 = vsel %vm3142_vm6, %v3266_v5, %v3275_v36  ;;  %v3285_v2 = vsel %vm3142_vm6, %v3275_v36, %v3284_v45  ;;  %v3310_v10 = vrot.slane %v3308_v53, 3  ;;  %v1526_v5 = vrot.slane %v6563_v0, 1  ;;  %v6567_v36 = vld [vmem:[%s7067_s11 + $0x78] sm:$0xff]   ;;  %v6575_v0 = vld [vmem:[%s7067_s11 + $0x68] sm:$0xff]  }
 0x18a   : > { %5867 = vmatmul.mubr.msk.bf16.gmra.mrb[4].mxu1 %vm611_vm2, %v1513_v13  ;;  %v3587_v13 = vld [vmem:[%s7067_s11 + $0x10] sm:$0x8]  ;;  %v1532_v45 = vrot.slane %v6567_v36, 1  ;;  %v3599_v46 = vsel %vm3592_vm7, %v3596_v25, %v3598_v38  ;;  %v2048_v42 = vshll.u32 %v6574_v54, 16 }
 0x18b   : > { %5870 = vmatprep.mubr.msk.bf16.mxu1 %vm611_vm2, %v1515_v15  ;;  %v3303_v15 = vsel %vm3142_vm6, %v3293_v59, %v3302_v58  ;;  %v5479_v22 = vcombine.low %v3587_v13, %v7388_v8  ;;  %v3311_v4 = vor.u32 %v3310_v10, %v3307_v3  ;;  %v1527_v56 = vsel %vm1072_vm5, %v1524_v14, %v1526_v5  ;;  %v6576_v10 = vld [vmem:[%s7067_s11 + $0x70] sm:$0xff]  }
 0x18c   : > { %v3604_v59 = vrot.slane %v7452_v41, 3  ;;  %v2054_v13 = vshrl.u32 %v6575_v0, 16  ;;  %v2063_v41 = vshrl.u32 %v6576_v10, 16 }
 0x18d   : > { %v3593_v9 = vrot.slane %v5479_v22, 3  ;;  %v3312_v8 = vsel %vm3142_vm6, %v3302_v58, %v3311_v4  ;;  %v3610_v4 = vrot.slane %v7476_v16, 3 }
 0x18e   : > { %6035 = vmatmul.mubr.msk.bf16.gmra.mrb[20].mxu0 %vm611_vm2, %v3258_v31  ;;  %v6565_v31 = vld [vmem:[%s7067_s11 + $0x68] sm:$0xff]   ;;  %v3605_v58 = vsel %vm3592_vm7, %v3602_v52, %v3604_v59  ;;  %v3607_v14 = vsel %vm3592_vm7, %v3604_v59, %v3606_v24  ;;  %v6580_v52 = vld [vmem:[%s7067_s11 + $0x90] sm:$0xff]  }
 0x18f   : > { %6038 = vmatprep.mubr.msk.bf16.mxu0 %vm611_vm2, %v3267_v17  ;;  %v6566_v17 = vld [vmem:[%s7067_s11 + $0x70] sm:$0xff]   ;;  %v1528_v6 = vrot.slane %v6565_v31, 1  ;;  %v3595_v18 = vsel %vm3592_vm7, %v3593_v9, %v3594_v32  ;;  %v2065_v31 = vrot.slane %v2063_v41, 1  ;;  %v3609_v9 = vsel %vm3592_vm7, %v3606_v24, %v3608_v20 }
 0x190   : > { %v1530_v23 = vrot.slane %v6566_v17, 1  ;;  %v6577_v17 = vld [vmem:[%s7067_s11 + $0x78] sm:$0xff]   ;;  %v2099_v40 = vshrl.u32 %v6580_v52, 16 }
 0x191   : > { %v2075_v7 = vshll.u32 %v6577_v17, 16 }
 0x192   : > { %5871 = vmatmul.mubr.msk.bf16.gmra.mrb[8].mxu1 %vm611_vm2, %v1517_v35  ;;  %v1529_v35 = vsel %vm1072_vm5, %v1526_v5, %v1528_v6  ;;  %v1531_v19 = vsel %vm1072_vm5, %v1528_v6, %v1530_v23  ;;  %v1533_v37 = vsel %vm1072_vm5, %v1530_v23, %v1532_v45  ;;  %v2056_v5 = vrot.slane %v2054_v13, 1  ;;  %v6578_v23 = vld [vmem:[%s7067_s11 + $0x80] sm:$0xff]  }
 0x193   : > { %5874 = vmatprep.mubr.msk.bf16.mxu1 %vm611_vm2, %v1519_v51  ;;  %v3597_v51 = vsel %vm3592_vm7, %v3594_v32, %v3596_v25  ;;  %v3611_v6 = vsel %vm3592_vm7, %v3608_v20, %v3610_v4  ;;  %v3612_v25 = vrot.slane %v7489_v21, 3  ;;  %v3622_v13 = vrot.slane %v7542_v11, 3 }
 0x194   : > { %v3626_v11 = vrot.slane %v7559_v30, 3  ;;  %v3628_v20 = vrot.slane %v7693_v61, 3  ;;  %v7822_v61 = vpop.permute.xlu1 %3912 }
 0x195   : > { %v3615_v21 = vsel %vm3592_vm7, %v3612_v25, %v3614_v34  ;;  %9039 = vst [vmem:[#allocation17_spill] sm:$0xff] %v7822_v61 }
 0x196   : > { %6039 = vmatmul.mubr.msk.bf16.gmra.mrb[24].mxu0 %vm611_vm2, %v3276_v44  ;;  %v1535_v44 = vsel %vm1072_vm5, %v1532_v45, %v1534_v50 }
 0x197   : > { %6042 = vmatprep.mubr.msk.bf16.mxu0 %vm611_vm2, %v3285_v2  ;;  %v1536_v2 = vrot.slane %v6569_v55, 1 }
 0x199   : > { %v1537_v48 = vsel %vm1072_vm5, %v1534_v50, %v1536_v2  ;;  %v1539_v43 = vsel %vm1072_vm5, %v1536_v2, %v1538_v26  ;;  %v3616_v2 = vrot.slane %v7518_v39, 3 }
 0x19a   : > { %5875 = vmatmul.mubr.msk.bf16.gmra.mrb[12].mxu1 %vm611_vm2, %v1521_v63  ;;  %v2045_v63 = vshrl.u32 %v6574_v54, 16 }
 0x19b   : > { %5878 = vmatprep.mubr.msk.bf16.mxu1 %vm611_vm2, %v1523_v57  ;;  %v2050_v57 = vrot.slane %v2048_v42, 2  ;;  %v2101_v42 = vrot.slane %v2099_v40, 1  ;;  %v3617_v59 = vsel %vm3592_vm7, %v3614_v34, %v3616_v2 }
 0x19c   : > { %v2047_v53 = vrot.slane %v2045_v63, 1  ;;  %v3618_v63 = vrot.slane %v7523_v49, 3  ;;  %v3620_v49 = vrot.slane %v7537_v60, 3 }
 0x19e   : > { %6043 = vmatmul.mubr.msk.bf16.gmra.mrb[28].mxu0 %vm611_vm2, %v3294_v1  ;;  %v2057_v1 = vshll.u32 %v6575_v0, 16  ;;  %v2051_v3 = vor.u32 %v2050_v57, %v2047_v53  ;;  %v3619_v24 = vsel %vm3592_vm7, %v3616_v2, %v3618_v63  ;;  %v6581_v57 = vld [vmem:[%s7067_s11 + $0x98] ss:$0 sps:$4 sm:$0x11]  }
 0x19f   : > { %6046 = vmatprep.mubr.msk.bf16.mxu0 %vm611_vm2, %v3303_v15  ;;  %v2066_v15 = vshll.u32 %v6576_v10, 16  ;;  %v3624_v10 = vrot.slane %v7555_v47, 3  ;;  %v4551_v47 = vld [vmem:[%s7507_s24 + $0x8] sm:$0x3] }
 0x1a0   : > { %v2059_v22 = vrot.slane %v2057_v1, 2  ;;  %v3621_v1 = vsel %vm3592_vm7, %v3618_v63, %v3620_v49  ;;  %v4552_v30 = vsel %vm4550_vm9, 0, %v4551_v47 }
 0x1a1   : > { %v3625_v41 = vsel %vm3592_vm7, %v3622_v13, %v3624_v10  ;;  %4553 = vst [vmem:[%s7507_s24 + $0x8] sm:$0x3] %v4552_v30 }
 0x1a2   : > { %5879 = vmatmul.mubr.msk.bf16.gmra.mrb[16].mxu1 %vm611_vm2, %v1525_v27  ;;  %v2052_v27 = vsel %vm1945_vm3, %v7257_v12, %v2051_v3  ;;  %v2060_v32 = vor.u32 %v2059_v22, %v2056_v5  ;;  %v2084_v12 = vshll.u32 %v6578_v23, 16  ;;  %v3629_v5 = vsel %vm3592_vm7, %v3626_v11, %v3628_v20 }
 0x1a3   : > { %5882 = vmatprep.mubr.msk.bf16.mxu1 %vm611_vm2, %v1527_v56  ;;  %v2068_v56 = vrot.slane %v2066_v15, 2  ;;  %v3627_v15 = vsel %vm3592_vm7, %v3624_v10, %v3626_v11 }
 0x1a4   : > { %v2061_v16 = vsel %vm1945_vm3, %v2051_v3, %v2060_v32  ;;  %v2086_v45 = vrot.slane %v2084_v12, 2  ;;  %v3623_v3 = vsel %vm3592_vm7, %v3620_v49, %v3622_v13 }
 0x1a6   : > { %6047 = vmatmul.mubr.msk.bf16.gmra.mrb[32].mxu0 %vm611_vm2, %v3312_v8  ;;  %v2072_v8 = vshrl.u32 %v6577_v17, 16 }
 0x1a7   : > { %6052 = vmatprep.mubr.msk.bf16.mxu0 %vm611_vm2, %v3595_v18  ;;  %v2069_v18 = vor.u32 %v2068_v56, %v2065_v31 }
 0x1a8   : > { %v2074_v36 = vrot.slane %v2072_v8, 1 }
 0x1a9   : > { %v2070_v38 = vsel %vm1945_vm3, %v2060_v32, %v2069_v18 }
 0x1aa   : > { %5883 = vmatmul.mubr.msk.bf16.gmra.mrb[20].mxu1 %vm611_vm2, %v1529_v35  ;;  %v2081_v35 = vshrl.u32 %v6578_v23, 16 }
 0x1ab   : > { %5886 = vmatprep.mubr.msk.bf16.mxu1 %vm611_vm2, %v1531_v19  ;;  %v2077_v19 = vrot.slane %v2075_v7, 2 }
 0x1ad   : > { %v2078_v50 = vor.u32 %v2077_v19, %v2074_v36 }
 0x1ae   : > { %6053 = vmatmul.mubr.msk.bf16.vlgmr.msra.gmra.mrb[0].mxu0 %vm611_vm2, %v3597_v51  ;;  %v2083_v51 = vrot.slane %v2081_v35, 1 }
 0x1af   : > { %6056 = vmatprep.mubr.msk.bf16.mxu0 %vm611_vm2, %v3599_v46  ;;  %v3613_v46 = vsel %vm3592_vm7, %v3610_v4, %v3612_v25  ;;  %v2079_v29 = vsel %vm1945_vm3, %v2069_v18, %v2078_v50 }
 0x1b2   : > { %5887 = vmatmul.mubr.msk.bf16.gmra.mrb[24].mxu1 %vm611_vm2, %v1533_v37  ;;  %v6579_v37 = vld [vmem:[%s7067_s11 + $0x88] sm:$0xff]  }
 0x1b3   : > { %5890 = vmatprep.mubr.msk.bf16.mxu1 %vm611_vm2, %v1535_v44  ;;  %v2090_v28 = vshrl.u32 %v6579_v37, 16  ;;  %v2093_v55 = vshll.u32 %v6579_v37, 16  ;;  %v2087_v44 = vor.u32 %v2086_v45, %v2083_v51 }
 0x1b5   : > { %v2088_v54 = vsel %vm1945_vm3, %v2078_v50, %v2087_v44 }
 0x1b6   : > { %6057 = vmatmul.mubr.msk.bf16.gmra.mrb[4].mxu0 %vm611_vm2, %v3601_v62  ;;  %v2102_v62 = vshll.u32 %v6580_v52, 16 }
 0x1b7   : > { %6060 = vmatprep.mubr.msk.bf16.mxu0 %vm611_vm2, %v3603_v33  ;;  %v2092_v33 = vrot.slane %v2090_v28, 1 }
 0x1ba   : > { %5891 = vmatmul.mubr.msk.bf16.gmra.mrb[28].mxu1 %vm611_vm2, %v1537_v48  ;;  %v2104_v48 = vrot.slane %v2102_v62, 2 }
 0x1bb   : > { %5894 = vmatprep.mubr.msk.bf16.mxu1 %vm611_vm2, %v1539_v43 }
 0x1bc   : > { %v2105_v53 = vor.u32 %v2104_v48, %v2101_v42 }
 0x1be   : > { %6061 = vmatmul.mubr.msk.bf16.gmra.mrb[8].mxu0 %vm611_vm2, %v3605_v58  ;;  %v2108_v58 = vshll.u32 %v6581_v57, 16 }
 0x1bf   : > { %6064 = vmatprep.mubr.msk.bf16.mxu0 %vm611_vm2, %v3607_v14 }
 0x1c0   : > { %v2110_v14 = vrot.slane %v2108_v58, 2 }
 0x1c2   : > { %5895 = vmatmul.mubr.msk.bf16.gmra.mrb[32].mxu1 %vm611_vm2, %v1538_v26  ;;  %v2095_v26 = vrot.slane %v2093_v55, 2  ;;  %v2111_v60 = vsel %vm1945_vm3, %v2105_v53, %v2110_v14 }
 0x1c3   : > { %5920 = vmatprep.mubr.msk.bf16.mxu1 %vm611_vm2, %v2052_v27 }
 0x1c4   : > { %v2096_v43 = vor.u32 %v2095_v26, %v2092_v33 }
 0x1c6   : > { %6065 = vmatmul.mubr.msk.bf16.gmra.mrb[12].mxu0 %vm611_vm2, %v3609_v9  ;;  %v2097_v39 = vsel %vm1945_vm3, %v2087_v44, %v2096_v43  ;;  %v2106_v0 = vsel %vm1945_vm3, %v2096_v43, %v2105_v53  ;;  %v7820_v9 = vpop.permute.xlu0 %3902 }
 0x1c7   : > { %6068 = vmatprep.mubr.msk.bf16.mxu0 %vm611_vm2, %v3611_v6  ;;  %9038 = vst [vmem:[#allocation16_spill] sm:$0xff] %v7820_v9  ;;  %v7826_v6 = vpop.permute.xlu1 %3917 }
 0x1c8   : > { %9041 = vst [vmem:[#allocation19_spill] sm:$0xff] %v7826_v6 }
 0x1ca   : > { %5921 = vmatmul.mubr.msk.bf16.vlgmr.msra.gmra.mrb[20].mxu1 %vm611_vm2, %v2061_v16  ;;  %v7824_v7 = vpop.permute.xlu0 %3907 }
 0x1cb   : > { %5924 = vmatprep.mubr.msk.bf16.mxu1 %vm611_vm2, %v2070_v38  ;;  %9040 = vst [vmem:[#allocation18_spill] sm:$0xff] %v7824_v7  ;;  %v7838_v25 = vpop.permute.xlu1 %3927 }
 0x1cc   : > { %9043 = vst [vmem:[#allocation21_spill] sm:$0xff] %v7838_v25 }
 0x1ce   : > { %6069 = vmatmul.mubr.msk.bf16.gmra.mrb[16].mxu0 %vm611_vm2, %v3613_v46  ;;  %v7836_v16 = vpop.permute.xlu0 %3922 }
 0x1cf   : > { %6072 = vmatprep.mubr.msk.bf16.mxu0 %vm611_vm2, %v3615_v21  ;;  %9042 = vst [vmem:[#allocation20_spill] sm:$0xff] %v7836_v16  ;;  %v7850_v45 = vpop.permute.xlu1 %3937 }
 0x1d0   : > { %9045 = vst [vmem:[#allocation23_spill] sm:$0xff] %v7850_v45 }
 0x1d2   : > { %5925 = vmatmul.mubr.msk.bf16.gmra.mrb[24].mxu1 %vm611_vm2, %v2079_v29  ;;  %v7846_v34 = vpop.permute.xlu0 %3932 }
 0x1d3   : > { %5928 = vmatprep.mubr.msk.bf16.mxu1 %vm611_vm2, %v2088_v54  ;;  %9044 = vst [vmem:[#allocation22_spill] sm:$0xff] %v7846_v34  ;;  %v7858_v28 = vpop.permute.xlu1 %3947 }
 0x1d4   : > { %9047 = vst [vmem:[#allocation25_spill] sm:$0xff] %v7858_v28 }
 0x1d6   : > { %6073 = vmatmul.mubr.msk.bf16.gmra.mrb[20].mxu0 %vm611_vm2, %v3617_v59  ;;  %v7854_v50 = vpop.permute.xlu0 %3942 }
 0x1d7   : > { %6076 = vmatprep.mubr.msk.bf16.mxu0 %vm611_vm2, %v3619_v24  ;;  %9046 = vst [vmem:[#allocation24_spill] sm:$0xff] %v7854_v50  ;;  %v7866_v52 = vpop.permute.xlu1 %3957 }
 0x1d8   : > { %9049 = vst [vmem:[#allocation27_spill] sm:$0xff] %v7866_v52 }
 0x1da   : > { %5929 = vmatmul.mubr.msk.bf16.gmra.mrb[28].mxu1 %vm611_vm2, %v2097_v39  ;;  %v7864_v44 = vpop.permute.xlu0 %3952 }
 0x1db   : > { %5932 = vmatprep.mubr.msk.bf16.mxu1 %vm611_vm2, %v2106_v0  ;;  %9048 = vst [vmem:[#allocation26_spill] sm:$0xff] %v7864_v44  ;;  %v7872_v33 = vpop.permute.xlu1 %3967 }
 0x1dc   : > { %9051 = vst [vmem:[#allocation29_spill] sm:$0xff] %v7872_v33 }
 0x1de   : > { %6077 = vmatmul.mubr.msk.bf16.gmra.mrb[24].mxu0 %vm611_vm2, %v3621_v1  ;;  %v7868_v62 = vpop.permute.xlu0 %3962 }
 0x1df   : > { %6080 = vmatprep.mubr.msk.bf16.mxu0 %vm611_vm2, %v3623_v3  ;;  %9050 = vst [vmem:[#allocation28_spill] sm:$0xff] %v7868_v62  ;;  %v7890_v49 = vpop.permute.xlu1 %3977 }
 0x1e0   : > { %9053 = vst [vmem:[#allocation31_spill] sm:$0xff] %v7890_v49 }
 0x1e2   : > { %5933 = vmatmul.mubr.msk.bf16.gmra.mrb[32].mxu1 %vm611_vm2, %v2111_v60  ;;  %v7886_v53 = vpop.permute.xlu0 %3972 }
 0x1e3   : > { %9052 = vst [vmem:[#allocation30_spill] sm:$0xff] %v7886_v53 }
 0x1e6   : > { %6081 = vmatmul.mubr.msk.bf16.gmra.mrb[28].mxu0 %vm611_vm2, %v3625_v41 }
 0x1e7   : > { %6084 = vmatprep.mubr.msk.bf16.mxu0 %vm611_vm2, %v3627_v15 }
 0x1ee   : > { %6085 = vmatmul.mubr.msk.bf16.gmra.mrb[32].mxu0 %vm611_vm2, %v3629_v5 }
 0x255   : > { %v5864_v22 = vpop.f32.mrb[0].mxu1 }
 0x256   : > { %v1635_v27 = vpop.f32.mrb[1].mxu1 }
 0x257   : > { %v5865_v4 = vpop.f32.mrb[2].mxu1 }
 0x258   : > { %v1638_v31 = vpop.f32.mrb[3].mxu1 }
 0x25d   : > { %v5868_v56 = vpop.f32.mrb[4].mxu1 }
 0x25e   : > { %v1651_v32 = vpop.f32.mrb[5].mxu1 }
 0x25f   : > { %v5869_v17 = vpop.f32.mrb[6].mxu1 }
 0x260   : > { %v1654_v8 = vpop.f32.mrb[7].mxu1 }
 0x265   : > { %v7828_v18 = vpop.f32.mrb[8].mxu1 }
 0x266   : > { %v7830_v23 = vpop.f32.mrb[9].mxu1 }
 0x267   : > { %v7832_v35 = vpop.f32.mrb[10].mxu1 }
 0x268   : > { %v7834_v12 = vpop.f32.mrb[11].mxu1 }
 0x26d   : > { %v7840_v36 = vpop.f32.mrb[12].mxu1 }
 0x26e   : > { %v7842_v19 = vpop.f32.mrb[13].mxu1 }
 0x26f   : > { %v7844_v38 = vpop.f32.mrb[14].mxu1 }
 0x270   : > { %v7848_v51 = vpop.f32.mrb[15].mxu1 }
 0x275   : > { %v7852_v46 = vpop.f32.mrb[16].mxu1 }
 0x276   : > { %v7856_v37 = vpop.f32.mrb[17].mxu1 }
 0x277   : > { %v7860_v55 = vpop.f32.mrb[18].mxu1 }
 0x278   : > { %v7862_v21 = vpop.f32.mrb[19].mxu1 }
 0x281   : > { %v6054_v40 = vpop.f32.mrb[0].mxu0 }
 0x282   : > { %v7870_v29 = vadd.f32 %v6054_v40, %v5864_v22  ;;  %v3721_v2 = vpop.f32.mrb[1].mxu0 }
 0x283   : > { %v7874_v26 = vadd.f32 %v3721_v2, %v1635_v27  ;;  %v6055_v54 = vpop.f32.mrb[2].mxu0 }
 0x284   : > { %v7876_v63 = vadd.f32 %v6055_v54, %v5865_v4  ;;  %v3724_v42 = vpop.f32.mrb[3].mxu0  ;;  %v4082_v43 = vmul.f32 %v7870_v29, %v7822_v61  ;;  %v7906_v4 = vpop.permute.xlu0 %3982 }
 0x285   : > { %v4080_v48 = vmul.f32 %v7874_v26, %v7820_v9  ;;  %v7880_v59 = vadd.f32 %v3724_v42, %v1638_v31  ;;  %9054 = vst [vmem:[#allocation32_spill] sm:$0xff] %v7906_v4 }
 0x286   : > { %v4083_v39 = vmul.f32 %v7876_v63, %v7826_v6  ;;  %v4161_v3 = vmul.f32 %v7870_v29, %v4082_v43 }
 0x287   : > { %v4081_v24 = vmul.f32 %v7880_v59, %v7824_v7  ;;  %v4159_v57 = vmul.f32 %v7874_v26, %v4080_v48 }
 0x288   : > { %v4162_v15 = vmul.f32 %v7876_v63, %v4083_v39 }
 0x289   : > { %v4116_v58 = vadd.f32 %v4081_v24, %v4080_v48  ;;  %v4160_v0 = vmul.f32 %v7880_v59, %v4081_v24  ;;  %v6058_v13 = vpop.f32.mrb[4].mxu0 }
 0x28a   : > { %v7894_v1 = vadd.f32 %v6058_v13, %v5868_v56  ;;  %v3737_v14 = vpop.f32.mrb[5].mxu0  ;;  %v7910_v56 = vpop.permute.xlu1 %3987 }
 0x28b   : > { %v4117_v60 = vadd.f32 %v4116_v58, %v4082_v43  ;;  %v4195_v10 = vadd.f32 %v4160_v0, %v4159_v57  ;;  %v7897_v11 = vadd.f32 %v3737_v14, %v1651_v32  ;;  %v6059_v41 = vpop.f32.mrb[6].mxu0  ;;  %9055 = vst [vmem:[#allocation33_spill] sm:$0xff] %v7910_v56 }
 0x28c   : > { %v7900_v20 = vadd.f32 %v6059_v41, %v5869_v17  ;;  %v3740_v5 = vpop.f32.mrb[7].mxu0  ;;  %v4086_v31 = vmul.f32 %v7894_v1, %v7846_v34 }
 0x28d   : > { %v4196_v47 = vadd.f32 %v4195_v10, %v4161_v3  ;;  %v4084_v30 = vmul.f32 %v7897_v11, %v7836_v16  ;;  %v4118_v22 = vadd.f32 %v4117_v60, %v4083_v39  ;;  %v7904_v27 = vadd.f32 %v3740_v5, %v1654_v8  ;;  %v7925_v3 = vpop.permute.xlu0 %3992 }
 0x28e   : > { %v4087_v54 = vmul.f32 %v7900_v20, %v7850_v45  ;;  %v4165_v57 = vmul.f32 %v7894_v1, %v4086_v31  ;;  %9056 = vst [vmem:[#allocation34_spill] sm:$0xff] %v7925_v3 }
 0x28f   : > { %v4119_v32 = vadd.f32 %v4118_v22, %v4084_v30  ;;  %v4163_v40 = vmul.f32 %v7897_v11, %v4084_v30  ;;  %v4197_v17 = vadd.f32 %v4196_v47, %v4162_v15  ;;  %v4085_v2 = vmul.f32 %v7904_v27, %v7838_v25  ;;  %v7931_v15 = vpop.permute.xlu1 %3997 }
 0x290   : > { %v4166_v60 = vmul.f32 %v7900_v20, %v4087_v54  ;;  %9057 = vst [vmem:[#allocation35_spill] sm:$0xff] %v7931_v15 }
 0x291   : > { %v4198_v42 = vadd.f32 %v4197_v17, %v4163_v40  ;;  %v4120_v8 = vadd.f32 %v4119_v32, %v4085_v2  ;;  %v4164_v48 = vmul.f32 %v7904_v27, %v4085_v2  ;;  %v6062_v43 = vpop.f32.mrb[8].mxu0 }
 0x292   : > { %v7919_v24 = vadd.f32 %v6062_v43, %v7828_v18  ;;  %v3753_v39 = vpop.f32.mrb[9].mxu0 }
 0x293   : > { %v4121_v58 = vadd.f32 %v4120_v8, %v4086_v31  ;;  %v4199_v0 = vadd.f32 %v4198_v42, %v4164_v48  ;;  %v7923_v13 = vadd.f32 %v3753_v39, %v7830_v23  ;;  %v6063_v14 = vpop.f32.mrb[10].mxu0  ;;  %v7951_v43 = vpop.permute.xlu1 %4007 }
 0x294   : > { %v7929_v10 = vadd.f32 %v6063_v14, %v7832_v35  ;;  %v3756_v41 = vpop.f32.mrb[11].mxu0  ;;  %v4090_v23 = vmul.f32 %v7919_v24, %v7864_v44  ;;  %9059 = vst [vmem:[#allocation37_spill] sm:$0xff] %v7951_v43 }
 0x295   : > { %v4200_v18 = vadd.f32 %v4199_v0, %v4165_v57  ;;  %v4088_v5 = vmul.f32 %v7923_v13, %v7854_v50  ;;  %v4122_v47 = vadd.f32 %v4121_v58, %v4087_v54  ;;  %v7936_v30 = vadd.f32 %v3756_v41, %v7834_v12  ;;  %v7946_v12 = vpop.permute.xlu0 %4002 }
 0x296   : > { %v4091_v40 = vmul.f32 %v7929_v10, %v7866_v52  ;;  %9058 = vst [vmem:[#allocation36_spill] sm:$0xff] %v7946_v12  ;;  %v4169_v39 = vmul.f32 %v7919_v24, %v4090_v23 }
 0x297   : > { %v4123_v22 = vadd.f32 %v4122_v47, %v4088_v5  ;;  %v4167_v31 = vmul.f32 %v7923_v13, %v4088_v5  ;;  %v4201_v32 = vadd.f32 %v4200_v18, %v4166_v60  ;;  %v4089_v35 = vmul.f32 %v7936_v30, %v7858_v28 }
 0x298   : > { %v4170_v60 = vmul.f32 %v7929_v10, %v4091_v40 }
 0x299   : > { %v4202_v17 = vadd.f32 %v4201_v32, %v4167_v31  ;;  %v4124_v2 = vadd.f32 %v4123_v22, %v4089_v35  ;;  %v4168_v54 = vmul.f32 %v7936_v30, %v4089_v35  ;;  %v6066_v42 = vpop.f32.mrb[12].mxu0 }
 0x29a   : > { %v7949_v8 = vadd.f32 %v6066_v42, %v7840_v36  ;;  %v3769_v48 = vpop.f32.mrb[13].mxu0  ;;  %v7975_v42 = vpop.permute.xlu1 %4017 }
 0x29b   : > { %v4125_v57 = vadd.f32 %v4124_v2, %v4090_v23  ;;  %v4203_v58 = vadd.f32 %v4202_v17, %v4168_v54  ;;  %v7955_v0 = vadd.f32 %v3769_v48, %v7842_v19  ;;  %v6067_v14 = vpop.f32.mrb[14].mxu0  ;;  %v7971_v54 = vpop.permute.xlu0 %4012  ;;  %9061 = vst [vmem:[#allocation39_spill] sm:$0xff] %v7975_v42 }
 0x29c   : > { %v7959_v41 = vadd.f32 %v6067_v14, %v7844_v38  ;;  %v3772_v18 = vpop.f32.mrb[15].mxu0  ;;  %v4094_v19 = vmul.f32 %v7949_v8, %v7886_v53  ;;  %9060 = vst [vmem:[#allocation38_spill] sm:$0xff] %v7971_v54 }
 0x29d   : > { %v4204_v5 = vadd.f32 %v4203_v58, %v4169_v39  ;;  %v4092_v36 = vmul.f32 %v7955_v0, %v7868_v62  ;;  %v4126_v47 = vadd.f32 %v4125_v57, %v4091_v40  ;;  %v7964_v22 = vadd.f32 %v3772_v18, %v7848_v51  ;;  %v5922_v23 = vpop.f32.mrb[20].mxu1 }
 0x29e   : > { %v2283_v31 = vpop.f32.mrb[21].mxu1  ;;  %v4095_v40 = vmul.f32 %v7959_v41, %v7890_v49  ;;  %v4173_v18 = vmul.f32 %v7949_v8, %v4094_v19 }
 0x29f   : > { %v4127_v32 = vadd.f32 %v4126_v47, %v4092_v36  ;;  %v4171_v35 = vmul.f32 %v7955_v0, %v4092_v36  ;;  %v4205_v17 = vadd.f32 %v4204_v5, %v4170_v60  ;;  %v4093_v38 = vmul.f32 %v7964_v22, %v7872_v33  ;;  %v5923_v2 = vpop.f32.mrb[22].mxu1 }
 0x2a0   : > { %v2286_v51 = vpop.f32.mrb[23].mxu1  ;;  %v4174_v53 = vmul.f32 %v7959_v41, %v4095_v40 }
 0x2a1   : > { %v4206_v48 = vadd.f32 %v4205_v17, %v4171_v35  ;;  %v4128_v39 = vadd.f32 %v4127_v32, %v4093_v38  ;;  %v4172_v57 = vmul.f32 %v7964_v22, %v4093_v38  ;;  %v6070_v58 = vpop.f32.mrb[16].mxu0 }
 0x2a2   : > { %v7979_v14 = vadd.f32 %v6070_v58, %v7852_v46  ;;  %v3785_v60 = vpop.f32.mrb[17].mxu0 }
 0x2a3   : > { %v4129_v5 = vadd.f32 %v4128_v39, %v4094_v19  ;;  %v4207_v36 = vadd.f32 %v4206_v48, %v4172_v57  ;;  %v7983_v47 = vadd.f32 %v3785_v60, %v7856_v37  ;;  %v6071_v49 = vpop.f32.mrb[18].mxu0  ;;  %v7994_v48 = vpop.permute.xlu0 %4022 }
 0x2a4   : > { %v7987_v35 = vadd.f32 %v6071_v49, %v7860_v55  ;;  %v3788_v32 = vpop.f32.mrb[19].mxu0  ;;  %9062 = vst [vmem:[#allocation40_spill] sm:$0xff] %v7994_v48  ;;  %v4098_v37 = vmul.f32 %v7979_v14, %v7925_v3  ;;  %v7998_v57 = vpop.permute.xlu1 %4027 }
 0x2a5   : > { %v4208_v17 = vadd.f32 %v4207_v36, %v4173_v18  ;;  %v4096_v46 = vmul.f32 %v7983_v47, %v7906_v4  ;;  %v4130_v38 = vadd.f32 %v4129_v5, %v4095_v40  ;;  %v7992_v58 = vadd.f32 %v3788_v32, %v7862_v21  ;;  %v5926_v19 = vpop.f32.mrb[24].mxu1  ;;  %9063 = vst [vmem:[#allocation41_spill] sm:$0xff] %v7998_v57 }
 0x2a6   : > { %v2299_v39 = vpop.f32.mrb[25].mxu1  ;;  %v4099_v21 = vmul.f32 %v7987_v35, %v7931_v15 }
 0x2a7   : > { %v4131_v55 = vadd.f32 %v4130_v38, %v4096_v46  ;;  %v4175_v49 = vmul.f32 %v7983_v47, %v4096_v46  ;;  %v4209_v60 = vadd.f32 %v4208_v17, %v4174_v53  ;;  %v4097_v18 = vmul.f32 %v7992_v58, %v7910_v56  ;;  %v5927_v40 = vpop.f32.mrb[26].mxu1  ;;  %v8011_v52 = vpop.permute.xlu0 %4032 }
 0x2a8   : > { %v2302_v5 = vpop.f32.mrb[27].mxu1  ;;  %v4177_v38 = vmul.f32 %v7979_v14, %v4098_v37  ;;  %9064 = vst [vmem:[#allocation42_spill] sm:$0xff] %v8011_v52  ;;  %v4178_v15 = vmul.f32 %v7987_v35, %v4099_v21 }
 0x2a9   : > { %v4210_v36 = vadd.f32 %v4209_v60, %v4175_v49  ;;  %v4132_v32 = vadd.f32 %v4131_v55, %v4097_v18  ;;  %v4176_v4 = vmul.f32 %v7992_v58, %v4097_v18  ;;  %v6074_v3 = vpop.f32.mrb[20].mxu0  ;;  %v8016_v49 = vpop.permute.xlu1 %4037 }
 0x2aa   : > { %v8006_v33 = vadd.f32 %v6074_v3, %v5922_v23  ;;  %v3801_v62 = vpop.f32.mrb[21].mxu0  ;;  %9065 = vst [vmem:[#allocation43_spill] sm:$0xff] %v8016_v49 }
 0x2ab   : > { %v4133_v46 = vadd.f32 %v4132_v32, %v4098_v37  ;;  %v4211_v53 = vadd.f32 %v4210_v36, %v4176_v4  ;;  %v8009_v17 = vadd.f32 %v3801_v62, %v2283_v31  ;;  %v6075_v56 = vpop.f32.mrb[22].mxu0 }
 0x2ac   : > { %v8014_v44 = vadd.f32 %v6075_v56, %v5923_v2  ;;  %v3804_v55 = vpop.f32.mrb[23].mxu0  ;;  %v4102_v62 = vmul.f32 %v8006_v33, %v7971_v54 }
 0x2ad   : > { %v4212_v60 = vadd.f32 %v4211_v53, %v4177_v38  ;;  %v4100_v3 = vmul.f32 %v8009_v17, %v7946_v12  ;;  %v4134_v23 = vadd.f32 %v4133_v46, %v4099_v21  ;;  %v8020_v18 = vadd.f32 %v3804_v55, %v2286_v51  ;;  %v5930_v4 = vpop.f32.mrb[28].mxu1  ;;  %v8030_v12 = vpop.permute.xlu0 %4042 }
 0x2ae   : > { %v2315_v31 = vpop.f32.mrb[29].mxu1  ;;  %v4103_v38 = vmul.f32 %v8014_v44, %v7975_v42  ;;  %9066 = vst [vmem:[#allocation44_spill] sm:$0xff] %v8030_v12 }
 0x2af   : > { %v4135_v37 = vadd.f32 %v4134_v23, %v4100_v3  ;;  %v4179_v36 = vmul.f32 %v8009_v17, %v4100_v3  ;;  %v4213_v56 = vadd.f32 %v4212_v60, %v4178_v15  ;;  %v4101_v2 = vmul.f32 %v8020_v18, %v7951_v43  ;;  %v5931_v32 = vpop.f32.mrb[30].mxu1  ;;  %v8034_v3 = vpop.permute.xlu1 %4047 }
 0x2b0   : > { %v2318_v53 = vpop.f32.mrb[31].mxu1  ;;  %9067 = vst [vmem:[#allocation45_spill] sm:$0xff] %v8034_v3  ;;  %v4181_v15 = vmul.f32 %v8006_v33, %v4102_v62 }
 0x2b1   : > { %v4214_v21 = vadd.f32 %v4213_v56, %v4179_v36  ;;  %v4136_v51 = vadd.f32 %v4135_v37, %v4101_v2  ;;  %v4180_v46 = vmul.f32 %v8020_v18, %v4101_v2  ;;  %v6078_v55 = vpop.f32.mrb[24].mxu0  ;;  %v4182_v36 = vmul.f32 %v8014_v44, %v4103_v38 }
 0x2b2   : > { %v8032_v54 = vadd.f32 %v6078_v55, %v5926_v19  ;;  %v3817_v23 = vpop.f32.mrb[25].mxu0 }
 0x2b3   : > { %v4137_v60 = vadd.f32 %v4136_v51, %v4102_v62  ;;  %v4215_v43 = vadd.f32 %v4214_v21, %v4180_v46  ;;  %v8037_v28 = vadd.f32 %v3817_v23, %v2299_v39  ;;  %v6079_v42 = vpop.f32.mrb[26].mxu0  ;;  %v8055_v23 = vpop.permute.xlu1 %4057 }
 0x2b4   : > { %v8040_v37 = vadd.f32 %v6079_v42, %v5927_v40  ;;  %v3820_v56 = vpop.f32.mrb[27].mxu0  ;;  %v4106_v62 = vmul.f32 %v8032_v54, %v8011_v52  ;;  %9069 = vst [vmem:[#allocation47_spill] sm:$0xff] %v8055_v23 }
 0x2b5   : > { %v4216_v2 = vadd.f32 %v4215_v43, %v4181_v15  ;;  %v4104_v19 = vmul.f32 %v8037_v28, %v7994_v48  ;;  %v4138_v55 = vadd.f32 %v4137_v60, %v4103_v38  ;;  %v8044_v50 = vadd.f32 %v3820_v56, %v2302_v5  ;;  %v5934_v45 = vpop.f32.mrb[32].mxu1  ;;  %v8051_v43 = vpop.permute.xlu0 %4052 }
 0x2b6   : > { %v2331_v21 = vpop.f32.mrb[33].mxu1  ;;  %9068 = vst [vmem:[#allocation46_spill] sm:$0xff] %v8051_v43  ;;  %v4107_v38 = vmul.f32 %v8040_v37, %v8016_v49 }
 0x2b7   : > { %v4139_v39 = vadd.f32 %v4138_v55, %v4104_v19  ;;  %v4183_v51 = vmul.f32 %v8037_v28, %v4104_v19  ;;  %v4217_v46 = vadd.f32 %v4216_v2, %v4182_v36  ;;  %v4105_v42 = vmul.f32 %v8044_v50, %v7998_v57  ;;  %v5935_v40 = vpop.f32.mrb[34].mxu1 }
 0x2b8   : > { %v2334_v5 = vpop.f32.mrb[35].mxu1  ;;  %v4185_v2 = vmul.f32 %v8032_v54, %v4106_v62  ;;  %v4186_v49 = vmul.f32 %v8040_v37, %v4107_v38 }
 0x2b9   : > { %v4218_v15 = vadd.f32 %v4217_v46, %v4183_v51  ;;  %v4140_v60 = vadd.f32 %v4139_v39, %v4105_v42  ;;  %v4184_v56 = vmul.f32 %v8044_v50, %v4105_v42  ;;  %v6082_v55 = vpop.f32.mrb[28].mxu0 }
 0x2ba   : > { %v8058_v52 = vadd.f32 %v6082_v55, %v5930_v4  ;;  %v3833_v36 = vpop.f32.mrb[29].mxu0 }
 0x2bb   : > { %v4141_v19 = vadd.f32 %v4140_v60, %v4106_v62  ;;  %v4219_v57 = vadd.f32 %v4218_v15, %v4184_v56  ;;  %v8061_v48 = vadd.f32 %v3833_v36, %v2315_v31  ;;  %v6083_v34 = vpop.f32.mrb[30].mxu0  ;;  %v8072_v62 = vpop.permute.xlu0 %4062 }
 0x2bc   : > { %v8064_v25 = vadd.f32 %v6083_v34, %v5931_v32  ;;  %v3836_v16 = vpop.f32.mrb[31].mxu0  ;;  %v4110_v42 = vmul.f32 %v8058_v52, %v8051_v43  ;;  %v8074_v31 = vpop.permute.xlu1 %4067 }
 0x2bd   : > { %v4220_v51 = vadd.f32 %v4219_v57, %v4185_v2  ;;  %v4108_v39 = vmul.f32 %v8061_v48, %v8030_v12  ;;  %v4142_v46 = vadd.f32 %v4141_v19, %v4107_v38  ;;  %v8068_v4 = vadd.f32 %v3836_v16, %v2318_v53 }
 0x2be   : > { %v4111_v32 = vmul.f32 %v8064_v25, %v8055_v23  ;;  %v4189_v2 = vmul.f32 %v8058_v52, %v4110_v42 }
 0x2bf   : > { %v4143_v15 = vadd.f32 %v4142_v46, %v4108_v39  ;;  %v4187_v60 = vmul.f32 %v8061_v48, %v4108_v39  ;;  %v4221_v34 = vadd.f32 %v4220_v51, %v4186_v49  ;;  %v4109_v57 = vmul.f32 %v8068_v4, %v8034_v3 }
 0x2c0   : > { %v4190_v51 = vmul.f32 %v8064_v25, %v4111_v32 }
 0x2c1   : > { %v4222_v38 = vadd.f32 %v4221_v34, %v4187_v60  ;;  %v4144_v16 = vadd.f32 %v4143_v15, %v4109_v57  ;;  %v4188_v53 = vmul.f32 %v8068_v4, %v4109_v57  ;;  %v6086_v56 = vpop.f32.mrb[32].mxu0  ;;  %v8090_v60 = vpop.permute.xlu0 %4072 }
 0x2c2   : > { %v8082_v55 = vadd.f32 %v6086_v56, %v5934_v45  ;;  %v3849_v36 = vpop.f32.mrb[33].mxu0  ;;  %v8092_v15 = vpop.permute.xlu1 %4077 }
 0x2c3   : > { %v4145_v19 = vadd.f32 %v4144_v16, %v4110_v42  ;;  %v4223_v46 = vadd.f32 %v4222_v38, %v4188_v53  ;;  %v8085_v39 = vadd.f32 %v3849_v36, %v2331_v21  ;;  %v6087_v49 = vpop.f32.mrb[34].mxu0  ;;  %9070 = vst [vmem:[#allocation48_spill] sm:$0xff] %v8092_v15 }
 0x2c4   : > { %v8088_v43 = vadd.f32 %v6087_v49, %v5935_v40  ;;  %v3852_v23 = vpop.f32.mrb[35].mxu0  ;;  %v4114_v21 = vmul.f32 %v8082_v55, %v8090_v60 }
 0x2c5   : > { %v4224_v34 = vadd.f32 %v4223_v46, %v4189_v2  ;;  %v4112_v45 = vmul.f32 %v8085_v39, %v8072_v62  ;;  %v4146_v57 = vadd.f32 %v4145_v19, %v4111_v32  ;;  %v8096_v56 = vadd.f32 %v3852_v23, %v2334_v5 }
 0x2c6   : > { %v4115_v42 = vmul.f32 %v8088_v43, %v8092_v15  ;;  %v4193_v23 = vmul.f32 %v8082_v55, %v4114_v21 }
 0x2c7   : > { %v4147_v40 = vadd.f32 %v4146_v57, %v4112_v45  ;;  %v4191_v38 = vmul.f32 %v8085_v39, %v4112_v45  ;;  %v4225_v16 = vadd.f32 %v4224_v34, %v4190_v51  ;;  %v4113_v53 = vmul.f32 %v8096_v56, %v8074_v31 }
 0x2c8   : > { %v4194_v5 = vmul.f32 %v8088_v43, %v4115_v42  ;;  %v4151_v49 = vsel %vm2387_vm4, %v4115_v42, 0.0 }
 0x2c9   : > { %v4226_v36 = vadd.f32 %v4225_v16, %v4191_v38  ;;  %v4148_v2 = vadd.f32 %v4147_v40, %v4113_v53  ;;  %v4192_v46 = vmul.f32 %v8096_v56, %v4113_v53 }
 0x2ca   : > { %v4229_v45 = vsel %vm2387_vm4, %v4194_v5, 0.0 }
 0x2cb   : > { %v4149_v32 = vadd.f32 %v4148_v2, %v4114_v21  ;;  %v4227_v19 = vadd.f32 %v4226_v36, %v4192_v46 }
 0x2cd   : > { %v4152_v15 = vadd.f32 %v4151_v49, %v4149_v32  ;;  %v4228_v57 = vadd.f32 %v4227_v19, %v4193_v23 }
 0x2cf   : > { %v4153_v51 = vrot.slane %v4152_v15, 4  ;;  %v4230_v34 = vadd.f32 %v4229_v45, %v4228_v57 }
 0x2d1   : > { %v4154_v3 = vadd.f32 %v4153_v51, %v4152_v15  ;;  %v4231_v12 = vrot.slane %v4230_v34, 4 }
 0x2d3   : > { %v4155_v38 = vrot.slane %v4154_v3, 2  ;;  %v4232_v40 = vadd.f32 %v4231_v12, %v4230_v34  ;;  %v8196_v34 = vld [vmem:[#allocation10] ss:$0 sm:$0xff] }
 0x2d5   : > { %v4156_v16 = vadd.f32 %v4155_v38, %v4154_v3  ;;  %v4233_v53 = vrot.slane %v4232_v40, 2 }
 0x2d7   : > { %v4157_v6 = vrot.slane %v4156_v16, 1  ;;  %v4234_v61 = vadd.f32 %v4233_v53, %v4232_v40 }
 0x2d9   : > { %v4158_v7 = vadd.f32 %v4157_v6, %v4156_v16  ;;  %v4235_v9 = vrot.slane %v4234_v61, 1 }
 0x2db   : > { %v4236_v21 = vadd.f32 %v4235_v9, %v4234_v61  ;;  %v8110_v36 = vmul.f32 0.00390625, %v4158_v7 }
 0x2dd   : > { %v4238_v42 = vmul.f32 0.00390625, %v4236_v21  ;;  %v4239_v2 = vmul.f32 %v8110_v36, %v8110_v36  ;;  %v4274_v46 = vsub.f32 %v8085_v39, %v8110_v36  ;;  %v4275_v15 = vsub.f32 %v8096_v56, %v8110_v36 }
 0x2de   : > { %v4276_v12 = vsub.f32 %v8082_v55, %v8110_v36  ;;  %v4258_v9 = vsub.f32 %v7983_v47, %v8110_v36  ;;  %v4259_v7 = vsub.f32 %v7992_v58, %v8110_v36  ;;  %v4260_v6 = vsub.f32 %v7979_v14, %v8110_v36 }
 0x2df   : > { %v4240_v3 = vsub.f32 %v4238_v42, %v4239_v2  ;;  %v4261_v39 = vsub.f32 %v7987_v35, %v8110_v36  ;;  %v4262_v56 = vsub.f32 %v8009_v17, %v8110_v36  ;;  %v4263_v55 = vsub.f32 %v8020_v18, %v8110_v36 }
 0x2e0   : > { %v4264_v23 = vsub.f32 %v8006_v33, %v8110_v36  ;;  %v4265_v32 = vsub.f32 %v8014_v44, %v8110_v36  ;;  %v4266_v19 = vsub.f32 %v8037_v28, %v8110_v36  ;;  %v4267_v49 = vsub.f32 %v8044_v50, %v8110_v36 }
 0x2e1   : > { %v4241_v5 = vmax.f32 %v4240_v3, 0.0  ;;  %v4268_v57 = vsub.f32 %v8032_v54, %v8110_v36  ;;  %v4269_v45 = vsub.f32 %v8040_v37, %v8110_v36  ;;  %v4270_v51 = vsub.f32 %v8061_v48, %v8110_v36 }
 0x2e2   : > { %v4242_v53 = vsub.f32 %v7874_v26, %v8110_v36  ;;  %v4243_v21 = vsub.f32 %v7880_v59, %v8110_v36  ;;  %v4244_v42 = vsub.f32 %v7870_v29, %v8110_v36  ;;  %v4245_v2 = vsub.f32 %v7876_v63, %v8110_v36 }
 0x2e3   : > { %v4278_v61 = vadd.f32 1e-05, %v4241_v5  ;;  %v4246_v3 = vsub.f32 %v7897_v11, %v8110_v36  ;;  %v4247_v5 = vsub.f32 %v7904_v27, %v8110_v36  ;;  %v4249_v26 = vsub.f32 %v7900_v20, %v8110_v36  ;;  %v8180_v27 = vld [vmem:[#allocation8] ss:$0 sm:$0xff] }
 0x2e4   : > { %v4250_v59 = vsub.f32 %v7923_v13, %v8110_v36  ;;  %v4251_v29 = vsub.f32 %v7936_v30, %v8110_v36  ;;  %v4252_v63 = vsub.f32 %v7919_v24, %v8110_v36  ;;  %v4253_v11 = vsub.f32 %v7929_v10, %v8110_v36 }
 0x2e5   : > { %6571 = vrsqrt.f32 %v4278_v61  ;;  %v4248_v61 = vsub.f32 %v7894_v1, %v8110_v36  ;;  %v4254_v1 = vsub.f32 %v7955_v0, %v8110_v36  ;;  %v4255_v20 = vsub.f32 %v7964_v22, %v8110_v36 }
 0x2e6   : > { %v4256_v13 = vsub.f32 %v7949_v8, %v8110_v36  ;;  %v4257_v30 = vsub.f32 %v7959_v41, %v8110_v36  ;;  %v9073_v48 = vsub.f32 %v8064_v25, %v8110_v36 }
 0x2ef   : > { %v8178_v16 = vpop.eup %6571 }
 0x2f0   : > { %v4312_v24 = vmul.f32 %v8178_v16, %v4274_v46  ;;  %v4313_v10 = vmul.f32 %v8178_v16, %v4275_v15  ;;  %v4314_v40 = vmul.f32 %v8178_v16, %v4276_v12  ;;  %v8194_v38 = vmul.f32 %v8178_v16, %v4242_v53 }
 0x2f1   : > { %v8199_v0 = vmul.f32 %v8178_v16, %v4243_v21  ;;  %v8202_v22 = vmul.f32 %v8178_v16, %v4244_v42  ;;  %v8205_v8 = vmul.f32 %v8178_v16, %v4245_v2  ;;  %v8208_v41 = vmul.f32 %v8178_v16, %v4246_v3 }
 0x2f2   : > { %v4355_v46 = vmul.f32 %v8180_v27, %v4312_v24  ;;  %v4356_v15 = vmul.f32 %v8180_v27, %v4313_v10  ;;  %v4357_v12 = vmul.f32 %v8180_v27, %v4314_v40  ;;  %v8214_v53 = vmul.f32 %v8178_v16, %v4247_v5 }
 0x2f3   : > { %v8217_v21 = vmul.f32 %v8178_v16, %v4248_v61  ;;  %v8220_v42 = vmul.f32 %v8178_v16, %v4249_v26  ;;  %v8223_v2 = vmul.f32 %v8178_v16, %v4250_v59  ;;  %v8226_v3 = vmul.f32 %v8178_v16, %v4251_v29 }
 0x2f4   : > { %v4398_v24 = vadd.f32 %v8196_v34, %v4355_v46  ;;  %v4399_v10 = vadd.f32 %v8196_v34, %v4356_v15  ;;  %v4400_v40 = vadd.f32 %v8196_v34, %v4357_v12  ;;  %v8232_v5 = vmul.f32 %v8178_v16, %v4252_v63 }
 0x2f5   : > { %v8235_v61 = vmul.f32 %v8178_v16, %v4253_v11  ;;  %v8238_v26 = vmul.f32 %v8178_v16, %v4254_v1  ;;  %v8241_v59 = vmul.f32 %v8178_v16, %v4255_v20  ;;  %v8244_v29 = vmul.f32 %v8178_v16, %v4256_v13 }
 0x2f6   : > { %v4434_v46 = vmul.f32 %v4398_v24, %v8072_v62  ;;  %v4435_v15 = vmul.f32 %v4399_v10, %v8074_v31  ;;  %v4436_v12 = vmul.f32 %v4400_v40, %v8090_v60  ;;  %v8250_v63 = vmul.f32 %v8178_v16, %v4257_v30 }
 0x2f7   : > { %v8256_v11 = vmul.f32 %v8178_v16, %v4258_v9  ;;  %v8262_v1 = vmul.f32 %v8178_v16, %v4259_v7  ;;  %v8268_v62 = vmul.f32 %v8178_v16, %v4260_v6  ;;  %v8274_v47 = vmul.f32 %v8178_v16, %v4261_v39 }
 0x2f8   : > { %vm4470_vm11 = vcmp.ge.f32.partialorder %v4434_v46, 0.0  ;;  %vm4471_vm12 = vcmp.ge.f32.partialorder %v4435_v15, 0.0  ;;  %vm4472_vm13 = vcmp.ge.f32.partialorder %v4436_v12, 0.0  ;;  %v4506_v31 = vmul.f32 0.01, %v4434_v46 }
 0x2f9   : > { %v4507_v58 = vmul.f32 0.01, %v4435_v15  ;;  %v4508_v60 = vmul.f32 0.01, %v4436_v12  ;;  %v4300_v14 = vmul.f32 %v8178_v16, %v4262_v56  ;;  %v4301_v9 = vmul.f32 %v8178_v16, %v4263_v55 }
 0x2fa   : > { %v4542_v35 = vsel %vm4470_vm11, %v4434_v46, %v4506_v31  ;;  %v4302_v7 = vmul.f32 %v8178_v16, %v4264_v23  ;;  %v4303_v6 = vmul.f32 %v8178_v16, %v4265_v32  ;;  %v4304_v17 = vmul.f32 %v8178_v16, %v4266_v19 }
 0x2fb   : > { %v4543_v39 = vsel %vm4471_vm12, %v4435_v15, %v4507_v58  ;;  %v4544_v18 = vsel %vm4472_vm13, %v4436_v12, %v4508_v60  ;;  %v5571_v56 = vpack.c.bf16 %v4542_v35, %v4542_v35  ;;  %v4305_v33 = vmul.f32 %v8178_v16, %v4267_v49 }
 0x2fc   : > { %v5572_v55 = vpack.c.bf16 %v4543_v39, %v4543_v39  ;;  %v5573_v23 = vpack.c.bf16 %v4544_v18, %v4544_v18  ;;  %v4306_v44 = vmul.f32 %v8178_v16, %v4268_v57  ;;  %v4307_v28 = vmul.f32 %v8178_v16, %v4269_v45 }
 0x2fd   : > { %v4984_v32 = vshrl.u32 %v5571_v56, 16  ;;  %v4987_v19 = vshll.u32 %v5571_v56, 16  ;;  %v4308_v50 = vmul.f32 %v8178_v16, %v4270_v51  ;;  %v9071_v49 = vsub.f32 %v8068_v4, %v8110_v36 }
 0x2fe   : > { %v4994_v54 = vshrl.u32 %v5572_v55, 16  ;;  %v4997_v13 = vshll.u32 %v5572_v55, 16  ;;  %v5004_v57 = vshrl.u32 %v5573_v23, 16  ;;  %v5007_v30 = vshll.u32 %v5573_v23, 16 }
 0x2ff   : > { %v4309_v20 = vmul.f32 %v8178_v16, %v9071_v49  ;;  %v4986_v24 = vrot.slane %v4984_v32, 6  ;;  %v4989_v37 = vrot.slane %v4987_v19, 7  ;;  %v9072_v45 = vsub.f32 %v8058_v52, %v8110_v36 }
 0x300   : > { %v4311_v51 = vmul.f32 %v8178_v16, %v9073_v48  ;;  %v4996_v40 = vrot.slane %v4994_v54, 6  ;;  %v4999_v4 = vrot.slane %v4997_v13, 7  ;;  %v5006_v46 = vrot.slane %v5004_v57, 6 }
 0x301   : > { %v4310_v10 = vmul.f32 %v8178_v16, %v9072_v45  ;;  %v5009_v15 = vrot.slane %v5007_v30, 7  ;;  %v8324_v12 = vor.u32 %v4989_v37, %v4986_v24  ;;  %v9075_v31 = vsub.f32 %v8088_v43, %v8110_v36 }
 0x302   : > { %v4323_v52 = vmul.f32 %v8180_v27, %v8194_v38  ;;  %v4324_v60 = vmul.f32 %v8180_v27, %v8199_v0  ;;  %v5000_v35 = vor.u32 %v4999_v4, %v4996_v40  ;;  %v4325_v39 = vmul.f32 %v8180_v27, %v8202_v22 }
 0x303   : > { %9074 = vst [vmem:[#allocation49_spill] sm:$0xff] %v8324_v12  ;;  %v4315_v58 = vmul.f32 %v8178_v16, %v9075_v31  ;;  %v4326_v43 = vmul.f32 %v8180_v27, %v8205_v8  ;;  %v4992_v36 = vrot.slane %v8324_v12, 4  ;;  %v4327_v38 = vmul.f32 %v8180_v27, %v8208_v41 }
 0x304   : > { %v4328_v16 = vmul.f32 %v8180_v27, %v8214_v53  ;;  %v4329_v0 = vmul.f32 %v8180_v27, %v8217_v21  ;;  %v5002_v18 = vrot.slane %v5000_v35, 4  ;;  %v8351_v56 = vor.u32 %v5009_v15, %v5006_v46 }
 0x305   : > { %v4330_v22 = vmul.f32 %v8180_v27, %v8220_v42  ;;  %v4331_v8 = vmul.f32 %v8180_v27, %v8223_v2  ;;  %v5001_v55 = vsel %vm8336_vm14, %v4992_v36, %v5000_v35  ;;  %v4332_v41 = vmul.f32 %v8180_v27, %v8226_v3 }
 0x306   : > { %9078 = vst [vmem:[#allocation50_spill] sm:$0xff] %v8351_v56  ;;  %v4333_v53 = vmul.f32 %v8180_v27, %v8232_v5  ;;  %v4334_v21 = vmul.f32 %v8180_v27, %v8235_v61  ;;  %v5011_v23 = vsel %vm8336_vm14, %v5002_v18, %v8351_v56  ;;  %5098 = vst [vmem:[%s7507_s24 + $0x8c] sm:$0xf] %v5001_v55 }
 0x307   : > { %v4335_v42 = vmul.f32 %v8180_v27, %v8238_v26  ;;  %v4336_v2 = vmul.f32 %v8180_v27, %v8241_v59  ;;  %v4337_v3 = vmul.f32 %v8180_v27, %v8244_v29  ;;  %5099 = vst [vmem:[%s7507_s24 + $0x90] sm:$0xf] %v5011_v23  ;;  %v4338_v5 = vmul.f32 %v8180_v27, %v8250_v63 }
 0x308   : > { %v4339_v61 = vmul.f32 %v8180_v27, %v8256_v11  ;;  %v4340_v32 = vmul.f32 %v8180_v27, %v8262_v1  ;;  %v4341_v19 = vmul.f32 %v8180_v27, %v8268_v62  ;;  %v4342_v26 = vmul.f32 %v8180_v27, %v8274_v47 }
 0x309   : > { %v4343_v59 = vmul.f32 %v8180_v27, %v4300_v14  ;;  %v4344_v29 = vmul.f32 %v8180_v27, %v4301_v9  ;;  %v4345_v49 = vmul.f32 %v8180_v27, %v4302_v7  ;;  %v4346_v63 = vmul.f32 %v8180_v27, %v4303_v6 }
 0x30a   : > { %v4347_v54 = vmul.f32 %v8180_v27, %v4304_v17  ;;  %v4348_v11 = vmul.f32 %v8180_v27, %v4305_v33  ;;  %v4349_v1 = vmul.f32 %v8180_v27, %v4306_v44  ;;  %v4350_v13 = vmul.f32 %v8180_v27, %v4307_v28 }
 0x30b   : > { %v4351_v62 = vmul.f32 %v8180_v27, %v4308_v50  ;;  %v4352_v47 = vmul.f32 %v8180_v27, %v4309_v20  ;;  %v4353_v14 = vmul.f32 %v8180_v27, %v4310_v10  ;;  %v4354_v9 = vmul.f32 %v8180_v27, %v4311_v51 }
 0x30c   : > { %v4358_v7 = vmul.f32 %v8180_v27, %v4315_v58  ;;  %v4366_v6 = vadd.f32 %v8196_v34, %v4323_v52  ;;  %v4367_v17 = vadd.f32 %v8196_v34, %v4324_v60  ;;  %v4368_v33 = vadd.f32 %v8196_v34, %v4325_v39 }
 0x30d   : > { %v4369_v44 = vadd.f32 %v8196_v34, %v4326_v43  ;;  %v4370_v28 = vadd.f32 %v8196_v34, %v4327_v38  ;;  %v4371_v50 = vadd.f32 %v8196_v34, %v4328_v16  ;;  %v4372_v20 = vadd.f32 %v8196_v34, %v4329_v0 }
 0x30e   : > { %v4373_v57 = vadd.f32 %v8196_v34, %v4330_v22  ;;  %v4374_v30 = vadd.f32 %v8196_v34, %v4331_v8  ;;  %v4375_v27 = vadd.f32 %v8196_v34, %v4332_v41  ;;  %v4376_v24 = vadd.f32 %v8196_v34, %v4333_v53  ;;  %v9079_v8 = vld [vmem:[#allocation16_spill] sm:$0xff]  ;;  %v9080_v41 = vld [vmem:[#allocation18_spill] sm:$0xff] }
 0x30f   : > { %v4377_v37 = vadd.f32 %v8196_v34, %v4334_v21  ;;  %v4378_v45 = vadd.f32 %v8196_v34, %v4335_v42  ;;  %v4379_v10 = vadd.f32 %v8196_v34, %v4336_v2  ;;  %v4380_v48 = vadd.f32 %v8196_v34, %v4337_v3  ;;  %v9081_v21 = vld [vmem:[#allocation17_spill] sm:$0xff]  ;;  %v9082_v42 = vld [vmem:[#allocation19_spill] sm:$0xff]  ;;  %v9083_v3 = vld [vmem:[#allocation20_spill] sm:$0xff] }
 0x310   : > { %v4381_v51 = vadd.f32 %v8196_v34, %v4338_v5  ;;  %v4382_v40 = vadd.f32 %v8196_v34, %v4339_v61  ;;  %v4383_v4 = vadd.f32 %v8196_v34, %v4340_v32  ;;  %v4384_v46 = vadd.f32 %v8196_v34, %v4341_v19  ;;  %v9084_v61 = vld [vmem:[#allocation21_spill] sm:$0xff]  ;;  %v9085_v19 = vld [vmem:[#allocation22_spill] sm:$0xff] }
 0x311   : > { %v4385_v15 = vadd.f32 %v8196_v34, %v4342_v26  ;;  %v4386_v31 = vadd.f32 %v8196_v34, %v4343_v59  ;;  %v4387_v58 = vadd.f32 %v8196_v34, %v4344_v29  ;;  %v4388_v52 = vadd.f32 %v8196_v34, %v4345_v49  ;;  %v9087_v29 = vld [vmem:[#allocation24_spill] sm:$0xff] }
 0x312   : > { %v4389_v60 = vadd.f32 %v8196_v34, %v4346_v63  ;;  %v4390_v35 = vadd.f32 %v8196_v34, %v4347_v54  ;;  %v4391_v39 = vadd.f32 %v8196_v34, %v4348_v11  ;;  %v4392_v43 = vadd.f32 %v8196_v34, %v4349_v1  ;;  %v9088_v63 = vld [vmem:[#allocation25_spill] sm:$0xff]  ;;  %v9089_v11 = vld [vmem:[#allocation26_spill] sm:$0xff] }
 0x313   : > { %v4393_v36 = vadd.f32 %v8196_v34, %v4350_v13  ;;  %v4394_v38 = vadd.f32 %v8196_v34, %v4351_v62  ;;  %v4395_v16 = vadd.f32 %v8196_v34, %v4352_v47  ;;  %v4396_v0 = vadd.f32 %v8196_v34, %v4353_v14  ;;  %v9090_v13 = vld [vmem:[#allocation27_spill] sm:$0xff]  ;;  %v9091_v47 = vld [vmem:[#allocation28_spill] sm:$0xff] }
 0x314   : > { %v4397_v18 = vadd.f32 %v8196_v34, %v4354_v9  ;;  %v4401_v22 = vadd.f32 %v8196_v34, %v4358_v7  ;;  %v4402_v55 = vmul.f32 %v4366_v6, %v9079_v8  ;;  %v8434_v53 = vmul.f32 %v4367_v17, %v9080_v41  ;;  %v9086_v34 = vld [vmem:[#allocation23_spill] sm:$0xff]  ;;  %v9092_v9 = vld [vmem:[#allocation29_spill] sm:$0xff]  ;;  %v9093_v6 = vld [vmem:[#allocation30_spill] sm:$0xff] }
 0x315   : > { %v8437_v23 = vmul.f32 %v4368_v33, %v9081_v21  ;;  %v8440_v2 = vmul.f32 %v4369_v44, %v9082_v42  ;;  %v8443_v5 = vmul.f32 %v4370_v28, %v9083_v3  ;;  %v8446_v32 = vmul.f32 %v4371_v50, %v9084_v61  ;;  %v9094_v33 = vld [vmem:[#allocation31_spill] sm:$0xff]  ;;  %v9095_v28 = vld [vmem:[#allocation32_spill] sm:$0xff] }
 0x316   : > { %v8449_v26 = vmul.f32 %v4372_v20, %v9085_v19  ;;  %v8452_v59 = vmul.f32 %v4373_v57, %v9086_v34  ;;  %v8455_v49 = vmul.f32 %v4374_v30, %v9087_v29  ;;  %v8458_v54 = vmul.f32 %v4375_v27, %v9088_v63  ;;  %v9096_v20 = vld [vmem:[#allocation33_spill] sm:$0xff]  ;;  %v9097_v30 = vld [vmem:[#allocation34_spill] sm:$0xff] }
 0x317   : > { %v8461_v1 = vmul.f32 %v4376_v24, %v9089_v11  ;;  %v8464_v62 = vmul.f32 %v4377_v37, %v9090_v13  ;;  %v8467_v14 = vmul.f32 %v4378_v45, %v9091_v47  ;;  %v8470_v7 = vmul.f32 %v4379_v10, %v9092_v9  ;;  %v9098_v24 = vld [vmem:[#allocation35_spill] sm:$0xff]  ;;  %v9099_v45 = vld [vmem:[#allocation36_spill] sm:$0xff] }
 0x318   : > { %v8473_v17 = vmul.f32 %v4380_v48, %v9093_v6  ;;  %v8476_v44 = vmul.f32 %v4381_v51, %v9094_v33  ;;  %v8479_v50 = vmul.f32 %v4382_v40, %v9095_v28  ;;  %v8482_v57 = vmul.f32 %v4383_v4, %v9096_v20  ;;  %v9100_v48 = vld [vmem:[#allocation37_spill] sm:$0xff]  ;;  %v9101_v51 = vld [vmem:[#allocation38_spill] sm:$0xff]  ;;  %v9102_v40 = vld [vmem:[#allocation39_spill] sm:$0xff] }
 0x319   : > { %v8485_v27 = vmul.f32 %v4384_v46, %v9097_v30  ;;  %v8488_v37 = vmul.f32 %v4385_v15, %v9098_v24  ;;  %v8491_v10 = vmul.f32 %v4386_v31, %v9099_v45  ;;  %v8494_v8 = vmul.f32 %v4387_v58, %v9100_v48  ;;  %v9103_v4 = vld [vmem:[#allocation40_spill] sm:$0xff]  ;;  %v9104_v46 = vld [vmem:[#allocation41_spill] sm:$0xff]  ;;  %v9105_v15 = vld [vmem:[#allocation42_spill] sm:$0xff] }
 0x31a   : > { %v8497_v41 = vmul.f32 %v4388_v52, %v9101_v51  ;;  %v8500_v21 = vmul.f32 %v4389_v60, %v9102_v40  ;;  %v8503_v42 = vmul.f32 %v4390_v35, %v9103_v4  ;;  %v8506_v3 = vmul.f32 %v4391_v39, %v9104_v46  ;;  %v9106_v31 = vld [vmem:[#allocation43_spill] sm:$0xff]  ;;  %v9107_v58 = vld [vmem:[#allocation44_spill] sm:$0xff]  ;;  %v9108_v52 = vld [vmem:[#allocation45_spill] sm:$0xff] }
 0x31b   : > { %v8509_v61 = vmul.f32 %v4392_v43, %v9105_v15  ;;  %v8512_v19 = vmul.f32 %v4393_v36, %v9106_v31  ;;  %v8515_v34 = vmul.f32 %v4394_v38, %v9107_v58  ;;  %v8518_v29 = vmul.f32 %v4395_v16, %v9108_v52  ;;  %v9109_v60 = vld [vmem:[#allocation46_spill] sm:$0xff]  ;;  %v9110_v35 = vld [vmem:[#allocation47_spill] sm:$0xff]  ;;  %v9111_v36 = vld [vmem:[#allocation48_spill] sm:$0xff] }
 0x31c   : > { %v8521_v63 = vmul.f32 %v4396_v0, %v9109_v60  ;;  %v8524_v11 = vmul.f32 %v4397_v18, %v9110_v35  ;;  %vm4438_vm15 = vcmp.ge.f32.partialorder %v4402_v55, 0.0  ;;  %vm4439_vm0 = vcmp.ge.f32.partialorder %v8434_v53, 0.0 }
 0x31d   : > { %vm4440_vm1 = vcmp.ge.f32.partialorder %v8437_v23, 0.0  ;;  %vm4441_vm2 = vcmp.ge.f32.partialorder %v8440_v2, 0.0  ;;  %vm4442_vm3 = vcmp.ge.f32.partialorder %v8443_v5, 0.0  ;;  %vm4443_vm4 = vcmp.ge.f32.partialorder %v8446_v32, 0.0 }
 0x31e   : > { %vm4444_vm5 = vcmp.ge.f32.partialorder %v8449_v26, 0.0  ;;  %vm4445_vm6 = vcmp.ge.f32.partialorder %v8452_v59, 0.0  ;;  %v4474_v39 = vmul.f32 0.01, %v4402_v55  ;;  %v4475_v43 = vmul.f32 0.01, %v8434_v53 }
 0x31f   : > { %v8539_v38 = vmul.f32 %v4401_v22, %v9111_v36  ;;  %vm4451_vm12 = vcmp.ge.f32.partialorder %v8470_v7, 0.0  ;;  %v4476_v16 = vmul.f32 0.01, %v8437_v23  ;;  %v4477_v0 = vmul.f32 0.01, %v8440_v2 }
 0x320   : > { %v4478_v18 = vmul.f32 0.01, %v8443_v5  ;;  %vm4456_vm8 = vcmp.ge.f32.partialorder %v8485_v27, 0.0  ;;  %vm4457_vm11 = vcmp.ge.f32.partialorder %v8488_v37, 0.0  ;;  %v4479_v22 = vmul.f32 0.01, %v8446_v32 }
 0x321   : > { %v4480_v13 = vmul.f32 0.01, %v8449_v26  ;;  %v4481_v47 = vmul.f32 0.01, %v8452_v59  ;;  %v8556_v9 = vsel %vm4438_vm15, %v4402_v55, %v4474_v39  ;;  %vm4461_vm9 = vcmp.ge.f32.partialorder %v8500_v21, 0.0 }
 0x322   : > { %v4482_v6 = vmul.f32 0.01, %v8455_v49  ;;  %v4483_v33 = vmul.f32 0.01, %v8458_v54  ;;  %v4484_v28 = vmul.f32 0.01, %v8461_v1  ;;  %v8568_v20 = vsel %vm4439_vm0, %v8434_v53, %v4475_v43 }
 0x323   : > { %vm4465_vm10 = vcmp.ge.f32.partialorder %v8512_v19, 0.0  ;;  %v4485_v55 = vmul.f32 0.01, %v8464_v62  ;;  %v4486_v30 = vmul.f32 0.01, %v8467_v14  ;;  %v4512_v45 = vsel %vm4440_vm1, %v8437_v23, %v4476_v16 }
 0x324   : > { %v4487_v24 = vmul.f32 0.01, %v8470_v7  ;;  %vm4466_vm0 = vcmp.ge.f32.partialorder %v8515_v34, 0.0  ;;  %vm4467_vm15 = vcmp.ge.f32.partialorder %v8518_v29, 0.0  ;;  %vm4468_vm7 = vcmp.ge.f32.partialorder %v8521_v63, 0.0 }
 0x325   : > { %vm4469_vm13 = vcmp.ge.f32.partialorder %v8524_v11, 0.0  ;;  %v4488_v53 = vmul.f32 0.01, %v8473_v17  ;;  %v4489_v48 = vmul.f32 0.01, %v8476_v44  ;;  %v4513_v40 = vsel %vm4441_vm2, %v8440_v2, %v4477_v0 }
 0x326   : > { %v4490_v51 = vmul.f32 0.01, %v8479_v50  ;;  %vm4473_vm1 = vcmp.ge.f32.partialorder %v8539_v38, 0.0  ;;  %v4491_v23 = vmul.f32 0.01, %v8482_v57  ;;  %v4514_v15 = vsel %vm4442_vm3, %v8443_v5, %v4478_v18 }
 0x327   : > { %v4492_v4 = vmul.f32 0.01, %v8485_v27  ;;  %v4493_v46 = vmul.f32 0.01, %v8488_v37  ;;  %v4494_v31 = vmul.f32 0.01, %v8491_v10  ;;  %v4515_v2 = vsel %vm4443_vm4, %v8446_v32, %v4479_v22 }
 0x328   : > { %v4495_v58 = vmul.f32 0.01, %v8494_v8  ;;  %v4496_v52 = vmul.f32 0.01, %v8497_v41  ;;  %v4497_v60 = vmul.f32 0.01, %v8500_v21  ;;  %v4516_v5 = vsel %vm4444_vm5, %v8449_v26, %v4480_v13 }
 0x329   : > { %v4498_v35 = vmul.f32 0.01, %v8503_v42  ;;  %v4499_v39 = vmul.f32 0.01, %v8506_v3  ;;  %v4500_v43 = vmul.f32 0.01, %v8509_v61  ;;  %v4517_v32 = vsel %vm4445_vm6, %v8452_v59, %v4481_v47 }
 0x32a   : > { %v4501_v36 = vmul.f32 0.01, %v8512_v19  ;;  %v4502_v16 = vmul.f32 0.01, %v8515_v34  ;;  %v4503_v0 = vmul.f32 0.01, %v8518_v29 }
 0x32b   : > { %v4504_v18 = vmul.f32 0.01, %v8521_v63  ;;  %v4505_v22 = vmul.f32 0.01, %v8524_v11  ;;  %vm9112_vm2 = vcmp.ge.f32.partialorder %v8455_v49, 0.0  ;;  %vm9113_vm3 = vcmp.ge.f32.partialorder %v8458_v54, 0.0 }
 0x32c   : > { %v4518_v26 = vsel %vm9112_vm2, %v8455_v49, %v4482_v6  ;;  %v4509_v13 = vmul.f32 0.01, %v8539_v38  ;;  %v4519_v12 = vsel %vm9113_vm3, %v8458_v54, %v4483_v33  ;;  %vm9114_vm4 = vcmp.ge.f32.partialorder %v8461_v1, 0.0 }
 0x32d   : > { %v4520_v59 = vsel %vm9114_vm4, %v8461_v1, %v4484_v28  ;;  %vm9115_vm5 = vcmp.ge.f32.partialorder %v8464_v62, 0.0  ;;  %vm9116_vm6 = vcmp.ge.f32.partialorder %v8467_v14, 0.0  ;;  %v4523_v49 = vsel %vm4451_vm12, %v8470_v7, %v4487_v24 }
 0x32e   : > { %v4521_v47 = vsel %vm9115_vm5, %v8464_v62, %v4485_v55  ;;  %v4522_v56 = vsel %vm9116_vm6, %v8467_v14, %v4486_v30  ;;  %vm9117_vm2 = vcmp.ge.f32.partialorder %v8473_v17, 0.0  ;;  %vm9118_vm3 = vcmp.ge.f32.partialorder %v8476_v44, 0.0 }
 0x32f   : > { %v4524_v54 = vsel %vm9117_vm2, %v8473_v17, %v4488_v53  ;;  %v4525_v1 = vsel %vm9118_vm3, %v8476_v44, %v4489_v48  ;;  %vm9119_vm4 = vcmp.ge.f32.partialorder %v8479_v50, 0.0  ;;  %vm9120_vm5 = vcmp.ge.f32.partialorder %v8482_v57, 0.0 }
 0x330   : > { %v4526_v62 = vsel %vm9119_vm4, %v8479_v50, %v4490_v51  ;;  %v4527_v14 = vsel %vm9120_vm5, %v8482_v57, %v4491_v23  ;;  %v4528_v7 = vsel %vm4456_vm8, %v8485_v27, %v4492_v4  ;;  %v4529_v17 = vsel %vm4457_vm11, %v8488_v37, %v4493_v46 }
 0x331   : > { %vm9121_vm12 = vcmp.ge.f32.partialorder %v8491_v10, 0.0  ;;  %vm9122_vm6 = vcmp.ge.f32.partialorder %v8494_v8, 0.0  ;;  %vm9123_vm2 = vcmp.ge.f32.partialorder %v8497_v41, 0.0  ;;  %v4533_v27 = vsel %vm4461_vm9, %v8500_v21, %v4497_v60 }
 0x332   : > { %v4530_v44 = vsel %vm9121_vm12, %v8491_v10, %v4494_v31  ;;  %v4531_v50 = vsel %vm9122_vm6, %v8494_v8, %v4495_v58  ;;  %v4532_v57 = vsel %vm9123_vm2, %v8497_v41, %v4496_v52  ;;  %vm9124_vm8 = vcmp.ge.f32.partialorder %v8503_v42, 0.0 }
 0x333   : > { %v4534_v37 = vsel %vm9124_vm8, %v8503_v42, %v4498_v35  ;;  %vm9125_vm11 = vcmp.ge.f32.partialorder %v8506_v3, 0.0  ;;  %vm9126_vm3 = vcmp.ge.f32.partialorder %v8509_v61, 0.0  ;;  %v4537_v41 = vsel %vm4465_vm10, %v8512_v19, %v4501_v36 }
 0x334   : > { %v4535_v10 = vsel %vm9125_vm11, %v8506_v3, %v4499_v39  ;;  %v4536_v8 = vsel %vm9126_vm3, %v8509_v61, %v4500_v43  ;;  %v4538_v21 = vsel %vm4466_vm0, %v8515_v34, %v4502_v16  ;;  %v4539_v42 = vsel %vm4467_vm15, %v8518_v29, %v4503_v0 }
 0x335   : > { %v4540_v3 = vsel %vm4468_vm7, %v8521_v63, %v4504_v18  ;;  %v4541_v61 = vsel %vm4469_vm13, %v8524_v11, %v4505_v22  ;;  %v4545_v19 = vsel %vm4473_vm1, %v8539_v38, %v4509_v13  ;;  %v5539_v6 = vpack.c.bf16 %v8556_v9, %v8556_v9 }
 0x336   : > { %v5540_v34 = vpack.c.bf16 %v8568_v20, %v8568_v20  ;;  %v5541_v33 = vpack.c.bf16 %v4512_v45, %v4512_v45  ;;  %v5542_v29 = vpack.c.bf16 %v4513_v40, %v4513_v40  ;;  %v5543_v28 = vpack.c.bf16 %v4514_v15, %v4514_v15 }
 0x337   : > { %v5544_v55 = vpack.c.bf16 %v4515_v2, %v4515_v2  ;;  %v8698_v30 = vpack.c.bf16 %v4516_v5, %v4516_v5  ;;  %v8700_v63 = vpack.c.bf16 %v4517_v32, %v4517_v32  ;;  %v8702_v24 = vpack.c.bf16 %v4518_v26, %v4518_v26 }
 0x338   : > { %v8704_v11 = vpack.c.bf16 %v4519_v12, %v4519_v12  ;;  %v8706_v53 = vpack.c.bf16 %v4520_v59, %v4520_v59  ;;  %v8708_v38 = vpack.c.bf16 %v4521_v47, %v4521_v47  ;;  %v8710_v9 = vpack.c.bf16 %v4522_v56, %v4522_v56 }
 0x339   : > { %v8712_v48 = vpack.c.bf16 %v4523_v49, %v4523_v49  ;;  %v8714_v20 = vpack.c.bf16 %v4524_v54, %v4524_v54  ;;  %v8716_v45 = vpack.c.bf16 %v4525_v1, %v4525_v1  ;;  %v8718_v51 = vpack.c.bf16 %v4526_v62, %v4526_v62 }
 0x33a   : > { %v8720_v40 = vpack.c.bf16 %v4527_v14, %v4527_v14  ;;  %v8722_v23 = vpack.c.bf16 %v4528_v7, %v4528_v7  ;;  %v8724_v12 = vpack.c.bf16 %v4529_v17, %v4529_v17  ;;  %v8726_v4 = vpack.c.bf16 %v4530_v44, %v4530_v44 }
 0x33b   : > { %v8728_v46 = vpack.c.bf16 %v4531_v50, %v4531_v50  ;;  %v8730_v56 = vpack.c.bf16 %v4532_v57, %v4532_v57  ;;  %v8732_v15 = vpack.c.bf16 %v4533_v27, %v4533_v27  ;;  %v8734_v31 = vpack.c.bf16 %v4534_v37, %v4534_v37 }
 0x33c   : > { %v8736_v58 = vpack.c.bf16 %v4535_v10, %v4535_v10  ;;  %v8738_v52 = vpack.c.bf16 %v4536_v8, %v4536_v8  ;;  %v8740_v2 = vpack.c.bf16 %v4537_v41, %v4537_v41  ;;  %v8742_v60 = vpack.c.bf16 %v4538_v21, %v4538_v21 }
 0x33d   : > { %v8744_v35 = vpack.c.bf16 %v4539_v42, %v4539_v42  ;;  %v8746_v39 = vpack.c.bf16 %v4540_v3, %v4540_v3  ;;  %v8748_v5 = vpack.c.bf16 %v4541_v61, %v4541_v61  ;;  %v8750_v43 = vpack.c.bf16 %v4545_v19, %v4545_v19 }
 0x33e   : > { %v4665_v36 = vshrl.u32 %v5539_v6, 16  ;;  %v4668_v16 = vshll.u32 %v5539_v6, 16  ;;  %v4674_v32 = vshrl.u32 %v5540_v34, 16  ;;  %v4677_v0 = vshll.u32 %v5540_v34, 16 }
 0x33f   : > { %v4684_v18 = vshrl.u32 %v5541_v33, 16  ;;  %v4687_v22 = vshll.u32 %v5541_v33, 16  ;;  %v4694_v59 = vshrl.u32 %v5542_v29, 16  ;;  %v4697_v47 = vshll.u32 %v5542_v29, 16 }
 0x340   : > { %v4667_v26 = vrot.slane %v4665_v36, 6  ;;  %v4670_v13 = vrot.slane %v4668_v16, 7  ;;  %v4676_v49 = vrot.slane %v4674_v32, 6  ;;  %v4679_v54 = vrot.slane %v4677_v0, 7 }
 0x341   : > { %v4686_v1 = vrot.slane %v4684_v18, 6  ;;  %v4689_v62 = vrot.slane %v4687_v22, 7  ;;  %v4696_v7 = vrot.slane %v4694_v59, 6  ;;  %v4699_v17 = vrot.slane %v4697_v47, 7 }
 0x342   : > { %v8752_v14 = vor.u32 %v4670_v13, %v4667_v26  ;;  %v4704_v44 = vshrl.u32 %v5543_v28, 16  ;;  %v4680_v50 = vor.u32 %v4679_v54, %v4676_v49  ;;  %v4707_v27 = vshll.u32 %v5543_v28, 16 }
 0x343   : > { %v4690_v57 = vor.u32 %v4689_v62, %v4686_v1  ;;  %v4714_v37 = vshrl.u32 %v5544_v55, 16  ;;  %v4700_v8 = vor.u32 %v4699_v17, %v4696_v7  ;;  %v4717_v21 = vshll.u32 %v5544_v55, 16 }
 0x344   : > { %v4672_v10 = vrot.slane %v8752_v14, 4  ;;  %v4706_v41 = vrot.slane %v4704_v44, 6  ;;  %v4682_v42 = vrot.slane %v4680_v50, 4  ;;  %v4709_v61 = vrot.slane %v4707_v27, 7 }
 0x345   : > { %v4692_v3 = vrot.slane %v4690_v57, 4  ;;  %v4716_v19 = vrot.slane %v4714_v37, 6  ;;  %v4702_v34 = vrot.slane %v4700_v8, 4  ;;  %v4719_v33 = vrot.slane %v4717_v21, 7 }
 0x346   : > { %v4681_v6 = vsel %vm8336_vm14, %v4672_v10, %v4680_v50  ;;  %v4724_v29 = vshrl.u32 %v8698_v30, 16  ;;  %v4691_v28 = vsel %vm8336_vm14, %v4682_v42, %v4690_v57  ;;  %v4710_v55 = vor.u32 %v4709_v61, %v4706_v41 }
 0x347   : > { %v4701_v36 = vsel %vm8336_vm14, %v4692_v3, %v4700_v8  ;;  %v4727_v16 = vshll.u32 %v8698_v30, 16  ;;  %5066 = vst [vmem:[%s7507_s24 + $0xc] sm:$0xf] %v4681_v6  ;;  %v4720_v32 = vor.u32 %v4719_v33, %v4716_v19  ;;  %v4734_v18 = vshrl.u32 %v8700_v63, 16  ;;  %5067 = vst [vmem:[%s7507_s24 + $0x10] sm:$0xf] %v4691_v28 }
 0x348   : > { %v4726_v0 = vrot.slane %v4724_v29, 6  ;;  %v4737_v22 = vshll.u32 %v8700_v63, 16  ;;  %5068 = vst [vmem:[%s7507_s24 + $0x14] sm:$0xf] %v4701_v36  ;;  %v4711_v26 = vsel %vm8336_vm14, %v4702_v34, %v4710_v55  ;;  %v4712_v13 = vrot.slane %v4710_v55, 4 }
 0x349   : > { %v4729_v59 = vrot.slane %v4727_v16, 7  ;;  %v4744_v47 = vshrl.u32 %v8702_v24, 16  ;;  %v4722_v49 = vrot.slane %v4720_v32, 4  ;;  %v4736_v30 = vrot.slane %v4734_v18, 6  ;;  %5069 = vst [vmem:[%s7507_s24 + $0x18] sm:$0xf] %v4711_v26 }
 0x34a   : > { %v4739_v54 = vrot.slane %v4737_v22, 7  ;;  %v4747_v1 = vshll.u32 %v8702_v24, 16  ;;  %v4721_v62 = vsel %vm8336_vm14, %v4712_v13, %v4720_v32  ;;  %v4754_v17 = vshrl.u32 %v8704_v11, 16 }
 0x34b   : > { %v4730_v63 = vor.u32 %v4729_v59, %v4726_v0  ;;  %v4746_v7 = vrot.slane %v4744_v47, 6  ;;  %v4757_v57 = vshll.u32 %v8704_v11, 16  ;;  %v4764_v27 = vshrl.u32 %v8706_v53, 16  ;;  %5070 = vst [vmem:[%s7507_s24 + $0x1c] sm:$0xf] %v4721_v62 }
 0x34c   : > { %v4740_v44 = vor.u32 %v4739_v54, %v4736_v30  ;;  %v4749_v50 = vrot.slane %v4747_v1, 7  ;;  %v4756_v10 = vrot.slane %v4754_v17, 6  ;;  %v4767_v8 = vshll.u32 %v8706_v53, 16 }
 0x34d   : > { %v4731_v37 = vsel %vm8336_vm14, %v4722_v49, %v4730_v63  ;;  %v4732_v24 = vrot.slane %v4730_v63, 4  ;;  %v4759_v42 = vrot.slane %v4757_v57, 7  ;;  %v4766_v3 = vrot.slane %v4764_v27, 6 }
 0x34e   : > { %v4742_v41 = vrot.slane %v4740_v44, 4  ;;  %v4750_v21 = vor.u32 %v4749_v50, %v4746_v7  ;;  %5071 = vst [vmem:[%s7507_s24 + $0x20] sm:$0xf] %v4731_v37  ;;  %v4769_v61 = vrot.slane %v4767_v8, 7  ;;  %v4774_v19 = vshrl.u32 %v8708_v38, 16 }
 0x34f   : > { %v4741_v11 = vsel %vm8336_vm14, %v4732_v24, %v4740_v44  ;;  %v4777_v6 = vshll.u32 %v8708_v38, 16  ;;  %v4760_v29 = vor.u32 %v4759_v42, %v4756_v10  ;;  %v4784_v53 = vshrl.u32 %v8710_v9, 16 }
 0x350   : > { %v4751_v34 = vsel %vm8336_vm14, %v4742_v41, %v4750_v21  ;;  %v4752_v33 = vrot.slane %v4750_v21, 4  ;;  %5072 = vst [vmem:[%s7507_s24 + $0x24] sm:$0xf] %v4741_v11  ;;  %v4770_v28 = vor.u32 %v4769_v61, %v4766_v3  ;;  %v4776_v36 = vrot.slane %v4774_v19, 6 }
 0x351   : > { %v4779_v55 = vrot.slane %v4777_v6, 7  ;;  %v4787_v16 = vshll.u32 %v8710_v9, 16  ;;  %5073 = vst [vmem:[%s7507_s24 + $0x28] sm:$0xf] %v4751_v34  ;;  %v4762_v0 = vrot.slane %v4760_v29, 4  ;;  %v4786_v38 = vrot.slane %v4784_v53, 6 }
 0x352   : > { %v4761_v32 = vsel %vm8336_vm14, %v4752_v33, %v4760_v29  ;;  %v4794_v18 = vshrl.u32 %v8712_v48, 16  ;;  %v4772_v22 = vrot.slane %v4770_v28, 4  ;;  %v4797_v59 = vshll.u32 %v8712_v48, 16 }
 0x353   : > { %v4780_v26 = vor.u32 %v4779_v55, %v4776_v36  ;;  %v4789_v13 = vrot.slane %v4787_v16, 7  ;;  %5074 = vst [vmem:[%s7507_s24 + $0x2c] sm:$0xf] %v4761_v32  ;;  %v4771_v47 = vsel %vm8336_vm14, %v4762_v0, %v4770_v28  ;;  %v4804_v49 = vshrl.u32 %v8714_v20, 16 }
 0x354   : > { %v4796_v9 = vrot.slane %v4794_v18, 6  ;;  %v4807_v30 = vshll.u32 %v8714_v20, 16  ;;  %v4799_v63 = vrot.slane %v4797_v59, 7  ;;  %5075 = vst [vmem:[%s7507_s24 + $0x30] sm:$0xf] %v4771_v47  ;;  %v4814_v48 = vshrl.u32 %v8716_v45, 16 }
 0x355   : > { %v4781_v54 = vsel %vm8336_vm14, %v4772_v22, %v4780_v26  ;;  %v4782_v1 = vrot.slane %v4780_v26, 4  ;;  %v4790_v62 = vor.u32 %v4789_v13, %v4786_v38  ;;  %v4806_v7 = vrot.slane %v4804_v49, 6 }
 0x356   : > { %v4809_v17 = vrot.slane %v4807_v30, 7  ;;  %v4817_v44 = vshll.u32 %v8716_v45, 16  ;;  %5076 = vst [vmem:[%s7507_s24 + $0x34] sm:$0xf] %v4781_v54  ;;  %v4800_v20 = vor.u32 %v4799_v63, %v4796_v9  ;;  %v4824_v27 = vshrl.u32 %v8718_v51, 16 }
 0x357   : > { %v4791_v50 = vsel %vm8336_vm14, %v4782_v1, %v4790_v62  ;;  %v4792_v57 = vrot.slane %v4790_v62, 4  ;;  %v4816_v24 = vrot.slane %v4814_v48, 6  ;;  %v4827_v8 = vshll.u32 %v8718_v51, 16 }
 0x358   : > { %v4810_v37 = vor.u32 %v4809_v17, %v4806_v7  ;;  %v4819_v10 = vrot.slane %v4817_v44, 7  ;;  %5077 = vst [vmem:[%s7507_s24 + $0x38] sm:$0xf] %v4791_v50  ;;  %v4802_v21 = vrot.slane %v4800_v20, 4  ;;  %v4826_v45 = vrot.slane %v4824_v27, 6 }
 0x359   : > { %v4801_v41 = vsel %vm8336_vm14, %v4792_v57, %v4800_v20  ;;  %v4834_v42 = vshrl.u32 %v8720_v40, 16  ;;  %v4829_v61 = vrot.slane %v4827_v8, 7  ;;  %v4837_v19 = vshll.u32 %v8720_v40, 16 }
 0x35a   : > { %v4812_v3 = vrot.slane %v4810_v37, 4  ;;  %v4820_v11 = vor.u32 %v4819_v10, %v4816_v24  ;;  %5078 = vst [vmem:[%s7507_s24 + $0x3c] sm:$0xf] %v4801_v41  ;;  %v4811_v6 = vsel %vm8336_vm14, %v4802_v21, %v4810_v37  ;;  %v4844_v34 = vshrl.u32 %v8722_v23, 16 }
 0x35b   : > { %v4836_v51 = vrot.slane %v4834_v42, 6  ;;  %v4847_v33 = vshll.u32 %v8722_v23, 16  ;;  %v4830_v28 = vor.u32 %v4829_v61, %v4826_v45  ;;  %v4839_v36 = vrot.slane %v4837_v19, 7  ;;  %5079 = vst [vmem:[%s7507_s24 + $0x40] sm:$0xf] %v4811_v6 }
 0x35c   : > { %v4821_v29 = vsel %vm8336_vm14, %v4812_v3, %v4820_v11  ;;  %v4822_v53 = vrot.slane %v4820_v11, 4  ;;  %v4846_v55 = vrot.slane %v4844_v34, 6  ;;  %v4854_v40 = vshrl.u32 %v8724_v12, 16 }
 0x35d   : > { %v4849_v16 = vrot.slane %v4847_v33, 7  ;;  %v4857_v32 = vshll.u32 %v8724_v12, 16  ;;  %5080 = vst [vmem:[%s7507_s24 + $0x44] sm:$0xf] %v4821_v29  ;;  %v4832_v38 = vrot.slane %v4830_v28, 4  ;;  %v4840_v23 = vor.u32 %v4839_v36, %v4836_v51 }
 0x35e   : > { %v4831_v0 = vsel %vm8336_vm14, %v4822_v53, %v4830_v28  ;;  %v4864_v18 = vshrl.u32 %v8726_v4, 16  ;;  %v4856_v26 = vrot.slane %v4854_v40, 6  ;;  %v4867_v59 = vshll.u32 %v8726_v4, 16 }
 0x35f   : > { %v4850_v22 = vor.u32 %v4849_v16, %v4846_v55  ;;  %v4859_v13 = vrot.slane %v4857_v32, 7  ;;  %5081 = vst [vmem:[%s7507_s24 + $0x48] sm:$0xf] %v4831_v0  ;;  %v4841_v47 = vsel %vm8336_vm14, %v4832_v38, %v4840_v23  ;;  %v4842_v9 = vrot.slane %v4840_v23, 4 }
 0x360   : > { %v4866_v12 = vrot.slane %v4864_v18, 6  ;;  %v4874_v49 = vshrl.u32 %v8728_v46, 16  ;;  %v4869_v1 = vrot.slane %v4867_v59, 7  ;;  %v4877_v62 = vshll.u32 %v8728_v46, 16  ;;  %5082 = vst [vmem:[%s7507_s24 + $0x4c] sm:$0xf] %v4841_v47 }
 0x361   : > { %v4852_v30 = vrot.slane %v4850_v22, 4  ;;  %v4860_v54 = vor.u32 %v4859_v13, %v4856_v26  ;;  %v4851_v63 = vsel %vm8336_vm14, %v4842_v9, %v4850_v22  ;;  %v4884_v7 = vshrl.u32 %v8730_v56, 16 }
 0x362   : > { %v4876_v4 = vrot.slane %v4874_v49, 6  ;;  %v4887_v17 = vshll.u32 %v8730_v56, 16  ;;  %v4870_v50 = vor.u32 %v4869_v1, %v4866_v12  ;;  %v4879_v57 = vrot.slane %v4877_v62, 7  ;;  %5083 = vst [vmem:[%s7507_s24 + $0x50] sm:$0xf] %v4851_v63 }
 0x363   : > { %v4861_v48 = vsel %vm8336_vm14, %v4852_v30, %v4860_v54  ;;  %v4862_v44 = vrot.slane %v4860_v54, 4  ;;  %v4886_v20 = vrot.slane %v4884_v7, 6  ;;  %v4894_v46 = vshrl.u32 %v8732_v15, 16 }
 0x364   : > { %v4889_v27 = vrot.slane %v4887_v17, 7  ;;  %v4897_v37 = vshll.u32 %v8732_v15, 16  ;;  %5084 = vst [vmem:[%s7507_s24 + $0x54] sm:$0xf] %v4861_v48  ;;  %v4872_v10 = vrot.slane %v4870_v50, 4  ;;  %v4880_v56 = vor.u32 %v4879_v57, %v4876_v4 }
 0x365   : > { %v4871_v24 = vsel %vm8336_vm14, %v4862_v44, %v4870_v50  ;;  %v4904_v8 = vshrl.u32 %v8734_v31, 16  ;;  %v4896_v21 = vrot.slane %v4894_v46, 6  ;;  %v4907_v42 = vshll.u32 %v8734_v31, 16  ;;  %v5063_v50 = vld [vmem:[%s7507_s24 + $0x8] sm:$0xe] }
 0x366   : > { %v4890_v41 = vor.u32 %v4889_v27, %v4886_v20  ;;  %v4899_v45 = vrot.slane %v4897_v37, 7  ;;  %5085 = vst [vmem:[%s7507_s24 + $0x58] sm:$0xf] %v4871_v24  ;;  %vm5060_vm7 = vcmask 1043457   ;;  %vm5061_vm9 = vsmask.f32 7942 }
 0x367   : > { %v4881_v15 = vsel %vm8336_vm14, %v4872_v10, %v4880_v56  ;;  %v4882_v3 = vrot.slane %v4880_v56, 4  ;;  %v4906_v11 = vrot.slane %v4904_v8, 6  ;;  %v4914_v61 = vshrl.u32 %v8736_v58, 16  ;;  %vm8887_vm15 = vmand %vm5060_vm7, %vm5061_vm9 }
 0x368   : > { %v4892_v19 = vrot.slane %v4890_v41, 4  ;;  %v4900_v6 = vor.u32 %v4899_v45, %v4896_v21  ;;  %v4909_v51 = vrot.slane %v4907_v42, 7  ;;  %v4917_v34 = vshll.u32 %v8736_v58, 16  ;;  %5086 = vst [vmem:[%s7507_s24 + $0x5c] sm:$0xf] %v4881_v15 }
 0x369   : > { %v4891_v31 = vsel %vm8336_vm14, %v4882_v3, %v4890_v41  ;;  %v4916_v33 = vrot.slane %v4914_v61, 6  ;;  %v4924_v29 = vshrl.u32 %v8738_v52, 16  ;;  %v4927_v53 = vshll.u32 %v8738_v52, 16  ;;  %v5104_v3 = vld [vmem:[%s7507_s24 + $0x98] sm:$0x1] }
 0x36a   : > { %v4901_v28 = vsel %vm8336_vm14, %v4892_v19, %v4900_v6  ;;  %v4902_v36 = vrot.slane %v4900_v6, 4  ;;  %v4910_v55 = vor.u32 %v4909_v51, %v4906_v11  ;;  %v4919_v16 = vrot.slane %v4917_v34, 7  ;;  %5087 = vst [vmem:[%s7507_s24 + $0x60] sm:$0xf] %v4891_v31  ;;  %v9129_v11 = vld [vmem:[#allocation50_spill] sm:$0xff] }
 0x36b   : > { %vm5101_vm10 = vcmask 1040384   ;;  %vm5102_vm13 = vsmask.f32 256  ;;  %v4926_v58 = vrot.slane %v4924_v29, 6  ;;  %v4929_v40 = vrot.slane %v4927_v53, 7  ;;  %v9130_v53 = vld [vmem:[#allocation49_spill] sm:$0xff] }
 0x36c   : > { %v4934_v32 = vshrl.u32 %v8740_v2, 16  ;;  %v4937_v0 = vshll.u32 %v8740_v2, 16  ;;  %5088 = vst [vmem:[%s7507_s24 + $0x64] sm:$0xf] %v4901_v28  ;;  %v4911_v52 = vsel %vm8336_vm14, %v4902_v36, %v4910_v55  ;;  %v4912_v38 = vrot.slane %v4910_v55, 4  ;;  %vm5103_vm0 = vmand %vm5101_vm10, %vm5102_vm13 }
 0x36d   : > { %v4920_v23 = vor.u32 %v4919_v16, %v4916_v33  ;;  %v4944_v18 = vshrl.u32 %v8742_v60, 16  ;;  %v4930_v22 = vor.u32 %v4929_v40, %v4926_v58  ;;  %v4947_v59 = vshll.u32 %v8742_v60, 16  ;;  %5089 = vst [vmem:[%s7507_s24 + $0x68] sm:$0xf] %v4911_v52 }
 0x36e   : > { %v4936_v26 = vrot.slane %v4934_v32, 6  ;;  %v4939_v13 = vrot.slane %v4937_v0, 7  ;;  %v4954_v12 = vshrl.u32 %v8744_v35, 16  ;;  %v4957_v1 = vshll.u32 %v8744_v35, 16 }
 0x36f   : > { %v4921_v47 = vsel %vm8336_vm14, %v4912_v38, %v4920_v23  ;;  %v4922_v9 = vrot.slane %v4920_v23, 4  ;;  %v4946_v2 = vrot.slane %v4944_v18, 6  ;;  %v4932_v49 = vrot.slane %v4930_v22, 4 }
 0x370   : > { %v4940_v30 = vor.u32 %v4939_v13, %v4936_v26  ;;  %v4949_v54 = vrot.slane %v4947_v59, 7  ;;  %5090 = vst [vmem:[%s7507_s24 + $0x6c] sm:$0xf] %v4921_v47  ;;  %v4956_v62 = vrot.slane %v4954_v12, 6  ;;  %v4964_v63 = vshrl.u32 %v8746_v39, 16 }
 0x371   : > { %v4931_v60 = vsel %vm8336_vm14, %v4922_v9, %v4930_v22  ;;  %v4967_v4 = vshll.u32 %v8746_v39, 16  ;;  %v4959_v44 = vrot.slane %v4957_v1, 7  ;;  %v4974_v27 = vshrl.u32 %v8748_v5, 16 }
 0x372   : > { %v4941_v7 = vsel %vm8336_vm14, %v4932_v49, %v4940_v30  ;;  %v4942_v17 = vrot.slane %v4940_v30, 4  ;;  %v4950_v48 = vor.u32 %v4949_v54, %v4946_v2  ;;  %5091 = vst [vmem:[%s7507_s24 + $0x70] sm:$0xf] %v4931_v60  ;;  %v4966_v57 = vrot.slane %v4964_v63, 6 }
 0x373   : > { %v4969_v20 = vrot.slane %v4967_v4, 7  ;;  %v4977_v39 = vshll.u32 %v8748_v5, 16  ;;  %5092 = vst [vmem:[%s7507_s24 + $0x74] sm:$0xf] %v4941_v7  ;;  %v4960_v24 = vor.u32 %v4959_v44, %v4956_v62  ;;  %v5014_v10 = vshrl.u32 %v8750_v43, 16 }
 0x374   : > { %v4951_v46 = vsel %vm8336_vm14, %v4942_v17, %v4950_v48  ;;  %v4952_v37 = vrot.slane %v4950_v48, 4  ;;  %v4976_v8 = vrot.slane %v4974_v27, 6  ;;  %v5017_v21 = vshll.u32 %v8750_v43, 16 }
 0x375   : > { %v4970_v56 = vor.u32 %v4969_v20, %v4966_v57  ;;  %v4979_v41 = vrot.slane %v4977_v39, 7  ;;  %5093 = vst [vmem:[%s7507_s24 + $0x78] sm:$0xf] %v4951_v46  ;;  %v4962_v45 = vrot.slane %v4960_v24, 4  ;;  %v5016_v42 = vrot.slane %v5014_v10, 6 }
 0x376   : > { %v4961_v5 = vsel %vm8336_vm14, %v4952_v37, %v4960_v24  ;;  %v5064_v15 = vsel %vm8887_vm15, %v8752_v14, %v5063_v50  ;;  %v5012_v61 = vrot.slane %v9129_v11, 4  ;;  %v5019_v6 = vrot.slane %v5017_v21, 7 }
 0x377   : > { %v4972_v43 = vrot.slane %v4970_v56, 4  ;;  %v4980_v19 = vor.u32 %v4979_v41, %v4976_v8  ;;  %5065 = vst [vmem:[%s7507_s24 + $0x8] sm:$0xe] %v5064_v15  ;;  %5094 = vst [vmem:[%s7507_s24 + $0x7c] sm:$0xf] %v4961_v5  ;;  %v4971_v51 = vsel %vm8336_vm14, %v4962_v45, %v4970_v56  ;;  %v5022_v14 = vrot.slane %v5016_v42, 4 }
 0x378   : > { %v5020_v33 = vor.u32 %v5019_v6, %v5016_v42  ;;  %5095 = vst [vmem:[%s7507_s24 + $0x80] sm:$0xf] %v4971_v51  ;;  %vm5107_vm1 = vcmask 1043456   ;;  %vm5108_vm4 = vsmask.f32 7938 }
 0x379   : > { %v4981_v34 = vsel %vm8336_vm14, %v4972_v43, %v4980_v19  ;;  %v4982_v31 = vrot.slane %v4980_v19, 4  ;;  %v5105_v29 = vsel %vm5103_vm0, %v5022_v14, %v5104_v3  ;;  %vm5109_vm5 = vmand %vm5107_vm1, %vm5108_vm4 }
 0x37a   : > { %5096 = vst [vmem:[%s7507_s24 + $0x84] sm:$0xf] %v4981_v34  ;;  %v5021_v36 = vsel %vm8336_vm14, %v5012_v61, %v5020_v33  ;;  %5106 = vst [vmem:[%s7507_s24 + $0x98] sm:$0x1] %v5105_v29 }
 0x37b   : > { %v4991_v28 = vsel %vm8336_vm14, %v4982_v31, %v9130_v53  ;;  %5100 = vst [vmem:[%s7507_s24 + $0x94] sm:$0xf] %v5021_v36 }
 0x37c   : > { %5097 = vst [vmem:[%s7507_s24 + $0x88] sm:$0xf] %v4991_v28 }
 0x381   : > { %v5110_v25 = vld [vmem:[%s7507_s24 + $0x98] sm:$0xf] }
 0x382   : > { %v5111_v55 = vsel %vm5109_vm5, 0, %v5110_v25 }
 0x383   : > { %5112 = vst [vmem:[%s7507_s24 + $0x98] sm:$0xf] %v5111_v55 }
 0x384   : > { %6737 = shalt.err (!%p6734_p13)
}
 0x385   : > { %s6738_s6 = scalar_lea.hbm %s8930_s17, 2624  ;;  %s6742_s12 = scalar_lea.hbm %s8983_s5, 5248 }
 0x386   : > { %p6739_p9 = scmp.ne.s32.totalorder %s8930_s17, %s6738_s6  ;;  %p6743_p4 = scmp.lt.u32.totalorder %s8930_s17, %s8983_s5 }
 0x387   : > { %p6744_p8 = scmp.lt.u32.totalorder %s6742_s12, %s6738_s6  ;;  %p6746_p3 = scmp.lt.u32.totalorder %s6738_s6, %s8930_s17 }
 0x388   : > { %p6740_p0 = pnand %p6739_p9, %p7006_p10 }
 0x389   : > { %p6745_p6 = por %p6744_p8, %p6743_p4 }
 0x38a   : > { %p6741_p11 = pneg %p6740_p0 }
 0x38b   : > { %p6747_p5 = por %p6746_p3, %p6745_p6 }
 0x38d   : > { %p6748_p7 = pnand %p6747_p5, %p6741_p11 }
 0x38f   : > { %6751 = shalt.err (!%p6748_p7)
}
 0x390   : > { %s6811_s26 = smov 64   ;;  %s6812_s8 = smov 4  }
 0x391   : > { %6410 = dma.vmem_to_hbm [thread:$0]  (%p7006_p10), %s8932_s16, 2624, %s8930_s17, %s5116_s13, %s6811_s26, %s6811_s26, %s6812_s8  }
 0x392 PF: > { %s5144_s28 = sand.u32 1, %s6786_s18   ;;  %p9131_p12 = scmp.ne.s32.totalorder %s9024_s25, 0 }
 0x393   : > { %p9132_p2 = scmp.ge.s32.totalorder %s6798_s21, 2  ;;  %s5145_s9 = scalar_lea.sflag [#allocation4], %s5144_s28 }
 0x395   : > { %p6430_p1 = pnand %p9132_p2, %p9131_p12 }
 0x397   : > { %6781 = dma.done.wait (!%p6430_p1), %s5145_s9, 2624  }
 0x398   : > { %6783 = vsyncadd (!%p6430_p1), %s5145_s9, 4294964672  ;;  %p20_p13 = scmp.ge.s32.totalorder %s6996_s14, 4   ;;  %s9133_s18 = smov %s6790_s19 }
 0x399   : > { %s9134_s19 = smov %s6794_s20  ;;  %s9135_s20 = smov %s7012_s7 }
 0x39a   : > { %s9136_s21 = smov %s6996_s14  ;;  %22 = sbr.rel (!%p20_p13) target bundleno = 7 (0x7), region = 101 }
 0x3a1   :  { %5150 = vsyncpa [#allocation3], 1 }
 0x3a2   :  { %5152 = vsyncpa [#allocation3 + $0x1], 1 }
 0x3a3   :  { %5153 = vsyncpa [#allocation6], 1 }
 0x3a4   :  { %5154 = vsyncpa [#allocation9], 1 }
 0x3a5   :  { %5155 = vsyncpa [#allocation4], 1 }
 0x3a6   :  { %5157 = vsyncpa [#allocation4 + $0x1], 1 }

// kernel: stacked_conv_layers3_forward.4
= control target key start
LH: loop header
LB: loop body
LE: loop exit
PB: predicated region body
PF: predicated region fallthrough
CT: control target
= control target key end

     0   :  { %s17926_s0 = inlined_call_operand.hbm [shape: bf16[2,324,128], index: 0, kind: input, shape index: {}]   ;;  %s17927_s1 = inlined_call_operand.hbm [shape: f32[286,1], index: 1, kind: input, shape index: {}]   ;;  %s17928_s2 = inlined_call_operand.hbm [shape: bf16[1152,128], index: 2, kind: input, shape index: {}]   ;;  %s17929_s3 = inlined_call_operand.hbm [shape: f32[1,128], index: 3, kind: input, shape index: {}]   ;;  %s17930_s4 = inlined_call_operand.hbm [shape: f32[1,128], index: 4, kind: input, shape index: {}]   ;;  %s17931_s5 = inlined_call_operand.hbm [shape: bf16[1152,128], index: 5, kind: input, shape index: {}]   ;;  %s17932_s6 = inlined_call_operand.hbm [shape: f32[1,128], index: 6, kind: input, shape index: {}]   ;;  %s17933_s7 = inlined_call_operand.hbm [shape: f32[1,128], index: 7, kind: input, shape index: {}]   ;;  %s17934_s8 = inlined_call_operand.hbm [shape: bf16[2,324,128], index: 8, kind: output, shape index: {}]  }
   0x1   :  { %18056 = sst [smem:[#allocation100_spill]] %s17927_s1 }
   0x2   :  { %18057 = sst [smem:[#allocation101_spill]] %s17929_s3 }
   0x3   :  { %13 = vsyncpa [#allocation4], 0 }
   0x4   :  { %15 = vsyncpa [#allocation4 + $0x1], 0 }
   0x5   :  { %16 = vsyncpa [#allocation7], 0 }
   0x6   :  { %17 = vsyncpa [#allocation10], 0 }
   0x7   :  { %18 = vsyncpa [#allocation13], 0 }
   0x8   :  { %19 = vsyncpa [#allocation16], 0 }
   0x9   :  { %20 = vsyncpa [#allocation5], 0 }
   0xa   :  { %22 = vsyncpa [#allocation5 + $0x1], 0  ;;  %s14046_s27 = smov 0   ;;  %s14048_s28 = smov 0  }
   0xb   :  { %s14050_s29 = smov 0   ;;  %s14052_s30 = smov 0  }
   0xc LB: > { %s13985_s9 = smov [#allocation6]   ;;  %s14067_s11 = sadd.s32 4294967295, %s13983_s30   ;;  %s13983_s30 = sphi %s14052_s30, %s18647_s30   ;;  %s13979_s29 = sphi %s14050_s29, %s18646_s29   ;;  %s13975_s28 = sphi %s14048_s28, %s18645_s28   ;;  %s13971_s27 = sphi %s14046_s27, %s18644_s27  }
   0xd   : > { %s244_s10 = sshll.u32 %s13985_s9, 4  ;;  %p10658_p0 = scmp.ge.s32.totalorder %s13983_s30, 1  ;;  %s14072_s10 = int_to_ptr.vmem [resolvable:$true] %s244_s10 }
   0xe   : > { %p17935_p1 = scmp.eq.s32.totalorder %s14067_s11, 0  ;;  %p232_p2 = scmp.lt.s32.totalorder %s13983_s30, 3 }
   0xf   : > { %s13986_s13 = smov [#allocation9]   ;;  %s13987_s16 = smov [#allocation12]  }
  0x10   : > { %p14074_p3 = pnand %p10658_p0, %p232_p2  ;;  %s271_s14 = sshll.u32 %s13986_s13, 4  ;;  %s14087_s14 = int_to_ptr.vmem [resolvable:$true] %s271_s14 }
  0x11   : > { %s14089_s17 = sshll.u32 %s13987_s16, 4  ;;  %s18060_s1 = sld [smem:[#allocation100_spill]]  ;;  %s293_s17 = int_to_ptr.vmem [resolvable:$true] %s14089_s17 }
  0x12   : > { %s18058_s12 = scalar_select %p14074_p3, 1, 0 }
  0x13   : > { %p13230_p5 = pneg %p14074_p3 }
  0x15   : > { %p14083_p6 = pnand %p13230_p5, %p17935_p1 }
  0x17   : > { %s13675_s20 = scalar_lea.hbm %s18060_s1, 4608  ;;  %p14099_p8 = pneg %p14083_p6 }
  0x18   : > { %p13676_p7 = scmp.ne.s32.totalorder %s18060_s1, %s13675_s20  ;;  %p13682_p11 = scmp.lt.u32.totalorder %s13675_s20, %s18060_s1 }
  0x1a   : > { %p13678_p9 = pnand %p14099_p8, %p13676_p7 }
  0x1c   : > { %p13679_p10 = pneg %p13678_p9 }
  0x1e   : > { %p13684_p12 = pnand %p13682_p11, %p13679_p10 }
  0x20   : > { %13687 = shalt.err (!%p13684_p12)
}
  0x21   : > { %s13688_s26 = scalar_lea.vmem %s14072_s10, 4608  ;;  %p13696_p5 = scmp.lt.s32.totalorder %s14072_s10, %s14072_s10 }
  0x22   : > { %p13689_p13 = scmp.ne.s32.totalorder %s14072_s10, %s13688_s26  ;;  %p13697_p4 = scmp.lt.s32.totalorder %s13688_s26, %s13688_s26 }
  0x24   : > { %p13691_p0 = pnand %p13689_p13, %p14099_p8  ;;  %p13698_p7 = por %p13697_p4, %p13696_p5 }
  0x26   : > { %p13692_p2 = pneg %p13691_p0 }
  0x28   : > { %p13699_p9 = pnand %p13698_p7, %p13692_p2 }
  0x2a   : > { %13702 = shalt.err (!%p13699_p9)
}
  0x2b   : > { %s13988_s9 = smov 128   ;;  %s13989_s13 = smov 8  }
  0x2c   : > { %13233 = dma.hbm_to_vmem [thread:$0]  (!%p14083_p6), %s18060_s1, 4608, %s14072_s10, [#allocation7], %s13988_s9, %s13988_s9, %s13989_s13  }
  0x2d   : > { %s18062_s3 = sld [smem:[#allocation101_spill]] }
  0x33   : > { %s13703_s21 = scalar_lea.hbm %s18062_s3, 16 }
  0x34   : > { %p13704_p4 = scmp.ne.s32.totalorder %s18062_s3, %s13703_s21  ;;  %p13710_p12 = scmp.lt.u32.totalorder %s13703_s21, %s18062_s3 }
  0x36   : > { %p13706_p10 = pnand %p13704_p4, %p14099_p8 }
  0x38   : > { %p13707_p11 = pneg %p13706_p10 }
  0x3a   : > { %p13712_p13 = pnand %p13710_p12, %p13707_p11 }
  0x3c   : > { %13715 = shalt.err (!%p13712_p13)
}
  0x3d   : > { %s13716_s10 = scalar_lea.vmem %s14087_s14, 16  ;;  %s13723_s9 = scalar_lea.vmem %s14087_s14, 32 }
  0x3e   : > { %p13717_p0 = scmp.ne.s32.totalorder %s14087_s14, %s13716_s10  ;;  %p13724_p7 = scmp.lt.s32.totalorder %s14087_s14, %s14087_s14 }
  0x3f   : > { %p13725_p9 = scmp.lt.s32.totalorder %s13723_s9, %s13716_s10 }
  0x40   : > { %p13719_p2 = pnand %p13717_p0, %p14099_p8 }
  0x41   : > { %p13726_p4 = por %p13725_p9, %p13724_p7 }
  0x42   : > { %p13720_p5 = pneg %p13719_p2 }
  0x44   : > { %p13727_p10 = pnand %p13726_p4, %p13720_p5 }
  0x46   : > { %13730 = shalt.err (!%p13727_p10)
}
  0x47   : > { %13239 = dma.hbm_to_vmem [thread:$0]  (!%p14083_p6), %s18062_s3, 16, %s14087_s14, [#allocation10]  }
  0x48   : > { %s13731_s20 = scalar_lea.hbm %s17931_s5, 9216 }
  0x49   : > { %p13732_p11 = scmp.ne.s32.totalorder %s17931_s5, %s13731_s20  ;;  %p13738_p0 = scmp.lt.u32.totalorder %s13731_s20, %s17931_s5 }
  0x4b   : > { %p13734_p12 = pnand %p13732_p11, %p14099_p8 }
  0x4d   : > { %p13735_p13 = pneg %p13734_p12 }
  0x4f   : > { %p13740_p2 = pnand %p13738_p0, %p13735_p13 }
  0x51   : > { %13743 = shalt.err (!%p13740_p2)
}
  0x52   : > { %s13744_s26 = scalar_lea.vmem %s293_s17, 9216  ;;  %p13752_p4 = scmp.lt.s32.totalorder %s293_s17, %s293_s17 }
  0x53   : > { %p13745_p5 = scmp.ne.s32.totalorder %s293_s17, %s13744_s26  ;;  %p13753_p10 = scmp.lt.s32.totalorder %s13744_s26, %s13744_s26 }
  0x55   : > { %p13747_p7 = pnand %p13745_p5, %p14099_p8  ;;  %p13754_p1 = por %p13753_p10, %p13752_p4 }
  0x57   : > { %p13748_p9 = pneg %p13747_p7 }
  0x59   : > { %p13755_p3 = pnand %p13754_p1, %p13748_p9 }
  0x5b   : > { %13758 = shalt.err (!%p13755_p3)
}
  0x5c   : > { %s17937_s14 = smov 64   ;;  %s17938_s10 = smov 4  }
  0x5d   : > { %13245 = dma.hbm_to_vmem [thread:$0]  (!%p14083_p6), %s17931_s5, 9216, %s293_s17, [#allocation13], %s17937_s14, %s17937_s14, %s17938_s10  }
  0x5e   : > { %s13992_s16 = smov [#allocation8]   ;;  %s13993_s19 = smov [#allocation11]  }
  0x5f   : > { %s257_s18 = sshll.u32 %s13992_s16, 4  ;;  %s282_s20 = sshll.u32 %s13993_s19, 4  ;;  %s258_s18 = int_to_ptr.vmem [resolvable:$true] %s257_s18  ;;  %s283_s20 = int_to_ptr.vmem [resolvable:$true] %s282_s20 }
  0x60   : > { %s13759_s24 = scalar_lea.hbm %s17928_s2, 9216 }
  0x61   : > { %p13760_p1 = scmp.ne.s32.totalorder %s17928_s2, %s13759_s24  ;;  %p13766_p12 = scmp.lt.u32.totalorder %s13759_s24, %s17928_s2 }
  0x63   : > { %p13762_p3 = pnand %p13760_p1, %p14099_p8 }
  0x65   : > { %p13763_p11 = pneg %p13762_p3 }
  0x67   : > { %p13768_p13 = pnand %p13766_p12, %p13763_p11 }
  0x69   : > { %13771 = shalt.err (!%p13768_p13)
}
  0x6a   : > { %s13772_s17 = scalar_lea.vmem %s258_s18, 9216  ;;  %p13780_p7 = scmp.lt.s32.totalorder %s258_s18, %s258_s18 }
  0x6b   : > { %p13773_p0 = scmp.ne.s32.totalorder %s258_s18, %s13772_s17  ;;  %p13781_p9 = scmp.lt.s32.totalorder %s13772_s17, %s13772_s17 }
  0x6d   : > { %p13775_p2 = pnand %p13773_p0, %p14099_p8  ;;  %p13782_p4 = por %p13781_p9, %p13780_p7 }
  0x6f   : > { %p13776_p5 = pneg %p13775_p2 }
  0x71   : > { %p13783_p10 = pnand %p13782_p4, %p13776_p5 }
  0x73   : > { %13786 = shalt.err (!%p13783_p10)
}
  0x74   : > { %13236 = dma.hbm_to_vmem [thread:$0]  (!%p14083_p6), %s17928_s2, 9216, %s258_s18, [#allocation7], %s17937_s14, %s17937_s14, %s17938_s10  }
  0x75   : > { %s13787_s16 = scalar_lea.hbm %s17930_s4, 16 }
  0x76   : > { %p13788_p1 = scmp.ne.s32.totalorder %s17930_s4, %s13787_s16  ;;  %p13794_p12 = scmp.lt.u32.totalorder %s13787_s16, %s17930_s4 }
  0x78   : > { %p13790_p3 = pnand %p13788_p1, %p14099_p8 }
  0x7a   : > { %p13791_p11 = pneg %p13790_p3 }
  0x7c   : > { %p13796_p13 = pnand %p13794_p12, %p13791_p11 }
  0x7e   : > { %13799 = shalt.err (!%p13796_p13)
}
  0x7f   : > { %s13800_s25 = scalar_lea.vmem %s283_s20, 16  ;;  %s13807_s18 = scalar_lea.vmem %s283_s20, 32 }
  0x80   : > { %p13801_p0 = scmp.ne.s32.totalorder %s283_s20, %s13800_s25  ;;  %p13808_p7 = scmp.lt.s32.totalorder %s283_s20, %s283_s20 }
  0x81   : > { %p13809_p9 = scmp.lt.s32.totalorder %s13807_s18, %s13800_s25 }
  0x82   : > { %p13803_p2 = pnand %p13801_p0, %p14099_p8 }
  0x83   : > { %p13810_p4 = por %p13809_p9, %p13808_p7 }
  0x84   : > { %p13804_p5 = pneg %p13803_p2 }
  0x86   : > { %p13811_p10 = pnand %p13810_p4, %p13804_p5 }
  0x88   : > { %13814 = shalt.err (!%p13811_p10)
}
  0x89   : > { %13242 = dma.hbm_to_vmem [thread:$0]  (!%p14083_p6), %s17930_s4, 16, %s283_s20, [#allocation10]  }
  0x8a   : > { %s13994_s1 = smov [#allocation14]   ;;  %s13995_s9 = smov [#allocation15]  }
  0x8b   : > { %s306_s3 = sshll.u32 %s13994_s1, 4  ;;  %s317_s13 = sshll.u32 %s13995_s9, 4  ;;  %s307_s3 = int_to_ptr.vmem [resolvable:$true] %s306_s3  ;;  %s318_s13 = int_to_ptr.vmem [resolvable:$true] %s317_s13 }
  0x8c   : > { %s13815_s21 = scalar_lea.hbm %s17932_s6, 16 }
  0x8d   : > { %p13816_p1 = scmp.ne.s32.totalorder %s17932_s6, %s13815_s21  ;;  %p13822_p12 = scmp.lt.u32.totalorder %s13815_s21, %s17932_s6 }
  0x8f   : > { %p13818_p3 = pnand %p13816_p1, %p14099_p8 }
  0x91   : > { %p13819_p11 = pneg %p13818_p3 }
  0x93   : > { %p13824_p13 = pnand %p13822_p12, %p13819_p11 }
  0x95   : > { %13827 = shalt.err (!%p13824_p13)
}
  0x96   : > { %s13828_s20 = scalar_lea.vmem %s307_s3, 16  ;;  %s13835_s26 = scalar_lea.vmem %s307_s3, 32 }
  0x97   : > { %p13829_p0 = scmp.ne.s32.totalorder %s307_s3, %s13828_s20  ;;  %p13836_p7 = scmp.lt.s32.totalorder %s307_s3, %s307_s3 }
  0x98   : > { %p13837_p9 = scmp.lt.s32.totalorder %s13835_s26, %s13828_s20 }
  0x99   : > { %p13831_p2 = pnand %p13829_p0, %p14099_p8 }
  0x9a   : > { %p13838_p4 = por %p13837_p9, %p13836_p7 }
  0x9b   : > { %p13832_p5 = pneg %p13831_p2 }
  0x9d   : > { %p13839_p10 = pnand %p13838_p4, %p13832_p5 }
  0x9f   : > { %13842 = shalt.err (!%p13839_p10)
}
  0xa0   : > { %13248 = dma.hbm_to_vmem [thread:$0]  (!%p14083_p6), %s17932_s6, 16, %s307_s3, [#allocation13]  }
  0xa1   : > { %s13843_s19 = scalar_lea.hbm %s17933_s7, 16 }
  0xa2   : > { %p13844_p1 = scmp.ne.s32.totalorder %s17933_s7, %s13843_s19  ;;  %p13850_p12 = scmp.lt.u32.totalorder %s13843_s19, %s17933_s7 }
  0xa4   : > { %p13846_p3 = pnand %p13844_p1, %p14099_p8 }
  0xa6   : > { %p13847_p11 = pneg %p13846_p3 }
  0xa8   : > { %p13852_p13 = pnand %p13850_p12, %p13847_p11 }
  0xaa   : > { %13855 = shalt.err (!%p13852_p13)
}
  0xab   : > { %s13856_s18 = scalar_lea.vmem %s318_s13, 16  ;;  %s13863_s3 = scalar_lea.vmem %s318_s13, 32 }
  0xac   : > { %p13857_p0 = scmp.ne.s32.totalorder %s318_s13, %s13856_s18  ;;  %p13864_p7 = scmp.lt.s32.totalorder %s318_s13, %s318_s13 }
  0xad   : > { %p13865_p9 = scmp.lt.s32.totalorder %s13863_s3, %s13856_s18 }
  0xae   : > { %p13859_p2 = pnand %p13857_p0, %p14099_p8 }
  0xaf   : > { %p13866_p4 = por %p13865_p9, %p13864_p7 }
  0xb0   : > { %p13860_p5 = pneg %p13859_p2 }
  0xb2   : > { %p13867_p10 = pnand %p13866_p4, %p13860_p5 }
  0xb4   : > { %13870 = shalt.err (!%p13867_p10)
}
  0xb5   : > { %13251 = dma.hbm_to_vmem [thread:$0]  (!%p14083_p6), %s17933_s7, 16, %s318_s13, [#allocation16]  }
  0xb6   : > { %s10657_s23 = sadd.s32 4294967294, %s13983_s30   ;;  %s14243_s15 = sadd.s32 1, %s13983_s30  }
  0xb7   : > { %s35_s17 = sadd.s32 1, %s13979_s29  ;;  %s32_s1 = ssub.s32 %s13983_s30, %s14243_s15 }
  0xb8   : > { %p42_p8 = scmp.ne.s32.totalorder %s13979_s29, %s13975_s28  ;;  %p33_p1 = scmp.eq.s32.totalorder %s32_s1, 0 }
  0xb9   : > { %p43_p3 = scmp.eq.s32.totalorder %s13983_s30, 0  ;;  %p48_p11 = scmp.ne.s32.totalorder %s13975_s28, %s13971_s27 }
  0xba   : > { %p219_p12 = scmp.eq.s32.totalorder %s14067_s11, 1  ;;  %p18063_p0 = scmp.eq.s32.totalorder %s14067_s11, 0 }
  0xbb   : > { %s14255_s9 = scalar_select %p33_p1, %s13979_s29, %s35_s17  }
  0xbc   : > { %p44_p13 = por %p43_p3, %p42_p8  ;;  %p14259_p2 = por %p18063_p0, %p48_p11 }
  0xbd   : > { %p14263_p6 = por %p219_p12, %p42_p8  ;;  %p225_p5 = scmp.eq.s32.totalorder %s10657_s23, 1 }
  0xbe   : > { %p13267_p7 = scmp.lt.s32.totalorder %s13983_s30, 2  ;;  %s328_s19 = sand.u32 1, %s13979_s29  }
  0xbf   : > { %s18065_s13 = scalar_select %p14263_p6, 1, 0 }
  0xc0   : > { %p14269_p9 = por %p225_p5, %p48_p11  ;;  %s13194_s22 = smul.u32 164, %s328_s19 }
  0xc1   : > { %p14273_p4 = pnand %p13267_p7, %p44_p13  ;;  %s13195_s25 = smul.u32 2624, %s13983_s30 }
  0xc2   : > { %s18066_s21 = scalar_select %p14269_p9, 1, 0 }
  0xc3   : > { %s14281_s20 = scalar_lea.hbm %s17926_s0, %s13195_s25  ;;  %s332_s26 = scalar_lea.vmem [#allocation3], %s13194_s22 }
  0xc4   : > { %s339_s23 = sshll.u32 %s332_s26, 4  ;;  %s14285_s17 = scalar_lea.sflag [#allocation4], %s328_s19  ;;  %s14283_s23 = int_to_ptr.vmem [resolvable:$true] %s339_s23 }
  0xc5   : > { %s13871_s1 = scalar_lea.hbm %s14281_s20, 2624  ;;  %p13873_p8 = pneg %p14273_p4 }
  0xc6   : > { %p13872_p10 = scmp.ne.s32.totalorder %s14281_s20, %s13871_s1  ;;  %s13876_s3 = scalar_lea.hbm %s17926_s0, 5248 }
  0xc7   : > { %p13877_p11 = scmp.lt.u32.totalorder %s14281_s20, %s17926_s0  ;;  %p13878_p12 = scmp.lt.u32.totalorder %s13876_s3, %s13871_s1 }
  0xc8   : > { %p13874_p1 = pnand %p13873_p8, %p13872_p10  ;;  %p13880_p0 = scmp.lt.u32.totalorder %s13871_s1, %s14281_s20 }
  0xc9   : > { %p13879_p13 = por %p13878_p12, %p13877_p11 }
  0xca   : > { %p13875_p3 = pneg %p13874_p1 }
  0xcb   : > { %p13881_p5 = por %p13880_p0, %p13879_p13 }
  0xcd   : > { %p13882_p7 = pnand %p13881_p5, %p13875_p3 }
  0xcf   : > { %13885 = shalt.err (!%p13882_p7)
}
  0xd0   : > { %s13886_s19 = scalar_lea.vmem %s14283_s23, 2624  ;;  %s13996_s22 = smov [#allocation3]  }
  0xd1   : > { %p13887_p10 = scmp.ne.s32.totalorder %s14283_s23, %s13886_s19  ;;  %s13891_s26 = sshll.u32 %s13996_s22, 4  ;;  %s13892_s26 = int_to_ptr.vmem [resolvable:$false] %s13891_s26 }
  0xd2   : > { %s13893_s14 = scalar_lea.vmem %s13892_s26, 5248  ;;  %p13894_p6 = scmp.lt.s32.totalorder %s14283_s23, %s13892_s26 }
  0xd3   : > { %p13889_p1 = pnand %p13887_p10, %p13873_p8  ;;  %p13895_p11 = scmp.lt.s32.totalorder %s13893_s14, %s13886_s19 }
  0xd5   : > { %p13890_p9 = pneg %p13889_p1  ;;  %p13896_p12 = por %p13895_p11, %p13894_p6 }
  0xd7   : > { %p13897_p13 = pnand %p13896_p12, %p13890_p9 }
  0xd9   : > { %13900 = shalt.err (!%p13897_p13)
}
  0xda   : > { %s18068_s10 = smov 4   ;;  %s18069_s1 = smov 64  }
  0xdb   : > { %13255 = dma.hbm_to_vmem [thread:$0]  (!%p14273_p4), %s14281_s20, 2624, %s14283_s23, %s14285_s17, %s18069_s1, %s18069_s1, %s18068_s10  }
  0xdc   : > { %p18070_p8 = scmp.ne.s32.totalorder %s18058_s12, 0 }
  0xde   : > { %351 = sbr.rel (%p18070_p8) target bundleno = 2409 (0x969), region = 52 }
  0xe5   : > { %s14319_s25 = sand.u32 1, %s13975_s28  }
  0xe6   : > { %s13196_s18 = smul.u32 164, %s14319_s25  ;;  %s354_s3 = scalar_lea.sflag [#allocation4], %s14319_s25 }
  0xe8   : > { %s14325_s24 = scalar_lea.vmem [#allocation3], %s13196_s18 }
  0xe9   : > { %13946 = dma.done.wait (%p14259_p2), %s354_s3, 2624  }
  0xea   : > { %13948 = vsyncadd (%p14259_p2), %s354_s3, 4294964672  ;;  %p18071_p6 = scmp.eq.s32.totalorder %s14067_s11, 0 }
  0xec   : > { %13950 = dma.done.wait (%p18071_p6), [#allocation7], 13824   ;;  %p18072_p9 = pmov %p18071_p6 }
  0xed   : > { %p18073_p4 = pmov %p18071_p6 }
  0xee   : > { %13952 = vsyncadd (%p18072_p9), [#allocation7], 4294953472 }
  0xef   : > { %13954 = dma.done.wait (%p18073_p4), [#allocation10], 32   ;;  %p18074_p3 = pmov %p18073_p4 }
  0xf1   : > { %13956 = vsyncadd (%p18074_p3), [#allocation10], 4294967264  ;;  %p18075_p0 = pmov %p18074_p3 }
  0xf3   : > { %13958 = dma.done.wait (%p18075_p0), [#allocation13], 9232   ;;  %p18076_p5 = pmov %p18075_p0 }
  0xf4   : > { %p18077_p2 = pmov %p18075_p0 }
  0xf5   : > { %13960 = vsyncadd (%p18076_p5), [#allocation13], 4294958064 }
  0xf6   : > { %13962 = dma.done.wait (%p18077_p2), [#allocation16], 16   ;;  %p18078_p7 = pmov %p18075_p0 }
  0xf7   : > { %v13324_v0 = vld [vmem:[#allocation8 + $0x40] sm:$0xff]   ;;  %v13325_v1 = vld [vmem:[#allocation8 + $0x48] sm:$0xff]   ;;  %v13326_v2 = vld [vmem:[#allocation8 + $0x50] sm:$0xff]   ;;  %vm18017_vm0 = vsmask.f32 7424  ;;  %vm18013_vm1 = vcmask 1046528  }
  0xf8   : > { %13964 = vsyncadd (%p18078_p7), [#allocation16], 4294967280  ;;  %11682 = vmatprep.subr.bf16.mxu0 %v13324_v0  ;;  %v13327_v3 = vld [vmem:[#allocation8 + $0x58] sm:$0xff]   ;;  %v14352_v7 = vld [vmem:[%s14325_s24 + $0x8] sm:$0xff]   ;;  %vm18012_vm2 = vsmask.f32 6400 }
  0xf9   : > { %11683 = vmatpush3.bf16.msra.mxu0 %v13324_v0  ;;  %v455_v4 = vld [vmem:[%s14325_s24] sm:$0xf]  ;;  %v456_v5 = vld [vmem:[%s14325_s24 + $0x4] sm:$0xf]  ;;  %v623_v10 = vshll.u32 %v14352_v7, 16  ;;  %v13329_v15 = vld [vmem:[#allocation8 + $0x68] sm:$0xff]  }
  0xfa   : > { %11684 = vmatprep.subr.bf16.mxu0 %v13325_v1  ;;  %v14349_v6 = vcombine.low %v455_v4, %v456_v5  ;;  %v13328_v11 = vld [vmem:[#allocation8 + $0x60] sm:$0xff]   ;;  %v14359_v17 = vld [vmem:[%s14325_s24 + $0x10] sm:$0xff]   ;;  %v14362_v19 = vld [vmem:[%s14325_s24 + $0x18] sm:$0xff]   ;;  %v627_v22 = vshrl.u32 %v14352_v7, 16  ;;  %vm18016_vm3 = vcmask 1045504   ;;  %s14769_s12 = scalar_lea.vmem [#allocation17], %s13196_s18 }
  0xfb   : > { %v625_v13 = vrot.slane %v623_v10, 1  ;;  %v13330_v18 = vld [vmem:[#allocation8 + $0x70] sm:$0xff]   ;;  %v631_v20 = vshll.u32 %v14359_v17, 16  ;;  %v13331_v21 = vld [vmem:[#allocation8 + $0x78] sm:$0xff]   ;;  %v635_v23 = vshrl.u32 %v14359_v17, 16  ;;  %v639_v24 = vshll.u32 %v14362_v19, 16 }
  0xfc   : > { %v616_v8 = vshrl.u32 %v14349_v6, 16  ;;  %v618_v9 = vshll.u32 %v14349_v6, 16  ;;  %v14369_v26 = vld [vmem:[%s14325_s24 + $0x20] sm:$0xff]   ;;  %v14372_v31 = vld [vmem:[%s14325_s24 + $0x28] sm:$0xff]   ;;  %v14375_v32 = vld [vmem:[%s14325_s24 + $0x30] sm:$0xff]   ;;  %v643_v34 = vshrl.u32 %v14362_v19, 16 }
  0xfd   : > { %11685 = vmatpush3.bf16.msra.mxu0 %v13325_v1  ;;  %v633_v25 = vrot.slane %v631_v20, 1  ;;  %v629_v27 = vor.u32 %v627_v22, %v625_v13  ;;  %v13335_v28 = vld [vmem:[#allocation8] sm:$0xff]   ;;  %v641_v30 = vrot.slane %v639_v24, 1  ;;  %v14378_v33 = vld [vmem:[%s14325_s24 + $0x38] sm:$0xff]   ;;  %v647_v35 = vshll.u32 %v14369_v26, 16  ;;  %v13338_v39 = vld [vmem:[#allocation8 + $0x8] sm:$0xff]  }
  0xfe   : > { %11686 = vmatprep.subr.bf16.mxu0 %v13326_v2  ;;  %v620_v12 = vrot.slane %v618_v9, 1  ;;  %v14384_v37 = vld [vmem:[%s14325_s24 + $0x40] sm:$0xff]   ;;  %v651_v40 = vshrl.u32 %v14369_v26, 16  ;;  %v655_v41 = vshll.u32 %v14372_v31, 16  ;;  %v663_v42 = vshll.u32 %v14375_v32, 16  ;;  %v14394_v48 = vld [vmem:[%s14325_s24 + $0x48] sm:$0xff]  }
  0xff   : > { %v637_v29 = vor.u32 %v635_v23, %v633_v25  ;;  %v634_v36 = vsel %vm18017_vm0, %v629_v27, %v633_v25  ;;  %v671_v43 = vshll.u32 %v14378_v33, 16  ;;  %v645_v44 = vor.u32 %v643_v34, %v641_v30  ;;  %v13341_v51 = vld [vmem:[#allocation8 + $0x10] sm:$0xff]   ;;  %v13344_v59 = vld [vmem:[#allocation8 + $0x18] sm:$0xff]   ;;  %v14415_v4 = vld [vmem:[%s14325_s24 + $0x68] sm:$0xff]   ;;  %s13197_s16 = smul.u32 2624, %s14067_s11  ;;  %s10517_s20 = sshll.u32 %s14769_s12, 4  ;;  %s17878_s20 = int_to_ptr.vmem [resolvable:$true] %s10517_s20 }
 0x100   : > { %v621_v14 = vor.u32 %v620_v12, %v616_v8  ;;  %v649_v45 = vrot.slane %v647_v35, 1  ;;  %v659_v46 = vshrl.u32 %v14372_v31, 16  ;;  %v679_v47 = vshll.u32 %v14384_v37, 16  ;;  %v14399_v56 = vld [vmem:[%s14325_s24 + $0x50] sm:$0xff]   ;;  %v14402_v57 = vld [vmem:[%s14325_s24 + $0x58] sm:$0xff]   ;;  %v13347_v9 = vld [vmem:[#allocation8 + $0x20] sm:$0xff]  }
 0x101   : > { %11687 = vmatpush3.bf16.msra.mxu0 %v13326_v2  ;;  %v642_v38 = vsel %vm18017_vm0, %v637_v29, %v641_v30  ;;  %v657_v50 = vrot.slane %v655_v41, 1  ;;  %v667_v52 = vshrl.u32 %v14375_v32, 16  ;;  %v675_v53 = vshrl.u32 %v14378_v33, 16  ;;  %v14411_v2 = vld [vmem:[%s14325_s24 + $0x60] sm:$0xff]   ;;  %s17876_s19 = scalar_lea.hbm %s17934_s8, %s13197_s16  ;;  %s10504_s22 = scalar_lea.sflag [#allocation5], %s14319_s25 }
 0x102   : > { %11688 = vmatprep.subr.bf16.mxu0 %v13327_v3  ;;  %v626_v16 = vsel %vm18017_vm0, %v621_v14, %v625_v13  ;;  %v653_v49 = vor.u32 %v651_v40, %v649_v45  ;;  %v665_v54 = vrot.slane %v663_v42, 1  ;;  %v673_v55 = vrot.slane %v671_v43, 1  ;;  %s13901_s26 = scalar_lea.vmem %s17878_s20, 2624  ;;  %p18641_p1 = scmp.ne.s32.totalorder %s18065_s13, 0 }
 0x103   : > { %11698 = vmatprep.mubr.bf16.mxu0 %v626_v16  ;;  %v650_v58 = vsel %vm18017_vm0, %v645_v44, %v649_v45  ;;  %v681_v60 = vrot.slane %v679_v47, 1  ;;  %v683_v61 = vshrl.u32 %v14384_v37, 16  ;;  %v687_v62 = vshll.u32 %v14394_v48, 16  ;;  %v13350_v16 = vld [vmem:[#allocation8 + $0x28] sm:$0xff]   ;;  %v13358_v45 = vld [vmem:[#allocation8 + $0x80] sm:$0xff]   ;;  %p13902_p10 = scmp.ne.s32.totalorder %s17878_s20, %s13901_s26  ;;  %s13998_s11 = smov [#allocation17]  }
 0x104   : > { %v691_v63 = vshrl.u32 %v14394_v48, 16  ;;  %v658_v0 = vsel %vm18017_vm0, %v653_v49, %v657_v50  ;;  %v695_v1 = vshll.u32 %v14399_v56, 16  ;;  %v661_v5 = vor.u32 %v659_v46, %v657_v50  ;;  %v14440_v50 = vld [vmem:[%s14325_s24 + $0x88] sm:$0xf]  ;;  %s13905_s14 = sshll.u32 %s13998_s11, 4  ;;  %s13906_s14 = int_to_ptr.vmem [resolvable:$false] %s13905_s14 }
 0x105   : > { %11689 = vmatpush3.bf16.msra.mxu0 %v13327_v3  ;;  %v703_v3 = vshll.u32 %v14402_v57, 16  ;;  %v689_v8 = vrot.slane %v687_v62, 1  ;;  %v669_v10 = vor.u32 %v667_v52, %v665_v54  ;;  %v707_v12 = vshrl.u32 %v14402_v57, 16  ;;  %v507_v52 = vld [vmem:[%s14325_s24 + $0x8c] sm:$0xf]  ;;  %p13903_p11 = pnand %p13902_p10, %p18641_p1  ;;  %s13907_s10 = scalar_lea.vmem %s13906_s14, 5248 }
 0x106   : > { %11690 = vmatprep.subr.bf16.mxu0 %v13328_v11  ;;  %v697_v13 = vrot.slane %v695_v1, 1  ;;  %v711_v14 = vshll.u32 %v14411_v2, 16  ;;  %v719_v20 = vshll.u32 %v14415_v4, 16  ;;  %v666_v22 = vsel %vm18017_vm0, %v661_v5, %v665_v54  ;;  %v14444_v54 = vld [vmem:[%s14325_s24 + $0x80] sm:$0xff]   ;;  %p13908_p13 = scmp.lt.s32.totalorder %s17878_s20, %s13906_s14  ;;  %p13909_p8 = scmp.lt.s32.totalorder %s13907_s10, %s13901_s26 }
 0x107   : > { %v674_v23 = vsel %vm18017_vm0, %v669_v10, %v673_v55  ;;  %v723_v25 = vshrl.u32 %v14415_v4, 16  ;;  %v677_v29 = vor.u32 %v675_v53, %v673_v55  ;;  %v685_v35 = vor.u32 %v683_v61, %v681_v60  ;;  %p13904_p12 = pneg %p13903_p11 }
 0x108   : > { %v713_v24 = vrot.slane %v711_v14, 1  ;;  %v721_v27 = vrot.slane %v719_v20, 1  ;;  %v693_v43 = vor.u32 %v691_v63, %v689_v8  ;;  %v743_v61 = vshll.u32 %v14444_v54, 16  ;;  %v13361_v20 = vld [vmem:[#allocation8 + $0x98] sm:$0xff]   ;;  %p13910_p6 = por %p13909_p8, %p13908_p13 }
 0x109   : > { %11691 = vmatpush3.bf16.msra.mxu0 %v13328_v11  ;;  %v699_v11 = vshrl.u32 %v14399_v56, 16  ;;  %v690_v40 = vsel %vm18017_vm0, %v685_v35, %v689_v8  ;;  %v747_v63 = vshrl.u32 %v14444_v54, 16  ;;  %vm18015_vm4 = vsmask.f32 5376 }
 0x10a   : > { %11692 = vmatprep.subr.bf16.mxu0 %v13329_v15  ;;  %v698_v47 = vsel %vm18017_vm0, %v693_v43, %v697_v13  ;;  %v725_v62 = vor.u32 %v723_v25, %v721_v27  ;;  %v745_v8 = vrot.slane %v743_v61, 1  ;;  %v13369_v25 = vld [vmem:[#allocation8 + $0xc8] sm:$0xff]   ;;  %vm18014_vm5 = vcmask 1044480   ;;  %p13911_p9 = pnand %p13910_p6, %p13904_p12 }
 0x10b   : > { %v701_v46 = vor.u32 %v699_v11, %v697_v13  ;;  %vm4884_vm6 = vcmask 1041408   ;;  %vm4885_vm7 = vsmask.f32 1280  ;;  %vm4998_vm9 = vsmask.f32 5392 }
 0x10c   : > { %v749_v11 = vor.u32 %v747_v63, %v745_v8  ;;  %v13640_v63 = vld [vmem:[%s14325_s24 + $0x50] sm:$0xff]   ;;  %vm4886_vm8 = vmand %vm4884_vm6, %vm4885_vm7 }
 0x10d   : > { %11693 = vmatpush3.bf16.msra.mxu0 %v13329_v15  ;;  %v705_v15 = vrot.slane %v703_v3, 1  ;;  %vm15402_vm13 = vmor %vm4885_vm7, %vm4998_vm9 }
 0x10e   : > { %11694 = vmatprep.subr.bf16.mxu0 %v13330_v18 }
 0x10f   : > { %v706_v49 = vsel %vm18017_vm0, %v701_v46, %v705_v15  ;;  %v13372_v46 = vld [vmem:[#allocation8 + $0xe0] sm:$0xff]  }
 0x111   : > { %11695 = vmatpush3.bf16.msra.mxu0 %v13330_v18  ;;  %v715_v18 = vshrl.u32 %v14411_v2, 16 }
 0x112   : > { %11696 = vmatprep.subr.bf16.mxu0 %v13331_v21 }
 0x113   : > { %v717_v53 = vor.u32 %v715_v18, %v713_v24  ;;  %v13360_v18 = vld [vmem:[#allocation8 + $0x90] sm:$0xff]  }
 0x115   : > { %11697 = vmatpush3.bf16.msra.mxu0 %v13331_v21  ;;  %v14423_v21 = vld [vmem:[%s14325_s24 + $0x70] sm:$0xff]  }
 0x116   : > { %11734 = vmatprep.subr.bf16.mxu0 %v13335_v28  ;;  %v727_v30 = vshll.u32 %v14423_v21, 16  ;;  %v731_v34 = vshrl.u32 %v14423_v21, 16 }
 0x118   : > { %11699 = vmatmul.mubr.bf16.vlgmr.msra.gmra.mrb[0].mxu0 %v634_v36  ;;  %v14431_v36 = vld [vmem:[%s14325_s24 + $0x78] sm:$0xff]   ;;  %v729_v44 = vrot.slane %v727_v30, 1 }
 0x119   : > { %11735 = vmatpush3.bf16.msra.mxu0 %v13335_v28  ;;  %11702 = vmatprep.mubr.bf16.mxu0 %v642_v38  ;;  %v13353_v28 = vld [vmem:[#allocation8 + $0x30] sm:$0xff]   ;;  %v13357_v38 = vld [vmem:[#allocation8 + $0x38] sm:$0xff]   ;;  %v735_v41 = vshll.u32 %v14431_v36, 16  ;;  %v739_v42 = vshrl.u32 %v14431_v36, 16 }
 0x11a   : > { %11736 = vmatprep.subr.bf16.mxu0 %v13338_v39  ;;  %v733_v1 = vor.u32 %v731_v34, %v729_v44  ;;  %v730_v3 = vsel %vm18017_vm0, %v725_v62, %v729_v44  ;;  %v13635_v34 = vld [vmem:[%s14325_s24 + $0x28] sm:$0xff]   ;;  %v13637_v44 = vld [vmem:[%s14325_s24 + $0x38] sm:$0xff]  }
 0x11b   : > { %v1277_v35 = vrot.slane %v13635_v34, 1  ;;  %v13375_v62 = vld [vmem:[#allocation8 + $0xf8] sm:$0xff]  }
 0x11c   : > { %v13386_v34 = vld [vmem:[%s14325_s24 + $0x40] sm:$0xff]  }
 0x11d   : > { %11737 = vmatpush3.bf16.msra.mxu0 %v13338_v39  ;;  %v682_v39 = vsel %vm18017_vm0, %v677_v29, %v681_v60  ;;  %v737_v60 = vrot.slane %v735_v41, 1  ;;  %v13634_v29 = vld [vmem:[%s14325_s24 + $0x20] sm:$0xff]  }
 0x11e   : > { %11738 = vmatprep.subr.bf16.mxu0 %v13341_v51  ;;  %v1275_v30 = vrot.slane %v13634_v29, 1  ;;  %v13371_v41 = vld [vmem:[#allocation8 + $0xd8] sm:$0xff]  }
 0x11f   : > { %v738_v5 = vsel %vm18017_vm0, %v733_v1, %v737_v60  ;;  %v13641_v1 = vld [vmem:[%s14325_s24 + $0x58] sm:$0xff]  }
 0x120   : > { %11703 = vmatmul.mubr.bf16.gmra.mrb[4].mxu0 %v650_v58  ;;  %v14448_v58 = vcombine.low %v14440_v50, %v507_v52  ;;  %v13384_v29 = vld [vmem:[%s14325_s24 + $0x38] sm:$0xff]  }
 0x121   : > { %11706 = vmatprep.mubr.bf16.mxu0 %v658_v0  ;;  %11739 = vmatpush3.bf16.msra.mxu0 %v13341_v51  ;;  %v709_v51 = vor.u32 %v707_v12, %v705_v15 }
 0x122   : > { %11740 = vmatprep.subr.bf16.mxu0 %v13344_v59  ;;  %v751_v0 = vshll.u32 %v14448_v58, 16  ;;  %v755_v14 = vshrl.u32 %v14448_v58, 16 }
 0x123   : > { %v714_v55 = vsel %vm18017_vm0, %v709_v51, %v713_v24  ;;  %v13638_v51 = vld [vmem:[%s14325_s24 + $0x40] sm:$0xff]  }
 0x124   : > { %v753_v10 = vrot.slane %v751_v0, 1  ;;  %v1283_v52 = vrot.slane %v13638_v51, 1  ;;  %v1287_v0 = vrot.slane %v13640_v63, 1  ;;  %v13390_v51 = vld [vmem:[%s14325_s24 + $0x58] sm:$0xff]   ;;  %v13393_v63 = vld [vmem:[%s14325_s24 + $0x68] sm:$0xff]  }
 0x125   : > { %11741 = vmatpush3.bf16.msra.mxu0 %v13344_v59  ;;  %v722_v59 = vsel %vm18017_vm0, %v717_v53, %v721_v27  ;;  %v13639_v53 = vld [vmem:[%s14325_s24 + $0x48] sm:$0xff]  }
 0x126   : > { %11742 = vmatprep.subr.bf16.mxu0 %v13347_v9  ;;  %v754_v13 = vsel %vm18017_vm0, %v749_v11, %v753_v10  ;;  %v757_v15 = vor.u32 %v755_v14, %v753_v10  ;;  %v13642_v10 = vld [vmem:[%s14325_s24 + $0x60] sm:$0xff]  }
 0x127   : > { %v1291_v11 = vrot.slane %v13642_v10, 1 }
 0x128   : > { %11707 = vmatmul.mubr.bf16.gmra.mrb[8].mxu0 %v666_v22  ;;  %v13362_v22 = vld [vmem:[#allocation8 + $0xa0] sm:$0xff]  }
 0x129   : > { %11710 = vmatprep.mubr.bf16.mxu0 %v674_v23  ;;  %11743 = vmatpush3.bf16.msra.mxu0 %v13347_v9  ;;  %v741_v9 = vor.u32 %v739_v42, %v737_v60  ;;  %v13363_v23 = vld [vmem:[#allocation8 + $0xa8] sm:$0xff]  }
 0x12a   : > { %11744 = vmatprep.subr.bf16.mxu0 %v13350_v16  ;;  %v13636_v42 = vld [vmem:[%s14325_s24 + $0x30] sm:$0xff]  }
 0x12b   : > { %v746_v12 = vsel %vm18017_vm0, %v741_v9, %v745_v8  ;;  %v1279_v43 = vrot.slane %v13636_v42, 1  ;;  %v13387_v42 = vld [vmem:[%s14325_s24 + $0x48] sm:$0xff]  }
 0x12d   : > { %11745 = vmatpush3.bf16.msra.mxu0 %v13350_v16  ;;  %v13359_v16 = vld [vmem:[#allocation8 + $0x88] sm:$0xff]  }
 0x12e   : > { %11746 = vmatprep.subr.bf16.mxu0 %v13353_v28 }
 0x130   : > { %11711 = vmatmul.mubr.bf16.gmra.mrb[12].mxu0 %v682_v39 }
 0x131   : > { %11714 = vmatprep.mubr.bf16.mxu0 %v690_v40  ;;  %11747 = vmatpush3.bf16.msra.mxu0 %v13353_v28  ;;  %v1278_v40 = vsel %vm18013_vm1, %v1275_v30, %v1277_v35 }
 0x132   : > { %11748 = vmatprep.subr.bf16.mxu0 %v13357_v38 }
 0x135   : > { %11749 = vmatpush3.bf16.msra.mxu0 %v13357_v38  ;;  %v13370_v38 = vld [vmem:[#allocation8 + $0xd0] sm:$0xff]  }
 0x136   : > { %11786 = vmatprep.subr.bf16.mxu0 %v13358_v45 }
 0x138   : > { %11715 = vmatmul.mubr.bf16.gmra.mrb[16].mxu0 %v698_v47  ;;  %v1280_v47 = vsel %vm18013_vm1, %v1277_v35, %v1279_v43  ;;  %v13388_v35 = vld [vmem:[#allocation8 + $0x118] sm:$0xff]  }
 0x139   : > { %11718 = vmatprep.mubr.bf16.mxu0 %v706_v49 }
 0x140   : > { %11719 = vmatmul.mubr.bf16.gmra.mrb[20].mxu0 %v714_v55  ;;  %v1285_v55 = vrot.slane %v13639_v53, 1  ;;  %v13392_v53 = vld [vmem:[%s14325_s24 + $0x60] sm:$0xff]  }
 0x141   : > { %11722 = vmatprep.mubr.bf16.mxu0 %v722_v59  ;;  %v13374_v59 = vld [vmem:[#allocation8 + $0xf0] sm:$0xff]  }
 0x142   : > { %v1286_v61 = vsel %vm18013_vm1, %v1283_v52, %v1285_v55  ;;  %v1288_v8 = vsel %vm18013_vm1, %v1285_v55, %v1287_v0  ;;  %v13401_v55 = vld [vmem:[#allocation8 + $0x138] sm:$0xff]  }
 0x148   : > { %11723 = vmatmul.mubr.bf16.gmra.mrb[24].mxu0 %v730_v3  ;;  %v1289_v3 = vrot.slane %v13641_v1, 1  ;;  %v13395_v1 = vld [vmem:[%s14325_s24 + $0x70] sm:$0xff]  }
 0x149   : > { %11726 = vmatprep.mubr.bf16.mxu0 %v738_v5  ;;  %v13379_v5 = vld [vmem:[#allocation8 + $0x100] sm:$0xff]  }
 0x14a   : > { %v1290_v9 = vsel %vm18013_vm1, %v1287_v0, %v1289_v3  ;;  %v1292_v14 = vsel %vm18013_vm1, %v1289_v3, %v1291_v11  ;;  %v1747_v3 = vrot.slane %v13393_v63, 1 }
 0x150   : > { %11727 = vmatmul.mubr.bf16.gmra.mrb[28].mxu0 %v746_v12  ;;  %v13643_v12 = vld [vmem:[%s14325_s24 + $0x68] sm:$0xff]  }
 0x151   : > { %11730 = vmatprep.mubr.bf16.mxu0 %v754_v13  ;;  %v1293_v13 = vrot.slane %v13643_v12, 1 }
 0x158   : > { %11731 = vmatmul.mubr.bf16.gmra.mrb[32].mxu0 %v757_v15  ;;  %v1294_v15 = vsel %vm18013_vm1, %v1291_v11, %v1293_v13  ;;  %v13398_v11 = vld [vmem:[%s14325_s24 + $0x80] sm:$0xff]  }
 0x159   : > { %11750 = vmatprep.mubr.bf16.mxu0 %v14349_v6  ;;  %v13364_v6 = vld [vmem:[#allocation8 + $0xb0] sm:$0xff]  }
 0x160   : > { %11751 = vmatmul.mubr.bf16.vlgmr.msra.gmra.mrb[0].mxu0 %v14352_v7  ;;  %v13365_v7 = vld [vmem:[#allocation8 + $0xb8] sm:$0xff]  }
 0x161   : > { %11787 = vmatpush3.bf16.msra.mxu0 %v13358_v45  ;;  %11754 = vmatprep.mubr.bf16.mxu0 %v14359_v17  ;;  %v13368_v17 = vld [vmem:[#allocation8 + $0xc0] sm:$0xff]   ;;  %v1281_v45 = vrot.slane %v13637_v44, 1  ;;  %v13389_v44 = vld [vmem:[%s14325_s24 + $0x50] sm:$0xff]  }
 0x162   : > { %11788 = vmatprep.subr.bf16.mxu0 %v13359_v16 }
 0x163   : > { %v1282_v49 = vsel %vm18013_vm1, %v1279_v43, %v1281_v45  ;;  %v1284_v60 = vsel %vm18013_vm1, %v1281_v45, %v1283_v52  ;;  %v13394_v45 = vld [vmem:[#allocation8 + $0x128] sm:$0xff]  }
 0x165   : > { %11789 = vmatpush3.bf16.msra.mxu0 %v13359_v16  ;;  %v13644_v16 = vld [vmem:[%s14325_s24 + $0x70] sm:$0xff]  }
 0x166   : > { %11790 = vmatprep.subr.bf16.mxu0 %v13360_v18 }
 0x168   : > { %11755 = vmatmul.mubr.bf16.gmra.mrb[4].mxu0 %v14362_v19  ;;  %v1247_v19 = vld [vmem:[%s14325_s24] sm:$0xe] }
 0x169   : > { %11758 = vmatprep.mubr.bf16.mxu0 %v14369_v26  ;;  %11791 = vmatpush3.bf16.msra.mxu0 %v13360_v18  ;;  %v13630_v26 = vld [vmem:[%s14325_s24 + $0x4] sm:$0xf]  ;;  %v1295_v18 = vrot.slane %v13644_v16, 1 }
 0x16a   : > { %11792 = vmatprep.subr.bf16.mxu0 %v13361_v20 }
 0x16d   : > { %11793 = vmatpush3.bf16.msra.mxu0 %v13361_v20  ;;  %v1297_v20 = vrot.slane %v14431_v36, 1 }
 0x16e   : > { %11794 = vmatprep.subr.bf16.mxu0 %v13362_v22 }
 0x170   : > { %11759 = vmatmul.mubr.bf16.gmra.mrb[8].mxu0 %v14372_v31  ;;  %v10711_v31 = vcombine.low %v1247_v19, %v13630_v26  ;;  %v13376_v26 = vld [vmem:[%s14325_s24 + $0x8] sm:$0xfe]  }
 0x171   : > { %11762 = vmatprep.mubr.bf16.mxu0 %v14375_v32  ;;  %11795 = vmatpush3.bf16.msra.mxu0 %v13362_v22  ;;  %v490_v32 = vld [vmem:[%s14325_s24 + $0x8c] sm:$0x7]  ;;  %v1296_v22 = vsel %vm18013_vm1, %v1293_v13, %v1295_v18  ;;  %v1753_v13 = vrot.slane %v13398_v11, 1 }
 0x172   : > { %11796 = vmatprep.subr.bf16.mxu0 %v13363_v23 }
 0x175   : > { %11797 = vmatpush3.bf16.msra.mxu0 %v13363_v23  ;;  %v1298_v23 = vsel %vm18013_vm1, %v1295_v18, %v1297_v20  ;;  %v13399_v18 = vld [vmem:[%s14325_s24 + $0x88] sm:$0xff]  }
 0x176   : > { %11798 = vmatprep.subr.bf16.mxu0 %v13364_v6 }
 0x178   : > { %11763 = vmatmul.mubr.bf16.gmra.mrb[12].mxu0 %v14378_v33  ;;  %v1268_v33 = vrot.slane %v10711_v31, 1  ;;  %v13377_v31 = vld [vmem:[%s14325_s24 + $0x10] sm:$0xff]  }
 0x179   : > { %11766 = vmatprep.mubr.bf16.mxu0 %v14384_v37  ;;  %11799 = vmatpush3.bf16.msra.mxu0 %v13364_v6  ;;  %v13631_v37 = vld [vmem:[%s14325_s24 + $0x8] sm:$0xff]   ;;  %v1299_v6 = vrot.slane %v14444_v54, 1 }
 0x17a   : > { %11800 = vmatprep.subr.bf16.mxu0 %v13365_v7 }
 0x17d   : > { %11801 = vmatpush3.bf16.msra.mxu0 %v13365_v7  ;;  %v1301_v7 = vrot.slane %v14448_v58, 1 }
 0x17e   : > { %11838 = vmatprep.subr.bf16.mxu0 %v13368_v17 }
 0x17f   : > { %v1302_v19 = vsel %vm18013_vm1, %v1299_v6, %v1301_v7 }
 0x180   : > { %11767 = vmatmul.mubr.bf16.gmra.mrb[16].mxu0 %v14394_v48  ;;  %v1269_v48 = vrot.slane %v13631_v37, 1 }
 0x181   : > { %11770 = vmatprep.mubr.bf16.mxu0 %v14399_v56  ;;  %v10702_v56 = vcombine.low %v14440_v50, %v490_v32  ;;  %v13373_v50 = vld [vmem:[#allocation8 + $0xe8] sm:$0xff]   ;;  %v1725_v32 = vrot.slane %v13377_v31, 1 }
 0x188   : > { %11771 = vmatmul.mubr.bf16.gmra.mrb[20].mxu0 %v14402_v57  ;;  %v1270_v57 = vsel %vm18013_vm1, %v1268_v33, %v1269_v48  ;;  %v13378_v33 = vld [vmem:[%s14325_s24 + $0x18] sm:$0xff]  }
 0x189   : > { %11774 = vmatprep.mubr.bf16.mxu0 %v14411_v2  ;;  %v13632_v2 = vld [vmem:[%s14325_s24 + $0x10] sm:$0xff]  }
 0x190   : > { %11775 = vmatmul.mubr.bf16.gmra.mrb[24].mxu0 %v14415_v4  ;;  %v1271_v4 = vrot.slane %v13632_v2, 1 }
 0x191   : > { %11778 = vmatprep.mubr.bf16.mxu0 %v14423_v21  ;;  %v13633_v21 = vld [vmem:[%s14325_s24 + $0x18] sm:$0xff]  }
 0x192   : > { %v1273_v24 = vrot.slane %v13633_v21, 1  ;;  %v1272_v27 = vsel %vm18013_vm1, %v1269_v48, %v1271_v4  ;;  %v13380_v48 = vld [vmem:[%s14325_s24 + $0x20] sm:$0xff]   ;;  %v13383_v21 = vld [vmem:[%s14325_s24 + $0x30] sm:$0xff]  }
 0x193   : > { %v1729_v58 = vrot.slane %v13380_v48, 1 }
 0x194   : > { %v1274_v28 = vsel %vm18013_vm1, %v1271_v4, %v1273_v24  ;;  %v1276_v39 = vsel %vm18013_vm1, %v1273_v24, %v1275_v30  ;;  %v13382_v4 = vld [vmem:[#allocation8 + $0x108] sm:$0xff]  }
 0x198   : > { %11779 = vmatmul.mubr.bf16.gmra.mrb[28].mxu0 %v14431_v36  ;;  %v1724_v36 = vrot.slane %v13376_v26, 1 }
 0x199   : > { %11782 = vmatprep.mubr.bf16.mxu0 %v14444_v54  ;;  %v1727_v54 = vrot.slane %v13378_v33, 1 }
 0x19a   : > { %v1726_v37 = vsel %vm18013_vm1, %v1724_v36, %v1725_v32 }
 0x19b   : > { %v1730_v2 = vsel %vm18013_vm1, %v1727_v54, %v1729_v58 }
 0x1a0   : > { %11783 = vmatmul.mubr.bf16.gmra.mrb[32].mxu0 %v10702_v56  ;;  %v1728_v56 = vsel %vm18013_vm1, %v1725_v32, %v1727_v54 }
 0x1a1   : > { %11802 = vmatprep.mubr.bf16.mxu0 %v1270_v57  ;;  %v13381_v57 = vld [vmem:[%s14325_s24 + $0x28] sm:$0xff]  }
 0x1a2   : > { %v1731_v24 = vrot.slane %v13381_v57, 1  ;;  %v14566_v57 = vld [vmem:[%s14325_s24 + $0x20] sm:$0xff]  }
 0x1a8   : > { %11803 = vmatmul.mubr.bf16.vlgmr.msra.gmra.mrb[0].mxu0 %v1272_v27  ;;  %v13385_v27 = vld [vmem:[#allocation8 + $0x110] sm:$0xff]  }
 0x1a9   : > { %11839 = vmatpush3.bf16.msra.mxu0 %v13368_v17  ;;  %11806 = vmatprep.mubr.bf16.mxu0 %v1274_v28  ;;  %v1300_v17 = vsel %vm18013_vm1, %v1297_v20, %v1299_v6  ;;  %v1732_v28 = vsel %vm18013_vm1, %v1729_v58, %v1731_v24  ;;  %v13400_v20 = vld [vmem:[%s14325_s24 + $0x90] sm:$0xff]  }
 0x1aa   : > { %11840 = vmatprep.subr.bf16.mxu0 %v13369_v25  ;;  %v14556_v6 = vld [vmem:[%s14325_s24 + $0x10] sm:$0xff]  }
 0x1ab   : > { %v2194_v31 = vshrl.u32 %v14556_v6, 16  ;;  %v2197_v36 = vshll.u32 %v14556_v6, 16 }
 0x1ad   : > { %11841 = vmatpush3.bf16.msra.mxu0 %v13369_v25  ;;  %v1733_v25 = vrot.slane %v13383_v21, 1  ;;  %v2196_v58 = vrot.slane %v2194_v31, 1 }
 0x1ae   : > { %11842 = vmatprep.subr.bf16.mxu0 %v13370_v38 }
 0x1af   : > { %v1734_v30 = vsel %vm18013_vm1, %v1731_v24, %v1733_v25 }
 0x1b0   : > { %11807 = vmatmul.mubr.bf16.gmra.mrb[4].mxu0 %v1276_v39  ;;  %v1737_v39 = vrot.slane %v13386_v34, 1 }
 0x1b1   : > { %11810 = vmatprep.mubr.bf16.mxu0 %v1278_v40  ;;  %11843 = vmatpush3.bf16.msra.mxu0 %v13370_v38  ;;  %v1735_v38 = vrot.slane %v13384_v29, 1  ;;  %v13391_v40 = vld [vmem:[#allocation8 + $0x120] sm:$0xff]  }
 0x1b2   : > { %11844 = vmatprep.subr.bf16.mxu0 %v13371_v41 }
 0x1b3   : > { %v1738_v43 = vsel %vm18013_vm1, %v1735_v38, %v1737_v39 }
 0x1b5   : > { %11845 = vmatpush3.bf16.msra.mxu0 %v13371_v41  ;;  %v1736_v41 = vsel %vm18013_vm1, %v1733_v25, %v1735_v38  ;;  %v2212_v25 = vshrl.u32 %v14566_v57, 16 }
 0x1b6   : > { %11846 = vmatprep.subr.bf16.mxu0 %v13372_v46 }
 0x1b8   : > { %11811 = vmatmul.mubr.bf16.gmra.mrb[8].mxu0 %v1280_v47  ;;  %v1741_v47 = vrot.slane %v13389_v44, 1 }
 0x1b9   : > { %11814 = vmatprep.mubr.bf16.mxu0 %v1282_v49  ;;  %11847 = vmatpush3.bf16.msra.mxu0 %v13372_v46  ;;  %v1739_v46 = vrot.slane %v13387_v42, 1  ;;  %v13397_v49 = vld [vmem:[#allocation8 + $0x130] sm:$0xff]  }
 0x1ba   : > { %11848 = vmatprep.subr.bf16.mxu0 %v13373_v50 }
 0x1bb   : > { %v1742_v52 = vsel %vm18013_vm1, %v1739_v46, %v1741_v47 }
 0x1bd   : > { %11849 = vmatpush3.bf16.msra.mxu0 %v13373_v50  ;;  %v1740_v50 = vsel %vm18013_vm1, %v1737_v39, %v1739_v46  ;;  %v14577_v39 = vld [vmem:[%s14325_s24 + $0x30] sm:$0xff]  }
 0x1be   : > { %11850 = vmatprep.subr.bf16.mxu0 %v13374_v59  ;;  %v2230_v44 = vshrl.u32 %v14577_v39, 16 }
 0x1c0   : > { %11815 = vmatmul.mubr.bf16.gmra.mrb[12].mxu0 %v1284_v60  ;;  %v1745_v60 = vrot.slane %v13392_v53, 1  ;;  %v2232_v53 = vrot.slane %v2230_v44, 1  ;;  %v13427_v44 = vld [vmem:[#allocation8 + $0x178] sm:$0xff]  }
 0x1c1   : > { %11818 = vmatprep.mubr.bf16.mxu0 %v1286_v61  ;;  %11851 = vmatpush3.bf16.msra.mxu0 %v13374_v59  ;;  %v1743_v59 = vrot.slane %v13390_v51, 1  ;;  %v14535_v61 = vld [vmem:[#allocation8 + $0x140] sm:$0xff]  }
 0x1c2   : > { %11852 = vmatprep.subr.bf16.mxu0 %v13375_v62 }
 0x1c3   : > { %v1746_v0 = vsel %vm18013_vm1, %v1743_v59, %v1745_v60 }
 0x1c5   : > { %11853 = vmatpush3.bf16.msra.mxu0 %v13375_v62  ;;  %v1744_v62 = vsel %vm18013_vm1, %v1741_v47, %v1743_v59  ;;  %v14589_v59 = vld [vmem:[%s14325_s24 + $0x40] sm:$0xff]  }
 0x1c6   : > { %11890 = vmatprep.subr.bf16.mxu0 %v13379_v5 }
 0x1c8   : > { %11819 = vmatmul.mubr.bf16.gmra.mrb[16].mxu0 %v1288_v8  ;;  %v1748_v8 = vsel %vm18013_vm1, %v1745_v60, %v1747_v3 }
 0x1c9   : > { %11822 = vmatprep.mubr.bf16.mxu0 %v1290_v9  ;;  %v13396_v9 = vld [vmem:[%s14325_s24 + $0x78] sm:$0xff]  }
 0x1ca   : > { %v1751_v12 = vrot.slane %v13396_v9, 1 }
 0x1d0   : > { %11823 = vmatmul.mubr.bf16.gmra.mrb[20].mxu0 %v1292_v14  ;;  %v2038_v14 = vld [vmem:[%s14325_s24 + $0x8] sm:$0xe] }
 0x1d1   : > { %11826 = vmatprep.mubr.bf16.mxu0 %v1294_v15  ;;  %v14548_v15 = vld [vmem:[%s14325_s24 + $0xc] sm:$0xf] }
 0x1d8   : > { %11827 = vmatmul.mubr.bf16.gmra.mrb[24].mxu0 %v1296_v22  ;;  %v1754_v22 = vsel %vm18013_vm1, %v1751_v12, %v1753_v13 }
 0x1d9   : > { %11830 = vmatprep.mubr.bf16.mxu0 %v1298_v23  ;;  %v10746_v23 = vcombine.low %v2038_v14, %v14548_v15  ;;  %v13414_v14 = vld [vmem:[#allocation8 + $0x158] sm:$0xff]  }
 0x1db   : > { %v2189_v26 = vshll.u32 %v10746_v23, 16 }
 0x1dd   : > { %v2191_v54 = vrot.slane %v2189_v26, 2 }
 0x1e0   : > { %11831 = vmatmul.mubr.bf16.gmra.mrb[28].mxu0 %v1300_v17  ;;  %v1757_v17 = vrot.slane %v13400_v20, 1 }
 0x1e1   : > { %11834 = vmatprep.mubr.bf16.mxu0 %v1302_v19  ;;  %v2186_v19 = vshrl.u32 %v10746_v23, 16 }
 0x1e3   : > { %v2188_v48 = vrot.slane %v2186_v19, 1  ;;  %v13417_v19 = vld [vmem:[#allocation8 + $0x160] sm:$0xff]  }
 0x1e5   : > { %v2192_v21 = vor.u32 %v2191_v54, %v2188_v48 }
 0x1e8   : > { %11835 = vmatmul.mubr.bf16.gmra.mrb[32].mxu0 %v1301_v7  ;;  %v1755_v7 = vrot.slane %v13399_v18, 1 }
 0x1e9   : > { %11854 = vmatprep.mubr.bf16.mxu0 %v1726_v37  ;;  %v14563_v37 = vld [vmem:[%s14325_s24 + $0x18] sm:$0xff]  }
 0x1ea   : > { %v1756_v32 = vsel %vm18013_vm1, %v1753_v13, %v1755_v7  ;;  %v1758_v33 = vsel %vm18013_vm1, %v1755_v7, %v1757_v17 }
 0x1f0   : > { %11855 = vmatmul.mubr.bf16.vlgmr.msra.gmra.mrb[0].mxu0 %v1728_v56  ;;  %v2199_v56 = vrot.slane %v2197_v36, 2 }
 0x1f1   : > { %11891 = vmatpush3.bf16.msra.mxu0 %v13379_v5  ;;  %11858 = vmatprep.mubr.bf16.mxu0 %v1730_v2  ;;  %v1749_v5 = vrot.slane %v13395_v1, 1  ;;  %v2203_v2 = vshrl.u32 %v14563_v37, 16  ;;  %v13411_v1 = vld [vmem:[#allocation8 + $0x150] sm:$0xff]  }
 0x1f2   : > { %11892 = vmatprep.subr.bf16.mxu0 %v13382_v4  ;;  %v2200_v24 = vor.u32 %v2199_v56, %v2196_v58  ;;  %v14614_v58 = vld [vmem:[%s14325_s24 + $0x60] sm:$0xff]   ;;  %v13420_v56 = vld [vmem:[#allocation8 + $0x168] sm:$0xff]  }
 0x1f3   : > { %v1750_v10 = vsel %vm18013_vm1, %v1747_v3, %v1749_v5  ;;  %v1752_v16 = vsel %vm18013_vm1, %v1749_v5, %v1751_v12  ;;  %v2248_v3 = vshrl.u32 %v14589_v59, 16  ;;  %v2251_v5 = vshll.u32 %v14589_v59, 16 }
 0x1f4   : > { %v2201_v34 = vsel %vm18012_vm2, %v2192_v21, %v2200_v24 }
 0x1f5   : > { %11893 = vmatpush3.bf16.msra.mxu0 %v13382_v4  ;;  %v2206_v4 = vshll.u32 %v14563_v37, 16  ;;  %v2250_v12 = vrot.slane %v2248_v3, 1  ;;  %v2253_v13 = vrot.slane %v2251_v5, 2  ;;  %v14640_v5 = vld [vmem:[%s14325_s24 + $0x80] sm:$0xff]  }
 0x1f6   : > { %11894 = vmatprep.subr.bf16.mxu0 %v13385_v27 }
 0x1f7   : > { %v2208_v29 = vrot.slane %v2206_v4, 2  ;;  %v2254_v23 = vor.u32 %v2253_v13, %v2250_v12  ;;  %v2320_v12 = vshrl.u32 %v14640_v5, 16  ;;  %v2323_v13 = vshll.u32 %v14640_v5, 16 }
 0x1f8   : > { %11859 = vmatmul.mubr.bf16.gmra.mrb[4].mxu0 %v1732_v28  ;;  %v2205_v28 = vrot.slane %v2203_v2, 1 }
 0x1f9   : > { %11862 = vmatprep.mubr.bf16.mxu0 %v1734_v30  ;;  %11895 = vmatpush3.bf16.msra.mxu0 %v13385_v27  ;;  %v2215_v27 = vshll.u32 %v14566_v57, 16  ;;  %v14573_v30 = vld [vmem:[%s14325_s24 + $0x28] sm:$0xff]  }
 0x1fa   : > { %11896 = vmatprep.subr.bf16.mxu0 %v13388_v35  ;;  %v2224_v42 = vshll.u32 %v14573_v30, 16 }
 0x1fb   : > { %v2217_v38 = vrot.slane %v2215_v27, 2  ;;  %v2287_v27 = vshll.u32 %v14614_v58, 16 }
 0x1fd   : > { %11897 = vmatpush3.bf16.msra.mxu0 %v13388_v35  ;;  %v2214_v35 = vrot.slane %v2212_v25, 1  ;;  %v2284_v25 = vshrl.u32 %v14614_v58, 16 }
 0x1fe   : > { %11898 = vmatprep.subr.bf16.mxu0 %v13391_v40 }
 0x200   : > { %11863 = vmatmul.mubr.bf16.gmra.mrb[8].mxu0 %v1736_v41  ;;  %v2221_v41 = vshrl.u32 %v14573_v30, 16 }
 0x201   : > { %11866 = vmatprep.mubr.bf16.mxu0 %v1738_v43  ;;  %11899 = vmatpush3.bf16.msra.mxu0 %v13391_v40  ;;  %v2209_v40 = vor.u32 %v2208_v29, %v2205_v28  ;;  %v2218_v43 = vor.u32 %v2217_v38, %v2214_v35  ;;  %v13423_v28 = vld [vmem:[#allocation8 + $0x170] sm:$0xff]   ;;  %v14622_v38 = vld [vmem:[%s14325_s24 + $0x68] sm:$0xff]  }
 0x202   : > { %11900 = vmatprep.subr.bf16.mxu0 %v13394_v45  ;;  %v2223_v47 = vrot.slane %v2221_v41, 1  ;;  %v2286_v41 = vrot.slane %v2284_v25, 1 }
 0x203   : > { %v2210_v46 = vsel %vm18012_vm2, %v2200_v24, %v2209_v40  ;;  %v2219_v51 = vsel %vm18012_vm2, %v2209_v40, %v2218_v43 }
 0x205   : > { %11901 = vmatpush3.bf16.msra.mxu0 %v13394_v45  ;;  %v2233_v45 = vshll.u32 %v14577_v39, 16 }
 0x206   : > { %11902 = vmatprep.subr.bf16.mxu0 %v13397_v49 }
 0x208   : > { %11867 = vmatmul.mubr.bf16.gmra.mrb[12].mxu0 %v1740_v50  ;;  %v14585_v50 = vld [vmem:[%s14325_s24 + $0x38] sm:$0xff]  }
 0x209   : > { %11870 = vmatprep.mubr.bf16.mxu0 %v1742_v52  ;;  %11903 = vmatpush3.bf16.msra.mxu0 %v13397_v49  ;;  %v2226_v49 = vrot.slane %v2224_v42, 2  ;;  %v13408_v52 = vld [vmem:[#allocation8 + $0x148] sm:$0xff]   ;;  %v2242_v63 = vshll.u32 %v14585_v50, 16  ;;  %v2289_v42 = vrot.slane %v2287_v27, 2 }
 0x20a   : > { %11904 = vmatprep.subr.bf16.mxu0 %v13401_v55 }
 0x20b   : > { %v2227_v60 = vor.u32 %v2226_v49, %v2223_v47  ;;  %v2296_v47 = vshll.u32 %v14622_v38, 16  ;;  %v2290_v49 = vor.u32 %v2289_v42, %v2286_v41 }
 0x20d   : > { %11905 = vmatpush3.bf16.msra.mxu0 %v13401_v55  ;;  %v2235_v55 = vrot.slane %v2233_v45, 2 }
 0x20e   : > { %11942 = vmatprep.subr.bf16.mxu0 %v14535_v61 }
 0x210   : > { %11871 = vmatmul.mubr.bf16.gmra.mrb[16].mxu0 %v1744_v62  ;;  %v2239_v62 = vshrl.u32 %v14585_v50, 16 }
 0x211   : > { %11874 = vmatprep.mubr.bf16.mxu0 %v1746_v0  ;;  %v2236_v0 = vor.u32 %v2235_v55, %v2232_v53  ;;  %v14632_v53 = vld [vmem:[#allocation8 + $0x180] sm:$0xff]  }
 0x212   : > { %v2241_v9 = vrot.slane %v2239_v62, 1  ;;  %v2298_v62 = vrot.slane %v2296_v47, 2 }
 0x213   : > { %v2237_v11 = vsel %vm18012_vm2, %v2227_v60, %v2236_v0 }
 0x218   : > { %11875 = vmatmul.mubr.bf16.gmra.mrb[20].mxu0 %v1748_v8  ;;  %v2228_v8 = vsel %vm18012_vm2, %v2218_v43, %v2227_v60  ;;  %v14626_v43 = vld [vmem:[%s14325_s24 + $0x70] sm:$0xff]  }
 0x219   : > { %11878 = vmatprep.mubr.bf16.mxu0 %v1750_v10  ;;  %v2244_v10 = vrot.slane %v2242_v63, 2  ;;  %v14636_v63 = vld [vmem:[%s14325_s24 + $0x78] sm:$0xff]  }
 0x21b   : > { %v2245_v18 = vor.u32 %v2244_v10, %v2241_v9  ;;  %v2311_v9 = vshrl.u32 %v14636_v63, 16  ;;  %v2314_v10 = vshll.u32 %v14636_v63, 16 }
 0x21d   : > { %v2246_v26 = vsel %vm18012_vm2, %v2236_v0, %v2245_v18 }
 0x220   : > { %11879 = vmatmul.mubr.bf16.gmra.mrb[24].mxu0 %v1752_v16  ;;  %v14602_v16 = vld [vmem:[%s14325_s24 + $0x50] sm:$0xff]  }
 0x221   : > { %11882 = vmatprep.mubr.bf16.mxu0 %v1754_v22  ;;  %v2266_v7 = vshrl.u32 %v14602_v16, 16 }
 0x223   : > { %v2268_v48 = vrot.slane %v2266_v7, 1  ;;  %v2322_v7 = vrot.slane %v2320_v12, 1 }
 0x228   : > { %11883 = vmatmul.mubr.bf16.gmra.mrb[28].mxu0 %v1756_v32  ;;  %v14610_v32 = vld [vmem:[%s14325_s24 + $0x58] sm:$0xff]  }
 0x229   : > { %11886 = vmatprep.mubr.bf16.mxu0 %v1758_v33  ;;  %v2255_v33 = vsel %vm18012_vm2, %v2245_v18, %v2254_v23  ;;  %v2275_v4 = vshrl.u32 %v14610_v32, 16  ;;  %v2278_v21 = vshll.u32 %v14610_v32, 16  ;;  %v2313_v18 = vrot.slane %v2311_v9, 1  ;;  %v13435_v9 = vld [vmem:[#allocation8 + $0x1a8] sm:$0xff]  }
 0x22b   : > { %v2280_v35 = vrot.slane %v2278_v21, 2 }
 0x230   : > { %11887 = vmatmul.mubr.bf16.gmra.mrb[32].mxu0 %v1757_v17  ;;  %v2269_v17 = vshll.u32 %v14602_v16, 16 }
 0x231   : > { %11906 = vmatprep.mubr.bf16.mxu0 %v2201_v34  ;;  %v2277_v34 = vrot.slane %v2275_v4, 1 }
 0x232   : > { %v2271_v54 = vrot.slane %v2269_v17, 2  ;;  %v2325_v17 = vrot.slane %v2323_v13, 2  ;;  %v13437_v13 = vld [vmem:[#allocation8 + $0x1b8] sm:$0xff]  }
 0x233   : > { %v2281_v45 = vor.u32 %v2280_v35, %v2277_v34  ;;  %v2630_v34 = vld [vmem:[%s14325_s24 + $0x8] sm:$0xc] }
 0x234   : > { %v2272_v24 = vor.u32 %v2271_v54, %v2268_v48  ;;  %v10773_v42 = vcombine.low %v2630_v34, %v14548_v15  ;;  %v14730_v34 = vld [vmem:[%s14325_s24 + $0x30] sm:$0xff]  }
 0x235   : > { %v2291_v0 = vsel %vm18012_vm2, %v2281_v45, %v2290_v49 }
 0x236   : > { %v2282_v55 = vsel %vm18012_vm2, %v2272_v24, %v2281_v45  ;;  %v2651_v45 = vrot.slane %v10773_v42, 2  ;;  %v3120_v42 = vrot.slane %v14730_v34, 2 }
 0x238   : > { %11907 = vmatmul.mubr.bf16.vlgmr.msra.gmra.mrb[0].mxu0 %v2210_v46  ;;  %v2293_v46 = vshrl.u32 %v14622_v38, 16 }
 0x239   : > { %11943 = vmatpush3.bf16.msra.mxu0 %v14535_v61  ;;  %11910 = vmatprep.mubr.bf16.mxu0 %v2219_v51  ;;  %v14598_v61 = vld [vmem:[%s14325_s24 + $0x48] sm:$0xff]   ;;  %v2302_v51 = vshrl.u32 %v14626_v43, 16 }
 0x23a   : > { %11944 = vmatprep.subr.bf16.mxu0 %v13408_v52  ;;  %v2257_v20 = vshrl.u32 %v14598_v61, 16  ;;  %v2260_v22 = vshll.u32 %v14598_v61, 16  ;;  %v2295_v60 = vrot.slane %v2293_v46, 1  ;;  %v2652_v46 = vrot.slane %v14556_v6, 2 }
 0x23b   : > { %v2658_v6 = vrot.slane %v14573_v30, 2  ;;  %v13434_v30 = vld [vmem:[#allocation8 + $0x1a0] sm:$0xff]  }
 0x23c   : > { %v2259_v31 = vrot.slane %v2257_v20, 1  ;;  %v2262_v36 = vrot.slane %v2260_v22, 2  ;;  %v2316_v20 = vrot.slane %v2314_v10, 2  ;;  %v14649_v22 = vld [vmem:[%s14325_s24 + $0x88] sm:$0xff]   ;;  %v2666_v10 = vrot.slane %v14598_v61, 2 }
 0x23d   : > { %11945 = vmatpush3.bf16.msra.mxu0 %v13408_v52  ;;  %v2305_v52 = vshll.u32 %v14626_v43, 16  ;;  %v13441_v61 = vld [vmem:[#allocation8 + $0x1c0] sm:$0xff]  }
 0x23e   : > { %11946 = vmatprep.subr.bf16.mxu0 %v13411_v1  ;;  %v2263_v2 = vor.u32 %v2262_v36, %v2259_v31  ;;  %v2329_v31 = vshrl.u32 %v14649_v22, 16  ;;  %v2332_v36 = vshll.u32 %v14649_v22, 16 }
 0x23f   : > { %v2307_v3 = vrot.slane %v2305_v52, 2  ;;  %v2656_v52 = vrot.slane %v14566_v57, 2  ;;  %v13433_v57 = vld [vmem:[#allocation8 + $0x198] sm:$0xff]  }
 0x240   : > { %11911 = vmatmul.mubr.bf16.gmra.mrb[4].mxu0 %v2228_v8  ;;  %v2264_v29 = vsel %vm18012_vm2, %v2254_v23, %v2263_v2  ;;  %v2273_v40 = vsel %vm18012_vm2, %v2263_v2, %v2272_v24  ;;  %v2299_v8 = vor.u32 %v2298_v62, %v2295_v60  ;;  %v2331_v2 = vrot.slane %v2329_v31, 1  ;;  %v13431_v60 = vld [vmem:[#allocation8 + $0x188] sm:$0xff]  }
 0x241   : > { %11914 = vmatprep.mubr.bf16.mxu0 %v2237_v11  ;;  %11947 = vmatpush3.bf16.msra.mxu0 %v13411_v1  ;;  %v2304_v1 = vrot.slane %v2302_v51, 1  ;;  %v2334_v4 = vrot.slane %v2332_v36, 2  ;;  %v2654_v51 = vrot.slane %v14563_v37, 2  ;;  %v2660_v62 = vrot.slane %v14577_v39, 2 }
 0x242   : > { %11948 = vmatprep.subr.bf16.mxu0 %v13414_v14 }
 0x243   : > { %v2308_v11 = vor.u32 %v2307_v3, %v2304_v1  ;;  %v2335_v27 = vor.u32 %v2334_v4, %v2331_v2  ;;  %v2657_v15 = vsel %vm18016_vm3, %v2654_v51, %v2656_v52  ;;  %v2659_v1 = vsel %vm18016_vm3, %v2656_v52, %v2658_v6  ;;  %v13450_v52 = vld [vmem:[#allocation8 + $0x1d8] sm:$0xff]  }
 0x244   : > { %v2661_v37 = vsel %vm18016_vm3, %v2658_v6, %v2660_v62  ;;  %v2662_v3 = vrot.slane %v14585_v50, 2  ;;  %v13436_v50 = vld [vmem:[#allocation8 + $0x1b0] sm:$0xff]  }
 0x245   : > { %11949 = vmatpush3.bf16.msra.mxu0 %v13414_v14  ;;  %v2300_v14 = vsel %vm18012_vm2, %v2290_v49, %v2299_v8  ;;  %v2309_v23 = vsel %vm18012_vm2, %v2299_v8, %v2308_v11  ;;  %v2653_v49 = vsel %vm18016_vm3, %v2651_v45, %v2652_v46  ;;  %v13447_v45 = vld [vmem:[#allocation8 + $0x1d0] sm:$0xff]  }
 0x246   : > { %11950 = vmatprep.subr.bf16.mxu0 %v13417_v19  ;;  %v2663_v8 = vsel %vm18016_vm3, %v2660_v62, %v2662_v3  ;;  %v14750_v62 = vld [vmem:[%s14325_s24 + $0x50] sm:$0xff]  }
 0x248   : > { %11915 = vmatmul.mubr.bf16.gmra.mrb[8].mxu0 %v2246_v26  ;;  %v2317_v26 = vor.u32 %v2316_v20, %v2313_v18  ;;  %v2672_v18 = vrot.slane %v14614_v58, 2 }
 0x249   : > { %11918 = vmatprep.mubr.bf16.mxu0 %v2255_v33  ;;  %11951 = vmatpush3.bf16.msra.mxu0 %v13417_v19  ;;  %v14653_v19 = vld [vmem:[%s14325_s24 + $0x90] sm:$0xff]   ;;  %v2326_v33 = vor.u32 %v2325_v17, %v2322_v7  ;;  %v2676_v7 = vrot.slane %v14626_v43, 2  ;;  %v2678_v17 = vrot.slane %v14636_v63, 2 }
 0x24a   : > { %11952 = vmatprep.subr.bf16.mxu0 %v13420_v56  ;;  %v2338_v48 = vshrl.u32 %v14653_v19, 16  ;;  %v2341_v54 = vshll.u32 %v14653_v19, 16  ;;  %v2684_v43 = vrot.slane %v14653_v19, 2 }
 0x24b   : > { %v2327_v21 = vsel %vm18012_vm2, %v2317_v26, %v2326_v33  ;;  %v2336_v35 = vsel %vm18012_vm2, %v2326_v33, %v2335_v27  ;;  %v2679_v31 = vsel %vm18016_vm3, %v2676_v7, %v2678_v17  ;;  %v2967_v33 = vld [vmem:[%s14325_s24 + $0x10] sm:$0xc] }
 0x24c   : > { %v2340_v24 = vrot.slane %v2338_v48, 1  ;;  %v2343_v25 = vrot.slane %v2341_v54, 2  ;;  %v14705_v48 = vld [vmem:[%s14325_s24 + $0x14] sm:$0xf] }
 0x24d   : > { %11953 = vmatpush3.bf16.msra.mxu0 %v13420_v56  ;;  %v2318_v56 = vsel %vm18012_vm2, %v2308_v11, %v2317_v26  ;;  %v2668_v11 = vrot.slane %v14602_v16, 2  ;;  %v2680_v26 = vrot.slane %v14640_v5, 2  ;;  %v14710_v5 = vcombine.low %v2967_v33, %v14705_v48  ;;  %v425_v33 = vld [vmem:[#allocation6 + $0x30] sm:$0xff] }
 0x24e   : > { %11954 = vmatprep.subr.bf16.mxu0 %v13423_v28 }
 0x24f   : > { %v2669_v12 = vsel %vm18016_vm3, %v2666_v10, %v2668_v11  ;;  %v2681_v36 = vsel %vm18016_vm3, %v2678_v17, %v2680_v26  ;;  %v3113_v19 = vrot.slane %v14710_v5, 2 }
 0x250   : > { %11919 = vmatmul.mubr.bf16.gmra.mrb[12].mxu0 %v2264_v29  ;;  %v2344_v29 = vor.u32 %v2343_v25, %v2340_v24  ;;  %v14724_v25 = vld [vmem:[%s14325_s24 + $0x28] sm:$0xff]  }
 0x251   : > { %11922 = vmatprep.mubr.bf16.mxu0 %v2273_v40  ;;  %11955 = vmatpush3.bf16.msra.mxu0 %v13423_v28  ;;  %v14662_v28 = vld [vmem:[%s14325_s24 + $0x98] ss:$0 sps:$4 sm:$0x11]  }
 0x252   : > { %11956 = vmatprep.subr.bf16.mxu0 %v13427_v44  ;;  %v2347_v40 = vshll.u32 %v14662_v28, 16  ;;  %v2345_v41 = vsel %vm18012_vm2, %v2335_v27, %v2344_v29 }
 0x255   : > { %11957 = vmatpush3.bf16.msra.mxu0 %v13427_v44  ;;  %v2349_v44 = vrot.slane %v2347_v40, 2  ;;  %v13444_v40 = vld [vmem:[#allocation8 + $0x1c8] sm:$0xff]  }
 0x256   : > { %11994 = vmatprep.subr.bf16.mxu0 %v14632_v53 }
 0x257   : > { %v2350_v47 = vsel %vm18012_vm2, %v2344_v29, %v2349_v44  ;;  %v3118_v29 = vrot.slane %v14724_v25, 2 }
 0x258   : > { %11923 = vmatmul.mubr.bf16.gmra.mrb[16].mxu0 %v2282_v55  ;;  %v2655_v55 = vsel %vm18016_vm3, %v2652_v46, %v2654_v51  ;;  %v14744_v51 = vld [vmem:[%s14325_s24 + $0x48] sm:$0xff]  }
 0x259   : > { %11926 = vmatprep.mubr.bf16.mxu0 %v2291_v0  ;;  %v13432_v0 = vld [vmem:[#allocation8 + $0x190] sm:$0xff]   ;;  %v3121_v46 = vsel %vm18016_vm3, %v3118_v29, %v3120_v42 }
 0x260   : > { %11927 = vmatmul.mubr.bf16.gmra.mrb[20].mxu0 %v2300_v14  ;;  %v2670_v14 = vrot.slane %v14610_v32, 2 }
 0x261   : > { %11930 = vmatprep.mubr.bf16.mxu0 %v2309_v23  ;;  %v2674_v23 = vrot.slane %v14622_v38, 2  ;;  %v2682_v38 = vrot.slane %v14649_v22, 2  ;;  %v2686_v22 = vrot.slane %v14662_v28, 2 }
 0x262   : > { %v2671_v16 = vsel %vm18016_vm3, %v2668_v11, %v2670_v14  ;;  %v2673_v20 = vsel %vm18016_vm3, %v2670_v14, %v2672_v18  ;;  %v14780_v14 = vld [vmem:[%s14325_s24 + $0x70] sm:$0xff]  }
 0x263   : > { %v2675_v32 = vsel %vm18016_vm3, %v2672_v18, %v2674_v23  ;;  %v2677_v58 = vsel %vm18016_vm3, %v2674_v23, %v2676_v7  ;;  %v2683_v54 = vsel %vm18016_vm3, %v2680_v26, %v2682_v38  ;;  %v2685_v63 = vsel %vm18016_vm3, %v2682_v38, %v2684_v43  ;;  %v420_v23 = vld [vmem:[#allocation6 + $0x8] sm:$0xff]  ;;  %v14791_v26 = vld [vmem:[%s14325_s24 + $0x80] sm:$0xff]  }
 0x264   : > { %v2687_v4 = vsel %vm18016_vm3, %v2684_v43, %v2686_v22  ;;  %v3136_v7 = vrot.slane %v14780_v14, 2  ;;  %v423_v38 = vld [vmem:[#allocation6 + $0x20] sm:$0xff]  ;;  %v424_v43 = vld [vmem:[#allocation6 + $0x28] sm:$0xff]  ;;  %v426_v22 = vld [vmem:[#allocation6 + $0x38] sm:$0xff] }
 0x268   : > { %11931 = vmatmul.mubr.bf16.gmra.mrb[24].mxu0 %v2318_v56  ;;  %v14713_v56 = vld [vmem:[%s14325_s24 + $0x18] sm:$0xff]  }
 0x269   : > { %11934 = vmatprep.mubr.bf16.mxu0 %v2327_v21  ;;  %v3114_v2 = vrot.slane %v14713_v56, 2  ;;  %v14720_v21 = vld [vmem:[%s14325_s24 + $0x20] sm:$0xff]  }
 0x26a   : > { %v3116_v27 = vrot.slane %v14720_v21, 2 }
 0x26b   : > { %v3115_v24 = vsel %vm18016_vm3, %v3113_v19, %v3114_v2 }
 0x26c   : > { %v3117_v28 = vsel %vm18016_vm3, %v3114_v2, %v3116_v27  ;;  %v14801_v2 = vld [vmem:[%s14325_s24 + $0x90] sm:$0xff]  }
 0x270   : > { %11935 = vmatmul.mubr.bf16.gmra.mrb[28].mxu0 %v2336_v35  ;;  %v3119_v35 = vsel %vm18016_vm3, %v3116_v27, %v3118_v29  ;;  %v427_v27 = vld [vmem:[#allocation6 + $0x40] sm:$0xff]  ;;  %v428_v29 = vld [vmem:[#allocation6 + $0x48] sm:$0xff] }
 0x271   : > { %11938 = vmatprep.mubr.bf16.mxu0 %v2345_v41  ;;  %v14734_v41 = vld [vmem:[%s14325_s24 + $0x38] sm:$0xff]  }
 0x272   : > { %v3122_v44 = vrot.slane %v14734_v41, 2 }
 0x278   : > { %11939 = vmatmul.mubr.bf16.gmra.mrb[32].mxu0 %v2350_v47  ;;  %v14740_v47 = vld [vmem:[%s14325_s24 + $0x40] sm:$0xff]  }
 0x279   : > { %11958 = vmatprep.mubr.bf16.mxu0 %v2653_v49  ;;  %v3123_v49 = vsel %vm18016_vm3, %v3120_v42, %v3122_v44  ;;  %v3451_v42 = vshrl.u32 %v14710_v5, 16 }
 0x280   : > { %11959 = vmatmul.mubr.bf16.vlgmr.msra.gmra.mrb[0].mxu0 %v2655_v55  ;;  %v3124_v55 = vrot.slane %v14740_v47, 2 }
 0x281   : > { %11995 = vmatpush3.bf16.msra.mxu0 %v14632_v53  ;;  %11962 = vmatprep.mubr.bf16.mxu0 %v2657_v15  ;;  %v2664_v53 = vrot.slane %v14589_v59, 2  ;;  %v3126_v15 = vrot.slane %v14744_v51, 2 }
 0x282   : > { %11996 = vmatprep.subr.bf16.mxu0 %v13431_v60  ;;  %v3125_v6 = vsel %vm18016_vm3, %v3122_v44, %v3124_v55  ;;  %v3454_v44 = vshll.u32 %v14710_v5, 16  ;;  %v432_v5 = vld [vmem:[#allocation6 + $0x68] sm:$0xff] }
 0x283   : > { %v2665_v39 = vsel %vm18016_vm3, %v2662_v3, %v2664_v53  ;;  %v2667_v59 = vsel %vm18016_vm3, %v2664_v53, %v2666_v10  ;;  %v13459_v53 = vld [vmem:[#allocation8 + $0x1f0] sm:$0xff]   ;;  %v13463_v10 = vld [vmem:[#allocation8 + $0x1f8] sm:$0xff]  }
 0x285   : > { %11997 = vmatpush3.bf16.msra.mxu0 %v13431_v60  ;;  %v13453_v60 = vld [vmem:[#allocation8 + $0x1e0] sm:$0xff]  }
 0x286   : > { %11998 = vmatprep.subr.bf16.mxu0 %v13432_v0 }
 0x288   : > { %11963 = vmatmul.mubr.bf16.gmra.mrb[4].mxu0 %v2659_v1  ;;  %v14754_v1 = vld [vmem:[%s14325_s24 + $0x58] sm:$0xff]  }
 0x289   : > { %11966 = vmatprep.mubr.bf16.mxu0 %v2661_v37  ;;  %11999 = vmatpush3.bf16.msra.mxu0 %v13432_v0  ;;  %v3127_v0 = vsel %vm18016_vm3, %v3124_v55, %v3126_v15  ;;  %v13456_v37 = vld [vmem:[#allocation8 + $0x1e8] sm:$0xff]   ;;  %v3130_v3 = vrot.slane %v14754_v1, 2 }
 0x28a   : > { %12000 = vmatprep.subr.bf16.mxu0 %v13433_v57 }
 0x28d   : > { %12001 = vmatpush3.bf16.msra.mxu0 %v13433_v57  ;;  %v3128_v57 = vrot.slane %v14750_v62, 2 }
 0x28e   : > { %12002 = vmatprep.subr.bf16.mxu0 %v13434_v30 }
 0x290   : > { %11967 = vmatmul.mubr.bf16.gmra.mrb[8].mxu0 %v2663_v8  ;;  %v14760_v8 = vld [vmem:[%s14325_s24 + $0x60] sm:$0xff]  }
 0x291   : > { %11970 = vmatprep.mubr.bf16.mxu0 %v2665_v39  ;;  %12003 = vmatpush3.bf16.msra.mxu0 %v13434_v30  ;;  %v3129_v30 = vsel %vm18016_vm3, %v3126_v15, %v3128_v57  ;;  %v3131_v39 = vsel %vm18016_vm3, %v3128_v57, %v3130_v3  ;;  %v3132_v11 = vrot.slane %v14760_v8, 2  ;;  %v13464_v15 = vld [vmem:[%s14325_s24 + $0xa0] ss:$0 sps:$4 sm:$0x11]   ;;  %v431_v57 = vld [vmem:[#allocation6 + $0x60] sm:$0xff] }
 0x292   : > { %12004 = vmatprep.subr.bf16.mxu0 %v13435_v9 }
 0x295   : > { %12005 = vmatpush3.bf16.msra.mxu0 %v13435_v9  ;;  %v14764_v9 = vld [vmem:[%s14325_s24 + $0x68] sm:$0xff]  }
 0x296   : > { %12006 = vmatprep.subr.bf16.mxu0 %v13436_v50 }
 0x298   : > { %11971 = vmatmul.mubr.bf16.gmra.mrb[12].mxu0 %v2667_v59  ;;  %v3134_v59 = vrot.slane %v14764_v9, 2 }
 0x299   : > { %11974 = vmatprep.mubr.bf16.mxu0 %v2669_v12  ;;  %12007 = vmatpush3.bf16.msra.mxu0 %v13436_v50  ;;  %v13997_v50 = vmov 0   ;;  %v14776_v12 = vld [vmem:[#allocation8 + $0x200] sm:$0xff]  }
 0x29a   : > { %12008 = vmatprep.subr.bf16.mxu0 %v13437_v13  ;;  %9948 = vst [vmem:[%s14769_s12] sm:$0xf] %v13997_v50  ;;  %9949 = vst [vmem:[%s14769_s12 + $0x4] sm:$0xf] %v13997_v50  ;;  %13322 = vset.pattern.permute.xlu0 %v13997_v50  ;;  %v3135_v18 = vsel %vm18016_vm3, %v3132_v11, %v3134_v59  ;;  %v3137_v17 = vsel %vm18016_vm3, %v3134_v59, %v3136_v7  ;;  %v3480_v59 = vshll.u32 %v14724_v25, 16 }
 0x29b   : > { %10501 = vst [vmem:[%s14769_s12 + $0x9c] sm:$0xf] %v13997_v50  ;;  %10502 = vst [vmem:[%s14769_s12 + $0xa0] sm:$0x3] %v13997_v50  ;;  %13323 = vset.pattern.permute.xlu1 %v13997_v50 }
 0x29c   : > { %4882 = vst [vmem:[#allocation2] sm:$0xf] %v13997_v50  ;;  %4883 = vst [vmem:[#allocation2 + $0x4] sm:$0xf] %v13997_v50 }
 0x29d   : > { %12009 = vmatpush3.bf16.msra.mxu0 %v13437_v13  ;;  %5449 = vst [vmem:[#allocation2 + $0x9c] sm:$0xf] %v13997_v50  ;;  %5450 = vst [vmem:[#allocation2 + $0xa0] sm:$0x3] %v13997_v50  ;;  %v3133_v13 = vsel %vm18016_vm3, %v3130_v3, %v3132_v11  ;;  %v433_v3 = vld [vmem:[#allocation6 + $0x70] sm:$0xff]  ;;  %v3477_v50 = vshrl.u32 %v14724_v25, 16 }
 0x29e   : > { %12046 = vmatprep.subr.bf16.mxu0 %v13441_v61 }
 0x2a0   : > { %11975 = vmatmul.mubr.bf16.gmra.mrb[16].mxu0 %v2671_v16  ;;  %v419_v16 = vld [vmem:[#allocation6] sm:$0xff] }
 0x2a1   : > { %11978 = vmatprep.mubr.bf16.mxu0 %v2673_v20  ;;  %4238 = vperm.xlu0 %13322, %v419_v16   ;;  %v421_v20 = vld [vmem:[#allocation6 + $0x10] sm:$0xff] }
 0x2a2   : > { %4248 = vperm.xlu1 %13323, %v421_v20  }
 0x2a5   : > { %4243 = vperm.xlu0 %13322, %v420_v23  }
 0x2a8   : > { %11979 = vmatmul.mubr.bf16.gmra.mrb[20].mxu0 %v2675_v32 }
 0x2a9   : > { %11982 = vmatprep.mubr.bf16.mxu0 %v2677_v58  ;;  %v422_v58 = vld [vmem:[#allocation6 + $0x18] sm:$0xff]  ;;  %4258 = vperm.xlu0 %13322, %v423_v38  }
 0x2aa   : > { %4253 = vperm.xlu1 %13323, %v422_v58   ;;  %v435_v58 = vld [vmem:[#allocation6 + $0x80] sm:$0xff] }
 0x2ad   : > { %4268 = vperm.xlu0 %13322, %v425_v33   ;;  %v3489_v33 = vshll.u32 %v14730_v34, 16 }
 0x2ae   : > { %4263 = vperm.xlu1 %13323, %v424_v43   ;;  %v3486_v43 = vshrl.u32 %v14730_v34, 16 }
 0x2b0   : > { %11983 = vmatmul.mubr.bf16.gmra.mrb[24].mxu0 %v2679_v31 }
 0x2b1   : > { %11986 = vmatprep.mubr.bf16.mxu0 %v2681_v36  ;;  %v14795_v36 = vld [vmem:[%s14325_s24 + $0x88] sm:$0xff]   ;;  %4278 = vperm.xlu0 %13322, %v427_v27   ;;  %v3488_v27 = vrot.slane %v3486_v43, 2 }
 0x2b2   : > { %4273 = vperm.xlu1 %13323, %v426_v22   ;;  %v3498_v22 = vshll.u32 %v14734_v41, 16 }
 0x2b6   : > { %4283 = vperm.xlu1 %13323, %v428_v29   ;;  %v3491_v29 = vrot.slane %v3489_v33, 3 }
 0x2b8   : > { %11987 = vmatmul.mubr.bf16.gmra.mrb[28].mxu0 %v2683_v54  ;;  %v3140_v54 = vrot.slane %v14791_v26, 2 }
 0x2b9   : > { %11990 = vmatprep.mubr.bf16.mxu0 %v2685_v63  ;;  %v3142_v63 = vrot.slane %v14795_v36, 2 }
 0x2c0   : > { %11991 = vmatmul.mubr.bf16.gmra.mrb[32].mxu0 %v2687_v4  ;;  %v14804_v4 = vld [vmem:[%s14325_s24 + $0x98] sm:$0xff]  }
 0x2c1   : > { %12010 = vmatprep.mubr.bf16.mxu0 %v3115_v24  ;;  %v3143_v24 = vsel %vm18016_vm3, %v3140_v54, %v3142_v63 }
 0x2c8   : > { %12011 = vmatmul.mubr.bf16.vlgmr.msra.gmra.mrb[0].mxu0 %v3117_v28  ;;  %v429_v28 = vld [vmem:[#allocation6 + $0x50] sm:$0xff] }
 0x2c9   : > { %12047 = vmatpush3.bf16.msra.mxu0 %v13441_v61  ;;  %12014 = vmatprep.mubr.bf16.mxu0 %v3119_v35  ;;  %v14784_v61 = vld [vmem:[%s14325_s24 + $0x78] sm:$0xff]   ;;  %v3144_v35 = vrot.slane %v14801_v2, 2 }
 0x2ca   : > { %12048 = vmatprep.subr.bf16.mxu0 %v13444_v40  ;;  %v3138_v32 = vrot.slane %v14784_v61, 2  ;;  %4288 = vperm.xlu0 %13322, %v429_v28  }
 0x2cc   : > { %v3139_v31 = vsel %vm18016_vm3, %v3136_v7, %v3138_v32  ;;  %v3141_v19 = vsel %vm18016_vm3, %v3138_v32, %v3140_v54  ;;  %v3479_v7 = vrot.slane %v3477_v50, 2  ;;  %v3482_v32 = vrot.slane %v3480_v59, 3  ;;  %v445_v50 = vld [vmem:[#allocation6 + $0xd0] sm:$0xff] }
 0x2cd   : > { %12049 = vmatpush3.bf16.msra.mxu0 %v13444_v40  ;;  %v3146_v40 = vrot.slane %v14804_v4, 2 }
 0x2ce   : > { %12050 = vmatprep.subr.bf16.mxu0 %v13447_v45  ;;  %4298 = vperm.xlu0 %13322, %v431_v57   ;;  %v3483_v54 = vor.u32 %v3482_v32, %v3479_v7  ;;  %v13469_v7 = vld [vmem:[#allocation8 + $0x220] sm:$0xff]   ;;  %v446_v32 = vld [vmem:[#allocation6 + $0xd8] sm:$0xff] }
 0x2cf   : > { %v3147_v55 = vsel %vm18016_vm3, %v3144_v35, %v3146_v40 }
 0x2d0   : > { %12015 = vmatmul.mubr.bf16.gmra.mrb[4].mxu0 %v3121_v46  ;;  %v3462_v46 = vshll.u32 %v14713_v56, 16 }
 0x2d1   : > { %12018 = vmatprep.mubr.bf16.mxu0 %v3123_v49  ;;  %12051 = vmatpush3.bf16.msra.mxu0 %v13447_v45  ;;  %v3459_v45 = vshrl.u32 %v14713_v56, 16  ;;  %v430_v49 = vld [vmem:[#allocation6 + $0x58] sm:$0xff] }
 0x2d2   : > { %12052 = vmatprep.subr.bf16.mxu0 %v13450_v52  ;;  %4293 = vperm.xlu1 %13323, %v430_v49   ;;  %v3492_v49 = vor.u32 %v3491_v29, %v3488_v27  ;;  %v3540_v27 = vshrl.u32 %v14760_v8, 16  ;;  %v3543_v29 = vshll.u32 %v14760_v8, 16 }
 0x2d3   : > { %4308 = vperm.xlu0 %13322, %v433_v3  }
 0x2d4   : > { %v3493_v57 = vsel %vm18015_vm4, %v3483_v54, %v3492_v49 }
 0x2d5   : > { %12053 = vmatpush3.bf16.msra.mxu0 %v13450_v52  ;;  %v3145_v52 = vsel %vm18016_vm3, %v3142_v63, %v3144_v35  ;;  %v3495_v63 = vshrl.u32 %v14734_v41, 16  ;;  %v13466_v35 = vld [vmem:[#allocation8 + $0x208] sm:$0xff]  }
 0x2d6   : > { %12054 = vmatprep.subr.bf16.mxu0 %v13453_v60  ;;  %4303 = vperm.xlu1 %13323, %v432_v5  }
 0x2d7   : > { %4318 = vperm.xlu0 %13322, %v435_v58   ;;  %v447_v58 = vld [vmem:[#allocation6 + $0xe0] sm:$0xff] }
 0x2d8   : > { %12019 = vmatmul.mubr.bf16.gmra.mrb[8].mxu0 %v3125_v6  ;;  %v3456_v6 = vrot.slane %v3454_v44, 3  ;;  %v439_v44 = vld [vmem:[#allocation6 + $0xa0] sm:$0xff] }
 0x2d9   : > { %12022 = vmatprep.mubr.bf16.mxu0 %v3127_v0  ;;  %12055 = vmatpush3.bf16.msra.mxu0 %v13453_v60  ;;  %v3453_v60 = vrot.slane %v3451_v42, 2  ;;  %v3461_v0 = vrot.slane %v3459_v45, 2  ;;  %v3500_v42 = vrot.slane %v3498_v22, 3  ;;  %v440_v45 = vld [vmem:[#allocation6 + $0xa8] sm:$0xff] }
 0x2da   : > { %12056 = vmatprep.subr.bf16.mxu0 %v13456_v37  ;;  %v448_v22 = vld [vmem:[#allocation6 + $0xe8] sm:$0xff] }
 0x2dd   : > { %12057 = vmatpush3.bf16.msra.mxu0 %v13456_v37  ;;  %v3464_v37 = vrot.slane %v3462_v46, 3  ;;  %v441_v46 = vld [vmem:[#allocation6 + $0xb0] sm:$0xff] }
 0x2de   : > { %12058 = vmatprep.subr.bf16.mxu0 %v13459_v53 }
 0x2df   : > { %v3465_v11 = vor.u32 %v3464_v37, %v3461_v0  ;;  %v3516_v0 = vshll.u32 %v14744_v51, 16  ;;  %v442_v37 = vld [vmem:[#allocation6 + $0xb8] sm:$0xff] }
 0x2e0   : > { %12023 = vmatmul.mubr.bf16.gmra.mrb[12].mxu0 %v3129_v30  ;;  %v3468_v30 = vshrl.u32 %v14720_v21, 16 }
 0x2e1   : > { %12026 = vmatprep.mubr.bf16.mxu0 %v3131_v39  ;;  %12059 = vmatpush3.bf16.msra.mxu0 %v13459_v53  ;;  %v3148_v53 = vrot.slane %v13464_v15, 2  ;;  %v3471_v39 = vshll.u32 %v14720_v21, 16 }
 0x2e2   : > { %12060 = vmatprep.subr.bf16.mxu0 %v13463_v10  ;;  %v3470_v16 = vrot.slane %v3468_v30, 2  ;;  %v3518_v30 = vrot.slane %v3516_v0, 3  ;;  %v452_v0 = vld [vmem:[#allocation6 + $0x108] sm:$0xff] }
 0x2e3   : > { %v3473_v20 = vrot.slane %v3471_v39, 3  ;;  %v13468_v39 = vld [vmem:[#allocation8 + $0x218] sm:$0xff]  }
 0x2e5   : > { %12061 = vmatpush3.bf16.msra.mxu0 %v13463_v10  ;;  %v3457_v10 = vor.u32 %v3456_v6, %v3453_v60  ;;  %v3474_v38 = vor.u32 %v3473_v20, %v3470_v16  ;;  %v13467_v60 = vld [vmem:[#allocation8 + $0x210] sm:$0xff]   ;;  %v3513_v6 = vshrl.u32 %v14744_v51, 16  ;;  %v3531_v20 = vshrl.u32 %v14754_v1, 16 }
 0x2e6   : > { %12098 = vmatprep.subr.bf16.mxu0 %v14776_v12 }
 0x2e7   : > { %v3466_v23 = vsel %vm18015_vm4, %v3457_v10, %v3465_v11  ;;  %v3484_v28 = vsel %vm18015_vm4, %v3474_v38, %v3483_v54  ;;  %v443_v10 = vld [vmem:[#allocation6 + $0xc0] sm:$0xff]  ;;  %v3533_v33 = vrot.slane %v3531_v20, 2  ;;  %v3576_v20 = vshrl.u32 %v14791_v26, 16 }
 0x2e8   : > { %12027 = vmatmul.mubr.bf16.gmra.mrb[16].mxu0 %v3133_v13  ;;  %v434_v13 = vld [vmem:[#allocation6 + $0x78] sm:$0xff] }
 0x2e9   : > { %12030 = vmatprep.mubr.bf16.mxu0 %v3135_v18  ;;  %v3149_v18 = vsel %vm18016_vm3, %v3146_v40, %v3148_v53  ;;  %4313 = vperm.xlu1 %13323, %v434_v13   ;;  %v3497_v40 = vrot.slane %v3495_v63, 2  ;;  %v3515_v53 = vrot.slane %v3513_v6, 2  ;;  %v3522_v13 = vshrl.u32 %v14750_v62, 16  ;;  %v13470_v63 = vld [vmem:[#allocation8 + $0x228] sm:$0xff]   ;;  %v13472_v6 = vld [vmem:[#allocation8 + $0x238] sm:$0xff]  }
 0x2eb   : > { %v3501_v15 = vor.u32 %v3500_v42, %v3497_v40  ;;  %v3519_v16 = vor.u32 %v3518_v30, %v3515_v53  ;;  %v3552_v40 = vshll.u32 %v14764_v9, 16  ;;  %v13471_v42 = vld [vmem:[#allocation8 + $0x230] sm:$0xff]   ;;  %v3567_v53 = vshrl.u32 %v14784_v61, 16 }
 0x2ec   : > { %v3570_v30 = vshll.u32 %v14784_v61, 16 }
 0x2ed   : > { %v3502_v3 = vsel %vm18015_vm4, %v3492_v49, %v3501_v15  ;;  %v3542_v49 = vrot.slane %v3540_v27, 2  ;;  %v3603_v27 = vshrl.u32 %v14804_v4, 16 }
 0x2f0   : > { %12031 = vmatmul.mubr.bf16.gmra.mrb[20].mxu0 %v3137_v17  ;;  %v436_v17 = vld [vmem:[#allocation6 + $0x88] sm:$0xff] }
 0x2f1   : > { %12034 = vmatprep.mubr.bf16.mxu0 %v3139_v31  ;;  %v437_v31 = vld [vmem:[#allocation6 + $0x90] sm:$0xff]  ;;  %4323 = vperm.xlu1 %13323, %v436_v17  }
 0x2f2   : > { %4328 = vperm.xlu0 %13322, %v437_v31   ;;  %v3524_v31 = vrot.slane %v3522_v13, 2  ;;  %v3569_v13 = vrot.slane %v3567_v53, 2  ;;  %v3921_v53 = vrot.slane %v14713_v56, 3  ;;  %v3929_v56 = vrot.slane %v14734_v41, 3 }
 0x2f3   : > { %v3937_v41 = vrot.slane %v14754_v1, 3 }
 0x2f6   : > { %4338 = vperm.xlu0 %13322, %v439_v44   ;;  %v450_v44 = vld [vmem:[#allocation6 + $0xf8] sm:$0xff] }
 0x2f8   : > { %12035 = vmatmul.mubr.bf16.gmra.mrb[24].mxu0 %v3141_v19  ;;  %v438_v19 = vld [vmem:[#allocation6 + $0x98] sm:$0xff] }
 0x2f9   : > { %12038 = vmatprep.mubr.bf16.mxu0 %v3143_v24  ;;  %v3475_v24 = vsel %vm18015_vm4, %v3465_v11, %v3474_v38  ;;  %4333 = vperm.xlu1 %13323, %v438_v19   ;;  %v444_v11 = vld [vmem:[#allocation6 + $0xc8] sm:$0xff]  ;;  %v449_v19 = vld [vmem:[#allocation6 + $0xf0] sm:$0xff] }
 0x2fa   : > { %4348 = vperm.xlu0 %13322, %v441_v46  }
 0x2fd   : > { %4343 = vperm.xlu1 %13323, %v440_v45   ;;  %v451_v45 = vld [vmem:[#allocation6 + $0x100] sm:$0xff] }
 0x2fe   : > { %4358 = vperm.xlu0 %13322, %v443_v10  }
 0x300   : > { %12039 = vmatmul.mubr.bf16.gmra.mrb[28].mxu0 %v3145_v52  ;;  %v3504_v52 = vshrl.u32 %v14740_v47, 16 }
 0x301   : > { %12042 = vmatprep.mubr.bf16.mxu0 %v3147_v55  ;;  %v3507_v55 = vshll.u32 %v14740_v47, 16  ;;  %4353 = vperm.xlu1 %13323, %v442_v37   ;;  %v453_v37 = vld [vmem:[#allocation6 + $0x110] sm:$0xff] }
 0x302   : > { %4368 = vperm.xlu0 %13322, %v445_v50  }
 0x303   : > { %v3509_v5 = vrot.slane %v3507_v55, 3 }
 0x305   : > { %4363 = vperm.xlu1 %13323, %v444_v11  }
 0x306   : > { %4378 = vperm.xlu0 %13322, %v447_v58   ;;  %v3588_v58 = vshll.u32 %v14795_v36, 16 }
 0x308   : > { %12043 = vmatmul.mubr.bf16.gmra.mrb[32].mxu0 %v3149_v18  ;;  %v3525_v18 = vshll.u32 %v14750_v62, 16 }
 0x309   : > { %12062 = vmatprep.mubr.bf16.mxu0 %v3466_v23  ;;  %v3534_v23 = vshll.u32 %v14754_v1, 16  ;;  %4373 = vperm.xlu1 %13323, %v446_v32   ;;  %v3585_v32 = vshrl.u32 %v14795_v36, 16  ;;  %v3945_v1 = vrot.slane %v14784_v61, 3  ;;  %v3953_v61 = vrot.slane %v14804_v4, 3 }
 0x30a   : > { %v3527_v38 = vrot.slane %v3525_v18, 3  ;;  %4388 = vperm.xlu0 %13322, %v449_v19   ;;  %v3572_v18 = vrot.slane %v3570_v30, 3  ;;  %v3597_v19 = vshll.u32 %v14801_v2, 16 }
 0x30b   : > { %v3536_v54 = vrot.slane %v3534_v23, 3  ;;  %v3579_v23 = vshll.u32 %v14791_v26, 16 }
 0x30d   : > { %4383 = vperm.xlu1 %13323, %v448_v22   ;;  %v3594_v22 = vshrl.u32 %v14801_v2, 16 }
 0x30e   : > { %4398 = vperm.xlu0 %13322, %v451_v45   ;;  %v3605_v45 = vrot.slane %v3603_v27, 2 }
 0x310   : > { %12063 = vmatmul.mubr.bf16.vlgmr.msra.gmra.mrb[0].mxu0 %v3475_v24  ;;  %v3528_v24 = vor.u32 %v3527_v38, %v3524_v31  ;;  %v3578_v31 = vrot.slane %v3576_v20, 2  ;;  %v3581_v38 = vrot.slane %v3579_v23, 3 }
 0x311   : > { %12099 = vmatpush3.bf16.msra.mxu0 %v14776_v12  ;;  %12066 = vmatprep.mubr.bf16.mxu0 %v3484_v28  ;;  %v3506_v12 = vrot.slane %v3504_v52, 2  ;;  %v3537_v28 = vor.u32 %v3536_v54, %v3533_v33  ;;  %v3545_v52 = vrot.slane %v3543_v29, 3  ;;  %v3587_v33 = vrot.slane %v3585_v32, 2 }
 0x312   : > { %12100 = vmatprep.subr.bf16.mxu0 %v13466_v35  ;;  %v3529_v46 = vsel %vm18015_vm4, %v3519_v16, %v3528_v24  ;;  %4393 = vperm.xlu1 %13323, %v450_v44   ;;  %v3590_v54 = vrot.slane %v3588_v58, 3  ;;  %v3606_v29 = vshll.u32 %v14804_v4, 16 }
 0x313   : > { %v3510_v59 = vor.u32 %v3509_v5, %v3506_v12  ;;  %v3538_v55 = vsel %vm18015_vm4, %v3528_v24, %v3537_v28  ;;  %v3558_v12 = vshrl.u32 %v14780_v14, 16  ;;  %v3561_v5 = vshll.u32 %v14780_v14, 16  ;;  %4408 = vperm.xlu0 %13322, %v453_v37  }
 0x314   : > { %v3591_v24 = vor.u32 %v3590_v54, %v3587_v33 }
 0x315   : > { %12101 = vmatpush3.bf16.msra.mxu0 %v13466_v35  ;;  %v3511_v17 = vsel %vm18015_vm4, %v3501_v15, %v3510_v59  ;;  %v3520_v43 = vsel %vm18015_vm4, %v3510_v59, %v3519_v16  ;;  %v3549_v35 = vshrl.u32 %v14764_v9, 16  ;;  %v3560_v11 = vrot.slane %v3558_v12, 2 }
 0x316   : > { %12102 = vmatprep.subr.bf16.mxu0 %v13467_v60  ;;  %4403 = vperm.xlu1 %13323, %v452_v0   ;;  %v3563_v50 = vrot.slane %v3561_v5, 3 }
 0x317   : > { %v3551_v15 = vrot.slane %v3549_v35, 2  ;;  %v3596_v35 = vrot.slane %v3594_v22, 2 }
 0x318   : > { %12067 = vmatmul.mubr.bf16.gmra.mrb[4].mxu0 %v3493_v57  ;;  %v3546_v57 = vor.u32 %v3545_v52, %v3542_v49  ;;  %v3564_v16 = vor.u32 %v3563_v50, %v3560_v11  ;;  %v3925_v11 = vrot.slane %v14724_v25, 3  ;;  %v3933_v25 = vrot.slane %v14744_v51, 3 }
 0x319   : > { %12070 = vmatprep.mubr.bf16.mxu0 %v3502_v3  ;;  %12103 = vmatpush3.bf16.msra.mxu0 %v13467_v60  ;;  %v3554_v60 = vrot.slane %v3552_v40, 3  ;;  %v3599_v40 = vrot.slane %v3597_v19, 3  ;;  %v3941_v51 = vrot.slane %v14764_v9, 3  ;;  %v3949_v9 = vrot.slane %v14795_v36, 3 }
 0x31a   : > { %12104 = vmatprep.subr.bf16.mxu0 %v13468_v39  ;;  %v3547_v10 = vsel %vm18015_vm4, %v3537_v28, %v3546_v57 }
 0x31b   : > { %v3555_v3 = vor.u32 %v3554_v60, %v3551_v15  ;;  %v3600_v49 = vor.u32 %v3599_v40, %v3596_v35  ;;  %v3899_v60 = vld [vmem:[%s14325_s24 + $0x10] sm:$0x8] }
 0x31c   : > { %v10818_v12 = vcombine.low %v3899_v60, %v14705_v48 }
 0x31d   : > { %12105 = vmatpush3.bf16.msra.mxu0 %v13468_v39  ;;  %v454_v39 = vld [vmem:[#allocation6 + $0x118] sm:$0x3f]  ;;  %v3556_v59 = vsel %vm18015_vm4, %v3546_v57, %v3555_v3 }
 0x31e   : > { %12106 = vmatprep.subr.bf16.mxu0 %v13469_v7  ;;  %4413 = vperm.xlu1 %13323, %v454_v39  }
 0x320   : > { %12071 = vmatmul.mubr.bf16.gmra.mrb[8].mxu0 %v3511_v17  ;;  %v3565_v17 = vsel %vm18015_vm4, %v3555_v3, %v3564_v16  ;;  %v3920_v3 = vrot.slane %v10818_v12, 3  ;;  %v14914_v19 = vpop.permute.xlu0 %4238 }
 0x321   : > { %12074 = vmatprep.mubr.bf16.mxu0 %v3520_v43  ;;  %12107 = vmatpush3.bf16.msra.mxu0 %v13469_v7  ;;  %v3573_v7 = vor.u32 %v3572_v18, %v3569_v13  ;;  %18079 = vst [vmem:[#allocation24_spill] sm:$0xff] %v14914_v19 }
 0x322   : > { %12108 = vmatprep.subr.bf16.mxu0 %v13470_v63  ;;  %v3922_v39 = vsel %vm18014_vm5, %v3920_v3, %v3921_v53 }
 0x323   : > { %v3574_v43 = vsel %vm18015_vm4, %v3564_v16, %v3573_v7 }
 0x324   : > { %v14918_v27 = vpop.permute.xlu0 %4243 }
 0x325   : > { %12109 = vmatpush3.bf16.msra.mxu0 %v13470_v63  ;;  %v3582_v63 = vor.u32 %v3581_v38, %v3578_v31  ;;  %18081 = vst [vmem:[#allocation26_spill] sm:$0xff] %v14918_v27 }
 0x326   : > { %12110 = vmatprep.subr.bf16.mxu0 %v13471_v42 }
 0x327   : > { %v3583_v28 = vsel %vm18015_vm4, %v3573_v7, %v3582_v63  ;;  %v3592_v44 = vsel %vm18015_vm4, %v3582_v63, %v3591_v24  ;;  %v4887_v63 = vld [vmem:[#allocation2 + $0x8] sm:$0x3] }
 0x328   : > { %12075 = vmatmul.mubr.bf16.gmra.mrb[12].mxu0 %v3529_v46  ;;  %v3608_v46 = vrot.slane %v3606_v29, 3  ;;  %v4888_v22 = vsel %vm4886_vm8, 0, %v4887_v63 }
 0x329   : > { %12078 = vmatprep.mubr.bf16.mxu0 %v3538_v55  ;;  %12111 = vmatpush3.bf16.msra.mxu0 %v13471_v42  ;;  %v14865_v42 = vld [vmem:[%s14325_s24 + $0xa0] ss:$0 sps:$4 sm:$0x33]   ;;  %4889 = vst [vmem:[#allocation2 + $0x8] sm:$0x3] %v4888_v22 }
 0x32a   : > { %12112 = vmatprep.subr.bf16.mxu0 %v13472_v6  ;;  %v3612_v52 = vshrl.u32 %v14865_v42, 16  ;;  %v3615_v55 = vshll.u32 %v14865_v42, 16  ;;  %v3609_v15 = vor.u32 %v3608_v46, %v3605_v45 }
 0x32c   : > { %v3614_v0 = vrot.slane %v3612_v52, 2  ;;  %v3617_v37 = vrot.slane %v3615_v55, 3  ;;  %v3610_v57 = vsel %vm18015_vm4, %v3600_v49, %v3609_v15 }
 0x32d   : > { %12113 = vmatpush3.bf16.msra.mxu0 %v13472_v6  ;;  %v3601_v6 = vsel %vm18015_vm4, %v3591_v24, %v3600_v49  ;;  %v14916_v24 = vpop.permute.xlu1 %4248 }
 0x32e   : > { %v3618_v5 = vor.u32 %v3617_v37, %v3614_v0  ;;  %18080 = vst [vmem:[#allocation25_spill] sm:$0xff] %v14916_v24 }
 0x330   : > { %12079 = vmatmul.mubr.bf16.gmra.mrb[16].mxu0 %v3547_v10  ;;  %v3619_v30 = vsel %vm18015_vm4, %v3609_v15, %v3618_v5  ;;  %v3923_v10 = vrot.slane %v14720_v21, 3  ;;  %v3931_v21 = vrot.slane %v14740_v47, 3  ;;  %v3939_v47 = vrot.slane %v14760_v8, 3 }
 0x331   : > { %12082 = vmatprep.mubr.bf16.mxu0 %v3556_v59  ;;  %v3927_v59 = vrot.slane %v14730_v34, 3  ;;  %v3935_v34 = vrot.slane %v14750_v62, 3  ;;  %v3943_v62 = vrot.slane %v14780_v14, 3  ;;  %v3947_v8 = vrot.slane %v14791_v26, 3  ;;  %v14920_v29 = vpop.permute.xlu1 %4253 }
 0x332   : > { %v3924_v50 = vsel %vm18014_vm5, %v3921_v53, %v3923_v10  ;;  %v3926_v48 = vsel %vm18014_vm5, %v3923_v10, %v3925_v11  ;;  %v3932_v16 = vsel %vm18014_vm5, %v3929_v56, %v3931_v21  ;;  %v3934_v20 = vsel %vm18014_vm5, %v3931_v21, %v3933_v25  ;;  %18082 = vst [vmem:[#allocation27_spill] sm:$0xff] %v14920_v29 }
 0x333   : > { %v3928_v13 = vsel %vm18014_vm5, %v3925_v11, %v3927_v59  ;;  %v3930_v18 = vsel %vm18014_vm5, %v3927_v59, %v3929_v56  ;;  %v3936_v23 = vsel %vm18014_vm5, %v3933_v25, %v3935_v34  ;;  %v3938_v7 = vsel %vm18014_vm5, %v3935_v34, %v3937_v41 }
 0x334   : > { %v3940_v32 = vsel %vm18014_vm5, %v3937_v41, %v3939_v47  ;;  %v3942_v58 = vsel %vm18014_vm5, %v3939_v47, %v3941_v51  ;;  %v3946_v31 = vsel %vm18014_vm5, %v3943_v62, %v3945_v1  ;;  %v3948_v38 = vsel %vm18014_vm5, %v3945_v1, %v3947_v8 }
 0x335   : > { %v3951_v14 = vrot.slane %v14801_v2, 3  ;;  %v3955_v26 = vrot.slane %v14865_v42, 3  ;;  %v9950_v2 = vld [vmem:[%s14769_s12 + $0x8] sm:$0x3]  ;;  %v14924_v35 = vpop.permute.xlu1 %4263 }
 0x336   : > { %v9951_v4 = vsel %vm4886_vm8, 0, %v9950_v2  ;;  %18084 = vst [vmem:[#allocation29_spill] sm:$0xff] %v14924_v35 }
 0x337   : > { %v3952_v33 = vsel %vm18014_vm5, %v3949_v9, %v3951_v14  ;;  %v3954_v54 = vsel %vm18014_vm5, %v3951_v14, %v3953_v61  ;;  %v3956_v36 = vsel %vm18014_vm5, %v3953_v61, %v3955_v26  ;;  %9952 = vst [vmem:[%s14769_s12 + $0x8] sm:$0x3] %v9951_v4 }
 0x338   : > { %12083 = vmatmul.mubr.bf16.gmra.mrb[20].mxu0 %v3565_v17  ;;  %v3944_v17 = vsel %vm18014_vm5, %v3941_v51, %v3943_v62 }
 0x339   : > { %12086 = vmatprep.mubr.bf16.mxu0 %v3574_v43  ;;  %v3950_v43 = vsel %vm18014_vm5, %v3947_v8, %v3949_v9  ;;  %v14928_v42 = vpop.permute.xlu1 %4273 }
 0x33a   : > { %18086 = vst [vmem:[#allocation31_spill] sm:$0xff] %v14928_v42 }
 0x33d   : > { %v14932_v45 = vpop.permute.xlu1 %4283 }
 0x33e   : > { %18088 = vst [vmem:[#allocation33_spill] sm:$0xff] %v14932_v45 }
 0x340   : > { %12087 = vmatmul.mubr.bf16.gmra.mrb[24].mxu0 %v3583_v28  ;;  %v14922_v28 = vpop.permute.xlu0 %4258 }
 0x341   : > { %12090 = vmatprep.mubr.bf16.mxu0 %v3592_v44  ;;  %18083 = vst [vmem:[#allocation28_spill] sm:$0xff] %v14922_v28 }
 0x344   : > { %v14926_v40 = vpop.permute.xlu0 %4268 }
 0x345   : > { %18085 = vst [vmem:[#allocation30_spill] sm:$0xff] %v14926_v40 }
 0x348   : > { %12091 = vmatmul.mubr.bf16.gmra.mrb[28].mxu0 %v3601_v6  ;;  %v14930_v44 = vpop.permute.xlu0 %4278 }
 0x349   : > { %12094 = vmatprep.mubr.bf16.mxu0 %v3610_v57  ;;  %18087 = vst [vmem:[#allocation32_spill] sm:$0xff] %v14930_v44 }
 0x34c   : > { %v14934_v46 = vpop.permute.xlu0 %4288 }
 0x34d   : > { %18089 = vst [vmem:[#allocation34_spill] sm:$0xff] %v14934_v46 }
 0x350   : > { %12095 = vmatmul.mubr.bf16.gmra.mrb[32].mxu0 %v3619_v30  ;;  %v14938_v52 = vpop.permute.xlu0 %4298 }
 0x351   : > { %12114 = vmatprep.mubr.bf16.mxu0 %v3922_v39  ;;  %v14936_v49 = vpop.permute.xlu1 %4293  ;;  %18091 = vst [vmem:[#allocation36_spill] sm:$0xff] %v14938_v52 }
 0x352   : > { %18090 = vst [vmem:[#allocation35_spill] sm:$0xff] %v14936_v49 }
 0x354   : > { %v14956_v5 = vpop.permute.xlu0 %4308 }
 0x355   : > { %v14940_v55 = vpop.permute.xlu1 %4303  ;;  %18093 = vst [vmem:[#allocation38_spill] sm:$0xff] %v14956_v5 }
 0x356   : > { %18092 = vst [vmem:[#allocation37_spill] sm:$0xff] %v14940_v55 }
 0x358   : > { %12115 = vmatmul.mubr.bf16.vlgmr.msra.gmra.mrb[0].mxu0 %v3924_v50 }
 0x359   : > { %12118 = vmatprep.mubr.bf16.mxu0 %v3926_v48 }
 0x360   : > { %12119 = vmatmul.mubr.bf16.gmra.mrb[4].mxu0 %v3928_v13 }
 0x361   : > { %12122 = vmatprep.mubr.bf16.mxu0 %v3930_v18 }
 0x368   : > { %12123 = vmatmul.mubr.bf16.gmra.mrb[8].mxu0 %v3932_v16  ;;  %v14958_v3 = vpop.permute.xlu1 %4313 }
 0x369   : > { %12126 = vmatprep.mubr.bf16.mxu0 %v3934_v20  ;;  %18094 = vst [vmem:[#allocation39_spill] sm:$0xff] %v14958_v3  ;;  %v14974_v20 = vpop.permute.xlu0 %4318 }
 0x36a   : > { %18095 = vst [vmem:[#allocation40_spill] sm:$0xff] %v14974_v20 }
 0x370   : > { %12127 = vmatmul.mubr.bf16.gmra.mrb[12].mxu0 %v3936_v23  ;;  %v14980_v23 = vpop.permute.xlu1 %4323 }
 0x371   : > { %12130 = vmatprep.mubr.bf16.mxu0 %v3938_v7  ;;  %18096 = vst [vmem:[#allocation41_spill] sm:$0xff] %v14980_v23 }
 0x378   : > { %12131 = vmatmul.mubr.bf16.gmra.mrb[16].mxu0 %v3940_v32  ;;  %v14995_v61 = vpop.permute.xlu1 %4333 }
 0x379   : > { %12134 = vmatprep.mubr.bf16.mxu0 %v3942_v58  ;;  %18098 = vst [vmem:[#allocation43_spill] sm:$0xff] %v14995_v61 }
 0x380   : > { %12135 = vmatmul.mubr.bf16.gmra.mrb[20].mxu0 %v3944_v17 }
 0x381   : > { %12138 = vmatprep.mubr.bf16.mxu0 %v3946_v31 }
 0x388   : > { %12139 = vmatmul.mubr.bf16.gmra.mrb[24].mxu0 %v3948_v38 }
 0x389   : > { %12142 = vmatprep.mubr.bf16.mxu0 %v3950_v43  ;;  %v14991_v43 = vpop.permute.xlu0 %4328 }
 0x38a   : > { %18097 = vst [vmem:[#allocation42_spill] sm:$0xff] %v14991_v43 }
 0x390   : > { %12143 = vmatmul.mubr.bf16.gmra.mrb[28].mxu0 %v3952_v33 }
 0x391   : > { %12146 = vmatprep.mubr.bf16.mxu0 %v3954_v54 }
 0x398   : > { %12147 = vmatmul.mubr.bf16.gmra.mrb[32].mxu0 %v3956_v36 }
 0x42b   : > { %v14942_v15 = vpop.f32.mrb[0].mxu0 }
 0x42c   : > { %v14944_v60 = vpop.f32.mrb[1].mxu0  ;;  %v4418_v57 = vmul.f32 %v14942_v15, %v14916_v24 }
 0x42d   : > { %v4416_v6 = vmul.f32 %v14914_v19, %v14944_v60  ;;  %v14948_v0 = vpop.f32.mrb[2].mxu0 }
 0x42e   : > { %v14950_v37 = vpop.f32.mrb[3].mxu0  ;;  %v4419_v30 = vmul.f32 %v14948_v0, %v14920_v29  ;;  %v4497_v11 = vmul.f32 %v14942_v15, %v4418_v57 }
 0x42f   : > { %v4417_v12 = vmul.f32 %v14918_v27, %v14950_v37  ;;  %v4495_v53 = vmul.f32 %v4416_v6, %v14944_v60 }
 0x430   : > { %v4498_v13 = vmul.f32 %v14948_v0, %v4419_v30 }
 0x431   : > { %v4452_v39 = vadd.f32 %v4417_v12, %v4416_v6  ;;  %v4496_v10 = vmul.f32 %v4417_v12, %v14950_v37 }
 0x433   : > { %v4453_v50 = vadd.f32 %v4452_v39, %v4418_v57  ;;  %v4531_v48 = vadd.f32 %v4496_v10, %v4495_v53  ;;  %v14965_v59 = vpop.f32.mrb[4].mxu0 }
 0x434   : > { %v14967_v56 = vpop.f32.mrb[5].mxu0  ;;  %v4422_v34 = vmul.f32 %v14965_v59, %v14926_v40 }
 0x435   : > { %v4532_v18 = vadd.f32 %v4531_v48, %v4497_v11  ;;  %v4420_v21 = vmul.f32 %v14922_v28, %v14967_v56  ;;  %v4454_v25 = vadd.f32 %v4453_v50, %v4419_v30  ;;  %v14972_v16 = vpop.f32.mrb[6].mxu0  ;;  %v15012_v11 = vpop.permute.xlu0 %4338 }
 0x436   : > { %v14978_v41 = vpop.f32.mrb[7].mxu0  ;;  %v4423_v62 = vmul.f32 %v14972_v16, %v14928_v42  ;;  %v4501_v31 = vmul.f32 %v14965_v59, %v4422_v34  ;;  %18099 = vst [vmem:[#allocation44_spill] sm:$0xff] %v15012_v11  ;;  %v15014_v50 = vpop.permute.xlu1 %4343 }
 0x437   : > { %v4455_v7 = vadd.f32 %v4454_v25, %v4420_v21  ;;  %v4499_v47 = vmul.f32 %v4420_v21, %v14967_v56  ;;  %v4533_v51 = vadd.f32 %v4532_v18, %v4498_v13  ;;  %v4421_v32 = vmul.f32 %v14924_v35, %v14978_v41  ;;  %18100 = vst [vmem:[#allocation45_spill] sm:$0xff] %v15014_v50 }
 0x438   : > { %v4502_v33 = vmul.f32 %v14972_v16, %v4423_v62 }
 0x439   : > { %v4534_v58 = vadd.f32 %v4533_v51, %v4499_v47  ;;  %v4456_v1 = vadd.f32 %v4455_v7, %v4421_v32  ;;  %v4500_v17 = vmul.f32 %v4421_v32, %v14978_v41 }
 0x43b   : > { %v4457_v8 = vadd.f32 %v4456_v1, %v4422_v34  ;;  %v4535_v9 = vadd.f32 %v4534_v58, %v4500_v17  ;;  %v14989_v38 = vpop.f32.mrb[8].mxu0 }
 0x43c   : > { %v14993_v14 = vpop.f32.mrb[9].mxu0  ;;  %v4426_v2 = vmul.f32 %v14989_v38, %v14934_v46 }
 0x43d   : > { %v4536_v54 = vadd.f32 %v4535_v9, %v4501_v31  ;;  %v4424_v26 = vmul.f32 %v14930_v44, %v14993_v14  ;;  %v4458_v36 = vadd.f32 %v4457_v8, %v4423_v62  ;;  %v15000_v63 = vpop.f32.mrb[10].mxu0  ;;  %v15033_v9 = vpop.permute.xlu0 %4348 }
 0x43e   : > { %v15004_v22 = vpop.f32.mrb[11].mxu0  ;;  %v4427_v30 = vmul.f32 %v15000_v63, %v14936_v49  ;;  %v4505_v48 = vmul.f32 %v14989_v38, %v4426_v2  ;;  %18101 = vst [vmem:[#allocation46_spill] sm:$0xff] %v15033_v9 }
 0x43f   : > { %v4459_v4 = vadd.f32 %v4458_v36, %v4424_v26  ;;  %v4503_v6 = vmul.f32 %v4424_v26, %v14993_v14  ;;  %v4537_v57 = vadd.f32 %v4536_v54, %v4502_v33  ;;  %v4425_v12 = vmul.f32 %v14932_v45, %v15004_v22  ;;  %v15035_v33 = vpop.permute.xlu1 %4353 }
 0x440   : > { %v4506_v34 = vmul.f32 %v15000_v63, %v4427_v30  ;;  %18102 = vst [vmem:[#allocation47_spill] sm:$0xff] %v15035_v33 }
 0x441   : > { %v4538_v53 = vadd.f32 %v4537_v57, %v4503_v6  ;;  %v4460_v39 = vadd.f32 %v4459_v4, %v4425_v12  ;;  %v4504_v10 = vmul.f32 %v4425_v12, %v15004_v22 }
 0x443   : > { %v4461_v13 = vadd.f32 %v4460_v39, %v4426_v2  ;;  %v4539_v18 = vadd.f32 %v4538_v53, %v4504_v10  ;;  %v15017_v21 = vpop.f32.mrb[12].mxu0 }
 0x444   : > { %v15019_v25 = vpop.f32.mrb[13].mxu0  ;;  %v4430_v58 = vmul.f32 %v15017_v21, %v14956_v5 }
 0x445   : > { %v4540_v7 = vadd.f32 %v4539_v18, %v4505_v48  ;;  %v4428_v47 = vmul.f32 %v14938_v52, %v15019_v25  ;;  %v4462_v51 = vadd.f32 %v4461_v13, %v4427_v30  ;;  %v15024_v32 = vpop.f32.mrb[14].mxu0  ;;  %v15050_v18 = vpop.permute.xlu0 %4358 }
 0x446   : > { %v15028_v62 = vpop.f32.mrb[15].mxu0  ;;  %v4431_v26 = vmul.f32 %v15024_v32, %v14958_v3  ;;  %v4509_v4 = vmul.f32 %v15017_v21, %v4430_v58  ;;  %18103 = vst [vmem:[#allocation48_spill] sm:$0xff] %v15050_v18 }
 0x447   : > { %v4463_v1 = vadd.f32 %v4462_v51, %v4428_v47  ;;  %v4507_v17 = vmul.f32 %v4428_v47, %v15019_v25  ;;  %v4541_v31 = vadd.f32 %v4540_v7, %v4506_v34  ;;  %v4429_v8 = vmul.f32 %v14940_v55, %v15028_v62  ;;  %v15056_v47 = vpop.permute.xlu1 %4363 }
 0x448   : > { %v4510_v30 = vmul.f32 %v15024_v32, %v4431_v26  ;;  %18104 = vst [vmem:[#allocation49_spill] sm:$0xff] %v15056_v47 }
 0x449   : > { %v4542_v54 = vadd.f32 %v4541_v31, %v4507_v17  ;;  %v4464_v36 = vadd.f32 %v4463_v1, %v4429_v8  ;;  %v4508_v2 = vmul.f32 %v4429_v8, %v15028_v62 }
 0x44b   : > { %v4465_v6 = vadd.f32 %v4464_v36, %v4430_v58  ;;  %v4543_v57 = vadd.f32 %v4542_v54, %v4508_v2  ;;  %v15041_v12 = vpop.f32.mrb[16].mxu0 }
 0x44c   : > { %v15043_v53 = vpop.f32.mrb[17].mxu0  ;;  %v4434_v34 = vmul.f32 %v15041_v12, %v14991_v43 }
 0x44d   : > { %v4544_v39 = vadd.f32 %v4543_v57, %v4509_v4  ;;  %v4432_v10 = vmul.f32 %v14974_v20, %v15043_v53  ;;  %v4466_v48 = vadd.f32 %v4465_v6, %v4431_v26  ;;  %v15048_v13 = vpop.f32.mrb[18].mxu0  ;;  %v15067_v57 = vpop.permute.xlu0 %4368 }
 0x44e   : > { %v15054_v7 = vpop.f32.mrb[19].mxu0  ;;  %v4435_v8 = vmul.f32 %v15048_v13, %v14995_v61  ;;  %v4513_v36 = vmul.f32 %v15041_v12, %v4434_v34  ;;  %18105 = vst [vmem:[#allocation50_spill] sm:$0xff] %v15067_v57 }
 0x44f   : > { %v4467_v51 = vadd.f32 %v4466_v48, %v4432_v10  ;;  %v4511_v58 = vmul.f32 %v4432_v10, %v15043_v53  ;;  %v4545_v1 = vadd.f32 %v4544_v39, %v4510_v30  ;;  %v4433_v17 = vmul.f32 %v14980_v23, %v15054_v7  ;;  %v15071_v30 = vpop.permute.xlu1 %4373 }
 0x450   : > { %18106 = vst [vmem:[#allocation51_spill] sm:$0xff] %v15071_v30  ;;  %v4514_v39 = vmul.f32 %v15048_v13, %v4435_v8 }
 0x451   : > { %v4546_v31 = vadd.f32 %v4545_v1, %v4511_v58  ;;  %v4468_v54 = vadd.f32 %v4467_v51, %v4433_v17  ;;  %v4512_v26 = vmul.f32 %v4433_v17, %v15054_v7 }
 0x453   : > { %v4469_v2 = vadd.f32 %v4468_v54, %v4434_v34  ;;  %v4547_v4 = vadd.f32 %v4546_v31, %v4512_v26  ;;  %v15065_v6 = vpop.f32.mrb[20].mxu0 }
 0x454   : > { %v15069_v10 = vpop.f32.mrb[21].mxu0  ;;  %v4438_v34 = vmul.f32 %v15065_v6, %v15033_v9 }
 0x455   : > { %v4548_v48 = vadd.f32 %v4547_v4, %v4513_v36  ;;  %v4436_v51 = vmul.f32 %v15012_v11, %v15069_v10  ;;  %v4470_v58 = vadd.f32 %v4469_v2, %v4435_v8  ;;  %v15076_v1 = vpop.f32.mrb[22].mxu0  ;;  %v15088_v2 = vpop.permute.xlu0 %4378 }
 0x456   : > { %v15080_v17 = vpop.f32.mrb[23].mxu0  ;;  %v4439_v36 = vmul.f32 %v15076_v1, %v15035_v33  ;;  %18107 = vst [vmem:[#allocation52_spill] sm:$0xff] %v15088_v2  ;;  %v15090_v11 = vpop.permute.xlu1 %4383  ;;  %v4517_v9 = vmul.f32 %v15065_v6, %v4438_v34 }
 0x457   : > { %v4471_v31 = vadd.f32 %v4470_v58, %v4436_v51  ;;  %v4515_v54 = vmul.f32 %v4436_v51, %v15069_v10  ;;  %v4549_v26 = vadd.f32 %v4548_v48, %v4514_v39  ;;  %v4437_v61 = vmul.f32 %v15014_v50, %v15080_v17  ;;  %18108 = vst [vmem:[#allocation53_spill] sm:$0xff] %v15090_v11 }
 0x458   : > { %v4518_v48 = vmul.f32 %v15076_v1, %v4439_v36 }
 0x459   : > { %v4550_v43 = vadd.f32 %v4549_v26, %v4515_v54  ;;  %v4472_v4 = vadd.f32 %v4471_v31, %v4437_v61  ;;  %v4516_v8 = vmul.f32 %v4437_v61, %v15080_v17  ;;  %v15109_v20 = vpop.permute.xlu0 %4388 }
 0x45a   : > { %18109 = vst [vmem:[#allocation54_spill] sm:$0xff] %v15109_v20 }
 0x45b   : > { %v4473_v58 = vadd.f32 %v4472_v4, %v4438_v34  ;;  %v4551_v23 = vadd.f32 %v4550_v43, %v4516_v8  ;;  %v15093_v51 = vpop.f32.mrb[24].mxu0 }
 0x45c   : > { %v15095_v39 = vpop.f32.mrb[25].mxu0  ;;  %v4442_v33 = vmul.f32 %v15093_v51, %v15067_v57 }
 0x45d   : > { %v4552_v54 = vadd.f32 %v4551_v23, %v4517_v9  ;;  %v4440_v31 = vmul.f32 %v15050_v18, %v15095_v39  ;;  %v4474_v26 = vadd.f32 %v4473_v58, %v4439_v36  ;;  %v15100_v61 = vpop.f32.mrb[26].mxu0  ;;  %v15111_v23 = vpop.permute.xlu1 %4393 }
 0x45e   : > { %v15104_v50 = vpop.f32.mrb[27].mxu0  ;;  %18110 = vst [vmem:[#allocation55_spill] sm:$0xff] %v15111_v23  ;;  %v4443_v36 = vmul.f32 %v15100_v61, %v15071_v30  ;;  %v4521_v18 = vmul.f32 %v15093_v51, %v4442_v33 }
 0x45f   : > { %v4475_v34 = vadd.f32 %v4474_v26, %v4440_v31  ;;  %v4519_v43 = vmul.f32 %v4440_v31, %v15095_v39  ;;  %v4553_v4 = vadd.f32 %v4552_v54, %v4518_v48  ;;  %v4441_v8 = vmul.f32 %v15056_v47, %v15104_v50 }
 0x460   : > { %v4522_v54 = vmul.f32 %v15100_v61, %v4443_v36 }
 0x461   : > { %v4554_v9 = vadd.f32 %v4553_v4, %v4519_v43  ;;  %v4476_v58 = vadd.f32 %v4475_v34, %v4441_v8  ;;  %v4520_v57 = vmul.f32 %v4441_v8, %v15104_v50  ;;  %v15126_v34 = vpop.permute.xlu0 %4398 }
 0x462   : > { %18111 = vst [vmem:[#allocation56_spill] sm:$0xff] %v15126_v34 }
 0x463   : > { %v4477_v26 = vadd.f32 %v4476_v58, %v4442_v33  ;;  %v4555_v3 = vadd.f32 %v4554_v9, %v4520_v57  ;;  %v15117_v31 = vpop.f32.mrb[28].mxu0  ;;  %v15132_v57 = vpop.permute.xlu1 %4403 }
 0x464   : > { %v15119_v48 = vpop.f32.mrb[29].mxu0  ;;  %v4446_v8 = vmul.f32 %v15117_v31, %v15109_v20  ;;  %18112 = vst [vmem:[#allocation57_spill] sm:$0xff] %v15132_v57 }
 0x465   : > { %v4556_v47 = vadd.f32 %v4555_v3, %v4521_v18  ;;  %v4444_v43 = vmul.f32 %v15088_v2, %v15119_v48  ;;  %v4478_v4 = vadd.f32 %v4477_v26, %v4443_v36  ;;  %v15124_v5 = vpop.f32.mrb[30].mxu0 }
 0x466   : > { %v15130_v33 = vpop.f32.mrb[31].mxu0  ;;  %v4447_v36 = vmul.f32 %v15124_v5, %v15111_v23  ;;  %v4525_v20 = vmul.f32 %v15117_v31, %v4446_v8 }
 0x467   : > { %v4479_v9 = vadd.f32 %v4478_v4, %v4444_v43  ;;  %v4523_v58 = vmul.f32 %v4444_v43, %v15119_v48  ;;  %v4557_v30 = vadd.f32 %v4556_v47, %v4522_v54  ;;  %v4445_v3 = vmul.f32 %v15090_v11, %v15130_v33  ;;  %v15143_v4 = vpop.permute.xlu0 %4408  ;;  %v15147_v47 = vpop.permute.xlu1 %4413 }
 0x468   : > { %18113 = vst [vmem:[#allocation58_spill] sm:$0xff] %v15143_v4  ;;  %18114 = vst [vmem:[#allocation59_spill] sm:$0xff] %v15147_v47 }
 0x469   : > { %v4558_v18 = vadd.f32 %v4557_v30, %v4523_v58  ;;  %v4480_v26 = vadd.f32 %v4479_v9, %v4445_v3  ;;  %v4524_v2 = vmul.f32 %v4445_v3, %v15130_v33  ;;  %v4526_v30 = vmul.f32 %v15124_v5, %v4447_v36 }
 0x46b   : > { %v4481_v55 = vadd.f32 %v4480_v26, %v4446_v8  ;;  %v4559_v52 = vadd.f32 %v4558_v18, %v4524_v2  ;;  %v15141_v49 = vpop.f32.mrb[32].mxu0 }
 0x46c   : > { %v15145_v43 = vpop.f32.mrb[33].mxu0  ;;  %v4450_v2 = vmul.f32 %v15141_v49, %v15143_v4 }
 0x46d   : > { %v4560_v54 = vadd.f32 %v4559_v52, %v4525_v20  ;;  %v4448_v9 = vmul.f32 %v15126_v34, %v15145_v43  ;;  %v4482_v58 = vadd.f32 %v4481_v55, %v4447_v36  ;;  %v15152_v3 = vpop.f32.mrb[34].mxu0 }
 0x46e   : > { %v4451_v8 = vmul.f32 %v15152_v3, %v15147_v47  ;;  %v15158_v18 = vpop.f32.mrb[35].mxu0  ;;  %v4529_v45 = vmul.f32 %v15141_v49, %v4450_v2 }
 0x46f   : > { %v4483_v26 = vadd.f32 %v4482_v58, %v4448_v9  ;;  %v4527_v23 = vmul.f32 %v4448_v9, %v15145_v43  ;;  %v4561_v11 = vadd.f32 %v4560_v54, %v4526_v30  ;;  %v4449_v52 = vmul.f32 %v15132_v57, %v15158_v18 }
 0x470   : > { %v4530_v36 = vmul.f32 %v15152_v3, %v4451_v8  ;;  %v4487_v47 = vsel %vm18016_vm3, %v4451_v8, 0.0 }
 0x471   : > { %v4562_v20 = vadd.f32 %v4561_v11, %v4527_v23  ;;  %v4484_v46 = vadd.f32 %v4483_v26, %v4449_v52  ;;  %v4528_v55 = vmul.f32 %v4449_v52, %v15158_v18 }
 0x472   : > { %v4565_v9 = vsel %vm18016_vm3, %v4530_v36, 0.0 }
 0x473   : > { %v4485_v44 = vadd.f32 %v4484_v46, %v4450_v2  ;;  %v4563_v42 = vadd.f32 %v4562_v20, %v4528_v55 }
 0x475   : > { %v4488_v40 = vadd.f32 %v4487_v47, %v4485_v44  ;;  %v4564_v58 = vadd.f32 %v4563_v42, %v4529_v45 }
 0x477   : > { %v4489_v30 = vrot.slane %v4488_v40, 4  ;;  %v4566_v54 = vadd.f32 %v4565_v9, %v4564_v58 }
 0x479   : > { %v4490_v35 = vadd.f32 %v4489_v30, %v4488_v40  ;;  %v4567_v28 = vrot.slane %v4566_v54, 4 }
 0x47b   : > { %v4491_v11 = vrot.slane %v4490_v35, 2  ;;  %v4568_v23 = vadd.f32 %v4567_v28, %v4566_v54  ;;  %v13475_v54 = vld [vmem:[#allocation12 + $0x40] sm:$0xff]  }
 0x47c   : > { %12150 = vmatprep.subr.bf16.mxu1 %v13475_v54 }
 0x47d   : > { %v4492_v26 = vadd.f32 %v4491_v11, %v4490_v35  ;;  %v4569_v52 = vrot.slane %v4568_v23, 2  ;;  %12151 = vmatpush3.bf16.msra.mxu1 %v13475_v54  ;;  %v13476_v11 = vld [vmem:[#allocation12 + $0x48] sm:$0xff]  }
 0x47e   : > { %12152 = vmatprep.subr.bf16.mxu1 %v13476_v11 }
 0x47f   : > { %v4493_v29 = vrot.slane %v4492_v26, 1  ;;  %v4570_v24 = vadd.f32 %v4569_v52, %v4568_v23 }
 0x481   : > { %v4494_v27 = vadd.f32 %v4493_v29, %v4492_v26  ;;  %v4571_v19 = vrot.slane %v4570_v24, 1  ;;  %v15246_v26 = vld [vmem:[#allocation9] ss:$0 sm:$0xff]  ;;  %12153 = vmatpush3.bf16.msra.mxu1 %v13476_v11 }
 0x483   : > { %v4572_v46 = vadd.f32 %v4571_v19, %v4570_v24  ;;  %v15168_v2 = vmul.f32 0.00390625, %v4494_v27 }
 0x485   : > { %v4574_v8 = vmul.f32 0.00390625, %v4572_v46  ;;  %v4575_v42 = vmul.f32 %v15168_v2, %v15168_v2  ;;  %v4610_v44 = vsub.f32 %v15145_v43, %v15168_v2  ;;  %v4611_v40 = vsub.f32 %v15158_v18, %v15168_v2 }
 0x486   : > { %v4612_v28 = vsub.f32 %v15141_v49, %v15168_v2  ;;  %v4578_v29 = vsub.f32 %v14944_v60, %v15168_v2  ;;  %v4579_v19 = vsub.f32 %v14950_v37, %v15168_v2  ;;  %v4580_v24 = vsub.f32 %v14942_v15, %v15168_v2 }
 0x487   : > { %v4576_v27 = vsub.f32 %v4574_v8, %v4575_v42  ;;  %v4581_v35 = vsub.f32 %v14948_v0, %v15168_v2  ;;  %v4582_v45 = vsub.f32 %v14967_v56, %v15168_v2  ;;  %v4583_v43 = vsub.f32 %v14978_v41, %v15168_v2 }
 0x488   : > { %v4584_v49 = vsub.f32 %v14965_v59, %v15168_v2  ;;  %v4585_v60 = vsub.f32 %v14972_v16, %v15168_v2  ;;  %v4586_v37 = vsub.f32 %v14993_v14, %v15168_v2  ;;  %v4587_v15 = vsub.f32 %v15004_v22, %v15168_v2 }
 0x489   : > { %v4577_v47 = vmax.f32 %v4576_v27, 0.0  ;;  %v4588_v0 = vsub.f32 %v14989_v38, %v15168_v2  ;;  %v4589_v56 = vsub.f32 %v15000_v63, %v15168_v2  ;;  %v4590_v41 = vsub.f32 %v15019_v25, %v15168_v2  ;;  %v15254_v27 = vld [vmem:[#allocation11] ss:$0 sm:$0xff] }
 0x48a   : > { %v4591_v59 = vsub.f32 %v15028_v62, %v15168_v2  ;;  %v4592_v16 = vsub.f32 %v15017_v21, %v15168_v2  ;;  %v4593_v14 = vsub.f32 %v15024_v32, %v15168_v2  ;;  %v4594_v22 = vsub.f32 %v15043_v53, %v15168_v2 }
 0x48b   : > { %v4614_v18 = vadd.f32 1e-05, %v4577_v47  ;;  %v4595_v38 = vsub.f32 %v15054_v7, %v15168_v2  ;;  %v4596_v63 = vsub.f32 %v15041_v12, %v15168_v2  ;;  %v4597_v25 = vsub.f32 %v15048_v13, %v15168_v2 }
 0x48c   : > { %v4598_v62 = vsub.f32 %v15069_v10, %v15168_v2  ;;  %v4599_v21 = vsub.f32 %v15080_v17, %v15168_v2  ;;  %v4600_v32 = vsub.f32 %v15065_v6, %v15168_v2  ;;  %v4601_v53 = vsub.f32 %v15076_v1, %v15168_v2 }
 0x48d   : > { %13626 = vrsqrt.f32 %v4614_v18  ;;  %v4602_v7 = vsub.f32 %v15095_v39, %v15168_v2  ;;  %v4603_v12 = vsub.f32 %v15104_v50, %v15168_v2  ;;  %v4604_v13 = vsub.f32 %v15093_v51, %v15168_v2 }
 0x48e   : > { %v4605_v20 = vsub.f32 %v15100_v61, %v15168_v2  ;;  %v4606_v55 = vsub.f32 %v15119_v48, %v15168_v2  ;;  %v4607_v36 = vsub.f32 %v15130_v33, %v15168_v2  ;;  %v4608_v58 = vsub.f32 %v15117_v31, %v15168_v2 }
 0x48f   : > { %v4609_v9 = vsub.f32 %v15124_v5, %v15168_v2 }
 0x497   : > { %v15244_v23 = vpop.eup %13626 }
 0x498   : > { %v4648_v52 = vmul.f32 %v15244_v23, %v4610_v44  ;;  %v4649_v46 = vmul.f32 %v15244_v23, %v4611_v40  ;;  %v4650_v8 = vmul.f32 %v15244_v23, %v4612_v28  ;;  %v15252_v42 = vmul.f32 %v15244_v23, %v4578_v29 }
 0x499   : > { %v15257_v47 = vmul.f32 %v15244_v23, %v4579_v19  ;;  %v15260_v18 = vmul.f32 %v15244_v23, %v4580_v24  ;;  %v15263_v54 = vmul.f32 %v15244_v23, %v4581_v35  ;;  %v15266_v44 = vmul.f32 %v15244_v23, %v4582_v45  ;;  %v13477_v19 = vld [vmem:[#allocation12 + $0x50] sm:$0xff]  }
 0x49a   : > { %v4691_v40 = vmul.f32 %v15246_v26, %v4648_v52  ;;  %v4692_v28 = vmul.f32 %v15246_v26, %v4649_v46  ;;  %v4693_v29 = vmul.f32 %v15246_v26, %v4650_v8  ;;  %v15272_v30 = vmul.f32 %v15244_v23, %v4583_v43  ;;  %12154 = vmatprep.subr.bf16.mxu1 %v13477_v19 }
 0x49b   : > { %v15275_v24 = vmul.f32 %v15244_v23, %v4584_v49  ;;  %v15278_v35 = vmul.f32 %v15244_v23, %v4585_v60  ;;  %v15281_v45 = vmul.f32 %v15244_v23, %v4586_v37  ;;  %v15284_v11 = vmul.f32 %v15244_v23, %v4587_v15  ;;  %12155 = vmatpush3.bf16.msra.mxu1 %v13477_v19 }
 0x49c   : > { %v4734_v52 = vadd.f32 %v15254_v27, %v4691_v40  ;;  %v4735_v46 = vadd.f32 %v15254_v27, %v4692_v28  ;;  %v4736_v43 = vadd.f32 %v15254_v27, %v4693_v29  ;;  %v15290_v8 = vmul.f32 %v15244_v23, %v4588_v0 }
 0x49d   : > { %v15293_v49 = vmul.f32 %v15244_v23, %v4589_v56  ;;  %v15296_v60 = vmul.f32 %v15244_v23, %v4590_v41  ;;  %v15299_v37 = vmul.f32 %v15244_v23, %v4591_v59  ;;  %v15302_v15 = vmul.f32 %v15244_v23, %v4592_v16  ;;  %v13478_v56 = vld [vmem:[#allocation12 + $0x58] sm:$0xff]  }
 0x49e   : > { %v4770_v40 = vmul.f32 %v4734_v52, %v15126_v34  ;;  %v4771_v28 = vmul.f32 %v4735_v46, %v15132_v57  ;;  %v4772_v0 = vmul.f32 %v4736_v43, %v15143_v4  ;;  %v15308_v29 = vmul.f32 %v15244_v23, %v4593_v14  ;;  %12156 = vmatprep.subr.bf16.mxu1 %v13478_v56 }
 0x49f   : > { %v15311_v41 = vmul.f32 %v15244_v23, %v4594_v22  ;;  %v15314_v59 = vmul.f32 %v15244_v23, %v4595_v38  ;;  %v15317_v16 = vmul.f32 %v15244_v23, %v4596_v63  ;;  %v15320_v19 = vmul.f32 %v15244_v23, %v4597_v25  ;;  %12157 = vmatpush3.bf16.msra.mxu1 %v13478_v56 }
 0x4a0   : > { %vm4806_vm10 = vcmp.ge.f32.partialorder %v4770_v40, 0.0  ;;  %vm4807_vm11 = vcmp.ge.f32.partialorder %v4771_v28, 0.0  ;;  %vm4808_vm12 = vcmp.ge.f32.partialorder %v4772_v0, 0.0  ;;  %v4842_v52 = vmul.f32 0.01, %v4770_v40 }
 0x4a1   : > { %v4843_v14 = vmul.f32 0.01, %v4771_v28  ;;  %v4844_v46 = vmul.f32 0.01, %v4772_v0  ;;  %v15326_v22 = vmul.f32 %v15244_v23, %v4598_v62  ;;  %v15332_v38 = vmul.f32 %v15244_v23, %v4599_v21  ;;  %v13479_v62 = vld [vmem:[#allocation12 + $0x60] sm:$0xff]  }
 0x4a2   : > { %v4878_v63 = vsel %vm4806_vm10, %v4770_v40, %v4842_v52  ;;  %v15338_v25 = vmul.f32 %v15244_v23, %v4600_v32  ;;  %v15344_v10 = vmul.f32 %v15244_v23, %v4601_v53  ;;  %v15350_v17 = vmul.f32 %v15244_v23, %v4602_v7  ;;  %12158 = vmatprep.subr.bf16.mxu1 %v13479_v62 }
 0x4a3   : > { %v4879_v21 = vsel %vm4807_vm11, %v4771_v28, %v4843_v14  ;;  %v4880_v43 = vsel %vm4808_vm12, %v4772_v0, %v4844_v46  ;;  %v11089_v40 = vpack.c.bf16 %v4878_v63, %v4878_v63  ;;  %v15356_v6 = vmul.f32 %v15244_v23, %v4603_v12  ;;  %12159 = vmatpush3.bf16.msra.mxu1 %v13479_v62  ;;  %v13480_v0 = vld [vmem:[#allocation12 + $0x68] sm:$0xff]  }
 0x4a4   : > { %v11090_v1 = vpack.c.bf16 %v4879_v21, %v4879_v21  ;;  %v11091_v32 = vpack.c.bf16 %v4880_v43, %v4880_v43  ;;  %v15362_v39 = vmul.f32 %v15244_v23, %v4604_v13  ;;  %v15368_v53 = vmul.f32 %v15244_v23, %v4605_v20  ;;  %12160 = vmatprep.subr.bf16.mxu1 %v13480_v0 }
 0x4a5   : > { %v5320_v7 = vshrl.u32 %v11089_v40, 16  ;;  %v5323_v50 = vshll.u32 %v11089_v40, 16  ;;  %v15374_v12 = vmul.f32 %v15244_v23, %v4606_v55  ;;  %v15380_v51 = vmul.f32 %v15244_v23, %v4607_v36 }
 0x4a6   : > { %v5330_v61 = vshrl.u32 %v11090_v1, 16  ;;  %v5333_v13 = vshll.u32 %v11090_v1, 16  ;;  %v5340_v20 = vshrl.u32 %v11091_v32, 16  ;;  %v5343_v28 = vshll.u32 %v11091_v32, 16 }
 0x4a7   : > { %v5322_v56 = vrot.slane %v5320_v7, 6  ;;  %v5325_v52 = vrot.slane %v5323_v50, 7  ;;  %v4646_v48 = vmul.f32 %v15244_v23, %v4608_v58  ;;  %v4647_v33 = vmul.f32 %v15244_v23, %v4609_v9  ;;  %12161 = vmatpush3.bf16.msra.mxu1 %v13480_v0 }
 0x4a8   : > { %v5332_v55 = vrot.slane %v5330_v61, 6  ;;  %v5335_v36 = vrot.slane %v5333_v13, 7  ;;  %v5342_v14 = vrot.slane %v5340_v20, 6  ;;  %v5345_v46 = vrot.slane %v5343_v28, 7 }
 0x4a9   : > { %v15390_v63 = vor.u32 %v5325_v52, %v5322_v56  ;;  %v18116_v62 = vsub.f32 %v15152_v3, %v15168_v2  ;;  %v4659_v31 = vmul.f32 %v15246_v26, %v15252_v42  ;;  %v4660_v5 = vmul.f32 %v15246_v26, %v15257_v47  ;;  %v13481_v2 = vld [vmem:[#allocation12 + $0x70] sm:$0xff]  }
 0x4aa   : > { %v18117_v58 = vmov 0  ;;  %v5336_v9 = vor.u32 %v5335_v36, %v5332_v55  ;;  %v4661_v43 = vmul.f32 %v15246_v26, %v15260_v18  ;;  %v4662_v3 = vmul.f32 %v15246_v26, %v15263_v54  ;;  %12162 = vmatprep.subr.bf16.mxu1 %v13481_v2 }
 0x4ab   : > { %18115 = vst [vmem:[#allocation60_spill] sm:$0xff] %v15390_v63  ;;  %v4651_v21 = vmul.f32 %v15244_v23, %v18116_v62  ;;  %v18118_v58 = vsel %vm15402_vm13, 4294967295, %v18117_v58  ;;  %v13482_v23 = vld [vmem:[#allocation12 + $0x78] sm:$0xff]   ;;  %v5328_v42 = vrot.slane %v15390_v63, 4  ;;  %v4663_v47 = vmul.f32 %v15246_v26, %v15266_v44  ;;  %12163 = vmatpush3.bf16.msra.mxu1 %v13481_v2 }
 0x4ac   : > { %18119 = vst [vmem:[#allocation61_spill] sm:$0xff] %v18118_v58  ;;  %v4664_v40 = vmul.f32 %v15246_v26, %v15272_v30  ;;  %v4665_v1 = vmul.f32 %v15246_v26, %v15275_v24  ;;  %v5338_v32 = vrot.slane %v5336_v9, 4  ;;  %v15417_v7 = vor.u32 %v5345_v46, %v5342_v14  ;;  %12164 = vmatprep.subr.bf16.mxu1 %v13482_v23 }
 0x4ad   : > { %v4666_v18 = vmul.f32 %v15246_v26, %v15278_v35  ;;  %v4667_v54 = vmul.f32 %v15246_v26, %v15281_v45  ;;  %v5337_v50 = vsel %vm15402_vm13, %v5328_v42, %v5336_v9  ;;  %v4668_v44 = vmul.f32 %v15246_v26, %v15284_v11 }
 0x4ae   : > { %18120 = vst [vmem:[#allocation62_spill] sm:$0xff] %v15417_v7  ;;  %v4669_v30 = vmul.f32 %v15246_v26, %v15290_v8  ;;  %v4670_v24 = vmul.f32 %v15246_v26, %v15293_v49  ;;  %v5347_v35 = vsel %vm15402_vm13, %v5338_v32, %v15417_v7  ;;  %5434 = vst [vmem:[#allocation2 + $0x8c] sm:$0xf] %v5337_v50  ;;  %v13486_v8 = vld [vmem:[#allocation12] sm:$0xff]  }
 0x4af   : > { %v4671_v45 = vmul.f32 %v15246_v26, %v15296_v60  ;;  %v4672_v61 = vmul.f32 %v15246_v26, %v15299_v37  ;;  %v4673_v11 = vmul.f32 %v15246_v26, %v15302_v15  ;;  %5435 = vst [vmem:[#allocation2 + $0x90] sm:$0xf] %v5347_v35  ;;  %v4674_v49 = vmul.f32 %v15246_v26, %v15308_v29 }
 0x4b0   : > { %v4675_v13 = vmul.f32 %v15246_v26, %v15311_v41  ;;  %v4676_v20 = vmul.f32 %v15246_v26, %v15314_v59  ;;  %v4677_v60 = vmul.f32 %v15246_v26, %v15317_v16  ;;  %v4678_v37 = vmul.f32 %v15246_v26, %v15320_v19  ;;  %12165 = vmatpush3.bf16.msra.mxu1 %v13482_v23 }
 0x4b1   : > { %v4679_v15 = vmul.f32 %v15246_v26, %v15326_v22  ;;  %v4680_v28 = vmul.f32 %v15246_v26, %v15332_v38  ;;  %v4681_v29 = vmul.f32 %v15246_v26, %v15338_v25  ;;  %v4682_v41 = vmul.f32 %v15246_v26, %v15344_v10  ;;  %12202 = vmatprep.subr.bf16.mxu1 %v13486_v8 }
 0x4b2   : > { %v4683_v59 = vmul.f32 %v15246_v26, %v15350_v17  ;;  %v4684_v16 = vmul.f32 %v15246_v26, %v15356_v6  ;;  %v4685_v19 = vmul.f32 %v15246_v26, %v15362_v39  ;;  %v4686_v22 = vmul.f32 %v15246_v26, %v15368_v53 }
 0x4b3   : > { %v4687_v38 = vmul.f32 %v15246_v26, %v15374_v12  ;;  %v4688_v25 = vmul.f32 %v15246_v26, %v15380_v51  ;;  %v4689_v10 = vmul.f32 %v15246_v26, %v4646_v48  ;;  %v4690_v17 = vmul.f32 %v15246_v26, %v4647_v33 }
 0x4b4   : > { %v4694_v6 = vmul.f32 %v15246_v26, %v4651_v21  ;;  %v4702_v0 = vadd.f32 %v15254_v27, %v4659_v31  ;;  %v4703_v39 = vadd.f32 %v15254_v27, %v4660_v5  ;;  %v4704_v56 = vadd.f32 %v15254_v27, %v4661_v43 }
 0x4b5   : > { %v4705_v53 = vadd.f32 %v15254_v27, %v4662_v3  ;;  %v4706_v12 = vadd.f32 %v15254_v27, %v4663_v47  ;;  %v4707_v52 = vadd.f32 %v15254_v27, %v4664_v40  ;;  %v4708_v51 = vadd.f32 %v15254_v27, %v4665_v1 }
 0x4b6   : > { %v4709_v48 = vadd.f32 %v15254_v27, %v4666_v18  ;;  %v4710_v33 = vadd.f32 %v15254_v27, %v4667_v54  ;;  %v4711_v26 = vadd.f32 %v15254_v27, %v4668_v44  ;;  %v4712_v55 = vadd.f32 %v15254_v27, %v4669_v30 }
 0x4b7   : > { %v4713_v36 = vadd.f32 %v15254_v27, %v4670_v24  ;;  %v4714_v14 = vadd.f32 %v15254_v27, %v4671_v45  ;;  %v4715_v46 = vadd.f32 %v15254_v27, %v4672_v61  ;;  %v4716_v62 = vadd.f32 %v15254_v27, %v4673_v11  ;;  %v18121_v24 = vld [vmem:[#allocation24_spill] sm:$0xff]  ;;  %v18122_v45 = vld [vmem:[#allocation26_spill] sm:$0xff]  ;;  %v18123_v11 = vld [vmem:[#allocation25_spill] sm:$0xff] }
 0x4b8   : > { %v4717_v21 = vadd.f32 %v15254_v27, %v4674_v49  ;;  %v4718_v31 = vadd.f32 %v15254_v27, %v4675_v13  ;;  %v4719_v5 = vadd.f32 %v15254_v27, %v4676_v20  ;;  %v4720_v9 = vadd.f32 %v15254_v27, %v4677_v60  ;;  %v18124_v49 = vld [vmem:[#allocation27_spill] sm:$0xff]  ;;  %v18125_v20 = vld [vmem:[#allocation28_spill] sm:$0xff] }
 0x4b9   : > { %v4721_v43 = vadd.f32 %v15254_v27, %v4678_v37  ;;  %v4722_v3 = vadd.f32 %v15254_v27, %v4679_v15  ;;  %v4723_v2 = vadd.f32 %v15254_v27, %v4680_v28  ;;  %v4724_v23 = vadd.f32 %v15254_v27, %v4681_v29  ;;  %v18126_v37 = vld [vmem:[#allocation29_spill] sm:$0xff]  ;;  %v18127_v28 = vld [vmem:[#allocation30_spill] sm:$0xff]  ;;  %v18128_v29 = vld [vmem:[#allocation31_spill] sm:$0xff] }
 0x4ba   : > { %v4725_v42 = vadd.f32 %v15254_v27, %v4682_v41  ;;  %v4726_v47 = vadd.f32 %v15254_v27, %v4683_v59  ;;  %v4727_v40 = vadd.f32 %v15254_v27, %v4684_v16  ;;  %v4728_v1 = vadd.f32 %v15254_v27, %v4685_v19  ;;  %v18129_v59 = vld [vmem:[#allocation32_spill] sm:$0xff]  ;;  %v18130_v19 = vld [vmem:[#allocation33_spill] sm:$0xff] }
 0x4bb   : > { %v4729_v32 = vadd.f32 %v15254_v27, %v4686_v22  ;;  %v4730_v18 = vadd.f32 %v15254_v27, %v4687_v38  ;;  %v4731_v54 = vadd.f32 %v15254_v27, %v4688_v25  ;;  %v4732_v50 = vadd.f32 %v15254_v27, %v4689_v10  ;;  %v18131_v38 = vld [vmem:[#allocation34_spill] sm:$0xff]  ;;  %v18132_v10 = vld [vmem:[#allocation35_spill] sm:$0xff] }
 0x4bc   : > { %v4733_v44 = vadd.f32 %v15254_v27, %v4690_v17  ;;  %v4737_v30 = vadd.f32 %v15254_v27, %v4694_v6  ;;  %v15507_v35 = vmul.f32 %v4702_v0, %v18121_v24  ;;  %v15510_v61 = vmul.f32 %v4703_v39, %v18122_v45  ;;  %v18133_v6 = vld [vmem:[#allocation36_spill] sm:$0xff]  ;;  %v18134_v39 = vld [vmem:[#allocation37_spill] sm:$0xff] }
 0x4bd   : > { %v15513_v8 = vmul.f32 %v4704_v56, %v18123_v11  ;;  %v15516_v13 = vmul.f32 %v4705_v53, %v18124_v49  ;;  %v15519_v60 = vmul.f32 %v4706_v12, %v18125_v20  ;;  %v15522_v15 = vmul.f32 %v4707_v52, %v18126_v37  ;;  %v18135_v53 = vld [vmem:[#allocation38_spill] sm:$0xff]  ;;  %v18136_v52 = vld [vmem:[#allocation39_spill] sm:$0xff] }
 0x4be   : > { %v15525_v27 = vmul.f32 %v4708_v51, %v18127_v28  ;;  %v15528_v41 = vmul.f32 %v4709_v48, %v18128_v29  ;;  %v15531_v16 = vmul.f32 %v4710_v33, %v18129_v59  ;;  %v15534_v22 = vmul.f32 %v4711_v26, %v18130_v19  ;;  %v18137_v48 = vld [vmem:[#allocation40_spill] sm:$0xff]  ;;  %v18138_v26 = vld [vmem:[#allocation41_spill] sm:$0xff] }
 0x4bf   : > { %v15537_v25 = vmul.f32 %v4712_v55, %v18131_v38  ;;  %v15540_v17 = vmul.f32 %v4713_v36, %v18132_v10  ;;  %v15543_v0 = vmul.f32 %v4714_v14, %v18133_v6  ;;  %v15546_v56 = vmul.f32 %v4715_v46, %v18134_v39  ;;  %v18139_v36 = vld [vmem:[#allocation42_spill] sm:$0xff]  ;;  %v18140_v14 = vld [vmem:[#allocation43_spill] sm:$0xff]  ;;  %v18141_v46 = vld [vmem:[#allocation44_spill] sm:$0xff] }
 0x4c0   : > { %v15549_v12 = vmul.f32 %v4716_v62, %v18135_v53  ;;  %v15552_v51 = vmul.f32 %v4717_v21, %v18136_v52  ;;  %v15555_v33 = vmul.f32 %v4718_v31, %v18137_v48  ;;  %v15558_v55 = vmul.f32 %v4719_v5, %v18138_v26  ;;  %v18142_v62 = vld [vmem:[#allocation45_spill] sm:$0xff]  ;;  %v18143_v21 = vld [vmem:[#allocation46_spill] sm:$0xff]  ;;  %v18144_v31 = vld [vmem:[#allocation47_spill] sm:$0xff] }
 0x4c1   : > { %v15561_v57 = vmul.f32 %v4720_v9, %v18139_v36  ;;  %v15564_v4 = vmul.f32 %v4721_v43, %v18140_v14  ;;  %v15567_v34 = vmul.f32 %v4722_v3, %v18141_v46  ;;  %v15570_v39 = vmul.f32 %v4723_v2, %v18142_v62  ;;  %v18145_v5 = vld [vmem:[#allocation48_spill] sm:$0xff]  ;;  %v18146_v9 = vld [vmem:[#allocation49_spill] sm:$0xff]  ;;  %v18147_v43 = vld [vmem:[#allocation50_spill] sm:$0xff] }
 0x4c2   : > { %v15573_v52 = vmul.f32 %v4724_v23, %v18143_v21  ;;  %v15576_v48 = vmul.f32 %v4725_v42, %v18144_v31  ;;  %v15579_v26 = vmul.f32 %v4726_v47, %v18145_v5  ;;  %v15582_v36 = vmul.f32 %v4727_v40, %v18146_v9  ;;  %v18148_v3 = vld [vmem:[#allocation51_spill] sm:$0xff]  ;;  %v18149_v2 = vld [vmem:[#allocation52_spill] sm:$0xff]  ;;  %v18150_v23 = vld [vmem:[#allocation53_spill] sm:$0xff] }
 0x4c3   : > { %v15585_v14 = vmul.f32 %v4728_v1, %v18147_v43  ;;  %v15588_v46 = vmul.f32 %v4729_v32, %v18148_v3  ;;  %v15591_v62 = vmul.f32 %v4730_v18, %v18149_v2  ;;  %v15594_v21 = vmul.f32 %v4731_v54, %v18150_v23  ;;  %v18151_v42 = vld [vmem:[#allocation54_spill] sm:$0xff]  ;;  %v18152_v47 = vld [vmem:[#allocation55_spill] sm:$0xff]  ;;  %v5451_v1 = vld [vmem:[#allocation2] sm:$0xf] }
 0x4c4   : > { %v15597_v31 = vmul.f32 %v4732_v50, %v18151_v42  ;;  %v15600_v5 = vmul.f32 %v4733_v44, %v18152_v47  ;;  %v18153_v40 = vld [vmem:[#allocation59_spill] sm:$0xff]  ;;  %vm4774_vm14 = vcmp.ge.f32.partialorder %v15507_v35, 0.0  ;;  %vm4775_vm15 = vcmp.ge.f32.partialorder %v15510_v61, 0.0  ;;  %v5452_v32 = vld [vmem:[#allocation2 + $0x4] sm:$0xf] }
 0x4c5   : > { %v15603_v9 = vmul.f32 %v4737_v30, %v18153_v40  ;;  %vm4776_vm6 = vcmp.ge.f32.partialorder %v15513_v8, 0.0  ;;  %vm4777_vm7 = vcmp.ge.f32.partialorder %v15516_v13, 0.0  ;;  %vm4778_vm8 = vcmp.ge.f32.partialorder %v15519_v60, 0.0 }
 0x4c6   : > { %vm4779_vm9 = vcmp.ge.f32.partialorder %v15522_v15, 0.0  ;;  %vm4780_vm10 = vcmp.ge.f32.partialorder %v15525_v27, 0.0  ;;  %vm4782_vm12 = vcmp.ge.f32.partialorder %v15531_v16, 0.0  ;;  %vm4783_vm2 = vcmp.ge.f32.partialorder %v15534_v22, 0.0 }
 0x4c7   : > { %v4810_v18 = vmul.f32 0.01, %v15507_v35  ;;  %v4811_v54 = vmul.f32 0.01, %v15510_v61  ;;  %vm4788_vm0 = vcmp.ge.f32.partialorder %v15549_v12, 0.0  ;;  %v15626_v40 = vcombine.low %v5451_v1, %v5452_v32 }
 0x4c8   : > { %v4812_v50 = vmul.f32 0.01, %v15513_v8  ;;  %v4813_v44 = vmul.f32 0.01, %v15516_v13  ;;  %v4814_v30 = vmul.f32 0.01, %v15519_v60 }
 0x4c9   : > { %18154 = vst [vmem:[#allocation63_spill] sm:$0xff] %v15626_v40  ;;  %vm4793_vm3 = vcmp.ge.f32.partialorder %v15564_v4, 0.0  ;;  %v4815_v47 = vmul.f32 0.01, %v15522_v15  ;;  %v4816_v23 = vmul.f32 0.01, %v15525_v27  ;;  %v15638_v2 = vsel %vm4774_vm14, %v15507_v35, %v4810_v18 }
 0x4ca   : > { %v4817_v42 = vmul.f32 0.01, %v15528_v41  ;;  %vm4797_vm4 = vcmp.ge.f32.partialorder %v15576_v48, 0.0  ;;  %v4818_v1 = vmul.f32 0.01, %v15531_v16  ;;  %v15650_v43 = vsel %vm4775_vm15, %v15510_v61, %v4811_v54 }
 0x4cb   : > { %v4819_v32 = vmul.f32 0.01, %v15534_v22  ;;  %v4820_v3 = vmul.f32 0.01, %v15537_v25  ;;  %vm4801_vm1 = vcmp.ge.f32.partialorder %v15588_v46, 0.0  ;;  %v4848_v6 = vsel %vm4776_vm6, %v15513_v8, %v4812_v50 }
 0x4cc   : > { %v4821_v35 = vmul.f32 0.01, %v15540_v17  ;;  %v4822_v18 = vmul.f32 0.01, %v15543_v0  ;;  %v4823_v53 = vmul.f32 0.01, %v15546_v56  ;;  %v4849_v19 = vsel %vm4777_vm7, %v15516_v13, %v4813_v44 }
 0x4cd   : > { %vm4802_vm15 = vcmp.ge.f32.partialorder %v15591_v62, 0.0  ;;  %vm4803_vm14 = vcmp.ge.f32.partialorder %v15594_v21, 0.0  ;;  %vm4804_vm11 = vcmp.ge.f32.partialorder %v15597_v31, 0.0  ;;  %vm4805_vm5 = vcmp.ge.f32.partialorder %v15600_v5, 0.0 }
 0x4ce   : > { %v4824_v61 = vmul.f32 0.01, %v15549_v12  ;;  %v4825_v54 = vmul.f32 0.01, %v15552_v51  ;;  %v4826_v10 = vmul.f32 0.01, %v15555_v33  ;;  %v4850_v59 = vsel %vm4778_vm8, %v15519_v60, %v4814_v30 }
 0x4cf   : > { %vm4809_vm6 = vcmp.ge.f32.partialorder %v15603_v9, 0.0  ;;  %v4827_v8 = vmul.f32 0.01, %v15558_v55  ;;  %v4828_v50 = vmul.f32 0.01, %v15561_v57  ;;  %v4851_v13 = vsel %vm4779_vm9, %v15522_v15, %v4815_v47 }
 0x4d0   : > { %v4829_v38 = vmul.f32 0.01, %v15564_v4  ;;  %v4830_v29 = vmul.f32 0.01, %v15567_v34  ;;  %v4831_v37 = vmul.f32 0.01, %v15570_v39  ;;  %v4852_v60 = vsel %vm4780_vm10, %v15525_v27, %v4816_v23 }
 0x4d1   : > { %v4832_v28 = vmul.f32 0.01, %v15573_v52  ;;  %v4833_v44 = vmul.f32 0.01, %v15576_v48  ;;  %v4834_v20 = vmul.f32 0.01, %v15579_v26  ;;  %v4854_v27 = vsel %vm4782_vm12, %v15531_v16, %v4818_v1 }
 0x4d2   : > { %v4835_v49 = vmul.f32 0.01, %v15582_v36  ;;  %v4836_v30 = vmul.f32 0.01, %v15585_v14  ;;  %v4837_v45 = vmul.f32 0.01, %v15588_v46  ;;  %v4855_v40 = vsel %vm4783_vm2, %v15534_v22, %v4819_v32 }
 0x4d3   : > { %v4838_v11 = vmul.f32 0.01, %v15591_v62  ;;  %vm18155_vm7 = vcmp.ge.f32.partialorder %v15528_v41, 0.0  ;;  %v4839_v47 = vmul.f32 0.01, %v15594_v21  ;;  %vm18156_vm8 = vcmp.ge.f32.partialorder %v15537_v25, 0.0 }
 0x4d4   : > { %v4853_v15 = vsel %vm18155_vm7, %v15528_v41, %v4817_v42  ;;  %v4840_v24 = vmul.f32 0.01, %v15597_v31  ;;  %v4841_v63 = vmul.f32 0.01, %v15600_v5  ;;  %v4845_v23 = vmul.f32 0.01, %v15603_v9 }
 0x4d5   : > { %v4856_v41 = vsel %vm18156_vm8, %v15537_v25, %v4820_v3  ;;  %vm18157_vm9 = vcmp.ge.f32.partialorder %v15540_v17, 0.0  ;;  %vm18158_vm10 = vcmp.ge.f32.partialorder %v15543_v0, 0.0  ;;  %vm18159_vm12 = vcmp.ge.f32.partialorder %v15546_v56, 0.0 }
 0x4d6   : > { %v4857_v42 = vsel %vm18157_vm9, %v15540_v17, %v4821_v35  ;;  %v4858_v7 = vsel %vm18158_vm10, %v15543_v0, %v4822_v18  ;;  %v4859_v16 = vsel %vm18159_vm12, %v15546_v56, %v4823_v53  ;;  %v4860_v22 = vsel %vm4788_vm0, %v15549_v12, %v4824_v61 }
 0x4d7   : > { %vm18160_vm2 = vcmp.ge.f32.partialorder %v15552_v51, 0.0  ;;  %vm18161_vm7 = vcmp.ge.f32.partialorder %v15555_v33, 0.0  ;;  %vm18162_vm8 = vcmp.ge.f32.partialorder %v15558_v55, 0.0  ;;  %vm18163_vm9 = vcmp.ge.f32.partialorder %v15561_v57, 0.0 }
 0x4d8   : > { %v4861_v25 = vsel %vm18160_vm2, %v15552_v51, %v4825_v54  ;;  %v4862_v17 = vsel %vm18161_vm7, %v15555_v33, %v4826_v10  ;;  %v4863_v0 = vsel %vm18162_vm8, %v15558_v55, %v4827_v8  ;;  %v4864_v56 = vsel %vm18163_vm9, %v15561_v57, %v4828_v50 }
 0x4d9   : > { %v4865_v53 = vsel %vm4793_vm3, %v15564_v4, %v4829_v38  ;;  %vm18164_vm0 = vcmp.ge.f32.partialorder %v15567_v34, 0.0  ;;  %vm18165_vm10 = vcmp.ge.f32.partialorder %v15570_v39, 0.0  ;;  %vm18166_vm12 = vcmp.ge.f32.partialorder %v15573_v52, 0.0 }
 0x4da   : > { %v4866_v12 = vsel %vm18164_vm0, %v15567_v34, %v4830_v29  ;;  %v4867_v10 = vsel %vm18165_vm10, %v15570_v39, %v4831_v37  ;;  %v4868_v51 = vsel %vm18166_vm12, %v15573_v52, %v4832_v28  ;;  %v4869_v57 = vsel %vm4797_vm4, %v15576_v48, %v4833_v44 }
 0x4db   : > { %vm18167_vm2 = vcmp.ge.f32.partialorder %v15579_v26, 0.0  ;;  %vm18168_vm3 = vcmp.ge.f32.partialorder %v15582_v36, 0.0  ;;  %vm18169_vm7 = vcmp.ge.f32.partialorder %v15585_v14, 0.0  ;;  %v4873_v28 = vsel %vm4801_vm1, %v15588_v46, %v4837_v45 }
 0x4dc   : > { %v4870_v4 = vsel %vm18167_vm2, %v15579_v26, %v4834_v20  ;;  %v4871_v34 = vsel %vm18168_vm3, %v15582_v36, %v4835_v49  ;;  %v4872_v37 = vsel %vm18169_vm7, %v15585_v14, %v4836_v30  ;;  %v4874_v29 = vsel %vm4802_vm15, %v15591_v62, %v4838_v11 }
 0x4dd   : > { %v4875_v20 = vsel %vm4803_vm14, %v15594_v21, %v4839_v47  ;;  %v4876_v49 = vsel %vm4804_vm11, %v15597_v31, %v4840_v24  ;;  %v4877_v38 = vsel %vm4805_vm5, %v15600_v5, %v4841_v63  ;;  %v4881_v45 = vsel %vm4809_vm6, %v15603_v9, %v4845_v23 }
 0x4de   : > { %v11057_v39 = vpack.c.bf16 %v15638_v2, %v15638_v2  ;;  %v11058_v11 = vpack.c.bf16 %v15650_v43, %v15650_v43  ;;  %v11059_v52 = vpack.c.bf16 %v4848_v6, %v4848_v6  ;;  %v11060_v48 = vpack.c.bf16 %v4849_v19, %v4849_v19 }
 0x4df   : > { %v11061_v33 = vpack.c.bf16 %v4850_v59, %v4850_v59  ;;  %v11062_v26 = vpack.c.bf16 %v4851_v13, %v4851_v13  ;;  %v15780_v55 = vpack.c.bf16 %v4852_v60, %v4852_v60  ;;  %v15782_v24 = vpack.c.bf16 %v4853_v15, %v4853_v15 }
 0x4e0   : > { %v15784_v36 = vpack.c.bf16 %v4854_v27, %v4854_v27  ;;  %v15786_v63 = vpack.c.bf16 %v4855_v40, %v4855_v40  ;;  %v15788_v14 = vpack.c.bf16 %v4856_v41, %v4856_v41  ;;  %v15790_v46 = vpack.c.bf16 %v4857_v42, %v4857_v42 }
 0x4e1   : > { %v15792_v62 = vpack.c.bf16 %v4858_v7, %v4858_v7  ;;  %v15794_v21 = vpack.c.bf16 %v4859_v16, %v4859_v16  ;;  %v15796_v6 = vpack.c.bf16 %v4860_v22, %v4860_v22  ;;  %v15798_v59 = vpack.c.bf16 %v4861_v25, %v4861_v25 }
 0x4e2   : > { %v15800_v19 = vpack.c.bf16 %v4862_v17, %v4862_v17  ;;  %v15802_v31 = vpack.c.bf16 %v4863_v0, %v4863_v0  ;;  %v15804_v5 = vpack.c.bf16 %v4864_v56, %v4864_v56  ;;  %v15806_v9 = vpack.c.bf16 %v4865_v53, %v4865_v53 }
 0x4e3   : > { %v15808_v43 = vpack.c.bf16 %v4866_v12, %v4866_v12  ;;  %v15810_v3 = vpack.c.bf16 %v4867_v10, %v4867_v10  ;;  %v15812_v7 = vpack.c.bf16 %v4868_v51, %v4868_v51  ;;  %v15814_v2 = vpack.c.bf16 %v4869_v57, %v4869_v57 }
 0x4e4   : > { %v15816_v40 = vpack.c.bf16 %v4870_v4, %v4870_v4  ;;  %v15818_v1 = vpack.c.bf16 %v4871_v34, %v4871_v34  ;;  %v15820_v32 = vpack.c.bf16 %v4872_v37, %v4872_v37  ;;  %v15822_v35 = vpack.c.bf16 %v4873_v28, %v4873_v28 }
 0x4e5   : > { %v15824_v18 = vpack.c.bf16 %v4874_v29, %v4874_v29  ;;  %v15826_v61 = vpack.c.bf16 %v4875_v20, %v4875_v20  ;;  %v15828_v54 = vpack.c.bf16 %v4876_v49, %v4876_v49  ;;  %v15830_v8 = vpack.c.bf16 %v4877_v38, %v4877_v38 }
 0x4e6   : > { %v15832_v50 = vpack.c.bf16 %v4881_v45, %v4881_v45  ;;  %v5001_v13 = vshrl.u32 %v11057_v39, 16  ;;  %v5004_v44 = vshll.u32 %v11057_v39, 16  ;;  %v5010_v60 = vshrl.u32 %v11058_v11, 16 }
 0x4e7   : > { %v5013_v30 = vshll.u32 %v11058_v11, 16  ;;  %v5020_v15 = vshrl.u32 %v11059_v52, 16  ;;  %v5023_v47 = vshll.u32 %v11059_v52, 16  ;;  %v5030_v41 = vshrl.u32 %v11060_v48, 16 }
 0x4e8   : > { %v5003_v27 = vrot.slane %v5001_v13, 6  ;;  %v5006_v23 = vrot.slane %v5004_v44, 7  ;;  %v5033_v42 = vshll.u32 %v11060_v48, 16  ;;  %v5012_v16 = vrot.slane %v5010_v60, 6 }
 0x4e9   : > { %v5015_v22 = vrot.slane %v5013_v30, 7  ;;  %v5022_v25 = vrot.slane %v5020_v15, 6  ;;  %v5025_v17 = vrot.slane %v5023_v47, 7  ;;  %v5032_v56 = vrot.slane %v5030_v41, 6 }
 0x4ea   : > { %v15834_v0 = vor.u32 %v5006_v23, %v5003_v27  ;;  %v5035_v53 = vrot.slane %v5033_v42, 7  ;;  %v5040_v12 = vshrl.u32 %v11061_v33, 16  ;;  %v5043_v57 = vshll.u32 %v11061_v33, 16 }
 0x4eb   : > { %v5016_v10 = vor.u32 %v5015_v22, %v5012_v16  ;;  %v5026_v51 = vor.u32 %v5025_v17, %v5022_v25  ;;  %v5050_v4 = vshrl.u32 %v11062_v26, 16  ;;  %v5053_v29 = vshll.u32 %v11062_v26, 16 }
 0x4ec   : > { %v5008_v34 = vrot.slane %v15834_v0, 4  ;;  %v5036_v37 = vor.u32 %v5035_v53, %v5032_v56  ;;  %v5042_v28 = vrot.slane %v5040_v12, 6  ;;  %v5045_v38 = vrot.slane %v5043_v57, 7 }
 0x4ed   : > { %v5018_v20 = vrot.slane %v5016_v10, 4  ;;  %v5028_v49 = vrot.slane %v5026_v51, 4  ;;  %v5052_v45 = vrot.slane %v5050_v4, 6  ;;  %v5055_v52 = vrot.slane %v5053_v29, 7 }
 0x4ee   : > { %v5017_v39 = vsel %vm15402_vm13, %v5008_v34, %v5016_v10  ;;  %v5038_v11 = vrot.slane %v5036_v37, 4  ;;  %v5060_v48 = vshrl.u32 %v15780_v55, 16  ;;  %v5046_v44 = vor.u32 %v5045_v38, %v5042_v28 }
 0x4ef   : > { %v5027_v33 = vsel %vm15402_vm13, %v5018_v20, %v5026_v51  ;;  %v5037_v13 = vsel %vm15402_vm13, %v5028_v49, %v5036_v37  ;;  %v5063_v26 = vshll.u32 %v15780_v55, 16  ;;  %5402 = vst [vmem:[#allocation2 + $0xc] sm:$0xf] %v5017_v39  ;;  %v5056_v60 = vor.u32 %v5055_v52, %v5052_v45 }
 0x4f0   : > { %v5062_v30 = vrot.slane %v5060_v48, 6  ;;  %v5070_v15 = vshrl.u32 %v15782_v24, 16  ;;  %v5073_v47 = vshll.u32 %v15782_v24, 16  ;;  %5403 = vst [vmem:[#allocation2 + $0x10] sm:$0xf] %v5027_v33  ;;  %v5047_v27 = vsel %vm15402_vm13, %v5038_v11, %v5046_v44 }
 0x4f1   : > { %5404 = vst [vmem:[#allocation2 + $0x14] sm:$0xf] %v5037_v13  ;;  %v5048_v23 = vrot.slane %v5046_v44, 4  ;;  %v5065_v41 = vrot.slane %v5063_v26, 7  ;;  %v5080_v42 = vshrl.u32 %v15784_v36, 16  ;;  %v5058_v16 = vrot.slane %v5056_v60, 4 }
 0x4f2   : > { %v5072_v22 = vrot.slane %v5070_v15, 6  ;;  %v5075_v25 = vrot.slane %v5073_v47, 7  ;;  %v5083_v55 = vshll.u32 %v15784_v36, 16  ;;  %5405 = vst [vmem:[#allocation2 + $0x18] sm:$0xf] %v5047_v27  ;;  %v5090_v53 = vshrl.u32 %v15786_v63, 16 }
 0x4f3   : > { %v5057_v17 = vsel %vm15402_vm13, %v5048_v23, %v5056_v60  ;;  %v5066_v56 = vor.u32 %v5065_v41, %v5062_v30  ;;  %v5082_v24 = vrot.slane %v5080_v42, 6  ;;  %v5093_v51 = vshll.u32 %v15786_v63, 16 }
 0x4f4   : > { %v5076_v12 = vor.u32 %v5075_v25, %v5072_v22  ;;  %v5085_v10 = vrot.slane %v5083_v55, 7  ;;  %v5100_v57 = vshrl.u32 %v15788_v14, 16  ;;  %5406 = vst [vmem:[#allocation2 + $0x1c] sm:$0xf] %v5057_v17  ;;  %v5092_v36 = vrot.slane %v5090_v53, 6 }
 0x4f5   : > { %v5067_v4 = vsel %vm15402_vm13, %v5058_v16, %v5066_v56  ;;  %v5068_v34 = vrot.slane %v5066_v56, 4  ;;  %v5103_v37 = vshll.u32 %v15788_v14, 16  ;;  %v5095_v20 = vrot.slane %v5093_v51, 7 }
 0x4f6   : > { %v5078_v28 = vrot.slane %v5076_v12, 4  ;;  %v5086_v29 = vor.u32 %v5085_v10, %v5082_v24  ;;  %v5102_v49 = vrot.slane %v5100_v57, 6  ;;  %5407 = vst [vmem:[#allocation2 + $0x20] sm:$0xf] %v5067_v4  ;;  %v5110_v63 = vshrl.u32 %v15790_v46, 16 }
 0x4f7   : > { %v5077_v38 = vsel %vm15402_vm13, %v5068_v34, %v5076_v12  ;;  %v5105_v45 = vrot.slane %v5103_v37, 7  ;;  %v5113_v39 = vshll.u32 %v15790_v46, 16  ;;  %v5096_v48 = vor.u32 %v5095_v20, %v5092_v36 }
 0x4f8   : > { %v5087_v11 = vsel %vm15402_vm13, %v5078_v28, %v5086_v29  ;;  %v5088_v52 = vrot.slane %v5086_v29, 4  ;;  %v5120_v14 = vshrl.u32 %v15792_v62, 16  ;;  %5408 = vst [vmem:[#allocation2 + $0x24] sm:$0xf] %v5077_v38  ;;  %v5112_v13 = vrot.slane %v5110_v63, 6 }
 0x4f9   : > { %v5106_v33 = vor.u32 %v5105_v45, %v5102_v49  ;;  %v5115_v44 = vrot.slane %v5113_v39, 7  ;;  %v5123_v26 = vshll.u32 %v15792_v62, 16  ;;  %5409 = vst [vmem:[#allocation2 + $0x28] sm:$0xf] %v5087_v11  ;;  %v5098_v30 = vrot.slane %v5096_v48, 4 }
 0x4fa   : > { %v5097_v60 = vsel %vm15402_vm13, %v5088_v52, %v5096_v48  ;;  %v5122_v15 = vrot.slane %v5120_v14, 6  ;;  %v5130_v46 = vshrl.u32 %v15794_v21, 16  ;;  %v5133_v41 = vshll.u32 %v15794_v21, 16 }
 0x4fb   : > { %v5108_v47 = vrot.slane %v5106_v33, 4  ;;  %v5116_v27 = vor.u32 %v5115_v44, %v5112_v13  ;;  %v5125_v23 = vrot.slane %v5123_v26, 7  ;;  %5410 = vst [vmem:[#allocation2 + $0x2c] sm:$0xf] %v5097_v60  ;;  %v5107_v42 = vsel %vm15402_vm13, %v5098_v30, %v5106_v33 }
 0x4fc   : > { %v5132_v16 = vrot.slane %v5130_v46, 6  ;;  %v5140_v62 = vshrl.u32 %v15796_v6, 16  ;;  %v5143_v22 = vshll.u32 %v15796_v6, 16  ;;  %v5135_v56 = vrot.slane %v5133_v41, 7  ;;  %5411 = vst [vmem:[#allocation2 + $0x30] sm:$0xf] %v5107_v42 }
 0x4fd   : > { %v5117_v25 = vsel %vm15402_vm13, %v5108_v47, %v5116_v27  ;;  %v5118_v55 = vrot.slane %v5116_v27, 4  ;;  %v5126_v17 = vor.u32 %v5125_v23, %v5122_v15  ;;  %v5150_v21 = vshrl.u32 %v15798_v59, 16 }
 0x4fe   : > { %v5142_v24 = vrot.slane %v5140_v62, 6  ;;  %v5145_v53 = vrot.slane %v5143_v22, 7  ;;  %v5153_v12 = vshll.u32 %v15798_v59, 16  ;;  %5412 = vst [vmem:[#allocation2 + $0x34] sm:$0xf] %v5117_v25  ;;  %v5136_v57 = vor.u32 %v5135_v56, %v5132_v16 }
 0x4ff   : > { %v5127_v10 = vsel %vm15402_vm13, %v5118_v55, %v5126_v17  ;;  %v5128_v51 = vrot.slane %v5126_v17, 4  ;;  %v5160_v6 = vshrl.u32 %v15800_v19, 16  ;;  %v5152_v34 = vrot.slane %v5150_v21, 6 }
 0x500   : > { %v5146_v4 = vor.u32 %v5145_v53, %v5142_v24  ;;  %v5155_v36 = vrot.slane %v5153_v12, 7  ;;  %v5163_v37 = vshll.u32 %v15800_v19, 16  ;;  %5413 = vst [vmem:[#allocation2 + $0x38] sm:$0xf] %v5127_v10  ;;  %v5138_v29 = vrot.slane %v5136_v57, 4 }
 0x501   : > { %v5137_v28 = vsel %vm15402_vm13, %v5128_v51, %v5136_v57  ;;  %v5162_v20 = vrot.slane %v5160_v6, 6  ;;  %v5170_v59 = vshrl.u32 %v15802_v31, 16  ;;  %v5173_v63 = vshll.u32 %v15802_v31, 16 }
 0x502   : > { %v5148_v49 = vrot.slane %v5146_v4, 4  ;;  %v5156_v38 = vor.u32 %v5155_v36, %v5152_v34  ;;  %v5165_v45 = vrot.slane %v5163_v37, 7  ;;  %5414 = vst [vmem:[#allocation2 + $0x3c] sm:$0xf] %v5137_v28  ;;  %v5147_v39 = vsel %vm15402_vm13, %v5138_v29, %v5146_v4 }
 0x503   : > { %v5172_v11 = vrot.slane %v5170_v59, 6  ;;  %v5180_v19 = vshrl.u32 %v15804_v5, 16  ;;  %v5183_v52 = vshll.u32 %v15804_v5, 16  ;;  %v5175_v13 = vrot.slane %v5173_v63, 7  ;;  %5415 = vst [vmem:[#allocation2 + $0x40] sm:$0xf] %v5147_v39 }
 0x504   : > { %v5157_v48 = vsel %vm15402_vm13, %v5148_v49, %v5156_v38  ;;  %v5158_v14 = vrot.slane %v5156_v38, 4  ;;  %v5166_v33 = vor.u32 %v5165_v45, %v5162_v20  ;;  %v5190_v31 = vshrl.u32 %v15806_v9, 16 }
 0x505   : > { %v5182_v44 = vrot.slane %v5180_v19, 6  ;;  %v5185_v26 = vrot.slane %v5183_v52, 7  ;;  %v5193_v60 = vshll.u32 %v15806_v9, 16  ;;  %5416 = vst [vmem:[#allocation2 + $0x44] sm:$0xf] %v5157_v48  ;;  %v5176_v46 = vor.u32 %v5175_v13, %v5172_v11 }
 0x506   : > { %v5167_v30 = vsel %vm15402_vm13, %v5158_v14, %v5166_v33  ;;  %v5168_v15 = vrot.slane %v5166_v33, 4  ;;  %v5200_v5 = vshrl.u32 %v15808_v43, 16  ;;  %v5192_v27 = vrot.slane %v5190_v31, 6 }
 0x507   : > { %v5186_v47 = vor.u32 %v5185_v26, %v5182_v44  ;;  %v5195_v23 = vrot.slane %v5193_v60, 7  ;;  %v5203_v41 = vshll.u32 %v15808_v43, 16  ;;  %5417 = vst [vmem:[#allocation2 + $0x48] sm:$0xf] %v5167_v30  ;;  %v5178_v16 = vrot.slane %v5176_v46, 4 }
 0x508   : > { %v5177_v42 = vsel %vm15402_vm13, %v5168_v15, %v5176_v46  ;;  %v5202_v62 = vrot.slane %v5200_v5, 6  ;;  %v5210_v9 = vshrl.u32 %v15810_v3, 16  ;;  %v5213_v17 = vshll.u32 %v15810_v3, 16 }
 0x509   : > { %v5188_v22 = vrot.slane %v5186_v47, 4  ;;  %v5196_v25 = vor.u32 %v5195_v23, %v5192_v27  ;;  %v5205_v55 = vrot.slane %v5203_v41, 7  ;;  %5418 = vst [vmem:[#allocation2 + $0x4c] sm:$0xf] %v5177_v42  ;;  %v5187_v56 = vsel %vm15402_vm13, %v5178_v16, %v5186_v47 }
 0x50a   : > { %v5212_v24 = vrot.slane %v5210_v9, 6  ;;  %v5220_v43 = vshrl.u32 %v15812_v7, 16  ;;  %v5223_v53 = vshll.u32 %v15812_v7, 16  ;;  %v5215_v51 = vrot.slane %v5213_v17, 7  ;;  %5419 = vst [vmem:[#allocation2 + $0x50] sm:$0xf] %v5187_v56 }
 0x50b   : > { %v5197_v21 = vsel %vm15402_vm13, %v5188_v22, %v5196_v25  ;;  %v5198_v12 = vrot.slane %v5196_v25, 4  ;;  %v5206_v10 = vor.u32 %v5205_v55, %v5202_v62  ;;  %v5230_v3 = vshrl.u32 %v15814_v2, 16  ;;  %v5399_v17 = vld [vmem:[#allocation2 + $0x8] sm:$0xe] }
 0x50c   : > { %v5222_v57 = vrot.slane %v5220_v43, 6  ;;  %v5225_v6 = vrot.slane %v5223_v53, 7  ;;  %v5233_v4 = vshll.u32 %v15814_v2, 16  ;;  %5420 = vst [vmem:[#allocation2 + $0x54] sm:$0xf] %v5197_v21  ;;  %v5216_v37 = vor.u32 %v5215_v51, %v5212_v24 }
 0x50d   : > { %v5207_v34 = vsel %vm15402_vm13, %v5198_v12, %v5206_v10  ;;  %v5208_v36 = vrot.slane %v5206_v10, 4  ;;  %v5240_v7 = vshrl.u32 %v15816_v40, 16  ;;  %v5232_v29 = vrot.slane %v5230_v3, 6 }
 0x50e   : > { %v5226_v28 = vor.u32 %v5225_v6, %v5222_v57  ;;  %v5235_v20 = vrot.slane %v5233_v4, 7  ;;  %v5243_v59 = vshll.u32 %v15816_v40, 16  ;;  %5421 = vst [vmem:[#allocation2 + $0x58] sm:$0xf] %v5207_v34  ;;  %vm5396_vm1 = vcmask 1043457  }
 0x50f   : > { %vm5397_vm4 = vsmask.f32 7942  ;;  %v5217_v49 = vsel %vm15402_vm13, %v5208_v36, %v5216_v37  ;;  %v5218_v2 = vrot.slane %v5216_v37, 4  ;;  %v5242_v38 = vrot.slane %v5240_v7, 6  ;;  %v5440_v37 = vld [vmem:[#allocation2 + $0x98] sm:$0x1] }
 0x510   : > { %v5250_v45 = vshrl.u32 %v15818_v1, 16  ;;  %v5228_v63 = vrot.slane %v5226_v28, 4  ;;  %v5236_v39 = vor.u32 %v5235_v20, %v5232_v29  ;;  %v5245_v11 = vrot.slane %v5243_v59, 7  ;;  %5422 = vst [vmem:[#allocation2 + $0x5c] sm:$0xf] %v5217_v49  ;;  %vm15943_vm14 = vmand %vm5396_vm1, %vm5397_vm4  ;;  %v15953_v59 = vld [vmem:[#allocation2 + $0x10] sm:$0xff]  }
 0x511   : > { %v5253_v19 = vshll.u32 %v15818_v1, 16  ;;  %v5227_v52 = vsel %vm15402_vm13, %v5218_v2, %v5226_v28  ;;  %v5260_v48 = vshrl.u32 %v15820_v32, 16  ;;  %v5263_v14 = vshll.u32 %v15820_v32, 16 }
 0x512   : > { %v5252_v40 = vrot.slane %v5250_v45, 6  ;;  %v5237_v33 = vsel %vm15402_vm13, %v5228_v63, %v5236_v39  ;;  %v5238_v13 = vrot.slane %v5236_v39, 4  ;;  %v5246_v44 = vor.u32 %v5245_v11, %v5242_v38  ;;  %5423 = vst [vmem:[#allocation2 + $0x60] sm:$0xf] %v5227_v52  ;;  %v18176_v63 = vld [vmem:[#allocation62_spill] sm:$0xff] }
 0x513   : > { %v5255_v26 = vrot.slane %v5253_v19, 7  ;;  %vm5437_vm5 = vcmask 1040384   ;;  %vm5438_vm11 = vsmask.f32 256  ;;  %v5262_v31 = vrot.slane %v5260_v48, 6  ;;  %v18177_v48 = vld [vmem:[#allocation63_spill] sm:$0xff] }
 0x514   : > { %v5265_v1 = vrot.slane %v5263_v14, 7  ;;  %v5270_v60 = vshrl.u32 %v15822_v35, 16  ;;  %v5273_v30 = vshll.u32 %v15822_v35, 16  ;;  %5424 = vst [vmem:[#allocation2 + $0x64] sm:$0xf] %v5237_v33  ;;  %v5247_v15 = vsel %vm15402_vm13, %v5238_v13, %v5246_v44  ;;  %vm15962_vm15 = vmand %vm5437_vm5, %vm5438_vm11 }
 0x515   : > { %v5248_v32 = vrot.slane %v5246_v44, 4  ;;  %v5256_v46 = vor.u32 %v5255_v26, %v5252_v40  ;;  %v5280_v5 = vshrl.u32 %v15824_v18, 16  ;;  %v5283_v41 = vshll.u32 %v15824_v18, 16  ;;  %5425 = vst [vmem:[#allocation2 + $0x68] sm:$0xf] %v5247_v15 }
 0x516   : > { %v5266_v47 = vor.u32 %v5265_v1, %v5262_v31  ;;  %v5272_v27 = vrot.slane %v5270_v60, 6  ;;  %v5275_v23 = vrot.slane %v5273_v30, 7  ;;  %v5290_v35 = vshrl.u32 %v15826_v61, 16  ;;  %v18178_v31 = vld [vmem:[#allocation60_spill] sm:$0xff] }
 0x517   : > { %v5257_v42 = vsel %vm15402_vm13, %v5248_v32, %v5256_v46  ;;  %v5258_v16 = vrot.slane %v5256_v46, 4  ;;  %v5282_v62 = vrot.slane %v5280_v5, 6  ;;  %v5285_v25 = vrot.slane %v5283_v41, 7  ;;  %v15980_v30 = vld [vmem:[#allocation2 + $0x18] sm:$0xff]  }
 0x518   : > { %v5268_v9 = vrot.slane %v5266_v47, 4  ;;  %v5276_v22 = vor.u32 %v5275_v23, %v5272_v27  ;;  %v5293_v55 = vshll.u32 %v15826_v61, 16  ;;  %5426 = vst [vmem:[#allocation2 + $0x6c] sm:$0xf] %v5257_v42  ;;  %v5292_v24 = vrot.slane %v5290_v35, 6  ;;  %v15987_v23 = vld [vmem:[#allocation2 + $0x20] sm:$0xff]  }
 0x519   : > { %v5267_v56 = vsel %vm15402_vm13, %v5258_v16, %v5266_v47  ;;  %v5300_v18 = vshrl.u32 %v15828_v54, 16  ;;  %v5303_v43 = vshll.u32 %v15828_v54, 16  ;;  %v5286_v12 = vor.u32 %v5285_v25, %v5282_v62 }
 0x51a   : > { %v5277_v53 = vsel %vm15402_vm13, %v5268_v9, %v5276_v22  ;;  %v5278_v21 = vrot.slane %v5276_v22, 4  ;;  %v5295_v10 = vrot.slane %v5293_v55, 7  ;;  %5427 = vst [vmem:[#allocation2 + $0x70] sm:$0xf] %v5267_v56  ;;  %v18170_v61 = vmov 0 }
 0x51b   : > { %v18171_v61 = vsel %vm15943_vm14, 4294967295, %v18170_v61  ;;  %v5302_v51 = vrot.slane %v5300_v18, 6  ;;  %v5305_v57 = vrot.slane %v5303_v43, 7  ;;  %v5310_v6 = vshrl.u32 %v15830_v8, 16  ;;  %5428 = vst [vmem:[#allocation2 + $0x74] sm:$0xf] %v5277_v53 }
 0x51c   : > { %18172 = vst [vmem:[#allocation64_spill] sm:$0xff] %v18171_v61  ;;  %v5313_v3 = vshll.u32 %v15830_v8, 16  ;;  %v5287_v54 = vsel %vm15402_vm13, %v5278_v21, %v5286_v12  ;;  %v5288_v4 = vrot.slane %v5286_v12, 4  ;;  %v5296_v34 = vor.u32 %v5295_v10, %v5292_v24  ;;  %v13490_v18 = vld [vmem:[#allocation12 + $0x8] sm:$0xff]   ;;  %v16000_v53 = vld [vmem:[#allocation2 + $0x28] sm:$0xff]   ;;  %v16003_v10 = vld [vmem:[#allocation2 + $0x30] sm:$0xff]  }
 0x51d   : > { %v5350_v36 = vshrl.u32 %v15832_v50, 16  ;;  %v5306_v7 = vor.u32 %v5305_v57, %v5302_v51  ;;  %v5312_v28 = vrot.slane %v5310_v6, 6  ;;  %v5353_v20 = vshll.u32 %v15832_v50, 16  ;;  %5429 = vst [vmem:[#allocation2 + $0x78] sm:$0xf] %v5287_v54  ;;  %v13645_v51 = vld [vmem:[#allocation12] sm:$0xff]  }
 0x51e   : > { %v5315_v29 = vrot.slane %v5313_v3, 7  ;;  %v5297_v8 = vsel %vm15402_vm13, %v5288_v4, %v5296_v34  ;;  %v5298_v49 = vrot.slane %v5296_v34, 4  ;;  %v5400_v38 = vsel %vm15943_vm14, %v15834_v0, %v5399_v17  ;;  %v13493_v54 = vld [vmem:[#allocation12 + $0x10] sm:$0xff]  }
 0x51f   : > { %v5352_v2 = vrot.slane %v5350_v36, 6  ;;  %v18173_v45 = vmov 0  ;;  %v5348_v50 = vrot.slane %v18176_v63, 4  ;;  %v5308_v39 = vrot.slane %v5306_v7, 4  ;;  %5401 = vst [vmem:[#allocation2 + $0x8] sm:$0xe] %v5400_v38 }
 0x520   : > { %v18174_v45 = vsel %vm15962_vm15, 4294967295, %v18173_v45  ;;  %v5316_v11 = vor.u32 %v5315_v29, %v5312_v28  ;;  %v5355_v19 = vrot.slane %v5353_v20, 7  ;;  %5430 = vst [vmem:[#allocation2 + $0x7c] sm:$0xf] %v5297_v8  ;;  %v5307_v52 = vsel %vm15402_vm13, %v5298_v49, %v5306_v7  ;;  %v16009_v7 = vld [vmem:[#allocation2 + $0x38] sm:$0xff]   ;;  %v16011_v29 = vld [vmem:[#allocation2 + $0x40] sm:$0xff]  }
 0x521   : > { %18175 = vst [vmem:[#allocation65_spill] sm:$0xff] %v18174_v45  ;;  %v5358_v40 = vrot.slane %v5352_v2, 4  ;;  %v5613_v14 = vshll.u32 %v18177_v48, 16  ;;  %5431 = vst [vmem:[#allocation2 + $0x80] sm:$0xf] %v5307_v52  ;;  %v5626_v44 = vshll.u32 %v15953_v59, 16 }
 0x522   : > { %v5317_v0 = vsel %vm15402_vm13, %v5308_v39, %v5316_v11  ;;  %v5318_v33 = vrot.slane %v5316_v11, 4  ;;  %v5356_v13 = vor.u32 %v5355_v19, %v5352_v2  ;;  %v5611_v15 = vshrl.u32 %v18177_v48, 16  ;;  %v16184_v61 = vld [vmem:[#allocation2 + $0x40] sm:$0xff]  }
 0x523   : > { %5432 = vst [vmem:[#allocation2 + $0x84] sm:$0xf] %v5317_v0  ;;  %v5441_v26 = vsel %vm15962_vm15, %v5358_v40, %v5440_v37  ;;  %v5615_v32 = vrot.slane %v5613_v14, 1  ;;  %vm5443_vm6 = vcmask 1043456   ;;  %vm5444_vm8 = vsmask.f32 7938 }
 0x524   : > { %v5327_v1 = vsel %vm15402_vm13, %v5318_v33, %v18178_v31  ;;  %v5357_v60 = vsel %vm15402_vm13, %v5348_v50, %v5356_v13  ;;  %5442 = vst [vmem:[#allocation2 + $0x98] sm:$0x1] %v5441_v26  ;;  %v5628_v46 = vrot.slane %v5626_v44, 1  ;;  %v5630_v47 = vshrl.u32 %v15953_v59, 16  ;;  %vm15989_vm9 = vmand %vm5443_vm6, %vm5444_vm8  ;;  %v13496_v37 = vld [vmem:[#allocation12 + $0x18] sm:$0xff]   ;;  %v13499_v50 = vld [vmem:[#allocation12 + $0x20] sm:$0xff]  }
 0x525   : > { %5433 = vst [vmem:[#allocation2 + $0x88] sm:$0xf] %v5327_v1  ;;  %5436 = vst [vmem:[#allocation2 + $0x94] sm:$0xf] %v5357_v60  ;;  %v5634_v27 = vshll.u32 %v15980_v30, 16  ;;  %v18179_v41 = vmov 0  ;;  %v5616_v42 = vor.u32 %v5615_v32, %v5611_v15 }
 0x526   : > { %v15983_v5 = vld [vmem:[#allocation2 + $0x8] sm:$0xff]   ;;  %v18180_v41 = vsel %vm15989_vm9, 4294967295, %v18179_v41  ;;  %v5632_v62 = vor.u32 %v5630_v47, %v5628_v46  ;;  %v5642_v17 = vshll.u32 %v15987_v23, 16  ;;  %vm18182_vm0 = vsmask.f32 7424  ;;  %v13502_v14 = vld [vmem:[#allocation12 + $0x28] sm:$0xff]  }
 0x527   : > { %18181 = vst [vmem:[#allocation62_spill] sm:$0xff] %v18180_v41  ;;  %v5618_v16 = vshll.u32 %v15983_v5, 16  ;;  %v5622_v22 = vshrl.u32 %v15983_v5, 16  ;;  %v5636_v55 = vrot.slane %v5634_v27, 1  ;;  %vm18183_vm10 = vmmov %vm18182_vm0  ;;  %v5638_v57 = vshrl.u32 %v15980_v30, 16  ;;  %v16019_v40 = vld [vmem:[#allocation2 + $0x48] sm:$0xff]  }
 0x528   : > { %vm18184_vm12 = vmmov %vm18182_vm0  ;;  %v5644_v12 = vrot.slane %v5642_v17, 1  ;;  %v5646_v6 = vshrl.u32 %v15987_v23, 16  ;;  %v5650_v3 = vshll.u32 %v16000_v53, 16  ;;  %v5658_v36 = vshll.u32 %v16003_v10, 16  ;;  %v16023_v44 = vld [vmem:[#allocation2 + $0x50] sm:$0xff]   ;;  %v13505_v60 = vld [vmem:[#allocation12 + $0x30] sm:$0xff]  }
 0x529   : > { %v5620_v9 = vrot.slane %v5618_v16, 1  ;;  %v5637_v43 = vsel %vm18183_vm10, %v5632_v62, %v5636_v55  ;;  %v5640_v4 = vor.u32 %v5638_v57, %v5636_v55  ;;  %vm18185_vm2 = vmmov %vm18182_vm0  ;;  %v5654_v2 = vshrl.u32 %v16000_v53, 16  ;;  %v16029_v27 = vld [vmem:[#allocation2 + $0x58] sm:$0xff]  }
 0x52a   : > { %v5648_v34 = vor.u32 %v5646_v6, %v5644_v12  ;;  %v5652_v28 = vrot.slane %v5650_v3, 1  ;;  %vm18186_vm3 = vmmov %vm18182_vm0  ;;  %v5660_v49 = vrot.slane %v5658_v36, 1  ;;  %v5662_v38 = vshrl.u32 %v16003_v10, 16  ;;  %v16046_v6 = vld [vmem:[#allocation2 + $0x70] sm:$0xff]  }
 0x52b   : > { %v5446_v35 = vld [vmem:[#allocation2 + $0x98] sm:$0xf]  ;;  %v5621_v56 = vsel %vm18182_vm0, %v5616_v42, %v5620_v9  ;;  %v5624_v24 = vor.u32 %v5622_v22, %v5620_v9  ;;  %v5645_v20 = vsel %vm18185_vm2, %v5640_v4, %v5644_v12  ;;  %v5666_v63 = vshll.u32 %v16009_v7, 16  ;;  %vm18187_vm7 = vmmov %vm18182_vm0  ;;  %v13508_v42 = vld [vmem:[#allocation12 + $0x38] sm:$0xff]  }
 0x52c   : > { %v5447_v25 = vsel %vm15989_vm9, 0, %v5446_v35  ;;  %12166 = vmatprep.mubr.bf16.mxu1 %v5621_v56  ;;  %v5653_v8 = vsel %vm18186_vm3, %v5648_v34, %v5652_v28  ;;  %v5656_v39 = vor.u32 %v5654_v2, %v5652_v28  ;;  %v5674_v11 = vshll.u32 %v16011_v29, 16  ;;  %vm18188_vm1 = vmmov %vm18182_vm0  ;;  %v16033_v9 = vld [vmem:[#allocation2 + $0x60] sm:$0xff]  }
 0x52d   : > { %5448 = vst [vmem:[#allocation2 + $0x98] sm:$0xf] %v5447_v25  ;;  %v5629_v21 = vsel %vm18184_vm12, %v5624_v24, %v5628_v46  ;;  %v5664_v19 = vor.u32 %v5662_v38, %v5660_v49  ;;  %v5668_v52 = vrot.slane %v5666_v63, 1  ;;  %v5670_v26 = vshrl.u32 %v16009_v7, 16  ;;  %vm18189_vm4 = vmmov %vm18182_vm0  ;;  %v16036_v25 = vld [vmem:[#allocation12 + $0x80] sm:$0xff]   ;;  %v16055_v2 = vld [vmem:[#allocation2 + $0x80] sm:$0xff]  }
 0x52e   : > { %12167 = vmatmul.mubr.bf16.vlgmr.msra.gmra.mrb[0].mxu1 %v5629_v21  ;;  %v5661_v0 = vsel %vm18187_vm7, %v5656_v39, %v5660_v49  ;;  %v5676_v13 = vrot.slane %v5674_v11, 1  ;;  %v5678_v31 = vshrl.u32 %v16011_v29, 16  ;;  %v5682_v1 = vshll.u32 %v16019_v40, 16  ;;  %vm18190_vm5 = vmmov %vm18182_vm0  ;;  %v16041_v21 = vld [vmem:[#allocation2 + $0x68] sm:$0xff]  }
 0x52f   : > { %12170 = vmatprep.mubr.bf16.mxu1 %v5637_v43  ;;  %12203 = vmatpush3.bf16.msra.mxu1 %v13645_v51  ;;  %v5669_v33 = vsel %vm18188_vm1, %v5664_v19, %v5668_v52  ;;  %v5672_v15 = vor.u32 %v5670_v26, %v5668_v52  ;;  %v5690_v46 = vshll.u32 %v16023_v44, 16  ;;  %v5686_v22 = vshrl.u32 %v16019_v40, 16  ;;  %vm18191_vm11 = vmmov %vm18182_vm0  ;;  %v16057_v38 = vld [vmem:[#allocation2 + $0x88] sm:$0xf] }
 0x530   : > { %12204 = vmatprep.subr.bf16.mxu1 %v13490_v18  ;;  %v5680_v32 = vor.u32 %v5678_v31, %v5676_v13  ;;  %v5684_v47 = vrot.slane %v5682_v1, 1  ;;  %v5694_v55 = vshrl.u32 %v16023_v44, 16  ;;  %v5698_v17 = vshll.u32 %v16029_v27, 16  ;;  %vm18192_vm6 = vmmov %vm18182_vm0 }
 0x531   : > { %v5677_v16 = vsel %vm18189_vm4, %v5672_v15, %v5676_v13  ;;  %v5692_v35 = vrot.slane %v5690_v46, 1  ;;  %v5702_v3 = vshrl.u32 %v16029_v27, 16  ;;  %v5714_v4 = vshll.u32 %v16041_v21, 16  ;;  %vm18193_vm8 = vmmov %vm18182_vm0  ;;  %v16072_v46 = vld [vmem:[#allocation2 + $0x10] sm:$0xff]  }
 0x532   : > { %v5685_v62 = vsel %vm18190_vm5, %v5680_v32, %v5684_v47  ;;  %v5688_v56 = vor.u32 %v5686_v22, %v5684_v47  ;;  %v5700_v43 = vrot.slane %v5698_v17, 1  ;;  %v5718_v39 = vshrl.u32 %v16041_v21, 16  ;;  %vm18194_vm10 = vmmov %vm18182_vm0  ;;  %v16074_v47 = vld [vmem:[#allocation2 + $0xc] sm:$0xf]  ;;  %v16082_v17 = vld [vmem:[#allocation2 + $0x30] sm:$0xff]  }
 0x533   : > { %12205 = vmatpush3.bf16.msra.mxu1 %v13490_v18  ;;  %v5696_v24 = vor.u32 %v5694_v55, %v5692_v35  ;;  %v5706_v18 = vshll.u32 %v16033_v9, 16  ;;  %v5716_v28 = vrot.slane %v5714_v4, 1  ;;  %v5726_v11 = vshrl.u32 %v16046_v6, 16  ;;  %vm18195_vm12 = vmmov %vm18182_vm0  ;;  %v16080_v55 = vld [vmem:[#allocation2 + $0x28] sm:$0xff]   ;;  %18196 = vst [vmem:[#allocation63_spill] sm:$0xff] %v16082_v17 }
 0x534   : > { %12206 = vmatprep.subr.bf16.mxu1 %v13493_v54  ;;  %v5693_v12 = vsel %vm18191_vm11, %v5688_v56, %v5692_v35  ;;  %v5704_v34 = vor.u32 %v5702_v3, %v5700_v43  ;;  %v5742_v32 = vshrl.u32 %v16055_v2, 16  ;;  %v16084_v56 = vld [vmem:[#allocation2 + $0x38] sm:$0xff]   ;;  %v16093_v3 = vld [vmem:[#allocation2 + $0x50] sm:$0xff]   ;;  %vm18201_vm2 = vmmov %vm18182_vm0  ;;  %vm18203_vm7 = vcmask 1045504  }
 0x535   : > { %v5701_v51 = vsel %vm18192_vm6, %v5696_v24, %v5700_v43  ;;  %v5708_v57 = vrot.slane %v5706_v18, 1  ;;  %v5720_v52 = vor.u32 %v5718_v39, %v5716_v28  ;;  %18197 = vst [vmem:[#allocation60_spill] sm:$0xff] %v16084_v56  ;;  %v7623_v24 = vld [vmem:[#allocation2 + $0x8] sm:$0xc]  ;;  %v7644_v43 = vrot.slane %v16072_v46, 2  ;;  %18200 = vst [vmem:[#allocation68_spill] sm:$0xff] %v16093_v3 }
 0x536   : > { %12171 = vmatmul.mubr.bf16.gmra.mrb[4].mxu1 %v5645_v20  ;;  %v16052_v20 = vld [vmem:[#allocation2 + $0x78] sm:$0xff]   ;;  %v10962_v18 = vcombine.low %v7623_v24, %v16074_v47  ;;  %vm18202_vm3 = vmmov %vm18182_vm0  ;;  %v7660_v24 = vrot.slane %v16093_v3, 2 }
 0x537   : > { %12174 = vmatprep.mubr.bf16.mxu1 %v5653_v8  ;;  %12207 = vmatpush3.bf16.msra.mxu1 %v13493_v54  ;;  %v5710_v54 = vshrl.u32 %v16033_v9, 16  ;;  %v5503_v8 = vld [vmem:[#allocation2 + $0x8c] sm:$0xf]  ;;  %v5709_v49 = vsel %vm18193_vm8, %v5704_v34, %v5708_v57  ;;  %v5730_v19 = vshll.u32 %v16052_v20, 16  ;;  %v5734_v15 = vshrl.u32 %v16052_v20, 16  ;;  %v13573_v39 = vld [vmem:[#allocation2 + $0x78] sm:$0xff]   ;;  %vm18205_vm1 = vmmov %vm18203_vm7 }
 0x538   : > { %12208 = vmatprep.subr.bf16.mxu1 %v13496_v37  ;;  %vm18207_vm4 = vmmov %vm18205_vm1 }
 0x539   : > { %v5712_v36 = vor.u32 %v5710_v54, %v5708_v57  ;;  %v5732_v13 = vrot.slane %v5730_v19, 1  ;;  %v16091_v57 = vld [vmem:[#allocation2 + $0x48] sm:$0xff]   ;;  %vm18209_vm5 = vmmov %vm18205_vm1 }
 0x53a   : > { %18199 = vst [vmem:[#allocation67_spill] sm:$0xff] %v16091_v57  ;;  %vm18211_vm11 = vmmov %vm18205_vm1 }
 0x53b   : > { %12209 = vmatpush3.bf16.msra.mxu1 %v13496_v37  ;;  %v5722_v37 = vshll.u32 %v16046_v6, 16  ;;  %v5717_v63 = vsel %vm18182_vm0, %v5712_v36, %v5716_v28  ;;  %v13568_v28 = vld [vmem:[#allocation2 + $0x60] sm:$0xff]   ;;  %vm18213_vm6 = vmmov %vm18205_vm1 }
 0x53c   : > { %12210 = vmatprep.subr.bf16.mxu1 %v13499_v50  ;;  %vm18215_vm8 = vmmov %vm18205_vm1 }
 0x53d   : > { %vm18217_vm0 = vmmov %vm18205_vm1 }
 0x53e   : > { %12175 = vmatmul.mubr.bf16.gmra.mrb[8].mxu1 %v5661_v0  ;;  %v16065_v0 = vcombine.low %v16057_v38, %v5503_v8  ;;  %v13570_v8 = vld [vmem:[#allocation2 + $0x68] sm:$0xff]  }
 0x53f   : > { %12178 = vmatprep.mubr.bf16.mxu1 %v5669_v33  ;;  %12211 = vmatpush3.bf16.msra.mxu1 %v13499_v50  ;;  %v5724_v50 = vrot.slane %v5722_v37, 1  ;;  %v13567_v37 = vld [vmem:[#allocation2 + $0x58] sm:$0xff]  }
 0x540   : > { %12212 = vmatprep.subr.bf16.mxu1 %v13502_v14  ;;  %v5746_v1 = vshll.u32 %v16065_v0, 16 }
 0x541   : > { %v5728_v33 = vor.u32 %v5726_v11, %v5724_v50  ;;  %v5725_v26 = vsel %vm18194_vm10, %v5720_v52, %v5724_v50  ;;  %v13571_v50 = vld [vmem:[#allocation2 + $0x70] sm:$0xff]   ;;  %v7652_v52 = vrot.slane %v16082_v17, 2  ;;  %vm18219_vm10 = vmmov %vm18217_vm0 }
 0x542   : > { %v5748_v22 = vrot.slane %v5746_v1, 1  ;;  %v13576_v1 = vld [vmem:[#allocation2 + $0x88] sm:$0xff]  }
 0x543   : > { %12213 = vmatpush3.bf16.msra.mxu1 %v13502_v14  ;;  %v5738_v14 = vshll.u32 %v16055_v2, 16 }
 0x544   : > { %12214 = vmatprep.subr.bf16.mxu1 %v13505_v60 }
 0x545   : > { %v5740_v31 = vrot.slane %v5738_v14, 1  ;;  %v7654_v14 = vrot.slane %v16084_v56, 2 }
 0x546   : > { %12179 = vmatmul.mubr.bf16.gmra.mrb[12].mxu1 %v5677_v16  ;;  %v16078_v16 = vld [vmem:[#allocation2 + $0x20] sm:$0xff]  }
 0x547   : > { %12182 = vmatprep.mubr.bf16.mxu1 %v5685_v62  ;;  %12215 = vmatpush3.bf16.msra.mxu1 %v13505_v60  ;;  %v5733_v60 = vsel %vm18195_vm12, %v5728_v33, %v5732_v13  ;;  %v5736_v62 = vor.u32 %v5734_v15, %v5732_v13  ;;  %v5744_v35 = vor.u32 %v5742_v32, %v5740_v31  ;;  %v7648_v4 = vrot.slane %v16078_v16, 2  ;;  %v13574_v13 = vld [vmem:[#allocation2 + $0x80] sm:$0xff]   ;;  %vm18221_vm12 = vmmov %vm18217_vm0 }
 0x548   : > { %12216 = vmatprep.subr.bf16.mxu1 %v13508_v42  ;;  %v16118_v32 = vsel %vm18213_vm6, %v7652_v52, %v7654_v14  ;;  %vm18237_vm6 = vmmov %vm18217_vm0 }
 0x549   : > { %v5741_v34 = vsel %vm18201_vm2, %v5736_v62, %v5740_v31  ;;  %v5749_v36 = vsel %vm18202_vm3, %v5744_v35, %v5748_v22  ;;  %18214 = vst [vmem:[#allocation74_spill] sm:$0xff] %v16118_v32  ;;  %v7658_v35 = vrot.slane %v16091_v57, 2  ;;  %vm18223_vm2 = vmmov %vm18217_vm0 }
 0x54a   : > { %vm18225_vm3 = vmmov %vm18217_vm0 }
 0x54b   : > { %12217 = vmatpush3.bf16.msra.mxu1 %v13508_v42  ;;  %v16076_v42 = vld [vmem:[#allocation2 + $0x18] sm:$0xff]  }
 0x54c   : > { %12254 = vmatprep.subr.bf16.mxu1 %v16036_v25  ;;  %v7646_v54 = vrot.slane %v16076_v42, 2 }
 0x54e   : > { %12183 = vmatmul.mubr.bf16.gmra.mrb[16].mxu1 %v5693_v12  ;;  %v5750_v12 = vshrl.u32 %v16065_v0, 16  ;;  %v16101_v11 = vsel %vm18203_vm7, %v7644_v43, %v7646_v54  ;;  %v16104_v19 = vsel %vm18205_vm1, %v7646_v54, %v7648_v4  ;;  %vm18227_vm7 = vmmov %vm18217_vm0 }
 0x54f   : > { %12186 = vmatprep.mubr.bf16.mxu1 %v5701_v51  ;;  %v16089_v51 = vld [vmem:[#allocation2 + $0x40] sm:$0xff]   ;;  %18204 = vst [vmem:[#allocation69_spill] sm:$0xff] %v16101_v11  ;;  %18206 = vst [vmem:[#allocation70_spill] sm:$0xff] %v16104_v19  ;;  %v16246_v11 = vld [vmem:[#allocation2 + $0x88] sm:$0xff]  }
 0x550   : > { %18198 = vst [vmem:[#allocation66_spill] sm:$0xff] %v16089_v51  ;;  %v5752_v33 = vor.u32 %v5750_v12, %v5748_v22  ;;  %v7656_v62 = vrot.slane %v16089_v51, 2  ;;  %v13577_v22 = vld [vmem:[#allocation2 + $0x90] sm:$0xff]   ;;  %v7666_v12 = vrot.slane %v13570_v8, 2  ;;  %vm18229_vm1 = vmmov %vm18217_vm0 }
 0x552   : > { %v16124_v54 = vsel %vm18215_vm8, %v7654_v14, %v7656_v62  ;;  %v7676_v14 = vrot.slane %v13577_v22, 2  ;;  %v16167_v22 = vld [vmem:[#allocation2 + $0x20] sm:$0xff]   ;;  %vm18240_vm8 = vsmask.f32 5376 }
 0x553   : > { %18216 = vst [vmem:[#allocation75_spill] sm:$0xff] %v16124_v54  ;;  %v16208_v54 = vld [vmem:[#allocation2 + $0x60] sm:$0xff]  }
 0x556   : > { %12187 = vmatmul.mubr.bf16.gmra.mrb[20].mxu1 %v5709_v49  ;;  %v7643_v49 = vrot.slane %v10962_v18, 2  ;;  %v7662_v18 = vrot.slane %v13567_v37, 2 }
 0x557   : > { %12190 = vmatprep.mubr.bf16.mxu1 %v5717_v63  ;;  %v7650_v63 = vrot.slane %v16080_v55, 2 }
 0x559   : > { %v16112_v31 = vsel %vm18209_vm5, %v7648_v4, %v7650_v63  ;;  %v16115_v15 = vsel %vm18211_vm11, %v7650_v63, %v7652_v52  ;;  %v16127_v4 = vsel %vm18217_vm0, %v7656_v62, %v7658_v35  ;;  %v16133_v63 = vsel %vm18221_vm12, %v7660_v24, %v7662_v18  ;;  %vm18233_vm5 = vmmov %vm18217_vm0 }
 0x55a   : > { %18210 = vst [vmem:[#allocation72_spill] sm:$0xff] %v16112_v31  ;;  %18212 = vst [vmem:[#allocation73_spill] sm:$0xff] %v16115_v15 }
 0x55b   : > { %18218 = vst [vmem:[#allocation76_spill] sm:$0xff] %v16127_v4  ;;  %18222 = vst [vmem:[#allocation78_spill] sm:$0xff] %v16133_v63 }
 0x55c   : > { %vm18235_vm11 = vmmov %vm18217_vm0 }
 0x55e   : > { %12191 = vmatmul.mubr.bf16.gmra.mrb[24].mxu1 %v5725_v26  ;;  %v16109_v26 = vsel %vm18207_vm4, %v7643_v49, %v7644_v43  ;;  %v7664_v43 = vrot.slane %v13568_v28, 2  ;;  %v16130_v49 = vsel %vm18219_vm10, %v7658_v35, %v7660_v24  ;;  %vm18231_vm4 = vmmov %vm18217_vm0 }
 0x55f   : > { %12194 = vmatprep.mubr.bf16.mxu1 %v5733_v60  ;;  %18208 = vst [vmem:[#allocation71_spill] sm:$0xff] %v16109_v26  ;;  %v13579_v60 = vld [vmem:[#allocation2 + $0x98] ss:$0 sps:$4 sm:$0x11]   ;;  %18220 = vst [vmem:[#allocation77_spill] sm:$0xff] %v16130_v49  ;;  %v16252_v26 = vld [vmem:[#allocation2 + $0x90] sm:$0xff]  }
 0x560   : > { %v16136_v52 = vsel %vm18223_vm2, %v7662_v18, %v7664_v43  ;;  %v16139_v37 = vsel %vm18225_vm3, %v7664_v43, %v7666_v12  ;;  %v7678_v62 = vrot.slane %v13579_v60, 2  ;;  %v16165_v60 = vld [vmem:[#allocation2 + $0x18] sm:$0xff]   ;;  %vm18242_vm0 = vmmov %vm18240_vm8 }
 0x561   : > { %18224 = vst [vmem:[#allocation79_spill] sm:$0xff] %v16136_v52  ;;  %18226 = vst [vmem:[#allocation80_spill] sm:$0xff] %v16139_v37 }
 0x562   : > { %v16158_v43 = vsel %vm18237_vm6, %v7676_v14, %v7678_v62  ;;  %v8453_v62 = vshll.u32 %v16165_v60, 16  ;;  %vm18244_vm10 = vmmov %vm18242_vm0 }
 0x563   : > { %18238 = vst [vmem:[#allocation86_spill] sm:$0xff] %v16158_v43  ;;  %vm18246_vm12 = vmmov %vm18242_vm0 }
 0x564   : > { %v8455_v43 = vrot.slane %v8453_v62, 3  ;;  %v16192_v62 = vld [vmem:[#allocation2 + $0x50] sm:$0xff]   ;;  %vm18248_vm2 = vmmov %vm18242_vm0 }
 0x565   : > { %v8516_v15 = vshll.u32 %v16192_v62, 16  ;;  %vm18250_vm3 = vmmov %vm18242_vm0 }
 0x566   : > { %12195 = vmatmul.mubr.bf16.gmra.mrb[28].mxu1 %v5741_v34  ;;  %v7668_v34 = vrot.slane %v13571_v50, 2  ;;  %v7672_v50 = vrot.slane %v13574_v13, 2  ;;  %v16160_v13 = vld [vmem:[#allocation2 + $0x14] sm:$0xf]  ;;  %vm18262_vm6 = vmmov %vm18242_vm0 }
 0x567   : > { %12198 = vmatprep.mubr.bf16.mxu1 %v5749_v36  ;;  %v7670_v36 = vrot.slane %v13573_v39, 2  ;;  %v7674_v39 = vrot.slane %v13576_v1, 2 }
 0x568   : > { %v16142_v28 = vsel %vm18227_vm7, %v7666_v12, %v7668_v34  ;;  %v7959_v12 = vld [vmem:[#allocation2 + $0x10] sm:$0xc]  ;;  %vm18252_vm7 = vmmov %vm18242_vm0 }
 0x569   : > { %18228 = vst [vmem:[#allocation81_spill] sm:$0xff] %v16142_v28  ;;  %v16145_v8 = vsel %vm18229_vm1, %v7668_v34, %v7670_v36  ;;  %v16148_v35 = vsel %vm18231_vm4, %v7670_v36, %v7672_v50  ;;  %v16151_v24 = vsel %vm18233_vm5, %v7672_v50, %v7674_v39  ;;  %v16155_v18 = vsel %vm18235_vm11, %v7674_v39, %v7676_v14  ;;  %v16174_v34 = vld [vmem:[#allocation2 + $0x30] sm:$0xff]   ;;  %v13511_v39 = vld [vmem:[#allocation12 + $0x90] sm:$0xff]   ;;  %vm18254_vm1 = vmmov %vm18242_vm0 }
 0x56a   : > { %18230 = vst [vmem:[#allocation82_spill] sm:$0xff] %v16145_v8  ;;  %18232 = vst [vmem:[#allocation83_spill] sm:$0xff] %v16148_v35  ;;  %v16163_v1 = vcombine.low %v7959_v12, %v16160_v13  ;;  %v8450_v14 = vshrl.u32 %v16165_v60, 16  ;;  %v16180_v12 = vld [vmem:[#allocation2 + $0x38] sm:$0xff]   ;;  %v8477_v28 = vshrl.u32 %v16174_v34, 16 }
 0x56b   : > { %18234 = vst [vmem:[#allocation84_spill] sm:$0xff] %v16151_v24  ;;  %18236 = vst [vmem:[#allocation85_spill] sm:$0xff] %v16155_v18 }
 0x56c   : > { %18239 = vst [vmem:[#allocation87_spill] sm:$0xff] %v16163_v1  ;;  %v8442_v36 = vshrl.u32 %v16163_v1, 16  ;;  %v8445_v50 = vshll.u32 %v16163_v1, 16  ;;  %v8452_v58 = vrot.slane %v8450_v14, 2  ;;  %v8480_v14 = vshll.u32 %v16174_v34, 16  ;;  %vm18256_vm4 = vmmov %vm18242_vm0 }
 0x56d   : > { %v8479_v4 = vrot.slane %v8477_v28, 2  ;;  %vm18258_vm5 = vmmov %vm18242_vm0 }
 0x56e   : > { %12199 = vmatmul.mubr.bf16.gmra.mrb[32].mxu1 %v5752_v33  ;;  %v13510_v33 = vld [vmem:[#allocation12 + $0x88] sm:$0xff]   ;;  %v8444_v41 = vrot.slane %v8442_v36, 2  ;;  %v8447_v45 = vrot.slane %v8445_v50, 3  ;;  %v13512_v36 = vld [vmem:[#allocation12 + $0x98] sm:$0xff]   ;;  %v8456_v37 = vor.u32 %v8455_v43, %v8452_v58  ;;  %v8482_v43 = vrot.slane %v8480_v14, 3  ;;  %vm18260_vm11 = vmmov %vm18242_vm0 }
 0x56f   : > { %12218 = vmatprep.mubr.bf16.mxu1 %v18177_v48  ;;  %v16170_v48 = vld [vmem:[#allocation2 + $0x28] sm:$0xff]  }
 0x570   : > { %v8468_v1 = vshrl.u32 %v16170_v48, 16  ;;  %v8471_v18 = vshll.u32 %v16170_v48, 16  ;;  %v8448_v24 = vor.u32 %v8447_v45, %v8444_v41  ;;  %v16189_v50 = vld [vmem:[#allocation2 + $0x48] sm:$0xff]   ;;  %v8489_v45 = vshll.u32 %v16180_v12, 16  ;;  %v16197_v41 = vld [vmem:[#allocation2 + $0x58] sm:$0xff]  }
 0x571   : > { %v8504_v14 = vshrl.u32 %v16189_v50, 16 }
 0x572   : > { %v8470_v52 = vrot.slane %v8468_v1, 2  ;;  %v8473_v63 = vrot.slane %v8471_v18, 3  ;;  %v8495_v18 = vshrl.u32 %v16184_v61, 16  ;;  %v8498_v1 = vshll.u32 %v16184_v61, 16 }
 0x573   : > { %v8506_v32 = vrot.slane %v8504_v14, 2  ;;  %v8531_v14 = vshrl.u32 %v16208_v54, 16 }
 0x574   : > { %v8474_v58 = vor.u32 %v8473_v63, %v8470_v52  ;;  %v8483_v63 = vor.u32 %v8482_v43, %v8479_v4  ;;  %v8497_v52 = vrot.slane %v8495_v18, 2  ;;  %v16223_v4 = vld [vmem:[#allocation2 + $0x70] sm:$0xff]  }
 0x576   : > { %12219 = vmatmul.mubr.bf16.vlgmr.msra.gmra.mrb[0].mxu1 %v15983_v5 }
 0x577   : > { %12222 = vmatprep.mubr.bf16.mxu1 %v15953_v59  ;;  %12255 = vmatpush3.bf16.msra.mxu1 %v16036_v25  ;;  %v8459_v59 = vshrl.u32 %v16167_v22, 16  ;;  %v8462_v25 = vshll.u32 %v16167_v22, 16 }
 0x578   : > { %12256 = vmatprep.subr.bf16.mxu1 %v13510_v33 }
 0x579   : > { %v8461_v35 = vrot.slane %v8459_v59, 2  ;;  %v8464_v8 = vrot.slane %v8462_v25, 3  ;;  %v16200_v59 = vsel %vm18240_vm8, %v8448_v24, %v8456_v37  ;;  %v13513_v25 = vld [vmem:[#allocation12 + $0xa0] sm:$0xff]   ;;  %vm18264_vm8 = vmmov %vm18242_vm0 }
 0x57a   : > { %18241 = vst [vmem:[#allocation88_spill] sm:$0xff] %v16200_v59  ;;  %v16214_v59 = vld [vmem:[#allocation2 + $0x68] sm:$0xff]  }
 0x57b   : > { %12257 = vmatpush3.bf16.msra.mxu1 %v13510_v33  ;;  %v8465_v49 = vor.u32 %v8464_v8, %v8461_v35  ;;  %v8486_v33 = vshrl.u32 %v16180_v12, 16  ;;  %v8491_v35 = vrot.slane %v8489_v45, 3  ;;  %v8513_v45 = vshrl.u32 %v16192_v62, 16 }
 0x57c   : > { %12258 = vmatprep.subr.bf16.mxu1 %v13511_v39 }
 0x57d   : > { %v16205_v28 = vsel %vm18242_vm0, %v8456_v37, %v8465_v49  ;;  %v8488_v8 = vrot.slane %v8486_v33, 2  ;;  %v16211_v24 = vsel %vm18244_vm10, %v8465_v49, %v8474_v58  ;;  %v8500_v37 = vrot.slane %v8498_v1, 3  ;;  %v13514_v1 = vld [vmem:[#allocation12 + $0xa8] sm:$0xff]   ;;  %vm18265_vm10 = vmmov %vm18242_vm0 }
 0x57e   : > { %12223 = vmatmul.mubr.bf16.gmra.mrb[4].mxu1 %v15980_v30  ;;  %18243 = vst [vmem:[#allocation89_spill] sm:$0xff] %v16205_v28  ;;  %18245 = vst [vmem:[#allocation90_spill] sm:$0xff] %v16211_v24  ;;  %v8507_v33 = vshll.u32 %v16189_v50, 16  ;;  %v16219_v28 = vsel %vm18246_vm12, %v8474_v58, %v8483_v63  ;;  %v8522_v49 = vshrl.u32 %v16197_v41, 16  ;;  %v8518_v24 = vrot.slane %v8516_v15, 3 }
 0x57f   : > { %12226 = vmatprep.mubr.bf16.mxu1 %v15987_v23  ;;  %12259 = vmatpush3.bf16.msra.mxu1 %v13511_v39  ;;  %v8492_v39 = vor.u32 %v8491_v35, %v8488_v8  ;;  %18247 = vst [vmem:[#allocation91_spill] sm:$0xff] %v16219_v28  ;;  %v8501_v18 = vor.u32 %v8500_v37, %v8497_v52  ;;  %v8515_v35 = vrot.slane %v8513_v45, 2  ;;  %v8525_v58 = vshll.u32 %v16197_v41, 16  ;;  %v16230_v28 = vld [vmem:[#allocation2 + $0x78] sm:$0xff]   ;;  %v16238_v37 = vld [vmem:[#allocation2 + $0x80] sm:$0xff]   ;;  %vm18266_vm12 = vmmov %vm18242_vm0 }
 0x580   : > { %12260 = vmatprep.subr.bf16.mxu1 %v13512_v36  ;;  %v8509_v8 = vrot.slane %v8507_v33, 3  ;;  %v8524_v31 = vrot.slane %v8522_v49, 2  ;;  %v8540_v52 = vshrl.u32 %v16214_v59, 16  ;;  %v8533_v45 = vrot.slane %v8531_v14, 2 }
 0x581   : > { %v16226_v43 = vsel %vm18248_vm2, %v8483_v63, %v8492_v39  ;;  %v8534_v63 = vshll.u32 %v16208_v54, 16  ;;  %v8519_v15 = vor.u32 %v8518_v24, %v8515_v35  ;;  %v8527_v33 = vrot.slane %v8525_v58, 3 }
 0x582   : > { %18249 = vst [vmem:[#allocation92_spill] sm:$0xff] %v16226_v43  ;;  %v8510_v19 = vor.u32 %v8509_v8, %v8506_v32  ;;  %v8543_v49 = vshll.u32 %v16214_v59, 16  ;;  %v8542_v8 = vrot.slane %v8540_v52, 2  ;;  %v13515_v43 = vld [vmem:[#allocation12 + $0xb0] sm:$0xff]   ;;  %v8552_v14 = vshll.u32 %v16223_v4, 16 }
 0x583   : > { %12261 = vmatpush3.bf16.msra.mxu1 %v13512_v36  ;;  %v16233_v36 = vsel %vm18250_vm3, %v8492_v39, %v8501_v18  ;;  %v8536_v32 = vrot.slane %v8534_v63, 3  ;;  %v8528_v35 = vor.u32 %v8527_v33, %v8524_v31  ;;  %v8558_v63 = vshrl.u32 %v16230_v28, 16 }
 0x584   : > { %12262 = vmatprep.subr.bf16.mxu1 %v13513_v25  ;;  %18251 = vst [vmem:[#allocation93_spill] sm:$0xff] %v16233_v36  ;;  %v16243_v39 = vsel %vm18252_vm7, %v8501_v18, %v8510_v19  ;;  %v8549_v36 = vshrl.u32 %v16223_v4, 16  ;;  %v16249_v24 = vsel %vm18254_vm1, %v8510_v19, %v8519_v15  ;;  %v8545_v58 = vrot.slane %v8543_v49, 3  ;;  %vm18269_vm7 = vmmov %vm18242_vm0 }
 0x585   : > { %18253 = vst [vmem:[#allocation94_spill] sm:$0xff] %v16243_v39  ;;  %18255 = vst [vmem:[#allocation95_spill] sm:$0xff] %v16249_v24  ;;  %v8561_v52 = vshll.u32 %v16230_v28, 16  ;;  %v16256_v39 = vld [vmem:[#allocation2 + $0x98] sm:$0xff]   ;;  %v16259_v3 = vsel %vm18256_vm4, %v8519_v15, %v8528_v35  ;;  %v8554_v19 = vrot.slane %v8552_v14, 3  ;;  %v8567_v31 = vshrl.u32 %v16238_v37, 16 }
 0x586   : > { %12227 = vmatmul.mubr.bf16.gmra.mrb[8].mxu1 %v16000_v53  ;;  %v8551_v18 = vrot.slane %v8549_v36, 2  ;;  %18257 = vst [vmem:[#allocation96_spill] sm:$0xff] %v16259_v3  ;;  %v8546_v57 = vor.u32 %v8545_v58, %v8542_v8  ;;  %v8560_v49 = vrot.slane %v8558_v63, 2  ;;  %v8570_v36 = vshll.u32 %v16238_v37, 16 }
 0x587   : > { %12230 = vmatprep.mubr.bf16.mxu1 %v16003_v10  ;;  %12263 = vmatpush3.bf16.msra.mxu1 %v13513_v25  ;;  %v8537_v25 = vor.u32 %v8536_v32, %v8533_v45  ;;  %v8563_v45 = vrot.slane %v8561_v52, 3  ;;  %v13516_v32 = vld [vmem:[#allocation12 + $0xb8] sm:$0xff]   ;;  %v8569_v15 = vrot.slane %v8567_v31, 2  ;;  %v8576_v8 = vshrl.u32 %v16246_v11, 16 }
 0x588   : > { %12264 = vmatprep.subr.bf16.mxu1 %v13514_v1  ;;  %v8555_v51 = vor.u32 %v8554_v19, %v8551_v18  ;;  %v8572_v14 = vrot.slane %v8570_v36, 3  ;;  %v8890_v18 = vld [vmem:[#allocation2 + $0x10] sm:$0x8]  ;;  %vm18267_vm2 = vcmask 1044480  }
 0x589   : > { %v16263_v33 = vsel %vm18258_vm5, %v8528_v35, %v8537_v25  ;;  %v16267_v24 = vsel %vm18260_vm11, %v8537_v25, %v8546_v57  ;;  %v8564_v58 = vor.u32 %v8563_v45, %v8560_v49  ;;  %v8585_v35 = vshrl.u32 %v16252_v26, 16  ;;  %v16282_v36 = vld [vmem:[#allocation12 + $0xc0] sm:$0xff]   ;;  %vm18268_vm3 = vmmov %vm18267_vm2 }
 0x58a   : > { %18259 = vst [vmem:[#allocation97_spill] sm:$0xff] %v16263_v33  ;;  %18261 = vst [vmem:[#allocation98_spill] sm:$0xff] %v16267_v24  ;;  %v16274_v63 = vsel %vm18262_vm6, %v8546_v57, %v8555_v51  ;;  %v8578_v52 = vrot.slane %v8576_v8, 2  ;;  %v8588_v33 = vshll.u32 %v16252_v26, 16  ;;  %v8594_v25 = vshrl.u32 %v16256_v39, 16 }
 0x58b   : > { %12265 = vmatpush3.bf16.msra.mxu1 %v13514_v1  ;;  %v8579_v1 = vshll.u32 %v16246_v11, 16  ;;  %18263 = vst [vmem:[#allocation99_spill] sm:$0xff] %v16274_v63  ;;  %v16280_v19 = vsel %vm18264_vm8, %v8555_v51, %v8564_v58  ;;  %v8573_v31 = vor.u32 %v8572_v14, %v8569_v15  ;;  %v8587_v45 = vrot.slane %v8585_v35, 2  ;;  %vm18270_vm1 = vmmov %vm18267_vm2 }
 0x58c   : > { %12266 = vmatprep.subr.bf16.mxu1 %v13515_v43  ;;  %v8590_v57 = vrot.slane %v8588_v33, 3  ;;  %v8596_v63 = vrot.slane %v8594_v25, 2  ;;  %v8597_v8 = vshll.u32 %v16256_v39, 16  ;;  %v11007_v56 = vcombine.low %v8890_v18, %v16160_v13  ;;  %vm18271_vm4 = vmmov %vm18270_vm1 }
 0x58d   : > { %v8581_v49 = vrot.slane %v8579_v1, 3  ;;  %v16286_v24 = vsel %vm18242_vm0, %v8564_v58, %v8573_v31  ;;  %v8911_v51 = vrot.slane %v16165_v60, 3  ;;  %v8913_v33 = vrot.slane %v16167_v22, 3  ;;  %vm18272_vm5 = vmmov %vm18270_vm1 }
 0x58e   : > { %12231 = vmatmul.mubr.bf16.gmra.mrb[12].mxu1 %v16009_v7  ;;  %v8599_v17 = vrot.slane %v8597_v8, 3  ;;  %v8910_v14 = vrot.slane %v11007_v56, 3  ;;  %v8915_v13 = vrot.slane %v16170_v48, 3  ;;  %v8917_v35 = vrot.slane %v16174_v34, 3  ;;  %vm18273_vm11 = vmmov %vm18270_vm1 }
 0x58f   : > { %12234 = vmatprep.mubr.bf16.mxu1 %v16011_v29  ;;  %12267 = vmatpush3.bf16.msra.mxu1 %v13515_v43  ;;  %v8582_v3 = vor.u32 %v8581_v49, %v8578_v52  ;;  %v8591_v43 = vor.u32 %v8590_v57, %v8587_v45  ;;  %v8919_v56 = vrot.slane %v16180_v12, 3  ;;  %v8921_v48 = vrot.slane %v16184_v61, 3  ;;  %v13624_v52 = vld [vmem:[#allocation2 + $0xa0] ss:$0 sps:$4 sm:$0x33]   ;;  %vm18274_vm6 = vmmov %vm18270_vm1 }
 0x590   : > { %12268 = vmatprep.subr.bf16.mxu1 %v13516_v32  ;;  %v16298_v58 = vor.u32 %v8599_v17, %v8596_v63  ;;  %v16303_v60 = vsel %vm18267_vm2, %v8910_v14, %v8911_v51  ;;  %v16315_v17 = vsel %vm18270_vm1, %v8913_v33, %v8915_v13  ;;  %v16318_v22 = vsel %vm18271_vm4, %v8915_v13, %v8917_v35  ;;  %vm18275_vm8 = vmmov %vm18270_vm1 }
 0x591   : > { %v16291_v15 = vsel %vm18265_vm10, %v8573_v31, %v8582_v3  ;;  %v16296_v1 = vsel %vm18266_vm12, %v8582_v3, %v8591_v43  ;;  %v16323_v34 = vsel %vm18272_vm5, %v8917_v35, %v8919_v56  ;;  %v8923_v12 = vrot.slane %v16189_v50, 3  ;;  %vm18276_vm0 = vmmov %vm18270_vm1 }
 0x592   : > { %v16312_v3 = vsel %vm18269_vm7, %v8591_v43, %v16298_v58  ;;  %v8925_v63 = vrot.slane %v16192_v62, 3  ;;  %v16328_v25 = vsel %vm18273_vm11, %v8919_v56, %v8921_v48  ;;  %v8927_v18 = vrot.slane %v16197_v41, 3  ;;  %vm18277_vm10 = vmmov %vm18276_vm0 }
 0x593   : > { %12269 = vmatpush3.bf16.msra.mxu1 %v13516_v32  ;;  %v16306_v32 = vsel %vm18268_vm3, %v8911_v51, %v8913_v33  ;;  %v8929_v31 = vrot.slane %v16208_v54, 3  ;;  %v8931_v49 = vrot.slane %v16214_v59, 3  ;;  %v16334_v61 = vsel %vm18274_vm6, %v8921_v48, %v8923_v12  ;;  %vm18278_vm12 = vmmov %vm18276_vm0  ;;  %v5486_v48 = vld [vmem:[#allocation2 + $0x8c] sm:$0x7] }
 0x594   : > { %12306 = vmatprep.subr.bf16.mxu1 %v16282_v36  ;;  %v16337_v45 = vsel %vm18275_vm8, %v8923_v12, %v8925_v63  ;;  %v8933_v50 = vrot.slane %v16223_v4, 3  ;;  %v8935_v62 = vrot.slane %v16230_v28, 3  ;;  %v16342_v57 = vsel %vm18276_vm0, %v8925_v63, %v8927_v18  ;;  %vm18279_vm2 = vmmov %vm18276_vm0 }
 0x595   : > { %v16345_v8 = vsel %vm18277_vm10, %v8927_v18, %v8929_v31  ;;  %v16348_v54 = vsel %vm18278_vm12, %v8929_v31, %v8931_v49  ;;  %v8937_v41 = vrot.slane %v16238_v37, 3  ;;  %vm18280_vm3 = vmmov %vm18276_vm0  ;;  %v8939_v4 = vrot.slane %v16246_v11, 3  ;;  %v13647_v31 = vld [vmem:[#allocation2 + $0x10] sm:$0xff]  }
 0x596   : > { %12235 = vmatmul.mubr.bf16.gmra.mrb[16].mxu1 %v16019_v40  ;;  %v16352_v59 = vsel %vm18279_vm2, %v8931_v49, %v8933_v50  ;;  %v16355_v43 = vsel %vm18280_vm3, %v8933_v50, %v8935_v62  ;;  %v8941_v28 = vrot.slane %v16252_v26, 3  ;;  %vm18281_vm7 = vmmov %vm18276_vm0  ;;  %v8943_v14 = vrot.slane %v16256_v39, 3  ;;  %v6242_v26 = vld [vmem:[#allocation2] sm:$0xe]  ;;  %v13646_v39 = vld [vmem:[#allocation2 + $0x4] sm:$0xf] }
 0x597   : > { %12238 = vmatprep.mubr.bf16.mxu1 %v16023_v44  ;;  %v16360_v51 = vsel %vm18281_vm7, %v8935_v62, %v8937_v41  ;;  %v8945_v33 = vrot.slane %v13624_v52, 3  ;;  %vm18282_vm1 = vmmov %vm18276_vm0  ;;  %v10900_v56 = vcombine.low %v6242_v26, %v13646_v39  ;;  %v6263_v63 = vrot.slane %v15983_v5, 1  ;;  %v13520_v62 = vld [vmem:[#allocation12 + $0xc8] sm:$0xff]   ;;  %v13521_v5 = vld [vmem:[#allocation12 + $0xd0] sm:$0xff]  }
 0x598   : > { %v16364_v13 = vsel %vm18282_vm1, %v8937_v41, %v8939_v4  ;;  %vm18283_vm4 = vmmov %vm18276_vm0  ;;  %v10891_v52 = vcombine.low %v16057_v38, %v5486_v48  ;;  %vm18286_vm6 = vcmask 1046528   ;;  %v6265_v49 = vrot.slane %v13647_v31, 1  ;;  %v13523_v26 = vld [vmem:[#allocation12 + $0xe0] sm:$0xff]   ;;  %v13525_v48 = vld [vmem:[#allocation12 + $0xf0] sm:$0xff]  }
 0x599   : > { %v16367_v37 = vsel %vm18283_vm4, %v8939_v4, %v8941_v28  ;;  %vm18284_vm5 = vmmov %vm18276_vm0  ;;  %v6262_v12 = vrot.slane %v10900_v56, 1  ;;  %v6267_v50 = vrot.slane %v15980_v30, 1  ;;  %v6269_v38 = vrot.slane %v15987_v23, 1  ;;  %v13524_v23 = vld [vmem:[#allocation12 + $0xe8] sm:$0xff]  }
 0x59a   : > { %v16371_v35 = vsel %vm18284_vm5, %v8941_v28, %v8943_v14  ;;  %vm18285_vm11 = vmmov %vm18276_vm0  ;;  %v6271_v28 = vrot.slane %v16000_v53, 1  ;;  %v6275_v39 = vrot.slane %v16009_v7, 1  ;;  %v6281_v31 = vrot.slane %v16023_v44, 1 }
 0x59b   : > { %v16374_v11 = vsel %vm18285_vm11, %v8943_v14, %v8945_v33  ;;  %v6264_v18 = vsel %vm18286_vm6, %v6262_v12, %v6263_v63  ;;  %vm18287_vm8 = vmmov %vm18286_vm6  ;;  %v13522_v14 = vld [vmem:[#allocation12 + $0xd8] sm:$0xff]   ;;  %v6277_v12 = vrot.slane %v16011_v29, 1  ;;  %v6289_v44 = vrot.slane %v16046_v6, 1 }
 0x59c   : > { %v6266_v41 = vsel %vm18287_vm8, %v6263_v63, %v6265_v49  ;;  %vm18288_vm0 = vmmov %vm18286_vm6  ;;  %v6279_v63 = vrot.slane %v16019_v40, 1 }
 0x59d   : > { %v6268_v4 = vsel %vm18288_vm0, %v6265_v49, %v6267_v50  ;;  %vm18289_vm10 = vmmov %vm18288_vm0  ;;  %v6283_v49 = vrot.slane %v16029_v27, 1 }
 0x59e   : > { %12239 = vmatmul.mubr.bf16.gmra.mrb[20].mxu1 %v16029_v27  ;;  %v6270_v30 = vsel %vm18289_vm10, %v6267_v50, %v6269_v38  ;;  %vm18290_vm12 = vmmov %vm18288_vm0  ;;  %v6285_v50 = vrot.slane %v16033_v9, 1  ;;  %v6291_v27 = vrot.slane %v16052_v20, 1 }
 0x59f   : > { %12242 = vmatprep.mubr.bf16.mxu1 %v16033_v9  ;;  %v6272_v33 = vsel %vm18290_vm12, %v6269_v38, %v6271_v28  ;;  %vm18291_vm2 = vmmov %vm18288_vm0  ;;  %v6293_v9 = vrot.slane %v16055_v2, 1 }
 0x5a0   : > { %vm18292_vm3 = vmmov %vm18288_vm0  ;;  %v6292_v38 = vsel %vm18288_vm0, %v6289_v44, %v6291_v27 }
 0x5a1   : > { %vm18293_vm7 = vmmov %vm18288_vm0 }
 0x5a2   : > { %v6278_v7 = vsel %vm18293_vm7, %v6275_v39, %v6277_v12  ;;  %vm18294_vm1 = vmmov %vm18288_vm0 }
 0x5a3   : > { %vm18295_vm4 = vmmov %vm18288_vm0 }
 0x5a4   : > { %v6282_v29 = vsel %vm18295_vm4, %v6279_v63, %v6281_v31  ;;  %vm18296_vm5 = vmmov %vm18288_vm0 }
 0x5a5   : > { %v6284_v40 = vsel %vm18296_vm5, %v6281_v31, %v6283_v49  ;;  %vm18297_vm11 = vmmov %vm18288_vm0 }
 0x5a6   : > { %12243 = vmatmul.mubr.bf16.gmra.mrb[24].mxu1 %v16041_v21  ;;  %vm18298_vm6 = vmmov %vm18288_vm0 }
 0x5a7   : > { %12246 = vmatprep.mubr.bf16.mxu1 %v16046_v6  ;;  %vm18299_vm8 = vmmov %vm18288_vm0 }
 0x5a8   : > { %vm18300_vm10 = vmmov %vm18288_vm0 }
 0x5a9   : > { %vm18301_vm12 = vmmov %vm18288_vm0 }
 0x5aa   : > { %vm18304_vm7 = vmmov %vm18288_vm0 }
 0x5ab   : > { %vm18306_vm4 = vmmov %vm18288_vm0 }
 0x5ac   : > { %vm18307_vm5 = vmmov %vm18288_vm0 }
 0x5ae   : > { %12247 = vmatmul.mubr.bf16.gmra.mrb[28].mxu1 %v16052_v20 }
 0x5af   : > { %12250 = vmatprep.mubr.bf16.mxu1 %v16055_v2 }
 0x5b6   : > { %12251 = vmatmul.mubr.bf16.gmra.mrb[32].mxu1 %v10891_v52  ;;  %v6280_v52 = vsel %vm18294_vm1, %v6277_v12, %v6279_v63  ;;  %v13533_v12 = vld [vmem:[#allocation2 + $0x30] sm:$0xff]   ;;  %v13537_v63 = vld [vmem:[#allocation12 + $0x110] sm:$0xff]   ;;  %vm18305_vm1 = vmmov %vm18288_vm0 }
 0x5b7   : > { %12270 = vmatprep.mubr.bf16.mxu1 %v6264_v18  ;;  %v13530_v18 = vld [vmem:[#allocation12 + $0x100] sm:$0xff]  }
 0x5be   : > { %12271 = vmatmul.mubr.bf16.vlgmr.msra.gmra.mrb[0].mxu1 %v6266_v41  ;;  %v6286_v41 = vsel %vm18297_vm11, %v6283_v49, %v6285_v50  ;;  %v13535_v49 = vld [vmem:[#allocation2 + $0x38] sm:$0xff]   ;;  %vm18308_vm11 = vmmov %vm18288_vm0 }
 0x5bf   : > { %12274 = vmatprep.mubr.bf16.mxu1 %v6268_v4  ;;  %12307 = vmatpush3.bf16.msra.mxu1 %v16282_v36  ;;  %v6273_v36 = vrot.slane %v16003_v10, 1  ;;  %v13526_v10 = vld [vmem:[#allocation12 + $0xf8] sm:$0xff]  }
 0x5c0   : > { %12308 = vmatprep.subr.bf16.mxu1 %v13520_v62 }
 0x5c1   : > { %v6274_v53 = vsel %vm18291_vm2, %v6271_v28, %v6273_v36  ;;  %v6276_v56 = vsel %vm18292_vm3, %v6273_v36, %v6275_v39  ;;  %v6294_v28 = vsel %vm18300_vm10, %v6291_v27, %v6293_v9  ;;  %vm18302_vm2 = vmmov %vm18288_vm0  ;;  %v13531_v39 = vld [vmem:[#allocation2 + $0x20] sm:$0xff]  }
 0x5c2   : > { %v6723_v2 = vrot.slane %v13531_v39, 1  ;;  %vm18303_vm3 = vmmov %vm18288_vm0 }
 0x5c3   : > { %12309 = vmatpush3.bf16.msra.mxu1 %v13520_v62  ;;  %v6287_v62 = vrot.slane %v16041_v21, 1  ;;  %v6295_v21 = vrot.slane %v16065_v0, 1  ;;  %vm18311_vm10 = vmmov %vm18288_vm0 }
 0x5c4   : > { %12310 = vmatprep.subr.bf16.mxu1 %v13521_v5 }
 0x5c5   : > { %v6288_v4 = vsel %vm18298_vm6, %v6285_v50, %v6287_v62  ;;  %v13543_v50 = vld [vmem:[#allocation12 + $0x120] sm:$0xff]   ;;  %vm18309_vm6 = vmmov %vm18288_vm0 }
 0x5c6   : > { %12275 = vmatmul.mubr.bf16.gmra.mrb[4].mxu1 %v6270_v30  ;;  %v13527_v30 = vld [vmem:[#allocation2 + $0x8] sm:$0xfe]  }
 0x5c7   : > { %12278 = vmatprep.mubr.bf16.mxu1 %v6272_v33  ;;  %12311 = vmatpush3.bf16.msra.mxu1 %v13521_v5  ;;  %v6290_v5 = vsel %vm18299_vm8, %v6287_v62, %v6289_v44  ;;  %v13528_v33 = vld [vmem:[#allocation2 + $0x10] sm:$0xff]   ;;  %v6718_v6 = vrot.slane %v13527_v30, 1  ;;  %v6729_v62 = vrot.slane %v13535_v49, 1  ;;  %v13538_v44 = vld [vmem:[#allocation2 + $0x48] sm:$0xff]   ;;  %v13541_v30 = vld [vmem:[#allocation2 + $0x58] sm:$0xff]  }
 0x5c8   : > { %12312 = vmatprep.subr.bf16.mxu1 %v13522_v14  ;;  %v6719_v20 = vrot.slane %v13528_v33, 1  ;;  %vm18310_vm8 = vmmov %vm18288_vm0  ;;  %v13550_v49 = vld [vmem:[#allocation2 + $0x88] sm:$0xff]  }
 0x5ca   : > { %v6720_v36 = vsel %vm18302_vm2, %v6718_v6, %v6719_v20  ;;  %v13542_v6 = vld [vmem:[#allocation2 + $0x60] sm:$0xff]   ;;  %vm18313_vm2 = vmmov %vm18288_vm0 }
 0x5cb   : > { %12313 = vmatpush3.bf16.msra.mxu1 %v13522_v14  ;;  %v6296_v14 = vsel %vm18301_vm12, %v6293_v9, %v6295_v21  ;;  %v6733_v9 = vrot.slane %v13538_v44, 1  ;;  %vm18312_vm12 = vmmov %vm18288_vm0 }
 0x5cc   : > { %12314 = vmatprep.subr.bf16.mxu1 %v13523_v26 }
 0x5ce   : > { %12279 = vmatmul.mubr.bf16.gmra.mrb[8].mxu1 %v6274_v53  ;;  %v13534_v53 = vld [vmem:[#allocation12 + $0x108] sm:$0xff]  }
 0x5cf   : > { %12282 = vmatprep.mubr.bf16.mxu1 %v6276_v56  ;;  %12315 = vmatpush3.bf16.msra.mxu1 %v13523_v26  ;;  %v13529_v26 = vld [vmem:[#allocation2 + $0x18] sm:$0xff]   ;;  %v13532_v56 = vld [vmem:[#allocation2 + $0x28] sm:$0xff]  }
 0x5d0   : > { %12316 = vmatprep.subr.bf16.mxu1 %v13524_v23 }
 0x5d3   : > { %12317 = vmatpush3.bf16.msra.mxu1 %v13524_v23  ;;  %v6721_v23 = vrot.slane %v13529_v26, 1  ;;  %v6737_v26 = vrot.slane %v13541_v30, 1 }
 0x5d4   : > { %12318 = vmatprep.subr.bf16.mxu1 %v13525_v48 }
 0x5d5   : > { %v6722_v0 = vsel %vm18303_vm3, %v6719_v20, %v6721_v23  ;;  %v16425_v20 = vld [vmem:[#allocation12 + $0x140] sm:$0xff]   ;;  %vm18314_vm3 = vmmov %vm18288_vm0 }
 0x5d6   : > { %12283 = vmatmul.mubr.bf16.gmra.mrb[12].mxu1 %v6278_v7  ;;  %v6727_v7 = vrot.slane %v13533_v12, 1  ;;  %v13547_v12 = vld [vmem:[#allocation2 + $0x78] sm:$0xff]  }
 0x5d7   : > { %12286 = vmatprep.mubr.bf16.mxu1 %v6280_v52  ;;  %12319 = vmatpush3.bf16.msra.mxu1 %v13525_v48  ;;  %v6724_v48 = vsel %vm18304_vm7, %v6721_v23, %v6723_v2  ;;  %v13540_v52 = vld [vmem:[#allocation12 + $0x118] sm:$0xff]   ;;  %vm18315_vm7 = vmmov %vm18288_vm0 }
 0x5d8   : > { %12320 = vmatprep.subr.bf16.mxu1 %v13526_v10  ;;  %v13544_v23 = vld [vmem:[#allocation2 + $0x68] sm:$0xff]  }
 0x5db   : > { %12321 = vmatpush3.bf16.msra.mxu1 %v13526_v10  ;;  %v6725_v10 = vrot.slane %v13532_v56, 1 }
 0x5dc   : > { %12358 = vmatprep.subr.bf16.mxu1 %v13530_v18 }
 0x5dd   : > { %v6726_v31 = vsel %vm18305_vm1, %v6723_v2, %v6725_v10  ;;  %vm18316_vm1 = vmmov %vm18288_vm0 }
 0x5de   : > { %12287 = vmatmul.mubr.bf16.gmra.mrb[16].mxu1 %v6282_v29  ;;  %v6728_v29 = vsel %vm18306_vm4, %v6725_v10, %v6727_v7  ;;  %v13548_v10 = vld [vmem:[#allocation2 + $0x80] sm:$0xff]   ;;  %vm18317_vm4 = vmmov %vm18288_vm0 }
 0x5df   : > { %12290 = vmatprep.mubr.bf16.mxu1 %v6284_v40  ;;  %v13536_v40 = vld [vmem:[#allocation2 + $0x40] sm:$0xff]  }
 0x5e6   : > { %12291 = vmatmul.mubr.bf16.gmra.mrb[20].mxu1 %v6286_v41  ;;  %v13546_v41 = vld [vmem:[#allocation12 + $0x128] sm:$0xff]  }
 0x5e7   : > { %12294 = vmatprep.mubr.bf16.mxu1 %v6288_v4  ;;  %v6730_v4 = vsel %vm18307_vm5, %v6727_v7, %v6729_v62  ;;  %v6745_v7 = vrot.slane %v13547_v12, 1  ;;  %vm18318_vm5 = vsmask.f32 6400  ;;  %v7217_v12 = vshll.u32 %v16080_v55, 16 }
 0x5ee   : > { %12295 = vmatmul.mubr.bf16.gmra.mrb[24].mxu1 %v6290_v5  ;;  %v13539_v5 = vld [vmem:[#allocation2 + $0x50] sm:$0xff]  }
 0x5ef   : > { %12298 = vmatprep.mubr.bf16.mxu1 %v6292_v38  ;;  %v13549_v38 = vld [vmem:[#allocation12 + $0x130] sm:$0xff]  }
 0x5f6   : > { %12299 = vmatmul.mubr.bf16.gmra.mrb[28].mxu1 %v6294_v28  ;;  %v13552_v28 = vld [vmem:[#allocation12 + $0x138] sm:$0xff]  }
 0x5f7   : > { %12302 = vmatprep.mubr.bf16.mxu1 %v6296_v14 }
 0x5fe   : > { %12303 = vmatmul.mubr.bf16.gmra.mrb[32].mxu1 %v6295_v21  ;;  %v6735_v21 = vrot.slane %v13539_v5, 1  ;;  %v7190_v5 = vshll.u32 %v16072_v46, 16 }
 0x5ff   : > { %12322 = vmatprep.mubr.bf16.mxu1 %v6720_v36  ;;  %v6739_v36 = vrot.slane %v13542_v6, 1 }
 0x600   : > { %v6736_v33 = vsel %vm18310_vm8, %v6733_v9, %v6735_v21  ;;  %v6738_v39 = vsel %vm18288_vm0, %v6735_v21, %v6737_v26  ;;  %v7192_v30 = vrot.slane %v7190_v5, 2  ;;  %vm18324_vm8 = vmmov %vm18318_vm5 }
 0x601   : > { %v6740_v2 = vsel %vm18311_vm10, %v6737_v26, %v6739_v36  ;;  %vm18325_vm0 = vmmov %vm18318_vm5 }
 0x602   : > { %vm18328_vm10 = vmmov %vm18325_vm0 }
 0x606   : > { %12323 = vmatmul.mubr.bf16.vlgmr.msra.gmra.mrb[0].mxu1 %v6722_v0  ;;  %v6741_v0 = vrot.slane %v13544_v23, 1 }
 0x607   : > { %12326 = vmatprep.mubr.bf16.mxu1 %v6724_v48  ;;  %12359 = vmatpush3.bf16.msra.mxu1 %v13530_v18  ;;  %v6731_v18 = vrot.slane %v13536_v40, 1  ;;  %v7032_v40 = vld [vmem:[#allocation2 + $0x8] sm:$0xe] }
 0x608   : > { %12360 = vmatprep.subr.bf16.mxu1 %v13534_v53  ;;  %v6742_v48 = vsel %vm18312_vm12, %v6739_v36, %v6741_v0  ;;  %v7205_v36 = vshrl.u32 %v16078_v16, 16  ;;  %vm18329_vm12 = vmmov %vm18325_vm0 }
 0x609   : > { %v6732_v27 = vsel %vm18308_vm11, %v6729_v62, %v6731_v18  ;;  %v6734_v14 = vsel %vm18309_vm6, %v6731_v18, %v6733_v9  ;;  %v10935_v62 = vcombine.low %v7032_v40, %v16074_v47  ;;  %v6749_v18 = vrot.slane %v13550_v49, 1  ;;  %vm18320_vm11 = vmmov %vm18318_vm5 }
 0x60a   : > { %v7196_v47 = vshrl.u32 %v16076_v42, 16  ;;  %v7219_v49 = vrot.slane %v7217_v12, 2  ;;  %vm18321_vm6 = vmmov %vm18318_vm5 }
 0x60b   : > { %12361 = vmatpush3.bf16.msra.mxu1 %v13534_v53  ;;  %v13545_v53 = vld [vmem:[#allocation2 + $0x70] sm:$0xff]   ;;  %v7182_v44 = vshll.u32 %v10935_v62, 16 }
 0x60c   : > { %12362 = vmatprep.subr.bf16.mxu1 %v13537_v63  ;;  %v6743_v56 = vrot.slane %v13545_v53, 1  ;;  %v7207_v53 = vrot.slane %v7205_v36, 1 }
 0x60e   : > { %12327 = vmatmul.mubr.bf16.gmra.mrb[4].mxu1 %v6726_v31  ;;  %v6746_v31 = vsel %vm18314_vm3, %v6743_v56, %v6745_v7  ;;  %vm18331_vm3 = vmmov %vm18325_vm0 }
 0x60f   : > { %12330 = vmatprep.mubr.bf16.mxu1 %v6728_v29  ;;  %12363 = vmatpush3.bf16.msra.mxu1 %v13537_v63  ;;  %v6744_v63 = vsel %vm18313_vm2, %v6741_v0, %v6743_v56  ;;  %v13551_v29 = vld [vmem:[#allocation2 + $0x90] sm:$0xff]   ;;  %vm18330_vm2 = vmmov %vm18325_vm0 }
 0x610   : > { %12364 = vmatprep.subr.bf16.mxu1 %v13540_v52 }
 0x613   : > { %12365 = vmatpush3.bf16.msra.mxu1 %v13540_v52  ;;  %v6747_v52 = vrot.slane %v13548_v10, 1 }
 0x614   : > { %12366 = vmatprep.subr.bf16.mxu1 %v13543_v50 }
 0x616   : > { %12331 = vmatmul.mubr.bf16.gmra.mrb[8].mxu1 %v6730_v4  ;;  %v7179_v4 = vshrl.u32 %v10935_v62, 16 }
 0x617   : > { %12334 = vmatprep.mubr.bf16.mxu1 %v6732_v27  ;;  %12367 = vmatpush3.bf16.msra.mxu1 %v13543_v50  ;;  %v6748_v50 = vsel %vm18315_vm7, %v6745_v7, %v6747_v52  ;;  %v7187_v27 = vshrl.u32 %v16072_v46, 16  ;;  %v7208_v46 = vshll.u32 %v16078_v16, 16  ;;  %vm18332_vm7 = vmmov %vm18325_vm0 }
 0x618   : > { %12368 = vmatprep.subr.bf16.mxu1 %v13546_v41  ;;  %v7181_v21 = vrot.slane %v7179_v4, 1 }
 0x619   : > { %v7210_v0 = vrot.slane %v7208_v46, 2 }
 0x61b   : > { %12369 = vmatpush3.bf16.msra.mxu1 %v13546_v41  ;;  %v6751_v41 = vrot.slane %v13551_v29, 1 }
 0x61c   : > { %12370 = vmatprep.subr.bf16.mxu1 %v13549_v38 }
 0x61d   : > { %v6752_v9 = vsel %vm18317_vm4, %v6749_v18, %v6751_v41  ;;  %vm18334_vm4 = vmmov %vm18325_vm0 }
 0x61e   : > { %12335 = vmatmul.mubr.bf16.gmra.mrb[12].mxu1 %v6734_v14  ;;  %v7189_v14 = vrot.slane %v7187_v27, 1  ;;  %v18323_v27 = vld [vmem:[#allocation66_spill] sm:$0xff] }
 0x61f   : > { %12338 = vmatprep.mubr.bf16.mxu1 %v6736_v33  ;;  %12371 = vmatpush3.bf16.msra.mxu1 %v13549_v38  ;;  %v6750_v38 = vsel %vm18316_vm1, %v6747_v52, %v6749_v18  ;;  %v7199_v33 = vshll.u32 %v16076_v42, 16  ;;  %v7211_v42 = vor.u32 %v7210_v0, %v7207_v53  ;;  %v13560_v52 = vld [vmem:[#allocation12 + $0x148] sm:$0xff]   ;;  %v7241_v5 = vshrl.u32 %v18323_v27, 16  ;;  %vm18333_vm1 = vmmov %vm18325_vm0 }
 0x620   : > { %12372 = vmatprep.subr.bf16.mxu1 %v13552_v28  ;;  %v7193_v26 = vor.u32 %v7192_v30, %v7189_v14  ;;  %v18322_v18 = vld [vmem:[#allocation60_spill] sm:$0xff] }
 0x621   : > { %v7201_v23 = vrot.slane %v7199_v33, 2  ;;  %v7235_v4 = vshll.u32 %v18322_v18, 16  ;;  %v7243_v30 = vrot.slane %v7241_v5, 1  ;;  %v13569_v33 = vld [vmem:[#allocation12 + $0x160] sm:$0xff]   ;;  %v13572_v0 = vld [vmem:[#allocation12 + $0x168] sm:$0xff]  }
 0x623   : > { %12373 = vmatpush3.bf16.msra.mxu1 %v13552_v28  ;;  %v7184_v28 = vrot.slane %v7182_v44, 2  ;;  %v7237_v14 = vrot.slane %v7235_v4, 2 }
 0x624   : > { %12410 = vmatprep.subr.bf16.mxu1 %v16425_v20 }
 0x625   : > { %v7185_v6 = vor.u32 %v7184_v28, %v7181_v21 }
 0x626   : > { %12339 = vmatmul.mubr.bf16.gmra.mrb[16].mxu1 %v6738_v39  ;;  %v7198_v39 = vrot.slane %v7196_v47, 1 }
 0x627   : > { %12342 = vmatprep.mubr.bf16.mxu1 %v6740_v2  ;;  %v7194_v2 = vsel %vm18318_vm5, %v7185_v6, %v7193_v26  ;;  %vm18335_vm5 = vmmov %vm18325_vm0 }
 0x628   : > { %v7202_v56 = vor.u32 %v7201_v23, %v7198_v39  ;;  %v18327_v23 = vld [vmem:[#allocation68_spill] sm:$0xff] }
 0x629   : > { %v7262_v53 = vshll.u32 %v18327_v23, 16 }
 0x62a   : > { %v7203_v16 = vsel %vm18320_vm11, %v7193_v26, %v7202_v56  ;;  %v7212_v29 = vsel %vm18321_vm6, %v7202_v56, %v7211_v42  ;;  %v18326_v26 = vld [vmem:[#allocation67_spill] sm:$0xff]  ;;  %vm18336_vm11 = vmmov %vm18325_vm0 }
 0x62b   : > { %v7250_v36 = vshrl.u32 %v18326_v26, 16  ;;  %v7253_v46 = vshll.u32 %v18326_v26, 16  ;;  %vm18337_vm6 = vmmov %vm18325_vm0 }
 0x62d   : > { %v7255_v12 = vrot.slane %v7253_v46, 2 }
 0x62e   : > { %12343 = vmatmul.mubr.bf16.gmra.mrb[20].mxu1 %v6742_v48  ;;  %v7214_v48 = vshrl.u32 %v16080_v55, 16  ;;  %v13563_v55 = vld [vmem:[#allocation12 + $0x150] sm:$0xff]  }
 0x62f   : > { %12346 = vmatprep.mubr.bf16.mxu1 %v6744_v63  ;;  %v18319_v63 = vld [vmem:[#allocation63_spill] sm:$0xff] }
 0x630   : > { %v7223_v10 = vshrl.u32 %v18319_v63, 16  ;;  %v7226_v7 = vshll.u32 %v18319_v63, 16 }
 0x632   : > { %v7225_v40 = vrot.slane %v7223_v10, 1  ;;  %v7264_v10 = vrot.slane %v7262_v53, 2  ;;  %v13652_v53 = vld [vmem:[#allocation2 + $0x78] sm:$0xff]  }
 0x636   : > { %12347 = vmatmul.mubr.bf16.gmra.mrb[24].mxu1 %v6746_v31  ;;  %v7216_v31 = vrot.slane %v7214_v48, 1  ;;  %v7252_v48 = vrot.slane %v7250_v36, 1 }
 0x637   : > { %12350 = vmatprep.mubr.bf16.mxu1 %v6748_v50  ;;  %v7228_v50 = vrot.slane %v7226_v7, 2  ;;  %v13575_v7 = vld [vmem:[#allocation12 + $0x170] sm:$0xff]  }
 0x638   : > { %v7220_v62 = vor.u32 %v7219_v49, %v7216_v31 }
 0x639   : > { %v7229_v44 = vor.u32 %v7228_v50, %v7225_v40  ;;  %v13649_v40 = vld [vmem:[#allocation2 + $0x60] sm:$0xff]  }
 0x63a   : > { %v7221_v21 = vsel %vm18324_vm8, %v7211_v42, %v7220_v62  ;;  %v7277_v50 = vshrl.u32 %v13649_v40, 16  ;;  %vm18338_vm8 = vmmov %vm18325_vm0 }
 0x63e   : > { %12351 = vmatmul.mubr.bf16.gmra.mrb[28].mxu1 %v6750_v38  ;;  %v7244_v38 = vshll.u32 %v18323_v27, 16  ;;  %v7279_v27 = vrot.slane %v7277_v50, 1 }
 0x63f   : > { %12354 = vmatprep.mubr.bf16.mxu1 %v6752_v9  ;;  %v13566_v9 = vld [vmem:[#allocation12 + $0x158] sm:$0xff]  }
 0x640   : > { %v7246_v47 = vrot.slane %v7244_v38, 2  ;;  %v16465_v38 = vld [vmem:[#allocation12 + $0x180] sm:$0xff]  }
 0x642   : > { %v7247_v39 = vor.u32 %v7246_v47, %v7243_v30  ;;  %v13651_v30 = vld [vmem:[#allocation2 + $0x70] sm:$0xff]  }
 0x643   : > { %v7295_v47 = vshrl.u32 %v13651_v30, 16 }
 0x646   : > { %12355 = vmatmul.mubr.bf16.gmra.mrb[32].mxu1 %v6751_v41  ;;  %v7232_v41 = vshrl.u32 %v18322_v18, 16 }
 0x647   : > { %12374 = vmatprep.mubr.bf16.mxu1 %v7194_v2  ;;  %v7259_v2 = vshrl.u32 %v18327_v23, 16 }
 0x648   : > { %v7234_v28 = vrot.slane %v7232_v41, 1 }
 0x649   : > { %v7261_v63 = vrot.slane %v7259_v2, 1 }
 0x64a   : > { %v7238_v6 = vor.u32 %v7237_v14, %v7234_v28 }
 0x64c   : > { %v7239_v56 = vsel %vm18328_vm10, %v7229_v44, %v7238_v6  ;;  %v7248_v42 = vsel %vm18329_vm12, %v7238_v6, %v7247_v39  ;;  %vm18339_vm10 = vmmov %vm18325_vm0  ;;  %vm18359_vm12 = vcmask 1045504  }
 0x64e   : > { %12375 = vmatmul.mubr.bf16.vlgmr.msra.gmra.mrb[0].mxu1 %v7203_v16  ;;  %v13648_v16 = vld [vmem:[#allocation2 + $0x58] sm:$0xff]  }
 0x64f   : > { %12378 = vmatprep.mubr.bf16.mxu1 %v7212_v29  ;;  %12411 = vmatpush3.bf16.msra.mxu1 %v16425_v20  ;;  %v7230_v20 = vsel %vm18325_vm0, %v7220_v62, %v7229_v44  ;;  %v7268_v31 = vshrl.u32 %v13648_v16, 16  ;;  %v7271_v49 = vshll.u32 %v13648_v16, 16  ;;  %v7265_v29 = vor.u32 %v7264_v10, %v7261_v63  ;;  %v13578_v62 = vld [vmem:[#allocation12 + $0x178] sm:$0xff]  }
 0x650   : > { %12412 = vmatprep.subr.bf16.mxu1 %v13560_v52 }
 0x651   : > { %v7270_v41 = vrot.slane %v7268_v31, 1  ;;  %v7273_v4 = vrot.slane %v7271_v49, 2 }
 0x653   : > { %12413 = vmatpush3.bf16.msra.mxu1 %v13560_v52  ;;  %v7256_v52 = vor.u32 %v7255_v12, %v7252_v48  ;;  %v13653_v12 = vld [vmem:[#allocation2 + $0x80] sm:$0xff]  }
 0x654   : > { %12414 = vmatprep.subr.bf16.mxu1 %v13563_v55  ;;  %v7316_v63 = vshll.u32 %v13653_v12, 16 }
 0x655   : > { %v7257_v18 = vsel %vm18330_vm2, %v7247_v39, %v7256_v52  ;;  %v7266_v44 = vsel %vm18331_vm3, %v7256_v52, %v7265_v29  ;;  %v7297_v39 = vrot.slane %v7295_v47, 1  ;;  %v13656_v47 = vld [vmem:[#allocation2 + $0x98] ss:$0 sps:$4 sm:$0x11]   ;;  %vm18360_vm2 = vmmov %vm18359_vm12 }
 0x656   : > { %12379 = vmatmul.mubr.bf16.gmra.mrb[4].mxu1 %v7221_v21  ;;  %v13650_v21 = vld [vmem:[#allocation2 + $0x68] sm:$0xff]   ;;  %v7318_v49 = vrot.slane %v7316_v63, 2  ;;  %vm18361_vm3 = vmmov %vm18360_vm2 }
 0x657   : > { %12382 = vmatprep.mubr.bf16.mxu1 %v7230_v20  ;;  %12415 = vmatpush3.bf16.msra.mxu1 %v13563_v55  ;;  %v7280_v55 = vshll.u32 %v13649_v40, 16  ;;  %v7286_v28 = vshrl.u32 %v13650_v21, 16  ;;  %v7289_v14 = vshll.u32 %v13650_v21, 16  ;;  %v13654_v40 = vld [vmem:[#allocation2 + $0x88] sm:$0xff]  }
 0x658   : > { %12416 = vmatprep.subr.bf16.mxu1 %v13566_v9  ;;  %v7322_v50 = vshrl.u32 %v13654_v40, 16  ;;  %v18345_v63 = vld [vmem:[#allocation74_spill] sm:$0xff] }
 0x659   : > { %v7282_v5 = vrot.slane %v7280_v55, 2  ;;  %v7288_v26 = vrot.slane %v7286_v28, 1  ;;  %v7291_v36 = vrot.slane %v7289_v14, 2  ;;  %v7325_v55 = vshll.u32 %v13654_v40, 16  ;;  %v18351_v40 = vld [vmem:[#allocation80_spill] sm:$0xff] }
 0x65b   : > { %12417 = vmatpush3.bf16.msra.mxu1 %v13566_v9  ;;  %v7274_v9 = vor.u32 %v7273_v4, %v7270_v41  ;;  %v7283_v20 = vor.u32 %v7282_v5, %v7279_v27  ;;  %v7292_v2 = vor.u32 %v7291_v36, %v7288_v26  ;;  %v7324_v27 = vrot.slane %v7322_v50, 1  ;;  %v18352_v50 = vld [vmem:[#allocation81_spill] sm:$0xff] }
 0x65c   : > { %12418 = vmatprep.subr.bf16.mxu1 %v13569_v33  ;;  %v7327_v5 = vrot.slane %v7325_v55, 2  ;;  %v18353_v55 = vld [vmem:[#allocation82_spill] sm:$0xff] }
 0x65d   : > { %v7275_v6 = vsel %vm18332_vm7, %v7265_v29, %v7274_v9  ;;  %v7284_v46 = vsel %vm18333_vm1, %v7274_v9, %v7283_v20  ;;  %v7293_v10 = vsel %vm18334_vm4, %v7283_v20, %v7292_v2  ;;  %vm18362_vm7 = vmmov %vm18360_vm2 }
 0x65e   : > { %12383 = vmatmul.mubr.bf16.gmra.mrb[8].mxu1 %v7239_v56  ;;  %v7307_v56 = vshll.u32 %v13652_v53, 16  ;;  %v7328_v14 = vor.u32 %v7327_v5, %v7324_v27  ;;  %v13657_v27 = vld [vmem:[#allocation2 + $0x18] sm:$0xff]   ;;  %vm18363_vm1 = vmmov %vm18360_vm2 }
 0x65f   : > { %12386 = vmatprep.mubr.bf16.mxu1 %v7248_v42  ;;  %12419 = vmatpush3.bf16.msra.mxu1 %v13569_v33  ;;  %v7298_v33 = vshll.u32 %v13651_v30, 16  ;;  %v7313_v42 = vshrl.u32 %v13653_v12, 16  ;;  %v13585_v12 = vld [vmem:[#allocation12 + $0x1a0] sm:$0xff]   ;;  %v8106_v5 = vrot.slane %v13657_v27, 2  ;;  %vm18364_vm4 = vmmov %vm18363_vm1 }
 0x660   : > { %12420 = vmatprep.subr.bf16.mxu1 %v13572_v0  ;;  %v7309_v52 = vrot.slane %v7307_v56, 2  ;;  %v18343_v56 = vld [vmem:[#allocation72_spill] sm:$0xff] }
 0x661   : > { %v7300_v23 = vrot.slane %v7298_v33, 2  ;;  %v7315_v31 = vrot.slane %v7313_v42, 1  ;;  %v7340_v33 = vshll.u32 %v13656_v47, 16  ;;  %v13586_v42 = vld [vmem:[#allocation12 + $0x1a8] sm:$0xff]  }
 0x662   : > { %v13596_v47 = vld [vmem:[#allocation12 + $0x1c8] sm:$0xff]  }
 0x663   : > { %12421 = vmatpush3.bf16.msra.mxu1 %v13572_v0  ;;  %v7304_v0 = vshrl.u32 %v13652_v53, 16  ;;  %v7301_v48 = vor.u32 %v7300_v23, %v7297_v39  ;;  %v7342_v26 = vrot.slane %v7340_v33, 2  ;;  %v13582_v39 = vld [vmem:[#allocation12 + $0x188] sm:$0xff]   ;;  %v18341_v23 = vld [vmem:[#allocation69_spill] sm:$0xff] }
 0x664   : > { %12422 = vmatprep.subr.bf16.mxu1 %v13575_v7  ;;  %v13583_v53 = vld [vmem:[#allocation12 + $0x190] sm:$0xff]  }
 0x665   : > { %v7302_v16 = vsel %vm18335_vm5, %v7292_v2, %v7301_v48  ;;  %v18342_v2 = vld [vmem:[#allocation70_spill] sm:$0xff]  ;;  %vm18365_vm5 = vmmov %vm18363_vm1 }
 0x666   : > { %12387 = vmatmul.mubr.bf16.gmra.mrb[12].mxu1 %v7257_v18  ;;  %v13655_v18 = vld [vmem:[#allocation2 + $0x90] sm:$0xff]  }
 0x667   : > { %12390 = vmatprep.mubr.bf16.mxu1 %v7266_v44  ;;  %12423 = vmatpush3.bf16.msra.mxu1 %v13575_v7  ;;  %v7306_v7 = vrot.slane %v7304_v0, 1  ;;  %v7331_v41 = vshrl.u32 %v13655_v18, 16  ;;  %v7334_v4 = vshll.u32 %v13655_v18, 16  ;;  %v13584_v0 = vld [vmem:[#allocation12 + $0x198] sm:$0xff]   ;;  %v18355_v18 = vld [vmem:[#allocation84_spill] sm:$0xff] }
 0x668   : > { %12424 = vmatprep.subr.bf16.mxu1 %v13578_v62 }
 0x669   : > { %v7310_v29 = vor.u32 %v7309_v52, %v7306_v7  ;;  %v7333_v21 = vrot.slane %v7331_v41, 1  ;;  %v7336_v28 = vrot.slane %v7334_v4, 2  ;;  %v13588_v7 = vld [vmem:[#allocation12 + $0x1b8] sm:$0xff]   ;;  %v18347_v52 = vld [vmem:[#allocation76_spill] sm:$0xff]  ;;  %v18357_v4 = vld [vmem:[#allocation87_spill] sm:$0xff] }
 0x66a   : > { %v18356_v41 = vld [vmem:[#allocation85_spill] sm:$0xff] }
 0x66b   : > { %12425 = vmatpush3.bf16.msra.mxu1 %v13578_v62  ;;  %v7319_v62 = vor.u32 %v7318_v49, %v7315_v31  ;;  %v7311_v44 = vsel %vm18336_vm11, %v7301_v48, %v7310_v29  ;;  %v7337_v20 = vor.u32 %v7336_v28, %v7333_v21  ;;  %v18344_v48 = vld [vmem:[#allocation73_spill] sm:$0xff]  ;;  %v13592_v31 = vld [vmem:[#allocation12 + $0x1c0] sm:$0xff]   ;;  %vm18366_vm11 = vmmov %vm18363_vm1 }
 0x66c   : > { %12462 = vmatprep.subr.bf16.mxu1 %v16465_v38  ;;  %v18349_v49 = vld [vmem:[#allocation78_spill] sm:$0xff]  ;;  %v13658_v28 = vld [vmem:[#allocation2 + $0x20] sm:$0xff]  }
 0x66d   : > { %v7320_v9 = vsel %vm18337_vm6, %v7310_v29, %v7319_v62  ;;  %v7329_v30 = vsel %vm18338_vm8, %v7319_v62, %v7328_v14  ;;  %v7343_v36 = vsel %vm18339_vm10, %v7337_v20, %v7342_v26  ;;  %v18350_v29 = vld [vmem:[#allocation79_spill] sm:$0xff]  ;;  %v13599_v26 = vld [vmem:[#allocation12 + $0x1d0] sm:$0xff]   ;;  %vm18367_vm6 = vmmov %vm18363_vm1 }
 0x66e   : > { %12391 = vmatmul.mubr.bf16.gmra.mrb[16].mxu1 %v7275_v6  ;;  %v7338_v6 = vsel %vm18325_vm0, %v7328_v14, %v7337_v20  ;;  %v18354_v62 = vld [vmem:[#allocation83_spill] sm:$0xff]  ;;  %v8108_v14 = vrot.slane %v13658_v28, 2  ;;  %v13659_v20 = vld [vmem:[#allocation2 + $0x28] sm:$0xff]   ;;  %vm18368_vm8 = vmmov %vm18363_vm1 }
 0x66f   : > { %12394 = vmatprep.mubr.bf16.mxu1 %v7284_v46  ;;  %v18340_v46 = vld [vmem:[#allocation71_spill] sm:$0xff]  ;;  %vm18369_vm0 = vmmov %vm18363_vm1 }
 0x670   : > { %v8109_v33 = vsel %vm18360_vm2, %v8106_v5, %v8108_v14  ;;  %v13669_v28 = vld [vmem:[#allocation2 + $0x78] sm:$0xff]   ;;  %vm18370_vm10 = vmmov %vm18369_vm0 }
 0x671   : > { %vm18372_vm2 = vmmov %vm18369_vm0 }
 0x676   : > { %12395 = vmatmul.mubr.bf16.gmra.mrb[20].mxu1 %v7293_v10  ;;  %v18346_v10 = vld [vmem:[#allocation75_spill] sm:$0xff] }
 0x677   : > { %12398 = vmatprep.mubr.bf16.mxu1 %v7302_v16  ;;  %v18348_v16 = vld [vmem:[#allocation77_spill] sm:$0xff] }
 0x67e   : > { %12399 = vmatmul.mubr.bf16.gmra.mrb[24].mxu1 %v7311_v44  ;;  %v8105_v44 = vrot.slane %v18357_v4, 2  ;;  %v13667_v4 = vld [vmem:[#allocation2 + $0x68] sm:$0xff]  }
 0x67f   : > { %12402 = vmatprep.mubr.bf16.mxu1 %v7320_v9  ;;  %v18358_v9 = vld [vmem:[#allocation86_spill] sm:$0xff] }
 0x680   : > { %v8107_v21 = vsel %vm18359_vm12, %v8105_v44, %v8106_v5  ;;  %v8126_v44 = vrot.slane %v13667_v4, 2  ;;  %vm18371_vm12 = vmmov %vm18369_vm0  ;;  %v18385_v4 = vld [vmem:[#allocation96_spill] sm:$0xff] }
 0x686   : > { %12403 = vmatmul.mubr.bf16.gmra.mrb[28].mxu1 %v7329_v30  ;;  %v8110_v30 = vrot.slane %v13659_v20, 2 }
 0x687   : > { %12406 = vmatprep.mubr.bf16.mxu1 %v7338_v6 }
 0x688   : > { %v8111_v6 = vsel %vm18361_vm3, %v8108_v14, %v8110_v30  ;;  %v8130_v14 = vrot.slane %v13669_v28, 2  ;;  %vm18373_vm3 = vmmov %vm18369_vm0 }
 0x68e   : > { %12407 = vmatmul.mubr.bf16.gmra.mrb[32].mxu1 %v7343_v36  ;;  %v13660_v36 = vld [vmem:[#allocation2 + $0x30] sm:$0xff]  }
 0x68f   : > { %12426 = vmatprep.mubr.bf16.mxu1 %v18340_v46  ;;  %v8112_v46 = vrot.slane %v13660_v36, 2 }
 0x696   : > { %12427 = vmatmul.mubr.bf16.vlgmr.msra.gmra.mrb[0].mxu1 %v18341_v23 }
 0x697   : > { %12430 = vmatprep.mubr.bf16.mxu1 %v18342_v2  ;;  %12463 = vmatpush3.bf16.msra.mxu1 %v16465_v38  ;;  %v13587_v38 = vld [vmem:[#allocation12 + $0x1b0] sm:$0xff]   ;;  %v13602_v2 = vld [vmem:[#allocation12 + $0x1d8] sm:$0xff]  }
 0x698   : > { %12464 = vmatprep.subr.bf16.mxu1 %v13582_v39 }
 0x69b   : > { %12465 = vmatpush3.bf16.msra.mxu1 %v13582_v39  ;;  %v13661_v39 = vld [vmem:[#allocation2 + $0x38] sm:$0xff]  }
 0x69c   : > { %12466 = vmatprep.subr.bf16.mxu1 %v13583_v53  ;;  %v8114_v23 = vrot.slane %v13661_v39, 2  ;;  %v13672_v39 = vld [vmem:[#allocation2 + $0x90] sm:$0xff]  }
 0x69e   : > { %12431 = vmatmul.mubr.bf16.gmra.mrb[4].mxu1 %v18343_v56  ;;  %v13605_v56 = vld [vmem:[#allocation12 + $0x1e0] sm:$0xff]  }
 0x69f   : > { %12434 = vmatprep.mubr.bf16.mxu1 %v18344_v48  ;;  %12467 = vmatpush3.bf16.msra.mxu1 %v13583_v53  ;;  %v8113_v53 = vsel %vm18362_vm7, %v8110_v30, %v8112_v46  ;;  %v13662_v48 = vld [vmem:[#allocation2 + $0x40] sm:$0xff]   ;;  %vm18374_vm7 = vmmov %vm18369_vm0 }
 0x6a0   : > { %12468 = vmatprep.subr.bf16.mxu1 %v13584_v0 }
 0x6a3   : > { %12469 = vmatpush3.bf16.msra.mxu1 %v13584_v0  ;;  %v8115_v0 = vsel %vm18363_vm1, %v8112_v46, %v8114_v23  ;;  %vm18375_vm1 = vmmov %vm18369_vm0 }
 0x6a4   : > { %12470 = vmatprep.subr.bf16.mxu1 %v13585_v12 }
 0x6a6   : > { %12435 = vmatmul.mubr.bf16.gmra.mrb[8].mxu1 %v18345_v63 }
 0x6a7   : > { %12438 = vmatprep.mubr.bf16.mxu1 %v18346_v10  ;;  %12471 = vmatpush3.bf16.msra.mxu1 %v13585_v12  ;;  %v8116_v12 = vrot.slane %v13662_v48, 2  ;;  %v13608_v10 = vld [vmem:[#allocation12 + $0x1e8] sm:$0xff]  }
 0x6a8   : > { %12472 = vmatprep.subr.bf16.mxu1 %v13586_v42 }
 0x6ab   : > { %12473 = vmatpush3.bf16.msra.mxu1 %v13586_v42  ;;  %v13663_v42 = vld [vmem:[#allocation2 + $0x48] sm:$0xff]  }
 0x6ac   : > { %12474 = vmatprep.subr.bf16.mxu1 %v13587_v38  ;;  %v8118_v63 = vrot.slane %v13663_v42, 2 }
 0x6ae   : > { %12439 = vmatmul.mubr.bf16.gmra.mrb[12].mxu1 %v18347_v52  ;;  %v13611_v52 = vld [vmem:[#allocation12 + $0x1f0] sm:$0xff]  }
 0x6af   : > { %12442 = vmatprep.mubr.bf16.mxu1 %v18348_v16  ;;  %12475 = vmatpush3.bf16.msra.mxu1 %v13587_v38  ;;  %v8117_v38 = vsel %vm18364_vm4, %v8114_v23, %v8116_v12  ;;  %v13664_v16 = vld [vmem:[#allocation2 + $0x50] sm:$0xff]   ;;  %v8136_v23 = vrot.slane %v13672_v39, 2  ;;  %vm18376_vm4 = vmmov %vm18369_vm0 }
 0x6b0   : > { %12476 = vmatprep.subr.bf16.mxu1 %v13588_v7 }
 0x6b3   : > { %12477 = vmatpush3.bf16.msra.mxu1 %v13588_v7  ;;  %v8119_v7 = vsel %vm18365_vm5, %v8116_v12, %v8118_v63  ;;  %vm18389_vm5 = vsmask.f32 5376 }
 0x6b4   : > { %12514 = vmatprep.subr.bf16.mxu1 %v13592_v31 }
 0x6b6   : > { %12443 = vmatmul.mubr.bf16.gmra.mrb[16].mxu1 %v18349_v49  ;;  %v13665_v49 = vld [vmem:[#allocation2 + $0x58] sm:$0xff]  }
 0x6b7   : > { %12446 = vmatprep.mubr.bf16.mxu1 %v18350_v29  ;;  %v8122_v29 = vrot.slane %v13665_v49, 2  ;;  %v18381_v49 = vld [vmem:[#allocation92_spill] sm:$0xff] }
 0x6be   : > { %12447 = vmatmul.mubr.bf16.gmra.mrb[20].mxu1 %v18351_v40  ;;  %v13614_v40 = vld [vmem:[#allocation12 + $0x1f8] sm:$0xff]  }
 0x6bf   : > { %12450 = vmatprep.mubr.bf16.mxu1 %v18352_v50 }
 0x6c6   : > { %12451 = vmatmul.mubr.bf16.gmra.mrb[24].mxu1 %v18353_v55 }
 0x6c7   : > { %12454 = vmatprep.mubr.bf16.mxu1 %v18354_v62  ;;  %v13616_v62 = vld [vmem:[#allocation12 + $0x200] sm:$0xff]  }
 0x6ce   : > { %12455 = vmatmul.mubr.bf16.gmra.mrb[28].mxu1 %v18355_v18  ;;  %v13666_v18 = vld [vmem:[#allocation2 + $0x60] sm:$0xff]  }
 0x6cf   : > { %12458 = vmatprep.mubr.bf16.mxu1 %v18356_v41  ;;  %v8124_v41 = vrot.slane %v13666_v18, 2  ;;  %v13623_v18 = vld [vmem:[#allocation12 + $0x238] sm:$0xff]  }
 0x6d1   : > { %v8125_v27 = vsel %vm18368_vm8, %v8122_v29, %v8124_v41  ;;  %v8127_v5 = vsel %vm18369_vm0, %v8124_v41, %v8126_v44  ;;  %v18384_v41 = vld [vmem:[#allocation95_spill] sm:$0xff]  ;;  %vm18433_vm8 = vcmask 1044480  }
 0x6d6   : > { %12459 = vmatmul.mubr.bf16.gmra.mrb[32].mxu1 %v18358_v9  ;;  %v13668_v9 = vld [vmem:[#allocation2 + $0x70] sm:$0xff]  }
 0x6d7   : > { %12478 = vmatprep.mubr.bf16.mxu1 %v8107_v21  ;;  %v8128_v21 = vrot.slane %v13668_v9, 2  ;;  %v13674_v9 = vld [vmem:[#allocation2 + $0xa0] ss:$0 sps:$4 sm:$0x33]  }
 0x6d8   : > { %v8606_v28 = vshll.u32 %v13674_v9, 16 }
 0x6d9   : > { %v8129_v20 = vsel %vm18370_vm10, %v8126_v44, %v8128_v21  ;;  %v8131_v30 = vsel %vm18371_vm12, %v8128_v21, %v8130_v14  ;;  %v18386_v44 = vld [vmem:[#allocation97_spill] sm:$0xff]  ;;  %v8603_v21 = vshrl.u32 %v13674_v9, 16 }
 0x6de   : > { %12479 = vmatmul.mubr.bf16.vlgmr.msra.gmra.mrb[0].mxu1 %v8109_v33 }
 0x6df   : > { %12482 = vmatprep.mubr.bf16.mxu1 %v8111_v6  ;;  %12515 = vmatpush3.bf16.msra.mxu1 %v13592_v31  ;;  %v8120_v31 = vrot.slane %v13664_v16, 2  ;;  %v13671_v6 = vld [vmem:[#allocation2 + $0x88] sm:$0xff]  }
 0x6e0   : > { %12516 = vmatprep.subr.bf16.mxu1 %v13596_v47  ;;  %v13619_v16 = vld [vmem:[#allocation12 + $0x218] sm:$0xff]  }
 0x6e1   : > { %v8121_v50 = vsel %vm18366_vm11, %v8118_v63, %v8120_v31  ;;  %v8123_v55 = vsel %vm18367_vm6, %v8120_v31, %v8122_v29  ;;  %v18377_v63 = vld [vmem:[#allocation88_spill] sm:$0xff]  ;;  %v18380_v31 = vld [vmem:[#allocation91_spill] sm:$0xff]  ;;  %vm18431_vm11 = vmmov %vm18369_vm0 }
 0x6e2   : > { %v13620_v29 = vld [vmem:[#allocation12 + $0x220] sm:$0xff]   ;;  %vm18432_vm6 = vmmov %vm18369_vm0 }
 0x6e3   : > { %12517 = vmatpush3.bf16.msra.mxu1 %v13596_v47  ;;  %v13670_v47 = vld [vmem:[#allocation2 + $0x80] sm:$0xff]   ;;  %vm18435_vm0 = vmmov %vm18433_vm8 }
 0x6e4   : > { %12518 = vmatprep.subr.bf16.mxu1 %v13599_v26  ;;  %v8132_v33 = vrot.slane %v13670_v47, 2  ;;  %vm18437_vm10 = vmmov %vm18435_vm0 }
 0x6e5   : > { %vm18439_vm12 = vmmov %vm18435_vm0 }
 0x6e6   : > { %12483 = vmatmul.mubr.bf16.gmra.mrb[4].mxu1 %v8113_v53  ;;  %v8133_v36 = vsel %vm18372_vm2, %v8130_v14, %v8132_v33  ;;  %v8605_v14 = vrot.slane %v8603_v21, 2  ;;  %vm18441_vm2 = vmmov %vm18435_vm0 }
 0x6e7   : > { %12486 = vmatprep.mubr.bf16.mxu1 %v8115_v0  ;;  %12519 = vmatpush3.bf16.msra.mxu1 %v13599_v26  ;;  %v8134_v26 = vrot.slane %v13671_v6, 2 }
 0x6e8   : > { %12520 = vmatprep.subr.bf16.mxu1 %v13602_v2 }
 0x6e9   : > { %v8135_v46 = vsel %vm18373_vm3, %v8132_v33, %v8134_v26  ;;  %v8137_v0 = vsel %vm18374_vm7, %v8134_v26, %v8136_v23  ;;  %v18395_v26 = vld [vmem:[#allocation30_spill] sm:$0xff]  ;;  %vm18443_vm3 = vmmov %vm18435_vm0 }
 0x6ea   : > { %vm18445_vm7 = vmmov %vm18435_vm0 }
 0x6eb   : > { %12521 = vmatpush3.bf16.msra.mxu1 %v13602_v2  ;;  %v13673_v2 = vld [vmem:[#allocation2 + $0x98] sm:$0xff]  }
 0x6ec   : > { %12522 = vmatprep.subr.bf16.mxu1 %v13605_v56  ;;  %v8138_v53 = vrot.slane %v13673_v2, 2 }
 0x6ee   : > { %12487 = vmatmul.mubr.bf16.gmra.mrb[8].mxu1 %v8117_v38  ;;  %v8139_v48 = vsel %vm18375_vm1, %v8136_v23, %v8138_v53  ;;  %v18378_v38 = vld [vmem:[#allocation89_spill] sm:$0xff]  ;;  %vm18447_vm1 = vmmov %vm18435_vm0 }
 0x6ef   : > { %12490 = vmatprep.mubr.bf16.mxu1 %v8119_v7  ;;  %12523 = vmatpush3.bf16.msra.mxu1 %v13605_v56  ;;  %v13615_v56 = vld [vmem:[#allocation2 + $0xa0] ss:$0 sps:$4 sm:$0x11]   ;;  %v18379_v7 = vld [vmem:[#allocation90_spill] sm:$0xff] }
 0x6f0   : > { %12524 = vmatprep.subr.bf16.mxu1 %v13608_v10  ;;  %v8140_v12 = vrot.slane %v13615_v56, 2 }
 0x6f2   : > { %v8141_v42 = vsel %vm18376_vm4, %v8138_v53, %v8140_v12  ;;  %v18396_v53 = vld [vmem:[#allocation29_spill] sm:$0xff]  ;;  %vm18449_vm4 = vmmov %vm18435_vm0 }
 0x6f3   : > { %12525 = vmatpush3.bf16.msra.mxu1 %v13608_v10  ;;  %v13617_v10 = vld [vmem:[#allocation12 + $0x208] sm:$0xff]  }
 0x6f4   : > { %12526 = vmatprep.subr.bf16.mxu1 %v13611_v52 }
 0x6f6   : > { %12491 = vmatmul.mubr.bf16.gmra.mrb[12].mxu1 %v8121_v50  ;;  %v18382_v50 = vld [vmem:[#allocation93_spill] sm:$0xff] }
 0x6f7   : > { %12494 = vmatprep.mubr.bf16.mxu1 %v8123_v55  ;;  %12527 = vmatpush3.bf16.msra.mxu1 %v13611_v52  ;;  %v13618_v52 = vld [vmem:[#allocation12 + $0x210] sm:$0xff]   ;;  %v18383_v55 = vld [vmem:[#allocation94_spill] sm:$0xff] }
 0x6f8   : > { %12528 = vmatprep.subr.bf16.mxu1 %v13614_v40 }
 0x6fb   : > { %12529 = vmatpush3.bf16.msra.mxu1 %v13614_v40  ;;  %v13621_v40 = vld [vmem:[#allocation12 + $0x228] sm:$0xff]  }
 0x6fc   : > { %12566 = vmatprep.subr.bf16.mxu1 %v13616_v62 }
 0x6fe   : > { %12495 = vmatmul.mubr.bf16.gmra.mrb[16].mxu1 %v8125_v27  ;;  %v18387_v27 = vld [vmem:[#allocation98_spill] sm:$0xff] }
 0x6ff   : > { %12498 = vmatprep.mubr.bf16.mxu1 %v8127_v5  ;;  %v18388_v5 = vld [vmem:[#allocation99_spill] sm:$0xff] }
 0x706   : > { %12499 = vmatmul.mubr.bf16.gmra.mrb[20].mxu1 %v8129_v20  ;;  %v8608_v20 = vrot.slane %v8606_v28, 3  ;;  %v18401_v28 = vld [vmem:[#allocation35_spill] sm:$0xff] }
 0x707   : > { %12502 = vmatprep.mubr.bf16.mxu1 %v8131_v30 }
 0x708   : > { %v8609_v30 = vor.u32 %v8608_v20, %v8605_v14 }
 0x70a   : > { %v8610_v47 = vsel %vm18389_vm5, %v16298_v58, %v8609_v30  ;;  %vm18451_vm5 = vmmov %vm18435_vm0 }
 0x70e   : > { %12503 = vmatmul.mubr.bf16.gmra.mrb[24].mxu1 %v8133_v36 }
 0x70f   : > { %12506 = vmatprep.mubr.bf16.mxu1 %v8135_v46 }
 0x716   : > { %12507 = vmatmul.mubr.bf16.gmra.mrb[28].mxu1 %v8137_v0 }
 0x717   : > { %12510 = vmatprep.mubr.bf16.mxu1 %v8139_v48  ;;  %v18397_v48 = vld [vmem:[#allocation31_spill] sm:$0xff] }
 0x71e   : > { %12511 = vmatmul.mubr.bf16.gmra.mrb[32].mxu1 %v8141_v42 }
 0x71f   : > { %12530 = vmatprep.mubr.bf16.mxu1 %v18377_v63 }
 0x726   : > { %12531 = vmatmul.mubr.bf16.vlgmr.msra.gmra.mrb[0].mxu1 %v18378_v38 }
 0x727   : > { %12534 = vmatprep.mubr.bf16.mxu1 %v18379_v7  ;;  %12567 = vmatpush3.bf16.msra.mxu1 %v13616_v62  ;;  %v13622_v62 = vld [vmem:[#allocation12 + $0x230] sm:$0xff]  }
 0x728   : > { %12568 = vmatprep.subr.bf16.mxu1 %v13617_v10 }
 0x72b   : > { %12569 = vmatpush3.bf16.msra.mxu1 %v13617_v10 }
 0x72c   : > { %12570 = vmatprep.subr.bf16.mxu1 %v13618_v52 }
 0x72e   : > { %12535 = vmatmul.mubr.bf16.gmra.mrb[4].mxu1 %v18380_v31 }
 0x72f   : > { %12538 = vmatprep.mubr.bf16.mxu1 %v18381_v49  ;;  %12571 = vmatpush3.bf16.msra.mxu1 %v13618_v52 }
 0x730   : > { %12572 = vmatprep.subr.bf16.mxu1 %v13619_v16 }
 0x733   : > { %12573 = vmatpush3.bf16.msra.mxu1 %v13619_v16 }
 0x734   : > { %12574 = vmatprep.subr.bf16.mxu1 %v13620_v29 }
 0x736   : > { %12539 = vmatmul.mubr.bf16.gmra.mrb[8].mxu1 %v18382_v50 }
 0x737   : > { %12542 = vmatprep.mubr.bf16.mxu1 %v18383_v55  ;;  %12575 = vmatpush3.bf16.msra.mxu1 %v13620_v29  ;;  %v18398_v29 = vld [vmem:[#allocation32_spill] sm:$0xff] }
 0x738   : > { %12576 = vmatprep.subr.bf16.mxu1 %v13621_v40 }
 0x73b   : > { %12577 = vmatpush3.bf16.msra.mxu1 %v13621_v40 }
 0x73c   : > { %12578 = vmatprep.subr.bf16.mxu1 %v13622_v62 }
 0x73e   : > { %12543 = vmatmul.mubr.bf16.gmra.mrb[12].mxu1 %v18384_v41 }
 0x73f   : > { %12546 = vmatprep.mubr.bf16.mxu1 %v18385_v4  ;;  %12579 = vmatpush3.bf16.msra.mxu1 %v13622_v62  ;;  %v18399_v62 = vld [vmem:[#allocation34_spill] sm:$0xff] }
 0x740   : > { %12580 = vmatprep.subr.bf16.mxu1 %v13623_v18 }
 0x743   : > { %12581 = vmatpush3.bf16.msra.mxu1 %v13623_v18 }
 0x746   : > { %12547 = vmatmul.mubr.bf16.gmra.mrb[16].mxu1 %v18386_v44 }
 0x747   : > { %12550 = vmatprep.mubr.bf16.mxu1 %v18387_v27 }
 0x74e   : > { %12551 = vmatmul.mubr.bf16.gmra.mrb[20].mxu1 %v18388_v5  ;;  %v18400_v5 = vld [vmem:[#allocation33_spill] sm:$0xff] }
 0x74f   : > { %12554 = vmatprep.mubr.bf16.mxu1 %v16280_v19 }
 0x756   : > { %12555 = vmatmul.mubr.bf16.gmra.mrb[24].mxu1 %v16286_v24 }
 0x757   : > { %12558 = vmatprep.mubr.bf16.mxu1 %v16291_v15  ;;  %v18390_v15 = vld [vmem:[#allocation24_spill] sm:$0xff] }
 0x75e   : > { %12559 = vmatmul.mubr.bf16.gmra.mrb[28].mxu1 %v16296_v1 }
 0x75f   : > { %12562 = vmatprep.mubr.bf16.mxu1 %v16312_v3 }
 0x766   : > { %12563 = vmatmul.mubr.bf16.gmra.mrb[32].mxu1 %v8610_v47 }
 0x767   : > { %12582 = vmatprep.mubr.bf16.mxu1 %v16303_v60 }
 0x76e   : > { %12583 = vmatmul.mubr.bf16.vlgmr.msra.gmra.mrb[0].mxu1 %v16306_v32  ;;  %v18391_v32 = vld [vmem:[#allocation25_spill] sm:$0xff] }
 0x76f   : > { %12586 = vmatprep.mubr.bf16.mxu1 %v16315_v17  ;;  %v18392_v17 = vld [vmem:[#allocation26_spill] sm:$0xff] }
 0x776   : > { %12587 = vmatmul.mubr.bf16.gmra.mrb[4].mxu1 %v16318_v22 }
 0x777   : > { %12590 = vmatprep.mubr.bf16.mxu1 %v16323_v34 }
 0x77e   : > { %12591 = vmatmul.mubr.bf16.gmra.mrb[8].mxu1 %v16328_v25  ;;  %v18393_v25 = vld [vmem:[#allocation27_spill] sm:$0xff] }
 0x77f   : > { %12594 = vmatprep.mubr.bf16.mxu1 %v16334_v61 }
 0x786   : > { %12595 = vmatmul.mubr.bf16.gmra.mrb[12].mxu1 %v16337_v45 }
 0x787   : > { %12598 = vmatprep.mubr.bf16.mxu1 %v16342_v57 }
 0x78e   : > { %12599 = vmatmul.mubr.bf16.gmra.mrb[16].mxu1 %v16345_v8 }
 0x78f   : > { %12602 = vmatprep.mubr.bf16.mxu1 %v16348_v54 }
 0x796   : > { %12603 = vmatmul.mubr.bf16.gmra.mrb[20].mxu1 %v16352_v59 }
 0x797   : > { %12606 = vmatprep.mubr.bf16.mxu1 %v16355_v43 }
 0x79e   : > { %12607 = vmatmul.mubr.bf16.gmra.mrb[24].mxu1 %v16360_v51 }
 0x79f   : > { %12610 = vmatprep.mubr.bf16.mxu1 %v16364_v13 }
 0x7a6   : > { %12611 = vmatmul.mubr.bf16.gmra.mrb[28].mxu1 %v16367_v37 }
 0x7a7   : > { %12614 = vmatprep.mubr.bf16.mxu1 %v16371_v35  ;;  %v18394_v35 = vld [vmem:[#allocation28_spill] sm:$0xff] }
 0x7ae   : > { %12615 = vmatmul.mubr.bf16.gmra.mrb[32].mxu1 %v16374_v11 }
 0x841   : > { %v16552_v24 = vpop.f32.mrb[0].mxu1 }
 0x842   : > { %v16554_v19 = vpop.f32.mrb[1].mxu1  ;;  %v9228_v3 = vmul.f32 %v16552_v24, %v18391_v32 }
 0x843   : > { %v9226_v1 = vmul.f32 %v16554_v19, %v18390_v15  ;;  %v16558_v58 = vpop.f32.mrb[2].mxu1 }
 0x844   : > { %v16560_v60 = vpop.f32.mrb[3].mxu1  ;;  %v9229_v61 = vmul.f32 %v16558_v58, %v18393_v25  ;;  %v9306_v8 = vmul.f32 %v16552_v24, %v9228_v3 }
 0x845   : > { %v9227_v22 = vmul.f32 %v16560_v60, %v18392_v17  ;;  %v9304_v34 = vmul.f32 %v9226_v1, %v16554_v19 }
 0x846   : > { %v9307_v13 = vmul.f32 %v16558_v58, %v9229_v61 }
 0x847   : > { %v9262_v45 = vadd.f32 %v9227_v22, %v9226_v1  ;;  %v9305_v57 = vmul.f32 %v9227_v22, %v16560_v60 }
 0x849   : > { %v9263_v54 = vadd.f32 %v9262_v45, %v9228_v3  ;;  %v9340_v59 = vadd.f32 %v9305_v57, %v9304_v34  ;;  %v16571_v43 = vpop.f32.mrb[4].mxu1  ;;  %v18402_v57 = vld [vmem:[#allocation36_spill] sm:$0xff] }
 0x84a   : > { %v16573_v51 = vpop.f32.mrb[5].mxu1  ;;  %v9232_v36 = vmul.f32 %v16571_v43, %v18395_v26 }
 0x84b   : > { %v9341_v37 = vadd.f32 %v9340_v59, %v9306_v8  ;;  %v9230_v11 = vmul.f32 %v16573_v51, %v18394_v35  ;;  %v9264_v33 = vadd.f32 %v9263_v54, %v9229_v61  ;;  %v16578_v6 = vpop.f32.mrb[6].mxu1 }
 0x84c   : > { %v16582_v46 = vpop.f32.mrb[7].mxu1  ;;  %v9233_v12 = vmul.f32 %v16578_v6, %v18397_v48  ;;  %v9310_v10 = vmul.f32 %v16571_v43, %v9232_v36 }
 0x84d   : > { %v9265_v39 = vadd.f32 %v9264_v33, %v9230_v11  ;;  %v9308_v23 = vmul.f32 %v9230_v11, %v16573_v51  ;;  %v9342_v2 = vadd.f32 %v9341_v37, %v9307_v13  ;;  %v9231_v0 = vmul.f32 %v16582_v46, %v18396_v53  ;;  %v18403_v13 = vld [vmem:[#allocation38_spill] sm:$0xff] }
 0x84e   : > { %v9311_v31 = vmul.f32 %v16578_v6, %v9233_v12 }
 0x84f   : > { %v9343_v56 = vadd.f32 %v9342_v2, %v9308_v23  ;;  %v9266_v42 = vadd.f32 %v9265_v39, %v9231_v0  ;;  %v9309_v63 = vmul.f32 %v9231_v0, %v16582_v46  ;;  %v18404_v23 = vld [vmem:[#allocation37_spill] sm:$0xff] }
 0x851   : > { %v9267_v38 = vadd.f32 %v9266_v42, %v9232_v36  ;;  %v9344_v7 = vadd.f32 %v9343_v56, %v9309_v63  ;;  %v16591_v52 = vpop.f32.mrb[8].mxu1  ;;  %v18405_v56 = vld [vmem:[#allocation39_spill] sm:$0xff] }
 0x852   : > { %v16593_v16 = vpop.f32.mrb[9].mxu1  ;;  %v9236_v18 = vmul.f32 %v16591_v52, %v18399_v62  ;;  %v9584_v62 = vld [vmem:[%s14325_s24 + $0xc] sm:$0xf] }
 0x853   : > { %v9345_v49 = vadd.f32 %v9344_v7, %v9310_v10  ;;  %v9234_v40 = vmul.f32 %v16593_v16, %v18398_v29  ;;  %v9268_v50 = vadd.f32 %v9267_v38, %v9233_v12  ;;  %v16598_v55 = vpop.f32.mrb[10].mxu1  ;;  %v18430_v29 = vld [vmem:[#allocation57_spill] sm:$0xff]  ;;  %v9621_v25 = vunpack.c.l.bf16 %v9584_v62 }
 0x854   : > { %v16602_v41 = vpop.f32.mrb[11].mxu1  ;;  %v9237_v14 = vmul.f32 %v16598_v55, %v18401_v28  ;;  %v9314_v47 = vmul.f32 %v16591_v52, %v9236_v18  ;;  %v18428_v28 = vld [vmem:[#allocation58_spill] sm:$0xff] }
 0x855   : > { %v9269_v4 = vadd.f32 %v9268_v50, %v9234_v40  ;;  %v9312_v44 = vmul.f32 %v9234_v40, %v16593_v16  ;;  %v9346_v27 = vadd.f32 %v9345_v49, %v9311_v31  ;;  %v9235_v9 = vmul.f32 %v16602_v41, %v18400_v5 }
 0x856   : > { %v9315_v61 = vmul.f32 %v16598_v55, %v9237_v14  ;;  %v9696_v15 = vrot.slane %v9621_v25, 3 }
 0x857   : > { %v9347_v21 = vadd.f32 %v9346_v27, %v9312_v44  ;;  %v9270_v20 = vadd.f32 %v9269_v4, %v9235_v9  ;;  %v9313_v30 = vmul.f32 %v9235_v9, %v16602_v41  ;;  %v18407_v9 = vld [vmem:[#allocation42_spill] sm:$0xff] }
 0x859   : > { %v9271_v1 = vadd.f32 %v9270_v20, %v9236_v18  ;;  %v9348_v3 = vadd.f32 %v9347_v21, %v9313_v30  ;;  %v16611_v22 = vpop.f32.mrb[12].mxu1  ;;  %v18406_v18 = vld [vmem:[#allocation40_spill] sm:$0xff] }
 0x85a   : > { %v16613_v34 = vpop.f32.mrb[13].mxu1  ;;  %v9240_v37 = vmul.f32 %v16611_v22, %v18403_v13 }
 0x85b   : > { %v9349_v45 = vadd.f32 %v9348_v3, %v9314_v47  ;;  %v9238_v8 = vmul.f32 %v16613_v34, %v18402_v57  ;;  %v9272_v54 = vadd.f32 %v9271_v1, %v9237_v14  ;;  %v16618_v59 = vpop.f32.mrb[14].mxu1  ;;  %v18408_v1 = vld [vmem:[#allocation41_spill] sm:$0xff]  ;;  %v9583_v57 = vld [vmem:[%s14325_s24 + $0x8] sm:$0xe] }
 0x85c   : > { %v16622_v11 = vpop.f32.mrb[15].mxu1  ;;  %v9241_v12 = vmul.f32 %v16618_v59, %v18405_v56  ;;  %v9318_v10 = vmul.f32 %v16611_v22, %v9240_v37 }
 0x85d   : > { %v9273_v33 = vadd.f32 %v9272_v54, %v9238_v8  ;;  %v9316_v36 = vmul.f32 %v9238_v8, %v16613_v34  ;;  %v9350_v39 = vadd.f32 %v9349_v45, %v9315_v61  ;;  %v9239_v2 = vmul.f32 %v16622_v11, %v18404_v23  ;;  %v18409_v45 = vld [vmem:[#allocation43_spill] sm:$0xff] }
 0x85e   : > { %v9319_v40 = vmul.f32 %v16618_v59, %v9241_v12 }
 0x85f   : > { %v9351_v0 = vadd.f32 %v9350_v39, %v9316_v36  ;;  %v9274_v42 = vadd.f32 %v9273_v33, %v9239_v2  ;;  %v9317_v63 = vmul.f32 %v9239_v2, %v16622_v11 }
 0x861   : > { %v9275_v38 = vadd.f32 %v9274_v42, %v9240_v37  ;;  %v9352_v7 = vadd.f32 %v9351_v0, %v9317_v63  ;;  %v16631_v31 = vpop.f32.mrb[16].mxu1  ;;  %v18410_v63 = vld [vmem:[#allocation44_spill] sm:$0xff] }
 0x862   : > { %v16633_v49 = vpop.f32.mrb[17].mxu1  ;;  %v9244_v21 = vmul.f32 %v16631_v31, %v18407_v9 }
 0x863   : > { %v9353_v50 = vadd.f32 %v9352_v7, %v9318_v10  ;;  %v9242_v4 = vmul.f32 %v16633_v49, %v18406_v18  ;;  %v9276_v44 = vadd.f32 %v9275_v38, %v9241_v12  ;;  %v16638_v27 = vpop.f32.mrb[18].mxu1 }
 0x864   : > { %v16642_v14 = vpop.f32.mrb[19].mxu1  ;;  %v9245_v8 = vmul.f32 %v16638_v27, %v18409_v45  ;;  %v9322_v33 = vmul.f32 %v16631_v31, %v9244_v21 }
 0x865   : > { %v9277_v20 = vadd.f32 %v9276_v44, %v9242_v4  ;;  %v9320_v30 = vmul.f32 %v9242_v4, %v16633_v49  ;;  %v9354_v47 = vadd.f32 %v9353_v50, %v9319_v40  ;;  %v9243_v3 = vmul.f32 %v16642_v14, %v18408_v1  ;;  %v18411_v40 = vld [vmem:[#allocation46_spill] sm:$0xff] }
 0x866   : > { %v9323_v12 = vmul.f32 %v16638_v27, %v9245_v8 }
 0x867   : > { %v9355_v61 = vadd.f32 %v9354_v47, %v9320_v30  ;;  %v9278_v54 = vadd.f32 %v9277_v20, %v9243_v3  ;;  %v9321_v37 = vmul.f32 %v9243_v3, %v16642_v14  ;;  %v18412_v30 = vld [vmem:[#allocation45_spill] sm:$0xff] }
 0x869   : > { %v9279_v36 = vadd.f32 %v9278_v54, %v9244_v21  ;;  %v9356_v39 = vadd.f32 %v9355_v61, %v9321_v37  ;;  %v16651_v2 = vpop.f32.mrb[20].mxu1  ;;  %v18413_v61 = vld [vmem:[#allocation47_spill] sm:$0xff] }
 0x86a   : > { %v16653_v0 = vpop.f32.mrb[21].mxu1  ;;  %v9248_v50 = vmul.f32 %v16651_v2, %v18411_v40 }
 0x86b   : > { %v9357_v42 = vadd.f32 %v9356_v39, %v9322_v33  ;;  %v9246_v10 = vmul.f32 %v16653_v0, %v18410_v63  ;;  %v9280_v38 = vadd.f32 %v9279_v36, %v9245_v8  ;;  %v16658_v7 = vpop.f32.mrb[22].mxu1 }
 0x86c   : > { %v16662_v4 = vpop.f32.mrb[23].mxu1  ;;  %v9249_v54 = vmul.f32 %v16658_v7, %v18413_v61  ;;  %v9326_v33 = vmul.f32 %v16651_v2, %v9248_v50 }
 0x86d   : > { %v9281_v44 = vadd.f32 %v9280_v38, %v9246_v10  ;;  %v9324_v21 = vmul.f32 %v9246_v10, %v16653_v0  ;;  %v9358_v20 = vadd.f32 %v9357_v42, %v9323_v12  ;;  %v9247_v47 = vmul.f32 %v16662_v4, %v18412_v30  ;;  %v18414_v10 = vld [vmem:[#allocation48_spill] sm:$0xff] }
 0x86e   : > { %v9327_v12 = vmul.f32 %v16658_v7, %v9249_v54 }
 0x86f   : > { %v9359_v3 = vadd.f32 %v9358_v20, %v9324_v21  ;;  %v9282_v37 = vadd.f32 %v9281_v44, %v9247_v47  ;;  %v9325_v8 = vmul.f32 %v9247_v47, %v16662_v4  ;;  %v18415_v44 = vld [vmem:[#allocation50_spill] sm:$0xff] }
 0x871   : > { %v9283_v36 = vadd.f32 %v9282_v37, %v9248_v50  ;;  %v9360_v39 = vadd.f32 %v9359_v3, %v9325_v8  ;;  %v16671_v40 = vpop.f32.mrb[24].mxu1  ;;  %v18416_v8 = vld [vmem:[#allocation49_spill] sm:$0xff] }
 0x872   : > { %v16673_v38 = vpop.f32.mrb[25].mxu1  ;;  %v9252_v47 = vmul.f32 %v16671_v40, %v18415_v44 }
 0x873   : > { %v9361_v42 = vadd.f32 %v9360_v39, %v9326_v33  ;;  %v9250_v21 = vmul.f32 %v16673_v38, %v18414_v10  ;;  %v9284_v20 = vadd.f32 %v9283_v36, %v9249_v54  ;;  %v16678_v30 = vpop.f32.mrb[26].mxu1  ;;  %v18417_v33 = vld [vmem:[#allocation51_spill] sm:$0xff] }
 0x874   : > { %v16682_v61 = vpop.f32.mrb[27].mxu1  ;;  %v9253_v39 = vmul.f32 %v16678_v30, %v18417_v33  ;;  %v9330_v36 = vmul.f32 %v16671_v40, %v9252_v47 }
 0x875   : > { %v9285_v50 = vadd.f32 %v9284_v20, %v9250_v21  ;;  %v9328_v3 = vmul.f32 %v9250_v21, %v16673_v38  ;;  %v9362_v37 = vadd.f32 %v9361_v42, %v9327_v12  ;;  %v9251_v63 = vmul.f32 %v16682_v61, %v18416_v8  ;;  %v18420_v21 = vld [vmem:[#allocation52_spill] sm:$0xff] }
 0x876   : > { %v9331_v12 = vmul.f32 %v16678_v30, %v9253_v39 }
 0x877   : > { %v9363_v45 = vadd.f32 %v9362_v37, %v9328_v3  ;;  %v9286_v10 = vadd.f32 %v9285_v50, %v9251_v63  ;;  %v9329_v54 = vmul.f32 %v9251_v63, %v16682_v61  ;;  %v18422_v50 = vld [vmem:[#allocation54_spill] sm:$0xff] }
 0x879   : > { %v9287_v9 = vadd.f32 %v9286_v10, %v9252_v47  ;;  %v9364_v44 = vadd.f32 %v9363_v45, %v9329_v54  ;;  %v16691_v1 = vpop.f32.mrb[28].mxu1  ;;  %v18424_v54 = vld [vmem:[#allocation53_spill] sm:$0xff] }
 0x87a   : > { %18418 = vst [vmem:[#allocation63_spill] sm:$0xff] %v16691_v1  ;;  %v16693_v20 = vpop.f32.mrb[29].mxu1  ;;  %v9256_v63 = vmul.f32 %v16691_v1, %v18422_v50 }
 0x87b   : > { %18419 = vst [vmem:[#allocation60_spill] sm:$0xff] %v16693_v20  ;;  %v9365_v42 = vadd.f32 %v9364_v44, %v9330_v36  ;;  %v9254_v3 = vmul.f32 %v16693_v20, %v18420_v21  ;;  %v9288_v37 = vadd.f32 %v9287_v9, %v9253_v39  ;;  %v16698_v33 = vpop.f32.mrb[30].mxu1  ;;  %v18425_v44 = vld [vmem:[#allocation55_spill] sm:$0xff] }
 0x87c   : > { %18421 = vst [vmem:[#allocation66_spill] sm:$0xff] %v16698_v33  ;;  %v16702_v8 = vpop.f32.mrb[31].mxu1  ;;  %v9257_v36 = vmul.f32 %v16698_v33, %v18425_v44  ;;  %v11197_v21 = vld [vmem:[%s14325_s24 + $0x10] sm:$0xff]   ;;  %v9334_v50 = vmul.f32 %v16691_v1, %v9256_v63 }
 0x87d   : > { %18423 = vst [vmem:[#allocation67_spill] sm:$0xff] %v16702_v8  ;;  %v9289_v45 = vadd.f32 %v9288_v37, %v9254_v3  ;;  %v9332_v10 = vmul.f32 %v9254_v3, %v16693_v20  ;;  %v9366_v47 = vadd.f32 %v9365_v42, %v9331_v12  ;;  %v9255_v18 = vmul.f32 %v16702_v8, %v18424_v54  ;;  %v16753_v20 = vld [vmem:[%s14325_s24 + $0x48] sm:$0xff]  }
 0x87e   : > { %v9335_v42 = vmul.f32 %v16698_v33, %v9257_v36  ;;  %v11132_v44 = vunpack.c.h.bf16 %v11197_v21 }
 0x87f   : > { %v9367_v56 = vadd.f32 %v9366_v47, %v9332_v10  ;;  %v9290_v9 = vadd.f32 %v9289_v45, %v9255_v18  ;;  %v9333_v39 = vmul.f32 %v9255_v18, %v16702_v8  ;;  %v18426_v10 = vld [vmem:[#allocation56_spill] sm:$0xff]  ;;  %v11131_v18 = vunpack.c.l.bf16 %v11197_v21 }
 0x880   : > { %v11198_v21 = vld [vmem:[%s14325_s24 + $0x18] sm:$0xff]   ;;  %v9700_v35 = vrot.slane %v11132_v44, 3 }
 0x881   : > { %v9291_v13 = vadd.f32 %v9290_v9, %v9256_v63  ;;  %v9368_v37 = vadd.f32 %v9367_v56, %v9333_v39  ;;  %v16712_v23 = vpop.f32.mrb[32].mxu1  ;;  %v18429_v63 = vld [vmem:[#allocation59_spill] sm:$0xff] }
 0x882   : > { %v16714_v12 = vpop.f32.mrb[33].mxu1  ;;  %v9260_v56 = vmul.f32 %v16712_v23, %v18428_v28 }
 0x883   : > { %v9369_v3 = vadd.f32 %v9368_v37, %v9334_v50  ;;  %v9258_v47 = vmul.f32 %v16714_v12, %v18426_v10  ;;  %v9292_v45 = vadd.f32 %v9291_v13, %v9257_v36  ;;  %v16719_v54 = vpop.f32.mrb[34].mxu1  ;;  %v9620_v36 = vunpack.c.l.bf16 %v9583_v57  ;;  %v11199_v57 = vld [vmem:[%s14325_s24 + $0x20] sm:$0xff]  }
 0x884   : > { %18427 = vst [vmem:[#allocation68_spill] sm:$0xff] %v16719_v54  ;;  %v9261_v9 = vmul.f32 %v16719_v54, %v18429_v63  ;;  %v16726_v39 = vpop.f32.mrb[35].mxu1  ;;  %v9698_v63 = vrot.slane %v11131_v18, 3  ;;  %v11201_v18 = vld [vmem:[%s14325_s24 + $0x30] sm:$0xff]   ;;  %v11203_v10 = vld [vmem:[%s14325_s24 + $0x40] sm:$0xff]  }
 0x885   : > { %v9293_v5 = vadd.f32 %v9292_v45, %v9258_v47  ;;  %v9336_v50 = vmul.f32 %v9258_v47, %v16714_v12  ;;  %v9370_v37 = vadd.f32 %v9369_v3, %v9335_v42  ;;  %v9259_v13 = vmul.f32 %v16726_v39, %v18430_v29  ;;  %v11202_v29 = vld [vmem:[%s14325_s24 + $0x38] sm:$0xff]  }
 0x886   : > { %v9339_v45 = vmul.f32 %v16719_v54, %v9261_v9  ;;  %v11135_v47 = vunpack.c.l.bf16 %v11198_v21  ;;  %v9338_v42 = vmul.f32 %v16712_v23, %v9260_v56  ;;  %v9296_v17 = vsel %vm18431_vm11, %v9261_v9, 0.0  ;;  %vm18453_vm11 = vmmov %vm18435_vm0 }
 0x887   : > { %v9371_v48 = vadd.f32 %v9370_v37, %v9336_v50  ;;  %v9294_v26 = vadd.f32 %v9293_v5, %v9259_v13  ;;  %v9337_v53 = vmul.f32 %v9259_v13, %v16726_v39  ;;  %v11200_v50 = vld [vmem:[%s14325_s24 + $0x28] sm:$0xff]   ;;  %v9695_v13 = vrot.slane %v9620_v36, 3 }
 0x888   : > { %v9374_v62 = vsel %vm18432_vm6, %v9339_v45, 0.0  ;;  %v16742_v44 = vsel %vm18433_vm8, %v9698_v63, %v9700_v35  ;;  %v9702_v28 = vrot.slane %v11135_v47, 3  ;;  %v11143_v9 = vunpack.c.l.bf16 %v11200_v50  ;;  %vm18455_vm6 = vmmov %vm18435_vm0 }
 0x889   : > { %v9295_v3 = vadd.f32 %v9294_v26, %v9260_v56  ;;  %v9372_v32 = vadd.f32 %v9371_v48, %v9337_v53  ;;  %18434 = vst [vmem:[#allocation71_spill] sm:$0xff] %v16742_v44  ;;  %v11139_v53 = vunpack.c.l.bf16 %v11199_v57  ;;  %v11140_v48 = vunpack.c.h.bf16 %v11199_v57  ;;  %vm18457_vm8 = vmmov %vm18435_vm0 }
 0x88a   : > { %v11136_v56 = vunpack.c.h.bf16 %v11198_v21  ;;  %v11147_v33 = vunpack.c.l.bf16 %v11201_v18  ;;  %v11144_v36 = vunpack.c.h.bf16 %v11200_v50  ;;  %v11155_v45 = vunpack.c.l.bf16 %v11203_v10 }
 0x88b   : > { %v9297_v5 = vadd.f32 %v9296_v17, %v9295_v3  ;;  %v9373_v37 = vadd.f32 %v9372_v32, %v9338_v42  ;;  %v11148_v32 = vunpack.c.h.bf16 %v11201_v18  ;;  %v11151_v42 = vunpack.c.l.bf16 %v11202_v29 }
 0x88c   : > { %v11156_v3 = vunpack.c.h.bf16 %v11203_v10  ;;  %v16747_v44 = vsel %vm18435_vm0, %v9695_v13, %v9696_v15  ;;  %v16750_v47 = vsel %vm18437_vm10, %v9700_v35, %v9702_v28  ;;  %v9706_v57 = vrot.slane %v11139_v53, 3  ;;  %vm18466_vm10 = vmmov %vm18435_vm0 }
 0x88d   : > { %v9298_v54 = vrot.slane %v9297_v5, 4  ;;  %v9375_v26 = vadd.f32 %v9374_v62, %v9373_v37  ;;  %18436 = vst [vmem:[#allocation69_spill] sm:$0xff] %v16747_v44  ;;  %18438 = vst [vmem:[#allocation70_spill] sm:$0xff] %v16750_v47  ;;  %v9708_v21 = vrot.slane %v11140_v48, 3  ;;  %v9704_v1 = vrot.slane %v11136_v56, 3 }
 0x88e   : > { %v9710_v8 = vrot.slane %v11143_v9, 3  ;;  %v9712_v10 = vrot.slane %v11144_v36, 3  ;;  %v16755_v13 = vrot.slane %v11151_v42, 3  ;;  %v16757_v35 = vrot.slane %v11155_v45, 3  ;;  %v16781_v36 = vld [vmem:[%s14325_s24 + $0x50] sm:$0xff]   ;;  %v16784_v42 = vld [vmem:[%s14325_s24 + $0x88] sm:$0xff]  }
 0x88f   : > { %v9299_v17 = vadd.f32 %v9298_v54, %v9297_v5  ;;  %v9376_v25 = vrot.slane %v9375_v26, 4  ;;  %v9714_v54 = vrot.slane %v11147_v33, 3  ;;  %v9716_v5 = vrot.slane %v11148_v32, 3 }
 0x890   : > { %v16759_v47 = vrot.slane %v11156_v3, 3  ;;  %v11159_v53 = vunpack.c.l.bf16 %v16753_v20  ;;  %v16763_v33 = vsel %vm18439_vm12, %v9696_v15, %v9698_v63  ;;  %v16766_v9 = vsel %vm18441_vm2, %v9706_v57, %v9708_v21  ;;  %v16787_v15 = vld [vmem:[%s14325_s24 + $0x90] sm:$0xff]   ;;  %vm18468_vm12 = vmmov %vm18435_vm0 }
 0x891   : > { %v9300_v37 = vrot.slane %v9299_v17, 2  ;;  %v9377_v62 = vadd.f32 %v9376_v25, %v9375_v26  ;;  %v11152_v26 = vunpack.c.h.bf16 %v11202_v29  ;;  %18440 = vst [vmem:[#allocation72_spill] sm:$0xff] %v16763_v33  ;;  %18442 = vst [vmem:[#allocation73_spill] sm:$0xff] %v16766_v9  ;;  %v16769_v32 = vsel %vm18443_vm3, %v9702_v28, %v9704_v1 }
 0x892   : > { %18444 = vst [vmem:[#allocation74_spill] sm:$0xff] %v16769_v32  ;;  %v16775_v25 = vsel %vm18447_vm1, %v9708_v21, %v9710_v8  ;;  %v16778_v29 = vsel %vm18449_vm4, %v9714_v54, %v9716_v5  ;;  %v16790_v28 = vsel %vm18451_vm5, %v9710_v8, %v9712_v10  ;;  %v16797_v3 = vsel %vm18455_vm6, %v9712_v10, %v9714_v54  ;;  %vm18478_vm2 = vmmov %vm18435_vm0 }
 0x893   : > { %v9301_v50 = vadd.f32 %v9300_v37, %v9299_v17  ;;  %v9378_v18 = vrot.slane %v9377_v62, 2  ;;  %v16772_v17 = vsel %vm18445_vm7, %v9704_v1, %v9706_v57  ;;  %18448 = vst [vmem:[#allocation76_spill] sm:$0xff] %v16775_v25  ;;  %18450 = vst [vmem:[#allocation77_spill] sm:$0xff] %v16778_v29  ;;  %v16794_v1 = vsel %vm18453_vm11, %v9716_v5, %v16755_v13  ;;  %v18463_v29 = vld [vmem:[#allocation66_spill] sm:$0xff] }
 0x894   : > { %18446 = vst [vmem:[#allocation75_spill] sm:$0xff] %v16772_v17  ;;  %18452 = vst [vmem:[#allocation78_spill] sm:$0xff] %v16790_v28  ;;  %v16802_v37 = vsel %vm18457_vm8, %v16757_v35, %v16759_v47  ;;  %v16806_v57 = vrot.slane %v11159_v53, 3  ;;  %v11164_v5 = vunpack.c.h.bf16 %v16781_v36  ;;  %v11207_v53 = vld [vmem:[%s14325_s24 + $0x60] sm:$0xff]   ;;  %v11160_v8 = vunpack.c.h.bf16 %v16753_v20 }
 0x895   : > { %v9302_v48 = vrot.slane %v9301_v50, 1  ;;  %v9379_v56 = vadd.f32 %v9378_v18, %v9377_v62  ;;  %18454 = vst [vmem:[#allocation79_spill] sm:$0xff] %v16794_v1  ;;  %18456 = vst [vmem:[#allocation80_spill] sm:$0xff] %v16797_v3  ;;  %v16804_v62 = vrot.slane %v11152_v26, 3  ;;  %v11206_v18 = vld [vmem:[%s14325_s24 + $0x58] sm:$0xff]   ;;  %v11171_v9 = vunpack.c.l.bf16 %v11207_v53 }
 0x896   : > { %18458 = vst [vmem:[#allocation81_spill] sm:$0xff] %v16802_v37  ;;  %18459 = vst [vmem:[#allocation82_spill] sm:$0xff] %v16806_v57  ;;  %v11167_v25 = vunpack.c.l.bf16 %v11206_v18  ;;  %v11172_v37 = vunpack.c.h.bf16 %v11207_v53  ;;  %v11168_v17 = vunpack.c.h.bf16 %v11206_v18  ;;  %v16909_v3 = vsel %vm18466_vm10, %v16759_v47, %v16806_v57  ;;  %v16923_v18 = vld [vmem:[%s14325_s24 + $0x78] sm:$0xff]  }
 0x897   : > { %v9303_v63 = vadd.f32 %v9302_v48, %v9301_v50  ;;  %v9380_v45 = vrot.slane %v9379_v56, 1  ;;  %v16902_v1 = vsel %vm18435_vm0, %v16755_v13, %v16804_v62  ;;  %18467 = vst [vmem:[#allocation84_spill] sm:$0xff] %v16909_v3  ;;  %v16914_v20 = vsel %vm18468_vm12, %v16804_v62, %v16757_v35  ;;  %vm18479_vm3 = vmmov %vm18435_vm0 }
 0x898   : > { %18465 = vst [vmem:[#allocation83_spill] sm:$0xff] %v16902_v1  ;;  %18469 = vst [vmem:[#allocation85_spill] sm:$0xff] %v16914_v20  ;;  %v18470_v53 = vunpack.c.l.bf16 %v16781_v36  ;;  %v16920_v13 = vrot.slane %v11164_v5, 3  ;;  %v16926_v1 = vld [vmem:[%s14325_s24 + $0x80] sm:$0xff]   ;;  %v18472_v44 = vunpack.c.l.bf16 %v16784_v42  ;;  %v18474_v47 = vunpack.c.l.bf16 %v16787_v15 }
 0x899   : > { %v9381_v21 = vadd.f32 %v9380_v45, %v9379_v56  ;;  %v16808_v50 = vmul.f32 0.00390625, %v9303_v63  ;;  %v18462_v56 = vld [vmem:[#allocation63_spill] sm:$0xff]  ;;  %v11196_v63 = vunpack.c.h.bf16 %v16787_v15  ;;  %v11192_v45 = vunpack.c.h.bf16 %v16784_v42  ;;  %vm18480_vm7 = vmmov %vm18435_vm0 }
 0x89a   : > { %v16918_v28 = vrot.slane %v18470_v53, 3  ;;  %v16930_v26 = vrot.slane %v18472_v44, 3  ;;  %v9762_v3 = vrot.slane %v18474_v47, 3  ;;  %v16936_v62 = vrot.slane %v11160_v8, 3  ;;  %vm18531_vm11 = vmmov %vm18435_vm0 }
 0x89b   : > { %v9383_v10 = vmul.f32 0.00390625, %v9381_v21  ;;  %v9384_v48 = vmul.f32 %v16808_v50, %v16808_v50  ;;  %v16879_v21 = vld [vmem:[%s14325_s24 + $0x68] sm:$0xff]   ;;  %v16934_v57 = vrot.slane %v11196_v63, 3  ;;  %v9760_v35 = vrot.slane %v11192_v45, 3  ;;  %vm18533_vm6 = vmmov %vm18435_vm0 }
 0x89c   : > { %v11175_v32 = vunpack.c.l.bf16 %v16879_v21  ;;  %18471 = vst [vmem:[#allocation87_spill] sm:$0xff] %v16918_v28  ;;  %18473 = vst [vmem:[#allocation86_spill] sm:$0xff] %v16930_v26  ;;  %v16938_v36 = vrot.slane %v11167_v25, 3  ;;  %v16940_v5 = vrot.slane %v11171_v9, 3  ;;  %v16942_v53 = vrot.slane %v11172_v37, 3 }
 0x89d   : > { %v9385_v54 = vsub.f32 %v9383_v10, %v9384_v48  ;;  %18475 = vst [vmem:[#allocation88_spill] sm:$0xff] %v16934_v57  ;;  %v16944_v20 = vrot.slane %v11168_v17, 3  ;;  %v16957_v37 = vld [vmem:[#allocation14] ss:$0 sm:$0xff]  ;;  %v9763_v45 = vsel %vm18480_vm7, %v9760_v35, %v9762_v3  ;;  %v18481_v47 = vsub.f32 %v16714_v12, %v16808_v50  ;;  %vm18534_vm8 = vmmov %vm18435_vm0 }
 0x89e   : > { %v16946_v28 = vrot.slane %v11175_v32, 3  ;;  %v9765_v32 = vsel %vm18478_vm2, %v9762_v3, %v16934_v57  ;;  %v18482_v25 = vsub.f32 %v16726_v39, %v16808_v50  ;;  %v18483_v17 = vsub.f32 %v16712_v23, %v16808_v50  ;;  %v18500_v57 = vld [vmem:[#allocation57_spill] sm:$0xff]  ;;  %vm18535_vm10 = vmmov %vm18435_vm0 }
 0x89f   : > { %v9386_v48 = vmax.f32 %v9385_v54, 0.0  ;;  %v16882_v54 = vld [vmem:[%s14325_s24 + $0x70] sm:$0xff]   ;;  %v18484_v44 = vsub.f32 %v16554_v19, %v16808_v50  ;;  %v18485_v12 = vsub.f32 %v16560_v60, %v16808_v50  ;;  %v18486_v39 = vsub.f32 %v16552_v24, %v16808_v50  ;;  %vm18536_vm12 = vmmov %vm18435_vm0 }
 0x8a0   : > { %v11179_v33 = vunpack.c.l.bf16 %v16882_v54  ;;  %18476 = vst [vmem:[#allocation89_spill] sm:$0xff] %v16946_v28  ;;  %v18487_v23 = vsub.f32 %v16558_v58, %v16808_v50  ;;  %vm18537_vm2 = vmmov %vm18435_vm0 }
 0x8a1   : > { %v9423_v10 = vadd.f32 1e-05, %v9386_v48  ;;  %v18460_v48 = vld [vmem:[#allocation60_spill] sm:$0xff]  ;;  %vm18541_vm7 = vmmov %vm18435_vm0 }
 0x8a2   : > { %v16949_v42 = vrot.slane %v11179_v33, 3  ;;  %v9761_v33 = vsel %vm18479_vm3, %v16930_v26, %v9760_v35  ;;  %v16981_v35 = vld [vmem:[#allocation15] ss:$0 sm:$0xff]  ;;  %vm18539_vm3 = vmmov %vm18435_vm0 }
 0x8a3   : > { %13628 = vrsqrt.f32 %v9423_v10  ;;  %v18461_v10 = vld [vmem:[#allocation67_spill] sm:$0xff] }
 0x8a4   : > { %18477 = vst [vmem:[#allocation90_spill] sm:$0xff] %v16949_v42 }
 0x8ad   : > { %v16955_v9 = vpop.eup %13628 }
 0x8ae   : > { %v9457_v8 = vmul.f32 %v16955_v9, %v18481_v47  ;;  %v9458_v63 = vmul.f32 %v16955_v9, %v18482_v25  ;;  %v9459_v15 = vmul.f32 %v16955_v9, %v18483_v17  ;;  %v9425_v3 = vmul.f32 %v16955_v9, %v18484_v44 }
 0x8af   : > { %v9426_v47 = vmul.f32 %v16955_v9, %v18485_v12  ;;  %v16991_v25 = vmul.f32 %v16955_v9, %v18486_v39  ;;  %v16997_v19 = vmul.f32 %v16955_v9, %v18487_v23  ;;  %v18488_v44 = vsub.f32 %v16573_v51, %v16808_v50 }
 0x8b0   : > { %v9500_v60 = vmul.f32 %v16957_v37, %v9457_v8  ;;  %v9501_v12 = vmul.f32 %v16957_v37, %v9458_v63  ;;  %v9502_v24 = vmul.f32 %v16957_v37, %v9459_v15  ;;  %v18489_v39 = vsub.f32 %v16582_v46, %v16808_v50 }
 0x8b1   : > { %v17003_v17 = vmul.f32 %v16955_v9, %v18488_v44  ;;  %v18490_v23 = vsub.f32 %v16571_v43, %v16808_v50  ;;  %v18491_v44 = vsub.f32 %v16578_v6, %v16808_v50  ;;  %v18492_v15 = vsub.f32 %v16593_v16, %v16808_v50 }
 0x8b2   : > { %v17012_v58 = vmul.f32 %v16955_v9, %v18489_v39  ;;  %v18493_v63 = vsub.f32 %v16602_v41, %v16808_v50  ;;  %v9543_v39 = vadd.f32 %v16981_v35, %v9500_v60  ;;  %v9545_v6 = vadd.f32 %v16981_v35, %v9502_v24 }
 0x8b3   : > { %v17018_v51 = vmul.f32 %v16955_v9, %v18490_v23  ;;  %v17024_v8 = vmul.f32 %v16955_v9, %v18491_v44  ;;  %v17030_v46 = vmul.f32 %v16955_v9, %v18492_v15  ;;  %v9544_v23 = vadd.f32 %v16981_v35, %v9501_v12 }
 0x8b4   : > { %v17036_v43 = vmul.f32 %v16955_v9, %v18493_v63  ;;  %v18494_v44 = vsub.f32 %v16591_v52, %v16808_v50  ;;  %v18495_v15 = vsub.f32 %v16598_v55, %v16808_v50  ;;  %v18496_v63 = vsub.f32 %v16613_v34, %v16808_v50  ;;  %v18501_v34 = vld [vmem:[#allocation58_spill] sm:$0xff] }
 0x8b5   : > { %v18497_v12 = vsub.f32 %v16622_v11, %v16808_v50  ;;  %v18498_v24 = vsub.f32 %v16611_v22, %v16808_v50  ;;  %v9580_v26 = vmul.f32 %v9544_v23, %v18500_v57  ;;  %v9581_v42 = vmul.f32 %v9545_v6, %v18501_v34 }
 0x8b6   : > { %v17045_v16 = vmul.f32 %v16955_v9, %v18494_v44  ;;  %v17051_v41 = vmul.f32 %v16955_v9, %v18495_v15  ;;  %v17057_v60 = vmul.f32 %v16955_v9, %v18496_v63  ;;  %v18499_v44 = vld [vmem:[#allocation56_spill] sm:$0xff]  ;;  %v18502_v63 = vsub.f32 %v16618_v59, %v16808_v50 }
 0x8b7   : > { %v17063_v52 = vmul.f32 %v16955_v9, %v18497_v12  ;;  %v17069_v55 = vmul.f32 %v16955_v9, %v18498_v24  ;;  %v9579_v15 = vmul.f32 %v9543_v39, %v18499_v44  ;;  %v18503_v12 = vsub.f32 %v16633_v49, %v16808_v50 }
 0x8b8   : > { %v17078_v11 = vmul.f32 %v16955_v9, %v18502_v63  ;;  %v18504_v24 = vsub.f32 %v16642_v14, %v16808_v50  ;;  %v18505_v57 = vsub.f32 %v16631_v31, %v16808_v50  ;;  %v18506_v23 = vsub.f32 %v16638_v27, %v16808_v50 }
 0x8b9   : > { %v17084_v22 = vmul.f32 %v16955_v9, %v18503_v12  ;;  %v9836_v6 = vadd.f32 %v9761_v33, %v9579_v15  ;;  %v9837_v44 = vadd.f32 %v9763_v45, %v9580_v26  ;;  %v9838_v34 = vadd.f32 %v9765_v32, %v9581_v42 }
 0x8ba   : > { %v17090_v39 = vmul.f32 %v16955_v9, %v18504_v24  ;;  %v17096_v59 = vmul.f32 %v16955_v9, %v18505_v57  ;;  %v17102_v49 = vmul.f32 %v16955_v9, %v18506_v23  ;;  %v18507_v14 = vsub.f32 %v16653_v0, %v16808_v50 }
 0x8bb   : > { %v18508_v31 = vsub.f32 %v16662_v4, %v16808_v50  ;;  %v18509_v27 = vsub.f32 %v16651_v2, %v16808_v50  ;;  %v18510_v26 = vsub.f32 %v16658_v7, %v16808_v50  ;;  %v18511_v42 = vsub.f32 %v16673_v38, %v16808_v50 }
 0x8bc   : > { %v17108_v63 = vmul.f32 %v16955_v9, %v18507_v14  ;;  %vm9872_vm1 = vcmp.ge.f32.partialorder %v9836_v6, 0.0  ;;  %vm9873_vm4 = vcmp.ge.f32.partialorder %v9837_v44, 0.0  ;;  %vm9874_vm5 = vcmp.ge.f32.partialorder %v9838_v34, 0.0 }
 0x8bd   : > { %v17114_v12 = vmul.f32 %v16955_v9, %v18508_v31  ;;  %v17120_v24 = vmul.f32 %v16955_v9, %v18509_v27  ;;  %v17126_v0 = vmul.f32 %v16955_v9, %v18510_v26  ;;  %v17132_v4 = vmul.f32 %v16955_v9, %v18511_v42 }
 0x8be   : > { %v9908_v32 = vmul.f32 0.01, %v9836_v6  ;;  %v9909_v2 = vmul.f32 0.01, %v9837_v44  ;;  %v9910_v33 = vmul.f32 0.01, %v9838_v34  ;;  %v18512_v45 = vsub.f32 %v16682_v61, %v16808_v50 }
 0x8bf   : > { %v18513_v15 = vsub.f32 %v16671_v40, %v16808_v50  ;;  %v18514_v23 = vsub.f32 %v16678_v30, %v16808_v50  ;;  %v18515_v31 = vsub.f32 %v18460_v48, %v16808_v50  ;;  %v18516_v61 = vsub.f32 %v18461_v10, %v16808_v50 }
 0x8c0   : > { %v9450_v7 = vmul.f32 %v16955_v9, %v18512_v45  ;;  %v9944_v38 = vsel %vm9872_vm1, %v9836_v6, %v9908_v32  ;;  %v9945_v42 = vsel %vm9873_vm4, %v9837_v44, %v9909_v2  ;;  %v9946_v40 = vsel %vm9874_vm5, %v9838_v34, %v9910_v33  ;;  %vm18543_vm1 = vmmov %vm18435_vm0 }
 0x8c1   : > { %v9451_v57 = vmul.f32 %v16955_v9, %v18513_v15  ;;  %v9452_v14 = vmul.f32 %v16955_v9, %v18514_v23  ;;  %v9453_v27 = vmul.f32 %v16955_v9, %v18515_v31  ;;  %v9454_v26 = vmul.f32 %v16955_v9, %v18516_v61  ;;  %v18519_v31 = vld [vmem:[#allocation68_spill] sm:$0xff]  ;;  %vm18545_vm4 = vmmov %vm18435_vm0 }
 0x8c2   : > { %v11125_v45 = vpack.c.bf16 %v9944_v38, %v9944_v38  ;;  %v18517_v6 = vsub.f32 %v18462_v56, %v16808_v50  ;;  %v11126_v32 = vpack.c.bf16 %v9945_v42, %v9945_v42  ;;  %v11127_v15 = vpack.c.bf16 %v9946_v40, %v9946_v40  ;;  %vm18547_vm5 = vmmov %vm18435_vm0 }
 0x8c3   : > { %v18518_v48 = vsub.f32 %v18463_v29, %v16808_v50  ;;  %v18520_v10 = vsub.f32 %v18519_v31, %v16808_v50  ;;  %v9468_v33 = vmul.f32 %v16957_v37, %v9425_v3  ;;  %v9469_v56 = vmul.f32 %v16957_v37, %v9426_v47 }
 0x8c4   : > { %v9455_v30 = vmul.f32 %v16955_v9, %v18517_v6  ;;  %v10381_v2 = vshrl.u32 %v11125_v45, 16  ;;  %v10384_v34 = vshll.u32 %v11125_v45, 16  ;;  %v10391_v38 = vshrl.u32 %v11126_v32, 16  ;;  %v17169_v6 = vld [vmem:[%s14325_s24 + $0x98] sm:$0x1] }
 0x8c5   : > { %v9456_v23 = vmul.f32 %v16955_v9, %v18518_v48  ;;  %v9460_v44 = vmul.f32 %v16955_v9, %v18520_v10  ;;  %v10394_v61 = vshll.u32 %v11126_v32, 16  ;;  %v10401_v42 = vshrl.u32 %v11127_v15, 16 }
 0x8c6   : > { %v10404_v40 = vshll.u32 %v11127_v15, 16  ;;  %v10383_v29 = vrot.slane %v10381_v2, 6  ;;  %v10386_v28 = vrot.slane %v10384_v34, 7  ;;  %v9470_v48 = vmul.f32 %v16957_v37, %v16991_v25 }
 0x8c7   : > { %v9471_v50 = vmul.f32 %v16957_v37, %v16997_v19  ;;  %v10393_v9 = vrot.slane %v10391_v38, 6  ;;  %v10396_v45 = vrot.slane %v10394_v61, 7  ;;  %v10403_v31 = vrot.slane %v10401_v42, 6  ;;  %v18561_v42 = vld [vmem:[#allocation27_spill] sm:$0xff] }
 0x8c8   : > { %v10406_v3 = vrot.slane %v10404_v40, 7  ;;  %v17175_v10 = vor.u32 %v10386_v28, %v10383_v29  ;;  %v9472_v47 = vmul.f32 %v16957_v37, %v17003_v17  ;;  %v9473_v32 = vmul.f32 %v16957_v37, %v17012_v58 }
 0x8c9   : > { %v9474_v15 = vmul.f32 %v16957_v37, %v17018_v51  ;;  %v9656_v25 = vunpack.c.l.bf16 %v17169_v6  ;;  %v10397_v2 = vor.u32 %v10396_v45, %v10393_v9  ;;  %v9475_v19 = vmul.f32 %v16957_v37, %v17024_v8  ;;  %v18538_v6 = vld [vmem:[#allocation89_spill] sm:$0xff] }
 0x8ca   : > { %18521 = vst [vmem:[#allocation91_spill] sm:$0xff] %v17175_v10  ;;  %v9476_v28 = vmul.f32 %v16957_v37, %v17030_v46  ;;  %v10389_v34 = vrot.slane %v17175_v10, 4  ;;  %v9477_v17 = vmul.f32 %v16957_v37, %v17036_v43  ;;  %v9478_v58 = vmul.f32 %v16957_v37, %v17045_v16  ;;  %v18560_v10 = vld [vmem:[#allocation25_spill] sm:$0xff] }
 0x8cb   : > { %v9479_v51 = vmul.f32 %v16957_v37, %v17051_v41  ;;  %v10399_v38 = vrot.slane %v10397_v2, 4  ;;  %v17195_v61 = vor.u32 %v10406_v3, %v10403_v31  ;;  %v9480_v8 = vmul.f32 %v16957_v37, %v17057_v60 }
 0x8cc   : > { %v9481_v46 = vmul.f32 %v16957_v37, %v17063_v52  ;;  %v10398_v40 = vsel %vm15402_vm13, %v10389_v34, %v10397_v2  ;;  %v9482_v43 = vmul.f32 %v16957_v37, %v17069_v55  ;;  %v9483_v16 = vmul.f32 %v16957_v37, %v17078_v11 }
 0x8cd   : > { %18522 = vst [vmem:[#allocation92_spill] sm:$0xff] %v17195_v61  ;;  %v9484_v41 = vmul.f32 %v16957_v37, %v17084_v22  ;;  %v10408_v29 = vsel %vm15402_vm13, %v10399_v38, %v17195_v61  ;;  %10492 = vst [vmem:[%s14769_s12 + $0x8c] sm:$0xf] %v10398_v40  ;;  %v9485_v60 = vmul.f32 %v16957_v37, %v17090_v39 }
 0x8ce   : > { %v9486_v52 = vmul.f32 %v16957_v37, %v17096_v59  ;;  %v9487_v55 = vmul.f32 %v16957_v37, %v17102_v49  ;;  %10493 = vst [vmem:[%s14769_s12 + $0x90] sm:$0xf] %v10408_v29  ;;  %v9488_v11 = vmul.f32 %v16957_v37, %v17108_v63  ;;  %v9489_v22 = vmul.f32 %v16957_v37, %v17114_v12 }
 0x8cf   : > { %v9490_v9 = vmul.f32 %v16957_v37, %v17120_v24  ;;  %v9491_v45 = vmul.f32 %v16957_v37, %v17126_v0  ;;  %v9492_v39 = vmul.f32 %v16957_v37, %v17132_v4  ;;  %v9493_v59 = vmul.f32 %v16957_v37, %v9450_v7 }
 0x8d0   : > { %v9494_v49 = vmul.f32 %v16957_v37, %v9451_v57  ;;  %v9495_v31 = vmul.f32 %v16957_v37, %v9452_v14  ;;  %v9496_v63 = vmul.f32 %v16957_v37, %v9453_v27  ;;  %v9497_v3 = vmul.f32 %v16957_v37, %v9454_v26 }
 0x8d1   : > { %v9498_v12 = vmul.f32 %v16957_v37, %v9455_v30  ;;  %v9499_v24 = vmul.f32 %v16957_v37, %v9456_v23  ;;  %v9503_v2 = vmul.f32 %v16957_v37, %v9460_v44  ;;  %v9511_v0 = vadd.f32 %v16981_v35, %v9468_v33 }
 0x8d2   : > { %v9512_v4 = vadd.f32 %v16981_v35, %v9469_v56  ;;  %v9513_v7 = vadd.f32 %v16981_v35, %v9470_v48  ;;  %v9514_v57 = vadd.f32 %v16981_v35, %v9471_v50  ;;  %v9515_v14 = vadd.f32 %v16981_v35, %v9472_v47 }
 0x8d3   : > { %v9516_v27 = vadd.f32 %v16981_v35, %v9473_v32  ;;  %v9517_v26 = vadd.f32 %v16981_v35, %v9474_v15  ;;  %v9518_v30 = vadd.f32 %v16981_v35, %v9475_v19  ;;  %v9519_v23 = vadd.f32 %v16981_v35, %v9476_v28 }
 0x8d4   : > { %v9520_v37 = vadd.f32 %v16981_v35, %v9477_v17  ;;  %v9521_v44 = vadd.f32 %v16981_v35, %v9478_v58  ;;  %v9522_v33 = vadd.f32 %v16981_v35, %v9479_v51  ;;  %v9523_v56 = vadd.f32 %v16981_v35, %v9480_v8 }
 0x8d5   : > { %v9524_v48 = vadd.f32 %v16981_v35, %v9481_v46  ;;  %v9525_v50 = vadd.f32 %v16981_v35, %v9482_v43  ;;  %v9526_v47 = vadd.f32 %v16981_v35, %v9483_v16  ;;  %v9527_v32 = vadd.f32 %v16981_v35, %v9484_v41 }
 0x8d6   : > { %v9528_v15 = vadd.f32 %v16981_v35, %v9485_v60  ;;  %v9529_v19 = vadd.f32 %v16981_v35, %v9486_v52  ;;  %v9530_v28 = vadd.f32 %v16981_v35, %v9487_v55  ;;  %v9531_v34 = vadd.f32 %v16981_v35, %v9488_v11 }
 0x8d7   : > { %v9532_v17 = vadd.f32 %v16981_v35, %v9489_v22  ;;  %v9533_v58 = vadd.f32 %v16981_v35, %v9490_v9  ;;  %v9534_v51 = vadd.f32 %v16981_v35, %v9491_v45  ;;  %v9535_v38 = vadd.f32 %v16981_v35, %v9492_v39 }
 0x8d8   : > { %v9536_v8 = vadd.f32 %v16981_v35, %v9493_v59  ;;  %v9537_v46 = vadd.f32 %v16981_v35, %v9494_v49  ;;  %v9538_v40 = vadd.f32 %v16981_v35, %v9495_v31  ;;  %v9539_v43 = vadd.f32 %v16981_v35, %v9496_v63 }
 0x8d9   : > { %v9540_v16 = vadd.f32 %v16981_v35, %v9497_v3  ;;  %v9541_v41 = vadd.f32 %v16981_v35, %v9498_v12  ;;  %v18524_v29 = vunpack.c.h.bf16 %v16882_v54  ;;  %v18525_v52 = vunpack.c.h.bf16 %v16879_v21  ;;  %v18530_v3 = vld [vmem:[#allocation87_spill] sm:$0xff]  ;;  %v18532_v12 = vld [vmem:[#allocation82_spill] sm:$0xff] }
 0x8da   : > { %v9542_v11 = vadd.f32 %v16981_v35, %v9499_v24  ;;  %v9546_v22 = vadd.f32 %v16981_v35, %v9503_v2  ;;  %v18526_v9 = vunpack.c.l.bf16 %v16923_v18  ;;  %v18527_v39 = vunpack.c.l.bf16 %v16926_v1 }
 0x8db   : > { %v9748_v60 = vrot.slane %v18524_v29, 3  ;;  %v9744_v55 = vrot.slane %v18525_v52, 3  ;;  %v18528_v49 = vunpack.c.h.bf16 %v16926_v1  ;;  %v18529_v63 = vunpack.c.h.bf16 %v16923_v18 }
 0x8dc   : > { %v9750_v45 = vrot.slane %v18526_v9, 3  ;;  %v9754_v59 = vrot.slane %v18527_v39, 3  ;;  %v17286_v21 = vsel %vm18531_vm11, %v18530_v3, %v16920_v13  ;;  %v17291_v35 = vsel %vm18533_vm6, %v18532_v12, %v16936_v62  ;;  %vm18549_vm11 = vmmov %vm18435_vm0 }
 0x8dd   : > { %v9756_v31 = vrot.slane %v18528_v49, 3  ;;  %v9752_v54 = vrot.slane %v18529_v63, 3  ;;  %v17296_v24 = vsel %vm18534_vm8, %v16936_v62, %v18530_v3  ;;  %v9766_v1 = vrot.slane %v9656_v25, 3  ;;  %v18540_v25 = vld [vmem:[#allocation90_spill] sm:$0xff]  ;;  %vm18551_vm6 = vmmov %vm18435_vm0  ;;  %v18556_v3 = vld [vmem:[#allocation88_spill] sm:$0xff] }
 0x8de   : > { %v17303_v18 = vsel %vm18435_vm0, %v16920_v13, %v16938_v36  ;;  %v17308_v2 = vsel %vm18535_vm10, %v16940_v5, %v16942_v53  ;;  %v17313_v29 = vsel %vm18536_vm12, %v16938_v36, %v16944_v20  ;;  %v17318_v62 = vsel %vm18537_vm2, %v16944_v20, %v16940_v5  ;;  %vm18553_vm8 = vmmov %vm18435_vm0  ;;  %v18555_v49 = vld [vmem:[#allocation86_spill] sm:$0xff] }
 0x8df   : > { %v17323_v13 = vsel %vm18539_vm3, %v16942_v53, %v18538_v6  ;;  %v17327_v52 = vsel %vm18541_vm7, %v18540_v25, %v9748_v60  ;;  %v17331_v9 = vsel %vm18543_vm1, %v18538_v6, %v9744_v55  ;;  %v17335_v36 = vsel %vm18545_vm4, %v9744_v55, %v18540_v25  ;;  %vm18557_vm10 = vmmov %vm18435_vm0  ;;  %v18558_v55 = vld [vmem:[#allocation24_spill] sm:$0xff]  ;;  %v18559_v25 = vld [vmem:[#allocation26_spill] sm:$0xff] }
 0x8e0   : > { %18542 = vst [vmem:[#allocation93_spill] sm:$0xff] %v17327_v52  ;;  %18544 = vst [vmem:[#allocation94_spill] sm:$0xff] %v17331_v9  ;;  %v17338_v20 = vsel %vm18547_vm5, %v9748_v60, %v9750_v45  ;;  %v17341_v5 = vsel %vm18549_vm11, %v9754_v59, %v9756_v31  ;;  %v17344_v53 = vsel %vm18551_vm6, %v9750_v45, %v9752_v54  ;;  %v18567_v9 = vld [vmem:[#allocation33_spill] sm:$0xff] }
 0x8e1   : > { %18546 = vst [vmem:[#allocation95_spill] sm:$0xff] %v17335_v36  ;;  %18548 = vst [vmem:[#allocation96_spill] sm:$0xff] %v17338_v20  ;;  %v17347_v39 = vsel %vm18553_vm8, %v9752_v54, %v9754_v59  ;;  %v9759_v63 = vsel %vm18435_vm0, %v9756_v31, %v18555_v49  ;;  %v9767_v12 = vsel %vm18557_vm10, %v18556_v3, %v9766_v1  ;;  %v18562_v20 = vld [vmem:[#allocation28_spill] sm:$0xff]  ;;  %v18564_v59 = vld [vmem:[#allocation30_spill] sm:$0xff] }
 0x8e2   : > { %18550 = vst [vmem:[#allocation97_spill] sm:$0xff] %v17341_v5  ;;  %18552 = vst [vmem:[#allocation98_spill] sm:$0xff] %v17344_v53  ;;  %v9547_v6 = vmul.f32 %v9511_v0, %v18558_v55  ;;  %v9548_v60 = vmul.f32 %v9512_v4, %v18559_v25  ;;  %v9549_v61 = vmul.f32 %v9513_v7, %v18560_v10  ;;  %v18563_v53 = vld [vmem:[#allocation29_spill] sm:$0xff]  ;;  %v18566_v31 = vld [vmem:[#allocation32_spill] sm:$0xff] }
 0x8e3   : > { %18554 = vst [vmem:[#allocation99_spill] sm:$0xff] %v17347_v39  ;;  %v9550_v5 = vmul.f32 %v9514_v57, %v18561_v42  ;;  %v9551_v45 = vmul.f32 %v9515_v14, %v18562_v20  ;;  %v9552_v52 = vmul.f32 %v9516_v27, %v18563_v53  ;;  %v9553_v54 = vmul.f32 %v9517_v26, %v18564_v59  ;;  %v18565_v39 = vld [vmem:[#allocation31_spill] sm:$0xff]  ;;  %v18568_v3 = vld [vmem:[#allocation34_spill] sm:$0xff]  ;;  %v18570_v25 = vld [vmem:[#allocation36_spill] sm:$0xff] }
 0x8e4   : > { %v9554_v36 = vmul.f32 %v9518_v30, %v18565_v39  ;;  %v9555_v49 = vmul.f32 %v9519_v23, %v18566_v31  ;;  %v9556_v1 = vmul.f32 %v9520_v37, %v18567_v9  ;;  %v9557_v0 = vmul.f32 %v9521_v44, %v18568_v3  ;;  %v18569_v55 = vld [vmem:[#allocation35_spill] sm:$0xff]  ;;  %v18571_v7 = vld [vmem:[#allocation37_spill] sm:$0xff]  ;;  %v18572_v57 = vld [vmem:[#allocation38_spill] sm:$0xff] }
 0x8e5   : > { %v9558_v4 = vmul.f32 %v9522_v33, %v18569_v55  ;;  %v9559_v10 = vmul.f32 %v9523_v56, %v18570_v25  ;;  %v9560_v42 = vmul.f32 %v9524_v48, %v18571_v7  ;;  %v9561_v14 = vmul.f32 %v9525_v50, %v18572_v57  ;;  %v18573_v20 = vld [vmem:[#allocation39_spill] sm:$0xff]  ;;  %v18574_v53 = vld [vmem:[#allocation40_spill] sm:$0xff]  ;;  %v18575_v59 = vld [vmem:[#allocation41_spill] sm:$0xff] }
 0x8e6   : > { %v9562_v27 = vmul.f32 %v9526_v47, %v18573_v20  ;;  %v9563_v26 = vmul.f32 %v9527_v32, %v18574_v53  ;;  %v9564_v30 = vmul.f32 %v9528_v15, %v18575_v59  ;;  %v18576_v39 = vld [vmem:[#allocation42_spill] sm:$0xff]  ;;  %v18577_v31 = vld [vmem:[#allocation43_spill] sm:$0xff]  ;;  %v18578_v9 = vld [vmem:[#allocation44_spill] sm:$0xff] }
 0x8e7   : > { %v9565_v23 = vmul.f32 %v9529_v19, %v18576_v39  ;;  %v9566_v37 = vmul.f32 %v9530_v28, %v18577_v31  ;;  %v9567_v44 = vmul.f32 %v9531_v34, %v18578_v9  ;;  %v18579_v3 = vld [vmem:[#allocation45_spill] sm:$0xff]  ;;  %v18580_v55 = vld [vmem:[#allocation46_spill] sm:$0xff]  ;;  %v18581_v25 = vld [vmem:[#allocation47_spill] sm:$0xff] }
 0x8e8   : > { %v9568_v33 = vmul.f32 %v9532_v17, %v18579_v3  ;;  %v9569_v56 = vmul.f32 %v9533_v58, %v18580_v55  ;;  %v9570_v48 = vmul.f32 %v9534_v51, %v18581_v25  ;;  %v18582_v7 = vld [vmem:[#allocation55_spill] sm:$0xff]  ;;  %v18584_v20 = vld [vmem:[#allocation48_spill] sm:$0xff]  ;;  %v18585_v53 = vld [vmem:[#allocation49_spill] sm:$0xff] }
 0x8e9   : > { %v9578_v50 = vmul.f32 %v9542_v11, %v18582_v7  ;;  %v18583_v57 = vld [vmem:[#allocation59_spill] sm:$0xff]  ;;  %v9571_v32 = vmul.f32 %v9535_v38, %v18584_v20  ;;  %v9572_v15 = vmul.f32 %v9536_v8, %v18585_v53  ;;  %v18586_v59 = vld [vmem:[#allocation50_spill] sm:$0xff]  ;;  %v18588_v31 = vld [vmem:[#allocation52_spill] sm:$0xff] }
 0x8ea   : > { %v9582_v47 = vmul.f32 %v9546_v22, %v18583_v57  ;;  %v9573_v19 = vmul.f32 %v9537_v46, %v18586_v59  ;;  %v18587_v39 = vld [vmem:[#allocation51_spill] sm:$0xff]  ;;  %v9575_v34 = vmul.f32 %v9539_v43, %v18588_v31  ;;  %v18589_v9 = vld [vmem:[#allocation53_spill] sm:$0xff]  ;;  %v18590_v3 = vld [vmem:[#allocation54_spill] sm:$0xff] }
 0x8eb   : > { %v9574_v28 = vmul.f32 %v9538_v40, %v18587_v39  ;;  %v9576_v17 = vmul.f32 %v9540_v16, %v18589_v9  ;;  %v9577_v58 = vmul.f32 %v9541_v41, %v18590_v3  ;;  %v18591_v55 = vld [vmem:[#allocation69_spill] sm:$0xff]  ;;  %v18592_v25 = vld [vmem:[#allocation72_spill] sm:$0xff]  ;;  %v18593_v22 = vld [vmem:[#allocation71_spill] sm:$0xff]  ;;  %v17405_v41 = vadd.f32 %v9759_v63, %v9578_v50 }
 0x8ec   : > { %v9804_v51 = vadd.f32 %v18591_v55, %v9547_v6  ;;  %v17388_v11 = vadd.f32 %v18592_v25, %v9548_v60  ;;  %v17391_v7 = vadd.f32 %v18593_v22, %v9549_v61  ;;  %v18594_v38 = vld [vmem:[#allocation70_spill] sm:$0xff]  ;;  %v18596_v40 = vld [vmem:[#allocation75_spill] sm:$0xff]  ;;  %v18597_v16 = vld [vmem:[#allocation73_spill] sm:$0xff]  ;;  %v17407_v6 = vadd.f32 %v9767_v12, %v9582_v47 }
 0x8ed   : > { %v17394_v8 = vadd.f32 %v18594_v38, %v9550_v5  ;;  %v18595_v46 = vld [vmem:[#allocation74_spill] sm:$0xff]  ;;  %v17400_v43 = vadd.f32 %v18596_v40, %v9552_v52  ;;  %v17403_v20 = vadd.f32 %v18597_v16, %v9553_v54  ;;  %v18598_v60 = vld [vmem:[#allocation76_spill] sm:$0xff]  ;;  %v18602_v52 = vld [vmem:[#allocation79_spill] sm:$0xff] }
 0x8ee   : > { %v17397_v57 = vadd.f32 %v18595_v46, %v9551_v45  ;;  %v17410_v53 = vadd.f32 %v18598_v60, %v9554_v36  ;;  %v18599_v61 = vld [vmem:[#allocation78_spill] sm:$0xff]  ;;  %v18600_v5 = vld [vmem:[#allocation80_spill] sm:$0xff]  ;;  %v18601_v45 = vld [vmem:[#allocation77_spill] sm:$0xff]  ;;  %v17422_v9 = vadd.f32 %v18602_v52, %v9558_v4  ;;  %v17443_v4 = vadd.f32 %v17286_v21, %v9565_v23 }
 0x8ef   : > { %v17413_v59 = vadd.f32 %v18599_v61, %v9555_v49  ;;  %v17416_v39 = vadd.f32 %v18600_v5, %v9556_v1  ;;  %v17419_v31 = vadd.f32 %v18601_v45, %v9557_v0  ;;  %v18603_v54 = vld [vmem:[#allocation83_spill] sm:$0xff]  ;;  %v18604_v12 = vld [vmem:[#allocation85_spill] sm:$0xff]  ;;  %v18606_v49 = vld [vmem:[#allocation84_spill] sm:$0xff]  ;;  %v17437_v1 = vadd.f32 %v17291_v35, %v9563_v26 }
 0x8f0   : > { %v17425_v63 = vadd.f32 %v18603_v54, %v9559_v10  ;;  %v17428_v50 = vadd.f32 %v18604_v12, %v9560_v42  ;;  %v18605_v36 = vld [vmem:[#allocation81_spill] sm:$0xff]  ;;  %v17434_v3 = vadd.f32 %v18606_v49, %v9562_v27  ;;  %v17440_v0 = vadd.f32 %v17296_v24, %v9564_v30  ;;  %v18607_v24 = vld [vmem:[#allocation94_spill] sm:$0xff]  ;;  %v18608_v21 = vld [vmem:[#allocation95_spill] sm:$0xff] }
 0x8f1   : > { %v17431_v47 = vadd.f32 %v18605_v36, %v9561_v14  ;;  %v17446_v10 = vadd.f32 %v17303_v18, %v9566_v37  ;;  %v17449_v42 = vadd.f32 %v17313_v29, %v9567_v44  ;;  %v17452_v14 = vadd.f32 %v17318_v62, %v9568_v33  ;;  %v18609_v18 = vld [vmem:[#allocation93_spill] sm:$0xff]  ;;  %v18610_v29 = vld [vmem:[#allocation96_spill] sm:$0xff]  ;;  %v18611_v62 = vld [vmem:[#allocation98_spill] sm:$0xff] }
 0x8f2   : > { %v17455_v27 = vadd.f32 %v17308_v2, %v9569_v56  ;;  %v17458_v35 = vadd.f32 %v17323_v13, %v9570_v48  ;;  %v17461_v26 = vadd.f32 %v18607_v24, %v9571_v32  ;;  %v17464_v30 = vadd.f32 %v18608_v21, %v9572_v15  ;;  %v18612_v2 = vld [vmem:[#allocation99_spill] sm:$0xff]  ;;  %v18613_v48 = vld [vmem:[#allocation97_spill] sm:$0xff] }
 0x8f3   : > { %v17467_v23 = vadd.f32 %v18609_v18, %v9573_v19  ;;  %v17470_v37 = vadd.f32 %v18610_v29, %v9574_v28  ;;  %v17473_v44 = vadd.f32 %v18611_v62, %v9575_v34  ;;  %v17476_v33 = vadd.f32 %v18612_v2, %v9576_v17 }
 0x8f4   : > { %vm9840_vm12 = vcmp.ge.f32.partialorder %v9804_v51, 0.0  ;;  %vm9841_vm2 = vcmp.ge.f32.partialorder %v17388_v11, 0.0  ;;  %vm9842_vm3 = vcmp.ge.f32.partialorder %v17391_v7, 0.0  ;;  %vm9843_vm7 = vcmp.ge.f32.partialorder %v17394_v8, 0.0 }
 0x8f5   : > { %vm9844_vm1 = vcmp.ge.f32.partialorder %v17397_v57, 0.0  ;;  %v9876_v13 = vmul.f32 0.01, %v9804_v51  ;;  %v9877_v56 = vmul.f32 0.01, %v17388_v11  ;;  %v17491_v32 = vadd.f32 %v18613_v48, %v9577_v58 }
 0x8f6   : > { %vm9853_vm5 = vcmp.ge.f32.partialorder %v17428_v50, 0.0  ;;  %v9878_v15 = vmul.f32 0.01, %v17391_v7  ;;  %v9879_v19 = vmul.f32 0.01, %v17394_v8  ;;  %vm9858_vm8 = vcmp.ge.f32.partialorder %v17443_v4, 0.0 }
 0x8f7   : > { %v9880_v28 = vmul.f32 0.01, %v17397_v57  ;;  %vm9859_vm4 = vcmp.ge.f32.partialorder %v17446_v10, 0.0  ;;  %v9881_v34 = vmul.f32 0.01, %v17400_v43  ;;  %v17508_v55 = vsel %vm9840_vm12, %v9804_v51, %v9876_v13 }
 0x8f8   : > { %v9882_v17 = vmul.f32 0.01, %v17403_v20  ;;  %v9883_v58 = vmul.f32 0.01, %v17410_v53  ;;  %vm9863_vm0 = vcmp.ge.f32.partialorder %v17458_v35, 0.0  ;;  %v17520_v46 = vsel %vm9841_vm2, %v17388_v11, %v9877_v56 }
 0x8f9   : > { %v9884_v25 = vmul.f32 0.01, %v17413_v59  ;;  %v9885_v22 = vmul.f32 0.01, %v17416_v39  ;;  %v9886_v38 = vmul.f32 0.01, %v17419_v31  ;;  %v9914_v60 = vsel %vm9842_vm3, %v17391_v7, %v9878_v15 }
 0x8fa   : > { %vm9867_vm10 = vcmp.ge.f32.partialorder %v17470_v37, 0.0  ;;  %v9887_v51 = vmul.f32 0.01, %v17422_v9  ;;  %v9888_v40 = vmul.f32 0.01, %v17425_v63  ;;  %vm9868_vm2 = vcmp.ge.f32.partialorder %v17473_v44, 0.0 }
 0x8fb   : > { %v9889_v16 = vmul.f32 0.01, %v17428_v50  ;;  %vm9869_vm12 = vcmp.ge.f32.partialorder %v17476_v33, 0.0  ;;  %v9890_v11 = vmul.f32 0.01, %v17431_v47  ;;  %v9915_v45 = vsel %vm9843_vm7, %v17394_v8, %v9879_v19 }
 0x8fc   : > { %v9891_v61 = vmul.f32 0.01, %v17434_v3  ;;  %v9892_v5 = vmul.f32 0.01, %v17437_v1  ;;  %v9893_v7 = vmul.f32 0.01, %v17440_v0  ;;  %v9916_v12 = vsel %vm9844_vm1, %v17397_v57, %v9880_v28 }
 0x8fd   : > { %v9894_v52 = vmul.f32 0.01, %v17443_v4  ;;  %v9895_v54 = vmul.f32 0.01, %v17446_v10  ;;  %v9896_v36 = vmul.f32 0.01, %v17449_v42 }
 0x8fe   : > { %v9897_v49 = vmul.f32 0.01, %v17452_v14  ;;  %v9898_v24 = vmul.f32 0.01, %v17455_v27  ;;  %vm18614_vm7 = vcmp.ge.f32.partialorder %v17400_v43, 0.0  ;;  %vm18615_vm3 = vcmp.ge.f32.partialorder %v17403_v20, 0.0 }
 0x8ff   : > { %v9917_v8 = vsel %vm18614_vm7, %v17400_v43, %v9881_v34  ;;  %v9899_v21 = vmul.f32 0.01, %v17458_v35  ;;  %v9900_v18 = vmul.f32 0.01, %v17461_v26  ;;  %v9901_v29 = vmul.f32 0.01, %v17464_v30 }
 0x900   : > { %v9918_v57 = vsel %vm18615_vm3, %v17403_v20, %v9882_v17  ;;  %v9902_v62 = vmul.f32 0.01, %v17467_v23  ;;  %v9903_v2 = vmul.f32 0.01, %v17470_v37  ;;  %v9904_v13 = vmul.f32 0.01, %v17473_v44 }
 0x901   : > { %vm18616_vm1 = vcmp.ge.f32.partialorder %v17410_v53, 0.0  ;;  %v9905_v56 = vmul.f32 0.01, %v17476_v33  ;;  %v9906_v48 = vmul.f32 0.01, %v17491_v32  ;;  %vm18617_vm7 = vcmp.ge.f32.partialorder %v17413_v59, 0.0 }
 0x902   : > { %v9919_v43 = vsel %vm18616_vm1, %v17410_v53, %v9883_v58  ;;  %v9907_v15 = vmul.f32 0.01, %v17405_v41  ;;  %v9920_v20 = vsel %vm18617_vm7, %v17413_v59, %v9884_v25  ;;  %v9911_v19 = vmul.f32 0.01, %v17407_v6 }
 0x903   : > { %vm18618_vm3 = vcmp.ge.f32.partialorder %v17416_v39, 0.0  ;;  %vm18619_vm11 = vcmp.ge.f32.partialorder %v17419_v31, 0.0  ;;  %vm18620_vm1 = vcmp.ge.f32.partialorder %v17422_v9, 0.0  ;;  %vm18621_vm6 = vcmp.ge.f32.partialorder %v17425_v63, 0.0 }
 0x904   : > { %v9921_v28 = vsel %vm18618_vm3, %v17416_v39, %v9885_v22  ;;  %v9922_v53 = vsel %vm18619_vm11, %v17419_v31, %v9886_v38  ;;  %v9923_v34 = vsel %vm18620_vm1, %v17422_v9, %v9887_v51  ;;  %v9924_v17 = vsel %vm18621_vm6, %v17425_v63, %v9888_v40 }
 0x905   : > { %v9925_v59 = vsel %vm9853_vm5, %v17428_v50, %v9889_v16  ;;  %vm18622_vm7 = vcmp.ge.f32.partialorder %v17431_v47, 0.0  ;;  %vm18623_vm3 = vcmp.ge.f32.partialorder %v17434_v3, 0.0  ;;  %vm18624_vm11 = vcmp.ge.f32.partialorder %v17437_v1, 0.0 }
 0x906   : > { %v9926_v39 = vsel %vm18622_vm7, %v17431_v47, %v9890_v11  ;;  %v9927_v31 = vsel %vm18623_vm3, %v17434_v3, %v9891_v61  ;;  %v9928_v9 = vsel %vm18624_vm11, %v17437_v1, %v9892_v5  ;;  %vm18625_vm1 = vcmp.ge.f32.partialorder %v17440_v0, 0.0 }
 0x907   : > { %v9929_v63 = vsel %vm18625_vm1, %v17440_v0, %v9893_v7  ;;  %v9930_v50 = vsel %vm9858_vm8, %v17443_v4, %v9894_v52  ;;  %v9931_v47 = vsel %vm9859_vm4, %v17446_v10, %v9895_v54  ;;  %vm18626_vm5 = vcmp.ge.f32.partialorder %v17449_v42, 0.0 }
 0x908   : > { %v9932_v3 = vsel %vm18626_vm5, %v17449_v42, %v9896_v36  ;;  %vm18627_vm6 = vcmp.ge.f32.partialorder %v17452_v14, 0.0  ;;  %vm18628_vm7 = vcmp.ge.f32.partialorder %v17455_v27, 0.0  ;;  %v9935_v4 = vsel %vm9863_vm0, %v17458_v35, %v9899_v21 }
 0x909   : > { %v9933_v1 = vsel %vm18627_vm6, %v17452_v14, %v9897_v49  ;;  %v9934_v0 = vsel %vm18628_vm7, %v17455_v27, %v9898_v24  ;;  %vm18629_vm8 = vcmp.ge.f32.partialorder %v17461_v26, 0.0  ;;  %vm18630_vm4 = vcmp.ge.f32.partialorder %v17464_v30, 0.0 }
 0x90a   : > { %v9936_v10 = vsel %vm18629_vm8, %v17461_v26, %v9900_v18  ;;  %v9937_v42 = vsel %vm18630_vm4, %v17464_v30, %v9901_v29  ;;  %vm18631_vm3 = vcmp.ge.f32.partialorder %v17467_v23, 0.0  ;;  %v9939_v27 = vsel %vm9867_vm10, %v17470_v37, %v9903_v2 }
 0x90b   : > { %v9938_v14 = vsel %vm18631_vm3, %v17467_v23, %v9902_v62  ;;  %v9940_v35 = vsel %vm9868_vm2, %v17473_v44, %v9904_v13  ;;  %v9941_v26 = vsel %vm9869_vm12, %v17476_v33, %v9905_v56  ;;  %vm18632_vm0 = vcmp.ge.f32.partialorder %v17491_v32, 0.0 }
 0x90c   : > { %v9942_v30 = vsel %vm18632_vm0, %v17491_v32, %v9906_v48  ;;  %vm18633_vm11 = vcmp.ge.f32.partialorder %v17405_v41, 0.0  ;;  %vm18634_vm1 = vcmp.ge.f32.partialorder %v17407_v6, 0.0  ;;  %v11093_v58 = vpack.c.bf16 %v17508_v55, %v17508_v55 }
 0x90d   : > { %v9943_v23 = vsel %vm18633_vm11, %v17405_v41, %v9907_v15  ;;  %v9947_v37 = vsel %vm18634_vm1, %v17407_v6, %v9911_v19  ;;  %v11094_v44 = vpack.c.bf16 %v17520_v46, %v17520_v46  ;;  %v11095_v25 = vpack.c.bf16 %v9914_v60, %v9914_v60 }
 0x90e   : > { %v11096_v33 = vpack.c.bf16 %v9915_v45, %v9915_v45  ;;  %v11097_v22 = vpack.c.bf16 %v9916_v12, %v9916_v12  ;;  %v11098_v38 = vpack.c.bf16 %v9917_v8, %v9917_v8  ;;  %v17650_v51 = vpack.c.bf16 %v9918_v57, %v9918_v57 }
 0x90f   : > { %v17652_v32 = vpack.c.bf16 %v9919_v43, %v9919_v43  ;;  %v17654_v40 = vpack.c.bf16 %v9920_v20, %v9920_v20  ;;  %v17656_v41 = vpack.c.bf16 %v9921_v28, %v9921_v28  ;;  %v17658_v16 = vpack.c.bf16 %v9922_v53, %v9922_v53 }
 0x910   : > { %v17660_v6 = vpack.c.bf16 %v9923_v34, %v9923_v34  ;;  %v17662_v55 = vpack.c.bf16 %v9924_v17, %v9924_v17  ;;  %v17664_v11 = vpack.c.bf16 %v9925_v59, %v9925_v59  ;;  %v17666_v46 = vpack.c.bf16 %v9926_v39, %v9926_v39 }
 0x911   : > { %v17668_v60 = vpack.c.bf16 %v9927_v31, %v9927_v31  ;;  %v17670_v61 = vpack.c.bf16 %v9928_v9, %v9928_v9  ;;  %v17672_v5 = vpack.c.bf16 %v9929_v63, %v9929_v63  ;;  %v17674_v45 = vpack.c.bf16 %v9930_v50, %v9930_v50 }
 0x912   : > { %v17676_v7 = vpack.c.bf16 %v9931_v47, %v9931_v47  ;;  %v17678_v52 = vpack.c.bf16 %v9932_v3, %v9932_v3  ;;  %v17680_v54 = vpack.c.bf16 %v9933_v1, %v9933_v1  ;;  %v17682_v12 = vpack.c.bf16 %v9934_v0, %v9934_v0 }
 0x913   : > { %v17684_v36 = vpack.c.bf16 %v9935_v4, %v9935_v4  ;;  %v17686_v49 = vpack.c.bf16 %v9936_v10, %v9936_v10  ;;  %v17688_v24 = vpack.c.bf16 %v9937_v42, %v9937_v42  ;;  %v17690_v8 = vpack.c.bf16 %v9938_v14, %v9938_v14 }
 0x914   : > { %v17692_v21 = vpack.c.bf16 %v9939_v27, %v9939_v27  ;;  %v17694_v18 = vpack.c.bf16 %v9940_v35, %v9940_v35  ;;  %v17696_v29 = vpack.c.bf16 %v9941_v26, %v9941_v26  ;;  %v17698_v57 = vpack.c.bf16 %v9942_v30, %v9942_v30 }
 0x915   : > { %v17700_v62 = vpack.c.bf16 %v9943_v23, %v9943_v23  ;;  %v17702_v2 = vpack.c.bf16 %v9947_v37, %v9947_v37  ;;  %v10062_v13 = vshrl.u32 %v11093_v58, 16  ;;  %v10065_v43 = vshll.u32 %v11093_v58, 16 }
 0x916   : > { %v10071_v56 = vshrl.u32 %v11094_v44, 16  ;;  %v10074_v48 = vshll.u32 %v11094_v44, 16  ;;  %v10081_v15 = vshrl.u32 %v11095_v25, 16  ;;  %v10084_v20 = vshll.u32 %v11095_v25, 16 }
 0x917   : > { %v10064_v19 = vrot.slane %v10062_v13, 6  ;;  %v10067_v28 = vrot.slane %v10065_v43, 7  ;;  %v10091_v53 = vshrl.u32 %v11096_v33, 16  ;;  %v10094_v34 = vshll.u32 %v11096_v33, 16 }
 0x918   : > { %v10073_v17 = vrot.slane %v10071_v56, 6  ;;  %v10076_v59 = vrot.slane %v10074_v48, 7  ;;  %v10083_v39 = vrot.slane %v10081_v15, 6  ;;  %v10086_v31 = vrot.slane %v10084_v20, 7 }
 0x919   : > { %v17704_v9 = vor.u32 %v10067_v28, %v10064_v19  ;;  %v10093_v63 = vrot.slane %v10091_v53, 6  ;;  %v10096_v50 = vrot.slane %v10094_v34, 7  ;;  %v10101_v47 = vshrl.u32 %v11097_v22, 16 }
 0x91a   : > { %v10077_v3 = vor.u32 %v10076_v59, %v10073_v17  ;;  %v10087_v1 = vor.u32 %v10086_v31, %v10083_v39  ;;  %v10104_v0 = vshll.u32 %v11097_v22, 16  ;;  %v10111_v4 = vshrl.u32 %v11098_v38, 16 }
 0x91b   : > { %v10069_v10 = vrot.slane %v17704_v9, 4  ;;  %v10097_v42 = vor.u32 %v10096_v50, %v10093_v63  ;;  %v10103_v14 = vrot.slane %v10101_v47, 6  ;;  %v10114_v27 = vshll.u32 %v11098_v38, 16 }
 0x91c   : > { %v10079_v35 = vrot.slane %v10077_v3, 4  ;;  %v10089_v26 = vrot.slane %v10087_v1, 4  ;;  %v10106_v30 = vrot.slane %v10104_v0, 7  ;;  %v10113_v23 = vrot.slane %v10111_v4, 6 }
 0x91d   : > { %v10078_v58 = vsel %vm15402_vm13, %v10069_v10, %v10077_v3  ;;  %v10099_v44 = vrot.slane %v10097_v42, 4  ;;  %v10116_v25 = vrot.slane %v10114_v27, 7  ;;  %v10121_v33 = vshrl.u32 %v17650_v51, 16 }
 0x91e   : > { %v10088_v22 = vsel %vm15402_vm13, %v10079_v35, %v10087_v1  ;;  %v10098_v13 = vsel %vm15402_vm13, %v10089_v26, %v10097_v42  ;;  %v10107_v38 = vor.u32 %v10106_v30, %v10103_v14  ;;  %v10124_v43 = vshll.u32 %v17650_v51, 16  ;;  %10460 = vst [vmem:[%s14769_s12 + $0xc] sm:$0xf] %v10078_v58 }
 0x91f   : > { %v10117_v56 = vor.u32 %v10116_v25, %v10113_v23  ;;  %v10123_v48 = vrot.slane %v10121_v33, 6  ;;  %v10131_v15 = vshrl.u32 %v17652_v32, 16  ;;  %v10134_v20 = vshll.u32 %v17652_v32, 16  ;;  %10461 = vst [vmem:[%s14769_s12 + $0x10] sm:$0xf] %v10088_v22 }
 0x920   : > { %10462 = vst [vmem:[%s14769_s12 + $0x14] sm:$0xf] %v10098_v13  ;;  %v10108_v19 = vsel %vm15402_vm13, %v10099_v44, %v10107_v38  ;;  %v10109_v28 = vrot.slane %v10107_v38, 4  ;;  %v10126_v53 = vrot.slane %v10124_v43, 7  ;;  %v10141_v34 = vshrl.u32 %v17654_v40, 16 }
 0x921   : > { %v10119_v17 = vrot.slane %v10117_v56, 4  ;;  %v10133_v51 = vrot.slane %v10131_v15, 6  ;;  %v10136_v59 = vrot.slane %v10134_v20, 7  ;;  %v10144_v39 = vshll.u32 %v17654_v40, 16  ;;  %10463 = vst [vmem:[%s14769_s12 + $0x18] sm:$0xf] %v10108_v19 }
 0x922   : > { %v10118_v31 = vsel %vm15402_vm13, %v10109_v28, %v10117_v56  ;;  %v10127_v32 = vor.u32 %v10126_v53, %v10123_v48  ;;  %v10143_v63 = vrot.slane %v10141_v34, 6  ;;  %v10151_v50 = vshrl.u32 %v17656_v41, 16 }
 0x923   : > { %v10137_v47 = vor.u32 %v10136_v59, %v10133_v51  ;;  %v10146_v3 = vrot.slane %v10144_v39, 7  ;;  %v10154_v1 = vshll.u32 %v17656_v41, 16  ;;  %v10161_v0 = vshrl.u32 %v17658_v16, 16  ;;  %10464 = vst [vmem:[%s14769_s12 + $0x1c] sm:$0xf] %v10118_v31 }
 0x924   : > { %v10128_v4 = vsel %vm15402_vm13, %v10119_v17, %v10127_v32  ;;  %v10129_v40 = vrot.slane %v10127_v32, 4  ;;  %v10153_v10 = vrot.slane %v10151_v50, 6  ;;  %v10164_v42 = vshll.u32 %v17658_v16, 16 }
 0x925   : > { %v10139_v14 = vrot.slane %v10137_v47, 4  ;;  %v10147_v27 = vor.u32 %v10146_v3, %v10143_v63  ;;  %v10156_v35 = vrot.slane %v10154_v1, 7  ;;  %v10163_v26 = vrot.slane %v10161_v0, 6  ;;  %10465 = vst [vmem:[%s14769_s12 + $0x20] sm:$0xf] %v10128_v4 }
 0x926   : > { %v10138_v41 = vsel %vm15402_vm13, %v10129_v40, %v10137_v47  ;;  %v10166_v30 = vrot.slane %v10164_v42, 7  ;;  %v10171_v23 = vshrl.u32 %v17660_v6, 16  ;;  %v10174_v58 = vshll.u32 %v17660_v6, 16 }
 0x927   : > { %v10148_v44 = vsel %vm15402_vm13, %v10139_v14, %v10147_v27  ;;  %v10149_v25 = vrot.slane %v10147_v27, 4  ;;  %v10157_v33 = vor.u32 %v10156_v35, %v10153_v10  ;;  %v10181_v16 = vshrl.u32 %v17662_v55, 16  ;;  %10466 = vst [vmem:[%s14769_s12 + $0x24] sm:$0xf] %v10138_v41 }
 0x928   : > { %v10167_v22 = vor.u32 %v10166_v30, %v10163_v26  ;;  %v10173_v13 = vrot.slane %v10171_v23, 6  ;;  %v10176_v38 = vrot.slane %v10174_v58, 7  ;;  %v10184_v43 = vshll.u32 %v17662_v55, 16  ;;  %10467 = vst [vmem:[%s14769_s12 + $0x28] sm:$0xf] %v10148_v44 }
 0x929   : > { %v10158_v56 = vsel %vm15402_vm13, %v10149_v25, %v10157_v33  ;;  %v10159_v48 = vrot.slane %v10157_v33, 4  ;;  %v10183_v6 = vrot.slane %v10181_v16, 6  ;;  %v10191_v15 = vshrl.u32 %v17664_v11, 16 }
 0x92a   : > { %v10169_v20 = vrot.slane %v10167_v22, 4  ;;  %v10177_v19 = vor.u32 %v10176_v38, %v10173_v13  ;;  %v10186_v28 = vrot.slane %v10184_v43, 7  ;;  %v10194_v53 = vshll.u32 %v17664_v11, 16  ;;  %10468 = vst [vmem:[%s14769_s12 + $0x2c] sm:$0xf] %v10158_v56 }
 0x92b   : > { %v10168_v34 = vsel %vm15402_vm13, %v10159_v48, %v10167_v22  ;;  %v10193_v55 = vrot.slane %v10191_v15, 6  ;;  %v10201_v17 = vshrl.u32 %v17666_v46, 16  ;;  %v10204_v51 = vshll.u32 %v17666_v46, 16 }
 0x92c   : > { %v10178_v59 = vsel %vm15402_vm13, %v10169_v20, %v10177_v19  ;;  %v10179_v39 = vrot.slane %v10177_v19, 4  ;;  %v10187_v31 = vor.u32 %v10186_v28, %v10183_v6  ;;  %v10196_v32 = vrot.slane %v10194_v53, 7  ;;  %10469 = vst [vmem:[%s14769_s12 + $0x30] sm:$0xf] %v10168_v34 }
 0x92d   : > { %v10203_v63 = vrot.slane %v10201_v17, 6  ;;  %v10206_v50 = vrot.slane %v10204_v51, 7  ;;  %v10211_v11 = vshrl.u32 %v17668_v60, 16  ;;  %v10214_v47 = vshll.u32 %v17668_v60, 16  ;;  %10470 = vst [vmem:[%s14769_s12 + $0x34] sm:$0xf] %v10178_v59 }
 0x92e   : > { %v10188_v3 = vsel %vm15402_vm13, %v10179_v39, %v10187_v31  ;;  %v10189_v1 = vrot.slane %v10187_v31, 4  ;;  %v10197_v46 = vor.u32 %v10196_v32, %v10193_v55  ;;  %v10221_v0 = vshrl.u32 %v17670_v61, 16 }
 0x92f   : > { %v10207_v4 = vor.u32 %v10206_v50, %v10203_v63  ;;  %v10213_v40 = vrot.slane %v10211_v11, 6  ;;  %v10216_v10 = vrot.slane %v10214_v47, 7  ;;  %v10224_v42 = vshll.u32 %v17670_v61, 16  ;;  %10471 = vst [vmem:[%s14769_s12 + $0x38] sm:$0xf] %v10188_v3 }
 0x930   : > { %v10198_v14 = vsel %vm15402_vm13, %v10189_v1, %v10197_v46  ;;  %v10199_v27 = vrot.slane %v10197_v46, 4  ;;  %v10223_v60 = vrot.slane %v10221_v0, 6  ;;  %v10231_v35 = vshrl.u32 %v17672_v5, 16 }
 0x931   : > { %v10209_v26 = vrot.slane %v10207_v4, 4  ;;  %v10217_v41 = vor.u32 %v10216_v10, %v10213_v40  ;;  %v10226_v30 = vrot.slane %v10224_v42, 7  ;;  %v10234_v23 = vshll.u32 %v17672_v5, 16  ;;  %10472 = vst [vmem:[%s14769_s12 + $0x3c] sm:$0xf] %v10198_v14 }
 0x932   : > { %v10208_v58 = vsel %vm15402_vm13, %v10199_v27, %v10207_v4  ;;  %v10233_v61 = vrot.slane %v10231_v35, 6  ;;  %v10241_v44 = vshrl.u32 %v17674_v45, 16  ;;  %v10244_v25 = vshll.u32 %v17674_v45, 16 }
 0x933   : > { %v10218_v33 = vsel %vm15402_vm13, %v10209_v26, %v10217_v41  ;;  %v10219_v16 = vrot.slane %v10217_v41, 4  ;;  %v10227_v22 = vor.u32 %v10226_v30, %v10223_v60  ;;  %v10236_v13 = vrot.slane %v10234_v23, 7  ;;  %10473 = vst [vmem:[%s14769_s12 + $0x40] sm:$0xf] %v10208_v58 }
 0x934   : > { %v10243_v38 = vrot.slane %v10241_v44, 6  ;;  %v10246_v43 = vrot.slane %v10244_v25, 7  ;;  %v10251_v5 = vshrl.u32 %v17676_v7, 16  ;;  %v10254_v56 = vshll.u32 %v17676_v7, 16  ;;  %10474 = vst [vmem:[%s14769_s12 + $0x44] sm:$0xf] %v10218_v33 }
 0x935   : > { %v10228_v48 = vsel %vm15402_vm13, %v10219_v16, %v10227_v22  ;;  %v10229_v6 = vrot.slane %v10227_v22, 4  ;;  %v10237_v45 = vor.u32 %v10236_v13, %v10233_v61  ;;  %v10261_v15 = vshrl.u32 %v17678_v52, 16 }
 0x936   : > { %v10247_v20 = vor.u32 %v10246_v43, %v10243_v38  ;;  %v10253_v19 = vrot.slane %v10251_v5, 6  ;;  %v10256_v28 = vrot.slane %v10254_v56, 7  ;;  %v10264_v53 = vshll.u32 %v17678_v52, 16  ;;  %10475 = vst [vmem:[%s14769_s12 + $0x48] sm:$0xf] %v10228_v48 }
 0x937   : > { %v10238_v34 = vsel %vm15402_vm13, %v10229_v6, %v10237_v45  ;;  %v10239_v55 = vrot.slane %v10237_v45, 4  ;;  %v10263_v7 = vrot.slane %v10261_v15, 6  ;;  %v10271_v17 = vshrl.u32 %v17680_v54, 16 }
 0x938   : > { %v10249_v51 = vrot.slane %v10247_v20, 4  ;;  %v10257_v59 = vor.u32 %v10256_v28, %v10253_v19  ;;  %v10266_v39 = vrot.slane %v10264_v53, 7  ;;  %v10274_v31 = vshll.u32 %v17680_v54, 16  ;;  %10476 = vst [vmem:[%s14769_s12 + $0x4c] sm:$0xf] %v10238_v34 }
 0x939   : > { %v10248_v32 = vsel %vm15402_vm13, %v10239_v55, %v10247_v20  ;;  %v10273_v52 = vrot.slane %v10271_v17, 6  ;;  %v10281_v63 = vshrl.u32 %v17682_v12, 16  ;;  %v10284_v50 = vshll.u32 %v17682_v12, 16 }
 0x93a   : > { %v10258_v11 = vsel %vm15402_vm13, %v10249_v51, %v10257_v59  ;;  %v10259_v47 = vrot.slane %v10257_v59, 4  ;;  %v10267_v3 = vor.u32 %v10266_v39, %v10263_v7  ;;  %v10276_v1 = vrot.slane %v10274_v31, 7  ;;  %10477 = vst [vmem:[%s14769_s12 + $0x50] sm:$0xf] %v10248_v32 }
 0x93b   : > { %v10283_v46 = vrot.slane %v10281_v63, 6  ;;  %v10286_v0 = vrot.slane %v10284_v50, 7  ;;  %v10291_v54 = vshrl.u32 %v17684_v36, 16  ;;  %v10294_v4 = vshll.u32 %v17684_v36, 16  ;;  %10478 = vst [vmem:[%s14769_s12 + $0x54] sm:$0xf] %v10258_v11 }
 0x93c   : > { %v10268_v40 = vsel %vm15402_vm13, %v10259_v47, %v10267_v3  ;;  %v10269_v10 = vrot.slane %v10267_v3, 4  ;;  %v10277_v12 = vor.u32 %v10276_v1, %v10273_v52  ;;  %v10301_v42 = vshrl.u32 %v17686_v49, 16  ;;  %v10457_v3 = vld [vmem:[%s14769_s12 + $0x8] sm:$0xe] }
 0x93d   : > { %v10287_v14 = vor.u32 %v10286_v0, %v10283_v46  ;;  %v10293_v27 = vrot.slane %v10291_v54, 6  ;;  %v10296_v60 = vrot.slane %v10294_v4, 7  ;;  %v10304_v35 = vshll.u32 %v17686_v49, 16  ;;  %10479 = vst [vmem:[%s14769_s12 + $0x58] sm:$0xf] %v10268_v40 }
 0x93e   : > { %v10278_v26 = vsel %vm15402_vm13, %v10269_v10, %v10277_v12  ;;  %v10279_v41 = vrot.slane %v10277_v12, 4  ;;  %v10303_v36 = vrot.slane %v10301_v42, 6  ;;  %v10311_v30 = vshrl.u32 %v17688_v24, 16 }
 0x93f   : > { %v10289_v23 = vrot.slane %v10287_v14, 4  ;;  %v10297_v58 = vor.u32 %v10296_v60, %v10293_v27  ;;  %v10306_v61 = vrot.slane %v10304_v35, 7  ;;  %v10314_v44 = vshll.u32 %v17688_v24, 16  ;;  %10480 = vst [vmem:[%s14769_s12 + $0x5c] sm:$0xf] %v10278_v26 }
 0x940   : > { %v10288_v25 = vsel %vm15402_vm13, %v10279_v41, %v10287_v14  ;;  %v10313_v49 = vrot.slane %v10311_v30, 6  ;;  %v10321_v33 = vshrl.u32 %v17690_v8, 16  ;;  %v10324_v16 = vshll.u32 %v17690_v8, 16  ;;  %v10495_v41 = vld [vmem:[%s14769_s12 + $0x98] sm:$0x1] }
 0x941   : > { %v10298_v22 = vsel %vm15402_vm13, %v10289_v23, %v10297_v58  ;;  %v10299_v13 = vrot.slane %v10297_v58, 4  ;;  %v10307_v38 = vor.u32 %v10306_v61, %v10303_v36  ;;  %v10316_v43 = vrot.slane %v10314_v44, 7  ;;  %10481 = vst [vmem:[%s14769_s12 + $0x60] sm:$0xf] %v10288_v25  ;;  %v18637_v36 = vld [vmem:[#allocation92_spill] sm:$0xff] }
 0x942   : > { %v10323_v5 = vrot.slane %v10321_v33, 6  ;;  %v10326_v56 = vrot.slane %v10324_v16, 7  ;;  %v10331_v24 = vshrl.u32 %v17692_v21, 16  ;;  %v10334_v48 = vshll.u32 %v17692_v21, 16  ;;  %10482 = vst [vmem:[%s14769_s12 + $0x64] sm:$0xf] %v10298_v22 }
 0x943   : > { %v10308_v6 = vsel %vm15402_vm13, %v10299_v13, %v10307_v38  ;;  %v10309_v45 = vrot.slane %v10307_v38, 4  ;;  %v10317_v8 = vor.u32 %v10316_v43, %v10313_v49  ;;  %v10341_v15 = vshrl.u32 %v17694_v18, 16  ;;  %v18639_v22 = vld [vmem:[#allocation91_spill] sm:$0xff] }
 0x944   : > { %v10327_v20 = vor.u32 %v10326_v56, %v10323_v5  ;;  %v10333_v19 = vrot.slane %v10331_v24, 6  ;;  %v10336_v28 = vrot.slane %v10334_v48, 7  ;;  %v10344_v53 = vshll.u32 %v17694_v18, 16  ;;  %10483 = vst [vmem:[%s14769_s12 + $0x68] sm:$0xf] %v10308_v6 }
 0x945   : > { %v10318_v34 = vsel %vm15402_vm13, %v10309_v45, %v10317_v8  ;;  %v10319_v55 = vrot.slane %v10317_v8, 4  ;;  %v10343_v21 = vrot.slane %v10341_v15, 6  ;;  %v10351_v7 = vshrl.u32 %v17696_v29, 16 }
 0x946   : > { %v10329_v17 = vrot.slane %v10327_v20, 4  ;;  %v10337_v51 = vor.u32 %v10336_v28, %v10333_v19  ;;  %v10346_v59 = vrot.slane %v10344_v53, 7  ;;  %v10354_v39 = vshll.u32 %v17696_v29, 16  ;;  %10484 = vst [vmem:[%s14769_s12 + $0x6c] sm:$0xf] %v10318_v34 }
 0x947   : > { %v10328_v18 = vsel %vm15402_vm13, %v10319_v55, %v10327_v20  ;;  %v10353_v31 = vrot.slane %v10351_v7, 6  ;;  %v10361_v32 = vshrl.u32 %v17698_v57, 16  ;;  %v10364_v52 = vshll.u32 %v17698_v57, 16 }
 0x948   : > { %v10338_v63 = vsel %vm15402_vm13, %v10329_v17, %v10337_v51  ;;  %v10339_v50 = vrot.slane %v10337_v51, 4  ;;  %v10347_v11 = vor.u32 %v10346_v59, %v10343_v21  ;;  %v10356_v47 = vrot.slane %v10354_v39, 7  ;;  %10485 = vst [vmem:[%s14769_s12 + $0x70] sm:$0xf] %v10328_v18 }
 0x949   : > { %v10363_v29 = vrot.slane %v10361_v32, 6  ;;  %v10366_v1 = vrot.slane %v10364_v52, 7  ;;  %v10371_v46 = vshrl.u32 %v17700_v62, 16  ;;  %v10374_v0 = vshll.u32 %v17700_v62, 16  ;;  %10486 = vst [vmem:[%s14769_s12 + $0x74] sm:$0xf] %v10338_v63 }
 0x94a   : > { %v10348_v57 = vsel %vm15402_vm13, %v10339_v50, %v10347_v11  ;;  %v10349_v54 = vrot.slane %v10347_v11, 4  ;;  %v10357_v4 = vor.u32 %v10356_v47, %v10353_v31  ;;  %v10411_v40 = vshrl.u32 %v17702_v2, 16 }
 0x94b   : > { %v10367_v10 = vor.u32 %v10366_v1, %v10363_v29  ;;  %v10373_v12 = vrot.slane %v10371_v46, 6  ;;  %v10376_v42 = vrot.slane %v10374_v0, 7  ;;  %v10414_v14 = vshll.u32 %v17702_v2, 16  ;;  %10487 = vst [vmem:[%s14769_s12 + $0x78] sm:$0xf] %v10348_v57 }
 0x94c   : > { %v10358_v27 = vsel %vm15402_vm13, %v10349_v54, %v10357_v4  ;;  %v10359_v62 = vrot.slane %v10357_v4, 4  ;;  %v10413_v60 = vrot.slane %v10411_v40, 6  ;;  %v10458_v26 = vsel %vm15943_vm14, %v17704_v9, %v10457_v3 }
 0x94d   : > { %v10409_v30 = vrot.slane %v18637_v36, 4  ;;  %v10369_v23 = vrot.slane %v10367_v10, 4  ;;  %v10377_v58 = vor.u32 %v10376_v42, %v10373_v12  ;;  %v10416_v2 = vrot.slane %v10414_v14, 7  ;;  %10459 = vst [vmem:[%s14769_s12 + $0x8] sm:$0xe] %v10458_v26 }
 0x94e   : > { %10488 = vst [vmem:[%s14769_s12 + $0x7c] sm:$0xf] %v10358_v27  ;;  %v10368_v61 = vsel %vm15402_vm13, %v10359_v62, %v10367_v10  ;;  %v10419_v44 = vrot.slane %v10413_v60, 4 }
 0x94f   : > { %v10378_v9 = vsel %vm15402_vm13, %v10369_v23, %v10377_v58  ;;  %v10379_v25 = vrot.slane %v10377_v58, 4  ;;  %v10417_v49 = vor.u32 %v10416_v2, %v10413_v60  ;;  %10489 = vst [vmem:[%s14769_s12 + $0x80] sm:$0xf] %v10368_v61 }
 0x950   : > { %10490 = vst [vmem:[%s14769_s12 + $0x84] sm:$0xf] %v10378_v9  ;;  %v10496_v16 = vsel %vm15962_vm15, %v10419_v44, %v10495_v41 }
 0x951   : > { %v10388_v13 = vsel %vm15402_vm13, %v10379_v25, %v18639_v22  ;;  %v10418_v38 = vsel %vm15402_vm13, %v10409_v30, %v10417_v49  ;;  %10497 = vst [vmem:[%s14769_s12 + $0x98] sm:$0x1] %v10496_v16 }
 0x952   : > { %10491 = vst [vmem:[%s14769_s12 + $0x88] sm:$0xf] %v10388_v13  ;;  %10494 = vst [vmem:[%s14769_s12 + $0x94] sm:$0xf] %v10418_v38 }
 0x958   : > { %v10498_v43 = vld [vmem:[%s14769_s12 + $0x98] sm:$0xf] }
 0x959   : > { %v10499_v37 = vsel %vm15989_vm9, 0, %v10498_v43 }
 0x95a   : > { %10500 = vst [vmem:[%s14769_s12 + $0x98] sm:$0xf] %v10499_v37 }
 0x95b   : > { %13914 = shalt.err (!%p13911_p9)
}
 0x95c   : > { %s13915_s1 = scalar_lea.hbm %s17876_s19, 2624  ;;  %s13919_s24 = scalar_lea.hbm %s17934_s8, 5248 }
 0x95d   : > { %p13916_p4 = scmp.ne.s32.totalorder %s17876_s19, %s13915_s1  ;;  %p13920_p5 = scmp.lt.u32.totalorder %s17876_s19, %s17934_s8 }
 0x95e   : > { %p13921_p2 = scmp.lt.u32.totalorder %s13919_s24, %s13915_s1  ;;  %p13923_p10 = scmp.lt.u32.totalorder %s13915_s1, %s17876_s19 }
 0x95f   : > { %p13917_p3 = pnand %p13916_p4, %p18641_p1 }
 0x960   : > { %p13922_p7 = por %p13921_p2, %p13920_p5 }
 0x961   : > { %p13918_p0 = pneg %p13917_p3 }
 0x962   : > { %p13924_p11 = por %p13923_p10, %p13922_p7 }
 0x964   : > { %p13925_p12 = pnand %p13924_p11, %p13918_p0 }
 0x966   : > { %13928 = shalt.err (!%p13925_p12)
}
 0x967   : > { %s13999_s23 = smov 64   ;;  %s14000_s17 = smov 4  }
 0x968   : > { %13228 = dma.vmem_to_hbm [thread:$0]  (%p18641_p1), %s17878_s20, 2624, %s17876_s19, %s10504_s22, %s13999_s23, %s13999_s23, %s14000_s17  }
 0x969 PF: > { %s10532_s26 = sand.u32 1, %s13971_s27   ;;  %p18642_p13 = scmp.ne.s32.totalorder %s18066_s21, 0 }
 0x96a   : > { %p18643_p8 = scmp.ge.s32.totalorder %s13983_s30, 2  ;;  %s10533_s11 = scalar_lea.sflag [#allocation5], %s10532_s26 }
 0x96c   : > { %p13257_p6 = pnand %p18643_p8, %p18642_p13 }
 0x96e   : > { %13966 = dma.done.wait (!%p13257_p6), %s10533_s11, 2624  }
 0x96f   : > { %13968 = vsyncadd (!%p13257_p6), %s10533_s11, 4294964672  ;;  %p25_p9 = scmp.ge.s32.totalorder %s14243_s15, 4   ;;  %s18644_s27 = smov %s13975_s28 }
 0x970   : > { %s18645_s28 = smov %s13979_s29  ;;  %s18646_s29 = smov %s14255_s9 }
 0x971   : > { %s18647_s30 = smov %s14243_s15  ;;  %27 = sbr.rel (!%p25_p9) target bundleno = 12 (0xc), region = 125 }
 0x978   :  { %10538 = vsyncpa [#allocation4], 1 }
 0x979   :  { %10540 = vsyncpa [#allocation4 + $0x1], 1 }
 0x97a   :  { %10541 = vsyncpa [#allocation7], 1 }
 0x97b   :  { %10542 = vsyncpa [#allocation10], 1 }
 0x97c   :  { %10543 = vsyncpa [#allocation13], 1 }
 0x97d   :  { %10544 = vsyncpa [#allocation16], 1 }
 0x97e   :  { %10545 = vsyncpa [#allocation5], 1 }
 0x97f   :  { %10547 = vsyncpa [#allocation5 + $0x1], 1 }

</bundles_post_ra>
